<compile_context>
chip_gen: v7x
topology: tpu7x:2x2x1
jax: 0.10.0
libtpu: 0.0.40
codegen_flags: <defaults>
</compile_context>

<pallas_src>
import functools

import jax
import jax.numpy as jnp
from jax.experimental import pallas as pl
from jax.experimental.pallas import tpu as pltpu

INPUT_DIM = 16
LATENT_DIM = 32
LAYERS_NUM = 3
DROPOUT_P = 0.5
NEG_SLOPE = 0.2
BN_EPS = 1e-5

_VMEM_LIMIT = 32 * 1024 * 1024  # explicit scoped-VMEM budget (far above actual use)


# ---------------------------------------------------------------------------
# In-kernel helpers
# ---------------------------------------------------------------------------
def _leaky_relu(x):
    # max(x, 0.2*x) == LeakyReLU(0.2) for slope < 1: one vmax instead of cmp+select.
    return jnp.maximum(x, NEG_SLOPE * x)


def _partial_stats(z):
    """Fused single-pass per-tile sum / sum-of-squares along the lane (batch) axis."""
    s1 = jnp.sum(z, axis=1, keepdims=True)           # (LATENT, 1)  XLU lane-reduce
    s2 = jnp.sum(z * z, axis=1, keepdims=True)       # (LATENT, 1)
    return jnp.concatenate([s1, s2], axis=0)[None]   # (1, 2*LATENT, 1)


# ---------------------------------------------------------------------------
# Kernels (all activations are (features, batch): features on sublanes, batch on lanes)
# ---------------------------------------------------------------------------
def _input_kernel(a_ref, b_ref, wa_ref, wb_ref, bias_ref, zout_ref, stats_ref):
    """Linear(2*input_dim -> latent) on the split [a; b] inputs (concat-free) + stats."""
    z = (jnp.dot(wa_ref[...], a_ref[...], preferred_element_type=jnp.float32)
         + jnp.dot(wb_ref[...], b_ref[...], preferred_element_type=jnp.float32)
         + bias_ref[...])
    zout_ref[...] = z
    stats_ref[...] = _partial_stats(z)


def _hidden_kernel(apply_mask, *refs):
    """BN(prev) -> LeakyReLU -> (Dropout) -> Linear(latent, latent) + partial stats."""
    if apply_mask:
        z_ref, scale_ref, shift_ref, mask_ref, w_ref, bias_ref, zout_ref, stats_ref = refs
    else:
        z_ref, scale_ref, shift_ref, w_ref, bias_ref, zout_ref, stats_ref = refs
        mask_ref = None
    x = _leaky_relu(z_ref[...] * scale_ref[...] + shift_ref[...])
    if apply_mask:
        x = x * mask_ref[...]
    z = jnp.dot(w_ref[...], x, preferred_element_type=jnp.float32) + bias_ref[...]
    zout_ref[...] = z
    stats_ref[...] = _partial_stats(z)


def _output_kernel(apply_mask, *refs):
    """BN(prev) -> LeakyReLU -> (Dropout) -> Linear(latent, input_dim) -> ReLU."""
    if apply_mask:
        z_ref, scale_ref, shift_ref, mask_ref, w_ref, bias_ref, out_ref = refs
    else:
        z_ref, scale_ref, shift_ref, w_ref, bias_ref, out_ref = refs
        mask_ref = None
    x = _leaky_relu(z_ref[...] * scale_ref[...] + shift_ref[...])
    if apply_mask:
        x = x * mask_ref[...]
    o = jnp.dot(w_ref[...], x, preferred_element_type=jnp.float32) + bias_ref[...]
    out_ref[...] = jnp.maximum(o, 0.0)  # final ReLU (per the v5 spec)


# ---------------------------------------------------------------------------
# Host-side (XLA) glue: combine per-tile partials into the BN affine (scale, shift)
# ---------------------------------------------------------------------------
def _bn_affine_from_partial_stats(pstats, gamma, beta, n):
    sums = jnp.sum(pstats[:, :, 0], axis=0)           # (2*LATENT,)
    mean = sums[:LATENT_DIM] / n
    ex2 = sums[LATENT_DIM:] / n
    var = jnp.maximum(ex2 - mean * mean, 0.0)          # biased (training-mode) variance
    inv_std = jax.lax.rsqrt(var + BN_EPS)
    scale = gamma * inv_std
    shift = beta - mean * scale
    return scale.reshape(LATENT_DIM, 1), shift.reshape(LATENT_DIM, 1)


def _cost(flops, bytes_accessed):
    return pl.CostEstimate(flops=int(flops), transcendentals=0,
                           bytes_accessed=int(bytes_accessed))


# ---------------------------------------------------------------------------
# Forward wrapper
# ---------------------------------------------------------------------------
def setop_block_v5_forward(a, b, params, dropout_masks=None, *, tile_n=2048):
    """Training-mode forward of SetOpBlock_v5.

    a, b: (N, input_dim) float32.
    dropout_masks: optional list of LAYERS_NUM pre-scaled keep masks, each of shape
      (latent_dim, N) with values in {0, 1/(1-p)}; None disables dropout.
    Returns (N, input_dim) float32.
    """
    N = a.shape[0]
    assert a.shape == (N, INPUT_DIM) and b.shape == (N, INPUT_DIM)

    # Largest lane tile that keeps all double-buffered streams tiny in VMEM;
    # fall back to a single full-batch tile if N is not divisible.
    tn = tile_n if (N % tile_n == 0) else N
    num_tiles = N // tn

    f32 = jnp.float32
    aT = a.T.astype(f32)                               # (IN, N)  batch on lanes
    bT = b.T.astype(f32)
    w_in = params["w_in"].astype(f32)                  # (LAT, 2*IN)  PyTorch (out, in)
    w_in_a = w_in[:, :INPUT_DIM]
    w_in_b = w_in[:, INPUT_DIM:]
    b_in = params["b_in"].reshape(LATENT_DIM, 1).astype(f32)
    gammas, betas = params["bn_gamma"], params["bn_beta"]
    w_out = params["w_out"].astype(f32)                # (OUT, LAT)
    b_out = params["b_out"].reshape(INPUT_DIM, 1).astype(f32)

    def act_spec(rows):                                # streamed per batch tile
        return pl.BlockSpec((rows, tn), lambda t: (0, t))

    def const_spec(shape):                             # fetched once, stays resident
        return pl.BlockSpec(shape, lambda t: (0,) * len(shape))

    stats_spec = pl.BlockSpec((1, 2 * LATENT_DIM, 1), lambda t: (t, 0, 0))
    stats_shape = jax.ShapeDtypeStruct((num_tiles, 2 * LATENT_DIM, 1), f32)
    cparams = pltpu.CompilerParams(dimension_semantics=("parallel",),
                                   vmem_limit_bytes=_VMEM_LIMIT)

    # ---- Linear_1(2*in -> latent) on split inputs (no lane concat) + stats ----
    z, pstats = pl.pallas_call(
        _input_kernel,
        grid=(num_tiles,),
        in_specs=[act_spec(INPUT_DIM), act_spec(INPUT_DIM),
                  const_spec((LATENT_DIM, INPUT_DIM)),
                  const_spec((LATENT_DIM, INPUT_DIM)),
                  const_spec((LATENT_DIM, 1))],
        out_specs=[act_spec(LATENT_DIM), stats_spec],
        out_shape=[jax.ShapeDtypeStruct((LATENT_DIM, N), f32), stats_shape],
        compiler_params=cparams,
        cost_estimate=_cost(2 * N * LATENT_DIM * (2 * INPUT_DIM + 2),
                            4 * N * (2 * INPUT_DIM + LATENT_DIM)),
    )(aT, bT, w_in_a, w_in_b, b_in)

    # ---- hidden blocks: BN -> LeakyReLU -> (Dropout) -> Linear(latent, latent) ----
    for i in range(LAYERS_NUM):
        scale, shift = _bn_affine_from_partial_stats(pstats, gammas[i], betas[i], N)
        use_mask = (dropout_masks is not None) and (i >= 1)   # no dropout after BN_1
        wi = params["w_mid"][i].astype(f32)
        bi = params["b_mid"][i].reshape(LATENT_DIM, 1).astype(f32)

        ins = [z, scale, shift]
        in_specs = [act_spec(LATENT_DIM), const_spec((LATENT_DIM, 1)),
                    const_spec((LATENT_DIM, 1))]
        if use_mask:
            ins.append(dropout_masks[i - 1].astype(f32))
            in_specs.append(act_spec(LATENT_DIM))
        ins += [wi, bi]
        in_specs += [const_spec((LATENT_DIM, LATENT_DIM)), const_spec((LATENT_DIM, 1))]

        z, pstats = pl.pallas_call(
            functools.partial(_hidden_kernel, use_mask),
            grid=(num_tiles,),
            in_specs=in_specs,
            out_specs=[act_spec(LATENT_DIM), stats_spec],
            out_shape=[jax.ShapeDtypeStruct((LATENT_DIM, N), f32), stats_shape],
            compiler_params=cparams,
            cost_estimate=_cost(2 * N * LATENT_DIM * (LATENT_DIM + 2) + 6 * N * LATENT_DIM,
                                4 * N * LATENT_DIM * (3 if use_mask else 2)),
        )(*ins)

    # ---- head: BN -> LeakyReLU -> (Dropout) -> Linear(latent, out) -> ReLU ----
    scale, shift = _bn_affine_from_partial_stats(
        pstats, gammas[LAYERS_NUM], betas[LAYERS_NUM], N)
    use_mask = (dropout_masks is not None) and (LAYERS_NUM >= 1)

    ins = [z, scale, shift]
    in_specs = [act_spec(LATENT_DIM), const_spec((LATENT_DIM, 1)),
                const_spec((LATENT_DIM, 1))]
    if use_mask:
        ins.append(dropout_masks[LAYERS_NUM - 1].astype(f32))
        in_specs.append(act_spec(LATENT_DIM))
    ins += [w_out, b_out]
    in_specs += [const_spec((INPUT_DIM, LATENT_DIM)), const_spec((INPUT_DIM, 1))]

    outT = pl.pallas_call(
        functools.partial(_output_kernel, use_mask),
        grid=(num_tiles,),
        in_specs=in_specs,
        out_specs=act_spec(INPUT_DIM),                 # (16, N): lane-dense output store
        out_shape=jax.ShapeDtypeStruct((INPUT_DIM, N), f32),
        compiler_params=cparams,
        cost_estimate=_cost(2 * N * INPUT_DIM * LATENT_DIM + 6 * N * LATENT_DIM,
                            4 * N * (LATENT_DIM * (2 if use_mask else 1) + INPUT_DIM)),
    )(*ins)

    return outT.T                                      # back to (N, input_dim)


# ---------------------------------------------------------------------------
# Parameter init (PyTorch defaults) and pure-JAX reference
# ---------------------------------------------------------------------------
def init_params(key):
    ks = jax.random.split(key, 2 * (LAYERS_NUM + 2))
    it = iter(range(len(ks)))

    def linear(kw, kb, out_d, in_d):
        lim = 1.0 / jnp.sqrt(jnp.float32(in_d))
        w = jax.random.uniform(kw, (out_d, in_d), jnp.float32, -lim, lim)
        b_ = jax.random.uniform(kb, (out_d,), jnp.float32, -lim, lim)
        return w, b_

    w_in, b_in = linear(ks[next(it)], ks[next(it)], LATENT_DIM, 2 * INPUT_DIM)
    w_mid, b_mid = [], []
    for _ in range(LAYERS_NUM):
        w, b_ = linear(ks[next(it)], ks[next(it)], LATENT_DIM, LATENT_DIM)
        w_mid.append(w)
        b_mid.append(b_)
    w_out, b_out = linear(ks[next(it)], ks[next(it)], INPUT_DIM, LATENT_DIM)
    bn_gamma = [jnp.ones((LATENT_DIM,), jnp.float32) for _ in range(LAYERS_NUM + 1)]
    bn_beta = [jnp.zeros((LATENT_DIM,), jnp.float32) for _ in range(LAYERS_NUM + 1)]
    return dict(w_in=w_in, b_in=b_in, w_mid=w_mid, b_mid=b_mid,
                w_out=w_out, b_out=b_out, bn_gamma=bn_gamma, bn_beta=bn_beta)


def _reference(a, b, params, dropout_masks):
    def bn(z, g, bta):
        m = jnp.mean(z, axis=0)
        v = jnp.mean((z - m) ** 2, axis=0)
        return (z - m) * jax.lax.rsqrt(v + BN_EPS) * g + bta

    def leaky(x):
        return jnp.where(x > 0, x, NEG_SLOPE * x)

    ab = jnp.concatenate([a, b], axis=1)
    x = leaky(bn(ab @ params["w_in"].T + params["b_in"],
                 params["bn_gamma"][0], params["bn_beta"][0]))
    for i in range(LAYERS_NUM):
        z = x @ params["w_mid"][i].T + params["b_mid"][i]
        x = leaky(bn(z, params["bn_gamma"][i + 1], params["bn_beta"][i + 1]))
        if dropout_masks is not None:
            x = x * dropout_masks[i].T
    o = x @ params["w_out"].T + params["b_out"]
    return jnp.maximum(o, 0.0)


# ---------------------------------------------------------------------------
if __name__ == "__main__":
    key = jax.random.PRNGKey(0)
    ka, kb, kp, kd = jax.random.split(key, 4)

    N = 4096  # two 2048-lane batch tiles (small: ~256 KiB per input)
    a = jax.random.normal(ka, (N, INPUT_DIM), jnp.float32)
    b = jax.random.normal(kb, (N, INPUT_DIM), jnp.float32)
    params = init_params(kp)

    # Training-mode dropout: pre-scaled keep masks generated outside the kernel so
    # the pure-JAX reference can apply the identical masks.
    mask_keys = jax.random.split(kd, LAYERS_NUM)
    dropout_masks = [
        jax.random.bernoulli(mask_keys[i], 1.0 - DROPOUT_P, (LATENT_DIM, N))
        .astype(jnp.float32) / (1.0 - DROPOUT_P)
        for i in range(LAYERS_NUM)
    ]

    fwd = jax.jit(lambda a_, b_, m_: setop_block_v5_forward(a_, b_, params, m_))
    out = jax.block_until_ready(fwd(a, b, dropout_masks))

    ref = _reference(a, b, params, dropout_masks)
    assert out.shape == (N, INPUT_DIM)
    # Slightly relaxed tolerance: the kernel's two-phase BN uses E[x^2]-mean^2 from
    # per-tile partial sums, the reference uses the centered formula.
    assert jnp.allclose(out, ref, atol=5e-4, rtol=5e-4), "mismatch vs pure-JAX reference"

    print("KERNEL_OK")
</pallas_src>

<mosaic_0001>
module attributes {stable_mosaic.version = 11 : i64} {
  func.func @_input_kernel(%arg0: i32, %arg1: memref<16x2048xf32, #tpu.memory_space<vmem>>, %arg2: memref<16x2048xf32, #tpu.memory_space<vmem>>, %arg3: memref<32x16xf32, #tpu.memory_space<vmem>>, %arg4: memref<32x16xf32, #tpu.memory_space<vmem>>, %arg5: memref<32x1xf32, #tpu.memory_space<vmem>>, %arg6: memref<32x2048xf32, #tpu.memory_space<vmem>>, %arg7: memref<1x64x1xf32, #tpu.memory_space<vmem>>) attributes {dimension_semantics = [#tpu.dimension_semantics<parallel>], iteration_bounds = array<i64: 2>, scalar_prefetch = 0 : i64, scratch_operands = 0 : i64, tpu.core_type = #tpu.core_type<tc>, window_params = [{transform_indices = @transform_0, window_bounds = array<i64: 16, 2048>}, {transform_indices = @transform_1, window_bounds = array<i64: 16, 2048>}, {pipeline_mode = #tpu.pipeline_mode<synchronous>, transform_indices = @transform_2, window_bounds = array<i64: 32, 16>}, {pipeline_mode = #tpu.pipeline_mode<synchronous>, transform_indices = @transform_3, window_bounds = array<i64: 32, 16>}, {pipeline_mode = #tpu.pipeline_mode<synchronous>, transform_indices = @transform_4, window_bounds = array<i64: 32, 1>}, {transform_indices = @transform_5, window_bounds = array<i64: 32, 2048>}, {transform_indices = @transform_6, window_bounds = array<i64: 1, 64, 1>}]} {
    %c0 = arith.constant 0 : index
    %c0_0 = arith.constant 0 : index
    %0 = vector.load %arg3[%c0, %c0_0] : memref<32x16xf32, #tpu.memory_space<vmem>>, vector<32x16xf32>
    %c0_1 = arith.constant 0 : index
    %c0_2 = arith.constant 0 : index
    %1 = vector.load %arg1[%c0_1, %c0_2] : memref<16x2048xf32, #tpu.memory_space<vmem>>, vector<16x2048xf32>
    %cst = arith.constant dense<0.000000e+00> : vector<32x2048xf32>
    %2 = tpu.matmul %0, %1, %cst {dimension_numbers = #tpu.dot_dimension_numbers<[1], [0], [0], [1], [0, 0, 1, 1], [], []>} : vector<32x16xf32>, vector<16x2048xf32>, vector<32x2048xf32> -> vector<32x2048xf32>
    %c0_3 = arith.constant 0 : index
    %c0_4 = arith.constant 0 : index
    %3 = vector.load %arg4[%c0_3, %c0_4] : memref<32x16xf32, #tpu.memory_space<vmem>>, vector<32x16xf32>
    %c0_5 = arith.constant 0 : index
    %c0_6 = arith.constant 0 : index
    %4 = vector.load %arg2[%c0_5, %c0_6] : memref<16x2048xf32, #tpu.memory_space<vmem>>, vector<16x2048xf32>
    %cst_7 = arith.constant dense<0.000000e+00> : vector<32x2048xf32>
    %5 = tpu.matmul %3, %4, %cst_7 {dimension_numbers = #tpu.dot_dimension_numbers<[1], [0], [0], [1], [0, 0, 1, 1], [], []>} : vector<32x16xf32>, vector<16x2048xf32>, vector<32x2048xf32> -> vector<32x2048xf32>
    %6 = arith.addf %2, %5 : vector<32x2048xf32>
    %c0_8 = arith.constant 0 : index
    %c0_9 = arith.constant 0 : index
    %7 = vector.load %arg5[%c0_8, %c0_9] : memref<32x1xf32, #tpu.memory_space<vmem>>, vector<32x1xf32>
    %8 = vector.broadcast %7 : vector<32x1xf32> to vector<32x2048xf32>
    %9 = arith.addf %6, %8 : vector<32x2048xf32>
    %c0_10 = arith.constant 0 : index
    %c0_11 = arith.constant 0 : index
    %10 = vector.load %arg6[%c0_10, %c0_11] : memref<32x2048xf32, #tpu.memory_space<vmem>>, vector<32x2048xf32>
    tpu.vector_store %arg6[%c0_10, %c0_11], %9 {strides = array<i32>} : memref<32x2048xf32, #tpu.memory_space<vmem>>, vector<32x2048xf32>,
    %cst_12 = arith.constant dense<0.000000e+00> : vector<32xf32>
    %11 = vector.multi_reduction <add>, %9, %cst_12 [1] : vector<32x2048xf32> to vector<32xf32>
    %12 = vector.shape_cast %11 : vector<32xf32> to vector<32x1xf32>
    %13 = arith.mulf %9, %9 : vector<32x2048xf32>
    %cst_13 = arith.constant dense<0.000000e+00> : vector<32xf32>
    %14 = vector.multi_reduction <add>, %13, %cst_13 [1] : vector<32x2048xf32> to vector<32xf32>
    %15 = vector.shape_cast %14 : vector<32xf32> to vector<32x1xf32>
    %16 = tpu.concatenate %12, %15 in 0 : vector<32x1xf32>, vector<32x1xf32> -> vector<64x1xf32>
    %17 = vector.shape_cast %16 : vector<64x1xf32> to vector<1x64x1xf32>
    %c0_14 = arith.constant 0 : index
    %c0_15 = arith.constant 0 : index
    %c0_16 = arith.constant 0 : index
    %18 = vector.load %arg7[%c0_14, %c0_15, %c0_16] : memref<1x64x1xf32, #tpu.memory_space<vmem>>, vector<1x64x1xf32>
    tpu.vector_store %arg7[%c0_14, %c0_15, %c0_16], %17 {strides = array<i32>} : memref<1x64x1xf32, #tpu.memory_space<vmem>>, vector<1x64x1xf32>,
    return
  }
  func.func @transform_0(%arg0: i32) -> (i32, i32) {
    %c0_i32 = arith.constant 0 : i32
    %c0_i32_0 = arith.constant 0 : i32
    return %c0_i32, %arg0 : i32, i32
  }
  func.func @transform_1(%arg0: i32) -> (i32, i32) {
    %c0_i32 = arith.constant 0 : i32
    %c0_i32_0 = arith.constant 0 : i32
    return %c0_i32, %arg0 : i32, i32
  }
  func.func @transform_2(%arg0: i32) -> (i32, i32) {
    %c0_i32 = arith.constant 0 : i32
    %c0_i32_0 = arith.constant 0 : i32
    %c0_i32_1 = arith.constant 0 : i32
    return %c0_i32, %c0_i32_0 : i32, i32
  }
  func.func @transform_3(%arg0: i32) -> (i32, i32) {
    %c0_i32 = arith.constant 0 : i32
    %c0_i32_0 = arith.constant 0 : i32
    %c0_i32_1 = arith.constant 0 : i32
    return %c0_i32, %c0_i32_0 : i32, i32
  }
  func.func @transform_4(%arg0: i32) -> (i32, i32) {
    %c0_i32 = arith.constant 0 : i32
    %c0_i32_0 = arith.constant 0 : i32
    %c0_i32_1 = arith.constant 0 : i32
    return %c0_i32, %c0_i32_0 : i32, i32
  }
  func.func @transform_5(%arg0: i32) -> (i32, i32) {
    %c0_i32 = arith.constant 0 : i32
    %c0_i32_0 = arith.constant 0 : i32
    return %c0_i32, %arg0 : i32, i32
  }
  func.func @transform_6(%arg0: i32) -> (i32, i32, i32) {
    %c0_i32 = arith.constant 0 : i32
    %c0_i32_0 = arith.constant 0 : i32
    %c0_i32_1 = arith.constant 0 : i32
    return %arg0, %c0_i32, %c0_i32_0 : i32, i32, i32
  }
}

module attributes {stable_mosaic.version = 11 : i64} {
  func.func @_output_kernel(%arg0: i32, %arg1: memref<32x2048xf32, #tpu.memory_space<vmem>>, %arg2: memref<32x1xf32, #tpu.memory_space<vmem>>, %arg3: memref<32x1xf32, #tpu.memory_space<vmem>>, %arg4: memref<32x2048xf32, #tpu.memory_space<vmem>>, %arg5: memref<16x32xf32, #tpu.memory_space<vmem>>, %arg6: memref<16x1xf32, #tpu.memory_space<vmem>>, %arg7: memref<16x2048xf32, #tpu.memory_space<vmem>>) attributes {dimension_semantics = [#tpu.dimension_semantics<parallel>], iteration_bounds = array<i64: 2>, scalar_prefetch = 0 : i64, scratch_operands = 0 : i64, tpu.core_type = #tpu.core_type<tc>, window_params = [{transform_indices = @transform_0, window_bounds = array<i64: 32, 2048>}, {pipeline_mode = #tpu.pipeline_mode<synchronous>, transform_indices = @transform_1, window_bounds = array<i64: 32, 1>}, {pipeline_mode = #tpu.pipeline_mode<synchronous>, transform_indices = @transform_2, window_bounds = array<i64: 32, 1>}, {transform_indices = @transform_3, window_bounds = array<i64: 32, 2048>}, {pipeline_mode = #tpu.pipeline_mode<synchronous>, transform_indices = @transform_4, window_bounds = array<i64: 16, 32>}, {pipeline_mode = #tpu.pipeline_mode<synchronous>, transform_indices = @transform_5, window_bounds = array<i64: 16, 1>}, {transform_indices = @transform_6, window_bounds = array<i64: 16, 2048>}]} {
    %c0 = arith.constant 0 : index
    %c0_0 = arith.constant 0 : index
    %0 = vector.load %arg1[%c0, %c0_0] : memref<32x2048xf32, #tpu.memory_space<vmem>>, vector<32x2048xf32>
    %c0_1 = arith.constant 0 : index
    %c0_2 = arith.constant 0 : index
    %1 = vector.load %arg2[%c0_1, %c0_2] : memref<32x1xf32, #tpu.memory_space<vmem>>, vector<32x1xf32>
    %2 = vector.broadcast %1 : vector<32x1xf32> to vector<32x2048xf32>
    %3 = arith.mulf %0, %2 : vector<32x2048xf32>
    %c0_3 = arith.constant 0 : index
    %c0_4 = arith.constant 0 : index
    %4 = vector.load %arg3[%c0_3, %c0_4] : memref<32x1xf32, #tpu.memory_space<vmem>>, vector<32x1xf32>
    %5 = vector.broadcast %4 : vector<32x1xf32> to vector<32x2048xf32>
    %6 = arith.addf %3, %5 : vector<32x2048xf32>
    %cst = arith.constant 2.000000e-01 : f32
    %7 = vector.broadcast %cst : f32 to vector<32x2048xf32>
    %8 = arith.mulf %7, %6 : vector<32x2048xf32>
    %9 = arith.maximumf %6, %8 : vector<32x2048xf32>
    %c0_5 = arith.constant 0 : index
    %c0_6 = arith.constant 0 : index
    %10 = vector.load %arg4[%c0_5, %c0_6] : memref<32x2048xf32, #tpu.memory_space<vmem>>, vector<32x2048xf32>
    %11 = arith.mulf %9, %10 : vector<32x2048xf32>
    %c0_7 = arith.constant 0 : index
    %c0_8 = arith.constant 0 : index
    %12 = vector.load %arg5[%c0_7, %c0_8] : memref<16x32xf32, #tpu.memory_space<vmem>>, vector<16x32xf32>
    %cst_9 = arith.constant dense<0.000000e+00> : vector<16x2048xf32>
    %13 = tpu.matmul %12, %11, %cst_9 {dimension_numbers = #tpu.dot_dimension_numbers<[1], [0], [0], [1], [0, 0, 1, 1], [], []>} : vector<16x32xf32>, vector<32x2048xf32>, vector<16x2048xf32> -> vector<16x2048xf32>
    %c0_10 = arith.constant 0 : index
    %c0_11 = arith.constant 0 : index
    %14 = vector.load %arg6[%c0_10, %c0_11] : memref<16x1xf32, #tpu.memory_space<vmem>>, vector<16x1xf32>
    %15 = vector.broadcast %14 : vector<16x1xf32> to vector<16x2048xf32>
    %16 = arith.addf %13, %15 : vector<16x2048xf32>
    %cst_12 = arith.constant 0.000000e+00 : f32
    %17 = vector.broadcast %cst_12 : f32 to vector<16x2048xf32>
    %18 = arith.maximumf %16, %17 : vector<16x2048xf32>
    %c0_13 = arith.constant 0 : index
    %c0_14 = arith.constant 0 : index
    %19 = vector.load %arg7[%c0_13, %c0_14] : memref<16x2048xf32, #tpu.memory_space<vmem>>, vector<16x2048xf32>
    tpu.vector_store %arg7[%c0_13, %c0_14], %18 {strides = array<i32>} : memref<16x2048xf32, #tpu.memory_space<vmem>>, vector<16x2048xf32>,
    return
  }
  func.func @transform_0(%arg0: i32) -> (i32, i32) {
    %c0_i32 = arith.constant 0 : i32
    %c0_i32_0 = arith.constant 0 : i32
    return %c0_i32, %arg0 : i32, i32
  }
  func.func @transform_1(%arg0: i32) -> (i32, i32) {
    %c0_i32 = arith.constant 0 : i32
    %c0_i32_0 = arith.constant 0 : i32
    %c0_i32_1 = arith.constant 0 : i32
    return %c0_i32, %c0_i32_0 : i32, i32
  }
  func.func @transform_2(%arg0: i32) -> (i32, i32) {
    %c0_i32 = arith.constant 0 : i32
    %c0_i32_0 = arith.constant 0 : i32
    %c0_i32_1 = arith.constant 0 : i32
    return %c0_i32, %c0_i32_0 : i32, i32
  }
  func.func @transform_3(%arg0: i32) -> (i32, i32) {
    %c0_i32 = arith.constant 0 : i32
    %c0_i32_0 = arith.constant 0 : i32
    return %c0_i32, %arg0 : i32, i32
  }
  func.func @transform_4(%arg0: i32) -> (i32, i32) {
    %c0_i32 = arith.constant 0 : i32
    %c0_i32_0 = arith.constant 0 : i32
    %c0_i32_1 = arith.constant 0 : i32
    return %c0_i32, %c0_i32_0 : i32, i32
  }
  func.func @transform_5(%arg0: i32) -> (i32, i32) {
    %c0_i32 = arith.constant 0 : i32
    %c0_i32_0 = arith.constant 0 : i32
    %c0_i32_1 = arith.constant 0 : i32
    return %c0_i32, %c0_i32_0 : i32, i32
  }
  func.func @transform_6(%arg0: i32) -> (i32, i32) {
    %c0_i32 = arith.constant 0 : i32
    %c0_i32_0 = arith.constant 0 : i32
    return %c0_i32, %arg0 : i32, i32
  }
}

module attributes {stable_mosaic.version = 11 : i64} {
  func.func @_hidden_kernel(%arg0: i32, %arg1: memref<32x2048xf32, #tpu.memory_space<vmem>>, %arg2: memref<32x1xf32, #tpu.memory_space<vmem>>, %arg3: memref<32x1xf32, #tpu.memory_space<vmem>>, %arg4: memref<32x32xf32, #tpu.memory_space<vmem>>, %arg5: memref<32x1xf32, #tpu.memory_space<vmem>>, %arg6: memref<32x2048xf32, #tpu.memory_space<vmem>>, %arg7: memref<1x64x1xf32, #tpu.memory_space<vmem>>) attributes {dimension_semantics = [#tpu.dimension_semantics<parallel>], iteration_bounds = array<i64: 2>, scalar_prefetch = 0 : i64, scratch_operands = 0 : i64, tpu.core_type = #tpu.core_type<tc>, window_params = [{transform_indices = @transform_0, window_bounds = array<i64: 32, 2048>}, {pipeline_mode = #tpu.pipeline_mode<synchronous>, transform_indices = @transform_1, window_bounds = array<i64: 32, 1>}, {pipeline_mode = #tpu.pipeline_mode<synchronous>, transform_indices = @transform_2, window_bounds = array<i64: 32, 1>}, {pipeline_mode = #tpu.pipeline_mode<synchronous>, transform_indices = @transform_3, window_bounds = array<i64: 32, 32>}, {pipeline_mode = #tpu.pipeline_mode<synchronous>, transform_indices = @transform_4, window_bounds = array<i64: 32, 1>}, {transform_indices = @transform_5, window_bounds = array<i64: 32, 2048>}, {transform_indices = @transform_6, window_bounds = array<i64: 1, 64, 1>}]} {
    %c0 = arith.constant 0 : index
    %c0_0 = arith.constant 0 : index
    %0 = vector.load %arg1[%c0, %c0_0] : memref<32x2048xf32, #tpu.memory_space<vmem>>, vector<32x2048xf32>
    %c0_1 = arith.constant 0 : index
    %c0_2 = arith.constant 0 : index
    %1 = vector.load %arg2[%c0_1, %c0_2] : memref<32x1xf32, #tpu.memory_space<vmem>>, vector<32x1xf32>
    %2 = vector.broadcast %1 : vector<32x1xf32> to vector<32x2048xf32>
    %3 = arith.mulf %0, %2 : vector<32x2048xf32>
    %c0_3 = arith.constant 0 : index
    %c0_4 = arith.constant 0 : index
    %4 = vector.load %arg3[%c0_3, %c0_4] : memref<32x1xf32, #tpu.memory_space<vmem>>, vector<32x1xf32>
    %5 = vector.broadcast %4 : vector<32x1xf32> to vector<32x2048xf32>
    %6 = arith.addf %3, %5 : vector<32x2048xf32>
    %cst = arith.constant 2.000000e-01 : f32
    %7 = vector.broadcast %cst : f32 to vector<32x2048xf32>
    %8 = arith.mulf %7, %6 : vector<32x2048xf32>
    %9 = arith.maximumf %6, %8 : vector<32x2048xf32>
    %c0_5 = arith.constant 0 : index
    %c0_6 = arith.constant 0 : index
    %10 = vector.load %arg4[%c0_5, %c0_6] : memref<32x32xf32, #tpu.memory_space<vmem>>, vector<32x32xf32>
    %cst_7 = arith.constant dense<0.000000e+00> : vector<32x2048xf32>
    %11 = tpu.matmul %10, %9, %cst_7 {dimension_numbers = #tpu.dot_dimension_numbers<[1], [0], [0], [1], [0, 0, 1, 1], [], []>} : vector<32x32xf32>, vector<32x2048xf32>, vector<32x2048xf32> -> vector<32x2048xf32>
    %c0_8 = arith.constant 0 : index
    %c0_9 = arith.constant 0 : index
    %12 = vector.load %arg5[%c0_8, %c0_9] : memref<32x1xf32, #tpu.memory_space<vmem>>, vector<32x1xf32>
    %13 = vector.broadcast %12 : vector<32x1xf32> to vector<32x2048xf32>
    %14 = arith.addf %11, %13 : vector<32x2048xf32>
    %c0_10 = arith.constant 0 : index
    %c0_11 = arith.constant 0 : index
    %15 = vector.load %arg6[%c0_10, %c0_11] : memref<32x2048xf32, #tpu.memory_space<vmem>>, vector<32x2048xf32>
    tpu.vector_store %arg6[%c0_10, %c0_11], %14 {strides = array<i32>} : memref<32x2048xf32, #tpu.memory_space<vmem>>, vector<32x2048xf32>,
    %cst_12 = arith.constant dense<0.000000e+00> : vector<32xf32>
    %16 = vector.multi_reduction <add>, %14, %cst_12 [1] : vector<32x2048xf32> to vector<32xf32>
    %17 = vector.shape_cast %16 : vector<32xf32> to vector<32x1xf32>
    %18 = arith.mulf %14, %14 : vector<32x2048xf32>
    %cst_13 = arith.constant dense<0.000000e+00> : vector<32xf32>
    %19 = vector.multi_reduction <add>, %18, %cst_13 [1] : vector<32x2048xf32> to vector<32xf32>
    %20 = vector.shape_cast %19 : vector<32xf32> to vector<32x1xf32>
    %21 = tpu.concatenate %17, %20 in 0 : vector<32x1xf32>, vector<32x1xf32> -> vector<64x1xf32>
    %22 = vector.shape_cast %21 : vector<64x1xf32> to vector<1x64x1xf32>
    %c0_14 = arith.constant 0 : index
    %c0_15 = arith.constant 0 : index
    %c0_16 = arith.constant 0 : index
    %23 = vector.load %arg7[%c0_14, %c0_15, %c0_16] : memref<1x64x1xf32, #tpu.memory_space<vmem>>, vector<1x64x1xf32>
    tpu.vector_store %arg7[%c0_14, %c0_15, %c0_16], %22 {strides = array<i32>} : memref<1x64x1xf32, #tpu.memory_space<vmem>>, vector<1x64x1xf32>,
    return
  }
  func.func @transform_0(%arg0: i32) -> (i32, i32) {
    %c0_i32 = arith.constant 0 : i32
    %c0_i32_0 = arith.constant 0 : i32
    return %c0_i32, %arg0 : i32, i32
  }
  func.func @transform_1(%arg0: i32) -> (i32, i32) {
    %c0_i32 = arith.constant 0 : i32
    %c0_i32_0 = arith.constant 0 : i32
    %c0_i32_1 = arith.constant 0 : i32
    return %c0_i32, %c0_i32_0 : i32, i32
  }
  func.func @transform_2(%arg0: i32) -> (i32, i32) {
    %c0_i32 = arith.constant 0 : i32
    %c0_i32_0 = arith.constant 0 : i32
    %c0_i32_1 = arith.constant 0 : i32
    return %c0_i32, %c0_i32_0 : i32, i32
  }
  func.func @transform_3(%arg0: i32) -> (i32, i32) {
    %c0_i32 = arith.constant 0 : i32
    %c0_i32_0 = arith.constant 0 : i32
    %c0_i32_1 = arith.constant 0 : i32
    return %c0_i32, %c0_i32_0 : i32, i32
  }
  func.func @transform_4(%arg0: i32) -> (i32, i32) {
    %c0_i32 = arith.constant 0 : i32
    %c0_i32_0 = arith.constant 0 : i32
    %c0_i32_1 = arith.constant 0 : i32
    return %c0_i32, %c0_i32_0 : i32, i32
  }
  func.func @transform_5(%arg0: i32) -> (i32, i32) {
    %c0_i32 = arith.constant 0 : i32
    %c0_i32_0 = arith.constant 0 : i32
    return %c0_i32, %arg0 : i32, i32
  }
  func.func @transform_6(%arg0: i32) -> (i32, i32, i32) {
    %c0_i32 = arith.constant 0 : i32
    %c0_i32_0 = arith.constant 0 : i32
    %c0_i32_1 = arith.constant 0 : i32
    return %arg0, %c0_i32, %c0_i32_0 : i32, i32, i32
  }
}

module attributes {stable_mosaic.version = 11 : i64} {
  func.func @_hidden_kernel(%arg0: i32, %arg1: memref<32x2048xf32, #tpu.memory_space<vmem>>, %arg2: memref<32x1xf32, #tpu.memory_space<vmem>>, %arg3: memref<32x1xf32, #tpu.memory_space<vmem>>, %arg4: memref<32x2048xf32, #tpu.memory_space<vmem>>, %arg5: memref<32x32xf32, #tpu.memory_space<vmem>>, %arg6: memref<32x1xf32, #tpu.memory_space<vmem>>, %arg7: memref<32x2048xf32, #tpu.memory_space<vmem>>, %arg8: memref<1x64x1xf32, #tpu.memory_space<vmem>>) attributes {dimension_semantics = [#tpu.dimension_semantics<parallel>], iteration_bounds = array<i64: 2>, scalar_prefetch = 0 : i64, scratch_operands = 0 : i64, tpu.core_type = #tpu.core_type<tc>, window_params = [{transform_indices = @transform_0, window_bounds = array<i64: 32, 2048>}, {pipeline_mode = #tpu.pipeline_mode<synchronous>, transform_indices = @transform_1, window_bounds = array<i64: 32, 1>}, {pipeline_mode = #tpu.pipeline_mode<synchronous>, transform_indices = @transform_2, window_bounds = array<i64: 32, 1>}, {transform_indices = @transform_3, window_bounds = array<i64: 32, 2048>}, {pipeline_mode = #tpu.pipeline_mode<synchronous>, transform_indices = @transform_4, window_bounds = array<i64: 32, 32>}, {pipeline_mode = #tpu.pipeline_mode<synchronous>, transform_indices = @transform_5, window_bounds = array<i64: 32, 1>}, {transform_indices = @transform_6, window_bounds = array<i64: 32, 2048>}, {transform_indices = @transform_7, window_bounds = array<i64: 1, 64, 1>}]} {
    %c0 = arith.constant 0 : index
    %c0_0 = arith.constant 0 : index
    %0 = vector.load %arg1[%c0, %c0_0] : memref<32x2048xf32, #tpu.memory_space<vmem>>, vector<32x2048xf32>
    %c0_1 = arith.constant 0 : index
    %c0_2 = arith.constant 0 : index
    %1 = vector.load %arg2[%c0_1, %c0_2] : memref<32x1xf32, #tpu.memory_space<vmem>>, vector<32x1xf32>
    %2 = vector.broadcast %1 : vector<32x1xf32> to vector<32x2048xf32>
    %3 = arith.mulf %0, %2 : vector<32x2048xf32>
    %c0_3 = arith.constant 0 : index
    %c0_4 = arith.constant 0 : index
    %4 = vector.load %arg3[%c0_3, %c0_4] : memref<32x1xf32, #tpu.memory_space<vmem>>, vector<32x1xf32>
    %5 = vector.broadcast %4 : vector<32x1xf32> to vector<32x2048xf32>
    %6 = arith.addf %3, %5 : vector<32x2048xf32>
    %cst = arith.constant 2.000000e-01 : f32
    %7 = vector.broadcast %cst : f32 to vector<32x2048xf32>
    %8 = arith.mulf %7, %6 : vector<32x2048xf32>
    %9 = arith.maximumf %6, %8 : vector<32x2048xf32>
    %c0_5 = arith.constant 0 : index
    %c0_6 = arith.constant 0 : index
    %10 = vector.load %arg4[%c0_5, %c0_6] : memref<32x2048xf32, #tpu.memory_space<vmem>>, vector<32x2048xf32>
    %11 = arith.mulf %9, %10 : vector<32x2048xf32>
    %c0_7 = arith.constant 0 : index
    %c0_8 = arith.constant 0 : index
    %12 = vector.load %arg5[%c0_7, %c0_8] : memref<32x32xf32, #tpu.memory_space<vmem>>, vector<32x32xf32>
    %cst_9 = arith.constant dense<0.000000e+00> : vector<32x2048xf32>
    %13 = tpu.matmul %12, %11, %cst_9 {dimension_numbers = #tpu.dot_dimension_numbers<[1], [0], [0], [1], [0, 0, 1, 1], [], []>} : vector<32x32xf32>, vector<32x2048xf32>, vector<32x2048xf32> -> vector<32x2048xf32>
    %c0_10 = arith.constant 0 : index
    %c0_11 = arith.constant 0 : index
    %14 = vector.load %arg6[%c0_10, %c0_11] : memref<32x1xf32, #tpu.memory_space<vmem>>, vector<32x1xf32>
    %15 = vector.broadcast %14 : vector<32x1xf32> to vector<32x2048xf32>
    %16 = arith.addf %13, %15 : vector<32x2048xf32>
    %c0_12 = arith.constant 0 : index
    %c0_13 = arith.constant 0 : index
    %17 = vector.load %arg7[%c0_12, %c0_13] : memref<32x2048xf32, #tpu.memory_space<vmem>>, vector<32x2048xf32>
    tpu.vector_store %arg7[%c0_12, %c0_13], %16 {strides = array<i32>} : memref<32x2048xf32, #tpu.memory_space<vmem>>, vector<32x2048xf32>,
    %cst_14 = arith.constant dense<0.000000e+00> : vector<32xf32>
    %18 = vector.multi_reduction <add>, %16, %cst_14 [1] : vector<32x2048xf32> to vector<32xf32>
    %19 = vector.shape_cast %18 : vector<32xf32> to vector<32x1xf32>
    %20 = arith.mulf %16, %16 : vector<32x2048xf32>
    %cst_15 = arith.constant dense<0.000000e+00> : vector<32xf32>
    %21 = vector.multi_reduction <add>, %20, %cst_15 [1] : vector<32x2048xf32> to vector<32xf32>
    %22 = vector.shape_cast %21 : vector<32xf32> to vector<32x1xf32>
    %23 = tpu.concatenate %19, %22 in 0 : vector<32x1xf32>, vector<32x1xf32> -> vector<64x1xf32>
    %24 = vector.shape_cast %23 : vector<64x1xf32> to vector<1x64x1xf32>
    %c0_16 = arith.constant 0 : index
    %c0_17 = arith.constant 0 : index
    %c0_18 = arith.constant 0 : index
    %25 = vector.load %arg8[%c0_16, %c0_17, %c0_18] : memref<1x64x1xf32, #tpu.memory_space<vmem>>, vector<1x64x1xf32>
    tpu.vector_store %arg8[%c0_16, %c0_17, %c0_18], %24 {strides = array<i32>} : memref<1x64x1xf32, #tpu.memory_space<vmem>>, vector<1x64x1xf32>,
    return
  }
  func.func @transform_0(%arg0: i32) -> (i32, i32) {
    %c0_i32 = arith.constant 0 : i32
    %c0_i32_0 = arith.constant 0 : i32
    return %c0_i32, %arg0 : i32, i32
  }
  func.func @transform_1(%arg0: i32) -> (i32, i32) {
    %c0_i32 = arith.constant 0 : i32
    %c0_i32_0 = arith.constant 0 : i32
    %c0_i32_1 = arith.constant 0 : i32
    return %c0_i32, %c0_i32_0 : i32, i32
  }
  func.func @transform_2(%arg0: i32) -> (i32, i32) {
    %c0_i32 = arith.constant 0 : i32
    %c0_i32_0 = arith.constant 0 : i32
    %c0_i32_1 = arith.constant 0 : i32
    return %c0_i32, %c0_i32_0 : i32, i32
  }
  func.func @transform_3(%arg0: i32) -> (i32, i32) {
    %c0_i32 = arith.constant 0 : i32
    %c0_i32_0 = arith.constant 0 : i32
    return %c0_i32, %arg0 : i32, i32
  }
  func.func @transform_4(%arg0: i32) -> (i32, i32) {
    %c0_i32 = arith.constant 0 : i32
    %c0_i32_0 = arith.constant 0 : i32
    %c0_i32_1 = arith.constant 0 : i32
    return %c0_i32, %c0_i32_0 : i32, i32
  }
  func.func @transform_5(%arg0: i32) -> (i32, i32) {
    %c0_i32 = arith.constant 0 : i32
    %c0_i32_0 = arith.constant 0 : i32
    %c0_i32_1 = arith.constant 0 : i32
    return %c0_i32, %c0_i32_0 : i32, i32
  }
  func.func @transform_6(%arg0: i32) -> (i32, i32) {
    %c0_i32 = arith.constant 0 : i32
    %c0_i32_0 = arith.constant 0 : i32
    return %c0_i32, %arg0 : i32, i32
  }
  func.func @transform_7(%arg0: i32) -> (i32, i32, i32) {
    %c0_i32 = arith.constant 0 : i32
    %c0_i32_0 = arith.constant 0 : i32
    %c0_i32_1 = arith.constant 0 : i32
    return %arg0, %c0_i32, %c0_i32_0 : i32, i32, i32
  }
}

</mosaic_0001>

<bundles_post_ra>
// kernel: _lambda_.6
= control target key start
LH: loop header
LB: loop body
LE: loop exit
PB: predicated region body
PF: predicated region fallthrough
CT: control target
= control target key end

     0   :  { %s2248_s21 = smov 0   ;;  %s2250_s22 = smov 0   ;;  %s3154_s0 = inlined_call_operand.vmem [shape: f32[32,4096], index: 0, kind: input, shape index: {}]   ;;  %s3155_s1 = inlined_call_operand.vmem [shape: f32[32,1], index: 1, kind: input, shape index: {}]   ;;  %s3156_s2 = inlined_call_operand.vmem [shape: f32[32,1], index: 2, kind: input, shape index: {}]   ;;  %s3157_s3 = inlined_call_operand.vmem [shape: f32[32,32], index: 3, kind: input, shape index: {}]   ;;  %s3158_s4 = inlined_call_operand.vmem [shape: f32[32,1], index: 4, kind: input, shape index: {}]   ;;  %s3159_s5 = inlined_call_operand.vmem [shape: f32[32,4096], index: 5, kind: output, shape index: {0}]   ;;  %s3160_s6 = inlined_call_operand.vmem [shape: f32[2,64,1], index: 6, kind: output, shape index: {1}]  }
   0x1   :  { %s2252_s23 = smov 0  }
   0x2 LB: > { %s2264_s24 = sadd.s32 4294967295, %s2209_s23   ;;  %s2267_s25 = sadd.s32 1, %s2209_s23   ;;  %s2209_s23 = sphi %s2252_s23, %s3164_s23   ;;  %s2205_s22 = sphi %s2250_s22, %s3163_s22   ;;  %s2201_s21 = sphi %s2248_s21, %s3162_s21  }
   0x3   : > { %s21_s26 = ssub.s32 %s2209_s23, %s2267_s25  ;;  %s24_s27 = sadd.s32 1, %s2205_s22 }
   0x4   : > { %p22_p0 = scmp.eq.s32.totalorder %s21_s26, 0  ;;  %p31_p1 = scmp.ne.s32.totalorder %s2205_s22, %s2201_s21 }
   0x5   : > { %p32_p2 = scmp.eq.s32.totalorder %s2209_s23, 0  ;;  %p145_p3 = scmp.eq.s32.totalorder %s2264_s24, 1 }
   0x6   : > { %s2277_s28 = scalar_select %p22_p0, %s2205_s22, %s24_s27  }
   0x7   : > { %p33_p4 = por %p32_p2, %p31_p1  ;;  %p2279_p5 = por %p145_p3, %p31_p1 }
   0x8   : > { %p2046_p6 = scmp.ge.s32.totalorder %s2209_s23, 2 }
   0xa   : > { %205 = sbr.rel (%p2046_p6) target bundleno = 53 (0x35), region = 32 }
  0x11   : > { %208 = sbr.rel (!%p33_p4) target bundleno = 53 (0x35), region = 36  ;;  %s210_s30 = sand.u32 (%p33_p4), 1, %s2205_s22  }
  0x12   : > { %s2092_s7 = sshll.u32 (%p33_p4), %s2209_s23, 7  ;;  %s2047_s8 = sshll.u32 (%p33_p4), %s210_s30, 9 }
  0x13   : > { %s2289_s11 = scalar_lea.vmem (%p33_p4), %s3154_s0, %s2092_s7  ;;  %s2294_s12 = scalar_lea.vmem (%p33_p4), [#allocation2], %s2047_s8 }
  0x14   : > { %v228_v0 = vld [vmem:[%s2289_s11] sm:$0xff] (%p33_p4)  ;;  %v230_v1 = vld [vmem:[%s2289_s11 + $0x8] sm:$0xff] (%p33_p4)  ;;  %v232_v2 = vld [vmem:[%s2289_s11 + $0x10] sm:$0xff] (%p33_p4) }
  0x15   : > { %229 = vst [vmem:[%s2294_s12] sm:$0xff] (%p33_p4), %v228_v0  ;;  %231 = vst [vmem:[%s2294_s12 + $0x8] sm:$0xff] (%p33_p4), %v230_v1  ;;  %v234_v3 = vld [vmem:[%s2289_s11 + $0x18] sm:$0xff] (%p33_p4)  ;;  %v236_v4 = vld [vmem:[%s2289_s11 + $0x20] sm:$0xff] (%p33_p4) }
  0x16   : > { %233 = vst [vmem:[%s2294_s12 + $0x10] sm:$0xff] (%p33_p4), %v232_v2  ;;  %v238_v5 = vld [vmem:[%s2289_s11 + $0x28] sm:$0xff] (%p33_p4)  ;;  %235 = vst [vmem:[%s2294_s12 + $0x18] sm:$0xff] (%p33_p4), %v234_v3  ;;  %v240_v6 = vld [vmem:[%s2289_s11 + $0x30] sm:$0xff] (%p33_p4) }
  0x17   : > { %237 = vst [vmem:[%s2294_s12 + $0x20] sm:$0xff] (%p33_p4), %v236_v4  ;;  %239 = vst [vmem:[%s2294_s12 + $0x28] sm:$0xff] (%p33_p4), %v238_v5  ;;  %v242_v7 = vld [vmem:[%s2289_s11 + $0x38] sm:$0xff] (%p33_p4)  ;;  %v244_v8 = vld [vmem:[%s2289_s11 + $0x40] sm:$0xff] (%p33_p4) }
  0x18   : > { %241 = vst [vmem:[%s2294_s12 + $0x30] sm:$0xff] %v240_v6  ;;  %243 = vst [vmem:[%s2294_s12 + $0x38] sm:$0xff] %v242_v7  ;;  %v246_v9 = vld [vmem:[%s2289_s11 + $0x48] sm:$0xff]  ;;  %v248_v10 = vld [vmem:[%s2289_s11 + $0x50] sm:$0xff] }
  0x19   : > { %245 = vst [vmem:[%s2294_s12 + $0x40] sm:$0xff] %v244_v8  ;;  %v250_v11 = vld [vmem:[%s2289_s11 + $0x58] sm:$0xff]  ;;  %247 = vst [vmem:[%s2294_s12 + $0x48] sm:$0xff] %v246_v9  ;;  %v252_v12 = vld [vmem:[%s2289_s11 + $0x60] sm:$0xff] }
  0x1a   : > { %249 = vst [vmem:[%s2294_s12 + $0x50] sm:$0xff] %v248_v10  ;;  %251 = vst [vmem:[%s2294_s12 + $0x58] sm:$0xff] %v250_v11  ;;  %v254_v13 = vld [vmem:[%s2289_s11 + $0x68] sm:$0xff]  ;;  %v256_v14 = vld [vmem:[%s2289_s11 + $0x70] sm:$0xff] }
  0x1b   : > { %253 = vst [vmem:[%s2294_s12 + $0x60] sm:$0xff] %v252_v12  ;;  %255 = vst [vmem:[%s2294_s12 + $0x68] sm:$0xff] %v254_v13  ;;  %v258_v15 = vld [vmem:[%s2289_s11 + $0x78] sm:$0xff]  ;;  %v260_v16 = vld [vmem:[%s2289_s11 + $0x100] sm:$0xff] }
  0x1c   : > { %257 = vst [vmem:[%s2294_s12 + $0x70] sm:$0xff] %v256_v14  ;;  %v262_v17 = vld [vmem:[%s2289_s11 + $0x108] sm:$0xff]  ;;  %259 = vst [vmem:[%s2294_s12 + $0x78] sm:$0xff] %v258_v15  ;;  %v264_v18 = vld [vmem:[%s2289_s11 + $0x110] sm:$0xff] }
  0x1d   : > { %261 = vst [vmem:[%s2294_s12 + $0x80] sm:$0xff] %v260_v16  ;;  %263 = vst [vmem:[%s2294_s12 + $0x88] sm:$0xff] %v262_v17  ;;  %v266_v19 = vld [vmem:[%s2289_s11 + $0x118] sm:$0xff]  ;;  %v268_v20 = vld [vmem:[%s2289_s11 + $0x120] sm:$0xff] }
  0x1e   : > { %265 = vst [vmem:[%s2294_s12 + $0x90] sm:$0xff] %v264_v18  ;;  %267 = vst [vmem:[%s2294_s12 + $0x98] sm:$0xff] %v266_v19  ;;  %v270_v21 = vld [vmem:[%s2289_s11 + $0x128] sm:$0xff]  ;;  %v272_v22 = vld [vmem:[%s2289_s11 + $0x130] sm:$0xff] }
  0x1f   : > { %269 = vst [vmem:[%s2294_s12 + $0xa0] sm:$0xff] %v268_v20  ;;  %v274_v23 = vld [vmem:[%s2289_s11 + $0x138] sm:$0xff]  ;;  %271 = vst [vmem:[%s2294_s12 + $0xa8] sm:$0xff] %v270_v21  ;;  %v276_v24 = vld [vmem:[%s2289_s11 + $0x140] sm:$0xff] }
  0x20   : > { %273 = vst [vmem:[%s2294_s12 + $0xb0] sm:$0xff] %v272_v22  ;;  %275 = vst [vmem:[%s2294_s12 + $0xb8] sm:$0xff] %v274_v23  ;;  %v278_v25 = vld [vmem:[%s2289_s11 + $0x148] sm:$0xff]  ;;  %v280_v26 = vld [vmem:[%s2289_s11 + $0x150] sm:$0xff] }
  0x21   : > { %277 = vst [vmem:[%s2294_s12 + $0xc0] sm:$0xff] %v276_v24  ;;  %279 = vst [vmem:[%s2294_s12 + $0xc8] sm:$0xff] %v278_v25  ;;  %v282_v27 = vld [vmem:[%s2289_s11 + $0x158] sm:$0xff]  ;;  %v284_v28 = vld [vmem:[%s2289_s11 + $0x160] sm:$0xff] }
  0x22   : > { %281 = vst [vmem:[%s2294_s12 + $0xd0] sm:$0xff] %v280_v26  ;;  %v286_v29 = vld [vmem:[%s2289_s11 + $0x168] sm:$0xff]  ;;  %283 = vst [vmem:[%s2294_s12 + $0xd8] sm:$0xff] %v282_v27  ;;  %v288_v30 = vld [vmem:[%s2289_s11 + $0x170] sm:$0xff] }
  0x23   : > { %285 = vst [vmem:[%s2294_s12 + $0xe0] sm:$0xff] %v284_v28  ;;  %287 = vst [vmem:[%s2294_s12 + $0xe8] sm:$0xff] %v286_v29  ;;  %v290_v31 = vld [vmem:[%s2289_s11 + $0x178] sm:$0xff]  ;;  %v292_v32 = vld [vmem:[%s2289_s11 + $0x200] sm:$0xff] }
  0x24   : > { %289 = vst [vmem:[%s2294_s12 + $0xf0] sm:$0xff] %v288_v30  ;;  %291 = vst [vmem:[%s2294_s12 + $0xf8] sm:$0xff] %v290_v31  ;;  %v294_v33 = vld [vmem:[%s2289_s11 + $0x208] sm:$0xff]  ;;  %v296_v34 = vld [vmem:[%s2289_s11 + $0x210] sm:$0xff] }
  0x25   : > { %293 = vst [vmem:[%s2294_s12 + $0x100] sm:$0xff] %v292_v32  ;;  %v298_v35 = vld [vmem:[%s2289_s11 + $0x218] sm:$0xff]  ;;  %295 = vst [vmem:[%s2294_s12 + $0x108] sm:$0xff] %v294_v33  ;;  %v300_v36 = vld [vmem:[%s2289_s11 + $0x220] sm:$0xff] }
  0x26   : > { %297 = vst [vmem:[%s2294_s12 + $0x110] sm:$0xff] %v296_v34  ;;  %299 = vst [vmem:[%s2294_s12 + $0x118] sm:$0xff] %v298_v35  ;;  %v302_v37 = vld [vmem:[%s2289_s11 + $0x228] sm:$0xff]  ;;  %v304_v38 = vld [vmem:[%s2289_s11 + $0x230] sm:$0xff] }
  0x27   : > { %301 = vst [vmem:[%s2294_s12 + $0x120] sm:$0xff] %v300_v36  ;;  %303 = vst [vmem:[%s2294_s12 + $0x128] sm:$0xff] %v302_v37  ;;  %v306_v39 = vld [vmem:[%s2289_s11 + $0x238] sm:$0xff]  ;;  %v308_v40 = vld [vmem:[%s2289_s11 + $0x240] sm:$0xff] }
  0x28   : > { %305 = vst [vmem:[%s2294_s12 + $0x130] sm:$0xff] %v304_v38  ;;  %v310_v41 = vld [vmem:[%s2289_s11 + $0x248] sm:$0xff]  ;;  %307 = vst [vmem:[%s2294_s12 + $0x138] sm:$0xff] %v306_v39  ;;  %v312_v42 = vld [vmem:[%s2289_s11 + $0x250] sm:$0xff] }
  0x29   : > { %309 = vst [vmem:[%s2294_s12 + $0x140] sm:$0xff] %v308_v40  ;;  %311 = vst [vmem:[%s2294_s12 + $0x148] sm:$0xff] %v310_v41  ;;  %v314_v43 = vld [vmem:[%s2289_s11 + $0x258] sm:$0xff]  ;;  %v316_v44 = vld [vmem:[%s2289_s11 + $0x260] sm:$0xff] }
  0x2a   : > { %313 = vst [vmem:[%s2294_s12 + $0x150] sm:$0xff] %v312_v42  ;;  %315 = vst [vmem:[%s2294_s12 + $0x158] sm:$0xff] %v314_v43  ;;  %v318_v45 = vld [vmem:[%s2289_s11 + $0x268] sm:$0xff]  ;;  %v320_v46 = vld [vmem:[%s2289_s11 + $0x270] sm:$0xff] }
  0x2b   : > { %317 = vst [vmem:[%s2294_s12 + $0x160] sm:$0xff] %v316_v44  ;;  %v322_v47 = vld [vmem:[%s2289_s11 + $0x278] sm:$0xff]  ;;  %319 = vst [vmem:[%s2294_s12 + $0x168] sm:$0xff] %v318_v45  ;;  %v324_v48 = vld [vmem:[%s2289_s11 + $0x300] sm:$0xff] }
  0x2c   : > { %321 = vst [vmem:[%s2294_s12 + $0x170] sm:$0xff] %v320_v46  ;;  %323 = vst [vmem:[%s2294_s12 + $0x178] sm:$0xff] %v322_v47  ;;  %v326_v49 = vld [vmem:[%s2289_s11 + $0x308] sm:$0xff]  ;;  %v328_v50 = vld [vmem:[%s2289_s11 + $0x310] sm:$0xff] }
  0x2d   : > { %325 = vst [vmem:[%s2294_s12 + $0x180] sm:$0xff] %v324_v48  ;;  %327 = vst [vmem:[%s2294_s12 + $0x188] sm:$0xff] %v326_v49  ;;  %v330_v51 = vld [vmem:[%s2289_s11 + $0x318] sm:$0xff]  ;;  %v332_v52 = vld [vmem:[%s2289_s11 + $0x320] sm:$0xff] }
  0x2e   : > { %329 = vst [vmem:[%s2294_s12 + $0x190] sm:$0xff] %v328_v50  ;;  %v334_v53 = vld [vmem:[%s2289_s11 + $0x328] sm:$0xff]  ;;  %331 = vst [vmem:[%s2294_s12 + $0x198] sm:$0xff] %v330_v51  ;;  %v336_v54 = vld [vmem:[%s2289_s11 + $0x330] sm:$0xff] }
  0x2f   : > { %333 = vst [vmem:[%s2294_s12 + $0x1a0] sm:$0xff] %v332_v52  ;;  %335 = vst [vmem:[%s2294_s12 + $0x1a8] sm:$0xff] %v334_v53  ;;  %v338_v55 = vld [vmem:[%s2289_s11 + $0x338] sm:$0xff]  ;;  %v340_v56 = vld [vmem:[%s2289_s11 + $0x340] sm:$0xff] }
  0x30   : > { %337 = vst [vmem:[%s2294_s12 + $0x1b0] sm:$0xff] %v336_v54  ;;  %339 = vst [vmem:[%s2294_s12 + $0x1b8] sm:$0xff] %v338_v55  ;;  %v342_v57 = vld [vmem:[%s2289_s11 + $0x348] sm:$0xff]  ;;  %v344_v58 = vld [vmem:[%s2289_s11 + $0x350] sm:$0xff] }
  0x31   : > { %341 = vst [vmem:[%s2294_s12 + $0x1c0] sm:$0xff] %v340_v56  ;;  %v346_v59 = vld [vmem:[%s2289_s11 + $0x358] sm:$0xff]  ;;  %343 = vst [vmem:[%s2294_s12 + $0x1c8] sm:$0xff] %v342_v57  ;;  %v348_v60 = vld [vmem:[%s2289_s11 + $0x360] sm:$0xff] }
  0x32   : > { %345 = vst [vmem:[%s2294_s12 + $0x1d0] sm:$0xff] %v344_v58  ;;  %347 = vst [vmem:[%s2294_s12 + $0x1d8] sm:$0xff] %v346_v59  ;;  %v350_v61 = vld [vmem:[%s2289_s11 + $0x368] sm:$0xff]  ;;  %v352_v62 = vld [vmem:[%s2289_s11 + $0x370] sm:$0xff] }
  0x33   : > { %349 = vst [vmem:[%s2294_s12 + $0x1e0] sm:$0xff] %v348_v60  ;;  %351 = vst [vmem:[%s2294_s12 + $0x1e8] sm:$0xff] %v350_v61  ;;  %v354_v63 = vld [vmem:[%s2289_s11 + $0x378] sm:$0xff] }
  0x34   : > { %353 = vst [vmem:[%s2294_s12 + $0x1f0] sm:$0xff] %v352_v62  ;;  %355 = vst [vmem:[%s2294_s12 + $0x1f8] sm:$0xff] %v354_v63 }
  0x35 PF: > { %p2050_p7 = scmp.ge.s32.totalorder %s2209_s23, 1  ;;  %p360_p8 = scmp.lt.s32.totalorder %s2209_s23, 3 }
  0x37   : > { %p361_p9 = pnand %p2050_p7, %p360_p8 }
  0x38   : > { %v559_v0 = vld [vmem:[%s3156_s2] sm:$0xff] (!%p361_p9)  ;;  %v2211_v2 = vmov (!%p361_p9), 0   ;;  %v560_v3 = vld [vmem:[%s3156_s2 + $0x8] sm:$0xff] (!%p361_p9)  ;;  %v474_v5 = vld [vmem:[%s3155_s1 + $0x18] sm:$0xff] (!%p361_p9)  ;;  %v2212_v13 = vmov (!%p361_p9), 0.0   ;;  %s367_s19 = sand.u32 (!%p361_p9), 1, %s2201_s21  }
  0x39   : > { %364 = sbr.rel (%p361_p9) target bundleno = 651 (0x28b), region = 59  ;;  %v471_v1 = vld [vmem:[%s3155_s1] sm:$0xff] (!%p361_p9)  ;;  %2186 = vset.pattern.permute.xlu1 (!%p361_p9), %v2211_v2  ;;  %2185 = vset.pattern.permute.xlu0 (!%p361_p9), %v2211_v2  ;;  %v472_v4 = vld [vmem:[%s3155_s1 + $0x8] sm:$0xff] (!%p361_p9)  ;;  %v473_v6 = vld [vmem:[%s3155_s1 + $0x10] sm:$0xff] (!%p361_p9)  ;;  %s2462_s20 = sshll.u32 (!%p361_p9), %s367_s19, 9  ;;  %vm803_vm0 = vcmask (!%p361_p9), 261120  }
  0x3a   : > { %565 = vperm.xlu1 (!%p361_p9), %2186, %v559_v0   ;;  %477 = vperm.xlu0 (!%p361_p9), %2185, %v471_v1   ;;  %v562_v7 = vld [vmem:[%s3156_s2 + $0x18] sm:$0xff] (!%p361_p9)  ;;  %v561_v8 = vld [vmem:[%s3156_s2 + $0x10] sm:$0xff] (!%p361_p9)  ;;  %v780_v9 = vld [vmem:[%s3158_s4 + $0x8] sm:$0xff] (!%p361_p9)  ;;  %s2465_s23 = scalar_lea.vmem (!%p361_p9), [#allocation2], %s2462_s20  ;;  %s2811_s11 = scalar_lea.vmem (!%p361_p9), [#allocation3], %s2462_s20  ;;  %vm1792_vm1 = vcmask (!%p361_p9), 7168  }
  0x3b   : > { %v779_v10 = vld [vmem:[%s3158_s4] sm:$0xff] (!%p361_p9)  ;;  %v782_v11 = vld [vmem:[%s3158_s4 + $0x18] sm:$0xff] (!%p361_p9)  ;;  %v781_v12 = vld [vmem:[%s3158_s4 + $0x10] sm:$0xff] (!%p361_p9)  ;;  %880 = vmatprep.mubr.f32.mxu0 (!%p361_p9), %v2212_v13  ;;  %969 = vmatprep.mubr.f32.mxu1 (!%p361_p9), %v2212_v13  ;;  %p402_p10 = scmp.lt.s32.totalorder (!%p361_p9), %s2264_s24, 1 }
  0x3c   : > { %v408_v14 = vld [vmem:[%s2465_s23 + $0x8] sm:$0xff] (!%p361_p9)  ;;  %v410_v15 = vld [vmem:[%s2465_s23 + $0x18] sm:$0xff] (!%p361_p9)  ;;  %v407_v16 = vld [vmem:[%s2465_s23] sm:$0xff] (!%p361_p9) }
  0x3d   : > { %v409_v17 = vld [vmem:[%s2465_s23 + $0x10] sm:$0xff] (!%p361_p9)  ;;  %v412_v18 = vld [vmem:[%s2465_s23 + $0x28] sm:$0xff] (!%p361_p9)  ;;  %v414_v19 = vld [vmem:[%s2465_s23 + $0x38] sm:$0xff] (!%p361_p9) }
  0x3e   : > { %570 = vperm.xlu1 (!%p361_p9), %2186, %v560_v3   ;;  %482 = vperm.xlu0 (!%p361_p9), %2185, %v472_v4   ;;  %v411_v20 = vld [vmem:[%s2465_s23 + $0x20] sm:$0xff] (!%p361_p9)  ;;  %v413_v21 = vld [vmem:[%s2465_s23 + $0x30] sm:$0xff] (!%p361_p9)  ;;  %v424_v28 = vld [vmem:[%s2465_s23 + $0x88] sm:$0xff] (!%p361_p9) }
  0x3f   : > { %v426_v29 = vld [vmem:[%s2465_s23 + $0x98] sm:$0xff] (!%p361_p9)  ;;  %v423_v36 = vld [vmem:[%s2465_s23 + $0x80] sm:$0xff] (!%p361_p9)  ;;  %v425_v38 = vld [vmem:[%s2465_s23 + $0x90] sm:$0xff] (!%p361_p9) }
  0x40   : > { %v440_v54 = vld [vmem:[%s2465_s23 + $0x108] sm:$0xff]  ;;  %v442_v60 = vld [vmem:[%s2465_s23 + $0x118] sm:$0xff]  ;;  %v439_v4 = vld [vmem:[%s2465_s23 + $0x100] sm:$0xff]  ;;  %s403_s12 = scalar_select %p402_p10, %s2264_s24, 1 }
  0x41   : > { %v456_v55 = vld [vmem:[%s2465_s23 + $0x188] sm:$0xff]  ;;  %v458_v61 = vld [vmem:[%s2465_s23 + $0x198] sm:$0xff]  ;;  %s2094_s17 = sshll.u32 (%p2279_p5), %s2264_s24, 7 }
  0x42   : > { %492 = vperm.xlu1 %2186, %v474_v5   ;;  %487 = vperm.xlu0 %2185, %v473_v6   ;;  %v455_v5 = vld [vmem:[%s2465_s23 + $0x180] sm:$0xff]  ;;  %s2093_s13 = sshll.u32 %s403_s12, 6  ;;  %s3017_s20 = scalar_lea.vmem (%p2279_p5), %s3159_s5, %s2094_s17 }
  0x43   : > { %s406_s16 = scalar_lea.vmem %s3160_s6, %s2093_s13 }
  0x46   : > { %580 = vperm.xlu1 %2186, %v562_v7   ;;  %575 = vperm.xlu0 %2185, %v561_v8  }
  0x4a   : > { %790 = vperm.xlu1 %2186, %v780_v9   ;;  %785 = vperm.xlu0 %2185, %v779_v10   ;;  %v441_v10 = vld [vmem:[%s2465_s23 + $0x110] sm:$0xff] }
  0x4e   : > { %800 = vperm.xlu1 %2186, %v782_v11   ;;  %795 = vperm.xlu0 %2185, %v781_v12   ;;  %v457_v11 = vld [vmem:[%s2465_s23 + $0x190] sm:$0xff] }
  0xb9   : > { %v2475_v22 = vpop.permute.xlu1 %565  ;;  %v2477_v23 = vpop.permute.xlu0 %477 }
  0xba   : > { %v496_v24 = vmul.f32 %v2477_v23, %v408_v14  ;;  %v498_v25 = vmul.f32 %v2477_v23, %v410_v15  ;;  %v495_v26 = vmul.f32 %v2477_v23, %v407_v16  ;;  %v497_v27 = vmul.f32 %v2477_v23, %v409_v17 }
  0xbb   : > { %v500_v30 = vmul.f32 %v2477_v23, %v412_v18  ;;  %v502_v31 = vmul.f32 %v2477_v23, %v414_v19  ;;  %v499_v32 = vmul.f32 %v2477_v23, %v411_v20  ;;  %v501_v33 = vmul.f32 %v2477_v23, %v413_v21 }
  0xbc   : > { %v584_v34 = vadd.f32 %v2475_v22, %v496_v24  ;;  %v586_v35 = vadd.f32 %v2475_v22, %v498_v25  ;;  %v583_v37 = vadd.f32 %v2475_v22, %v495_v26  ;;  %v585_v39 = vadd.f32 %v2475_v22, %v497_v27 }
  0xbd   : > { %v2495_v40 = vpop.permute.xlu1 %570  ;;  %v2497_v41 = vpop.permute.xlu0 %482  ;;  %v2500_v42 = vadd.f32 %v2475_v22, %v500_v30  ;;  %v2503_v43 = vadd.f32 %v2475_v22, %v502_v31  ;;  %v2506_v44 = vadd.f32 %v2475_v22, %v499_v32  ;;  %v2509_v45 = vadd.f32 %v2475_v22, %v501_v33 }
  0xbe   : > { %v512_v46 = vmul.f32 %v2497_v41, %v424_v28  ;;  %v648_v47 = vmul.f32 0.2, %v584_v34  ;;  %v514_v48 = vmul.f32 %v2497_v41, %v426_v29  ;;  %v650_v49 = vmul.f32 0.2, %v586_v35 }
  0xbf   : > { %v511_v50 = vmul.f32 %v2497_v41, %v423_v36  ;;  %v647_v51 = vmul.f32 0.2, %v583_v37  ;;  %v513_v52 = vmul.f32 %v2497_v41, %v425_v38  ;;  %v649_v53 = vmul.f32 0.2, %v585_v39 }
  0xc0   : > { %v600_v56 = vadd.f32 %v2495_v40, %v512_v46  ;;  %v712_v57 = vmax.f32 %v584_v34, %v648_v47  ;;  %v602_v58 = vadd.f32 %v2495_v40, %v514_v48  ;;  %v714_v59 = vmax.f32 %v586_v35, %v650_v49 }
  0xc1   : > { %v2521_v62 = vpop.permute.xlu1 %492  ;;  %v2523_v63 = vpop.permute.xlu0 %487  ;;  %v599_v0 = vadd.f32 %v2495_v40, %v511_v50  ;;  %v711_v1 = vmax.f32 %v583_v37, %v647_v51  ;;  %v601_v2 = vadd.f32 %v2495_v40, %v513_v52  ;;  %v713_v3 = vmax.f32 %v585_v39, %v649_v53  ;;  %v428_v51 = vld [vmem:[%s2465_s23 + $0xa8] sm:$0xff] }
  0xc2   : > { %v664_v6 = vmul.f32 0.2, %v600_v56  ;;  %v666_v7 = vmul.f32 0.2, %v602_v58  ;;  %v528_v8 = vmul.f32 %v2523_v63, %v440_v54  ;;  %v544_v9 = vmul.f32 %v2521_v62, %v456_v55 }
  0xc3   : > { %v663_v12 = vmul.f32 0.2, %v599_v0  ;;  %v665_v14 = vmul.f32 0.2, %v601_v2  ;;  %v530_v15 = vmul.f32 %v2523_v63, %v442_v60  ;;  %v546_v16 = vmul.f32 %v2521_v62, %v458_v61  ;;  %v430_v60 = vld [vmem:[%s2465_s23 + $0xb8] sm:$0xff] }
  0xc4   : > { %v728_v17 = vmax.f32 %v600_v56, %v664_v6  ;;  %v730_v18 = vmax.f32 %v602_v58, %v666_v7  ;;  %v527_v19 = vmul.f32 %v2523_v63, %v439_v4  ;;  %v543_v20 = vmul.f32 %v2521_v62, %v455_v5 }
  0xc5   : > { %v2537_v21 = vpop.permute.xlu1 %580  ;;  %v2539_v24 = vpop.permute.xlu0 %575  ;;  %v727_v25 = vmax.f32 %v599_v0, %v663_v12  ;;  %v729_v26 = vmax.f32 %v601_v2, %v665_v14  ;;  %v529_v27 = vmul.f32 %v2523_v63, %v441_v10  ;;  %v545_v28 = vmul.f32 %v2521_v62, %v457_v11  ;;  %v444_v14 = vld [vmem:[%s2465_s23 + $0x128] sm:$0xff] }
  0xc6   : > { %v2095_v29 = vpack.c.bf16 %v728_v17, %v712_v57  ;;  %v2103_v30 = vpack.c.bf16 %v730_v18, %v714_v59  ;;  %v616_v31 = vadd.f32 %v2539_v24, %v528_v8  ;;  %v632_v32 = vadd.f32 %v2537_v21, %v544_v9  ;;  %v429_v8 = vld [vmem:[%s2465_s23 + $0xb0] sm:$0xff] }
  0xc7   : > { %v2097_v33 = vpack.c.bf16 %v727_v25, %v711_v1  ;;  %v2105_v34 = vpack.c.bf16 %v729_v26, %v713_v3  ;;  %v618_v35 = vadd.f32 %v2539_v24, %v530_v15  ;;  %v634_v36 = vadd.f32 %v2537_v21, %v546_v16  ;;  %v427_v3 = vld [vmem:[%s2465_s23 + $0xa0] sm:$0xff] }
  0xc8   : > { %2096 = vmatprep.subr.bf16.mxu0 %v2095_v29  ;;  %2104 = vmatprep.subr.bf16.mxu1 %v2103_v30  ;;  %v680_v37 = vmul.f32 0.2, %v616_v31  ;;  %v696_v38 = vmul.f32 0.2, %v632_v32  ;;  %v615_v39 = vadd.f32 %v2539_v24, %v527_v19  ;;  %v631_v46 = vadd.f32 %v2537_v21, %v543_v20  ;;  %v460_v19 = vld [vmem:[%s2465_s23 + $0x1a8] sm:$0xff] }
  0xc9   : > { %2098 = vmatpush1.bf16.msra.mxu0 %v2097_v33  ;;  %2106 = vmatpush1.bf16.msra.mxu1 %v2105_v34  ;;  %v682_v47 = vmul.f32 0.2, %v618_v35  ;;  %v698_v48 = vmul.f32 0.2, %v634_v36  ;;  %v617_v49 = vadd.f32 %v2539_v24, %v529_v27  ;;  %v633_v50 = vadd.f32 %v2537_v21, %v545_v28  ;;  %v2570_v27 = vld [vmem:[%s3157_s3] sm:$0xff] }
  0xca   : > { %v744_v52 = vmax.f32 %v616_v31, %v680_v37  ;;  %v760_v53 = vmax.f32 %v632_v32, %v696_v38  ;;  %v679_v54 = vmul.f32 0.2, %v615_v39  ;;  %v695_v55 = vmul.f32 0.2, %v631_v46 }
  0xcb   : > { %v746_v56 = vmax.f32 %v618_v35, %v682_v47  ;;  %v762_v57 = vmax.f32 %v634_v36, %v698_v48  ;;  %v681_v58 = vmul.f32 0.2, %v617_v49  ;;  %v697_v59 = vmul.f32 0.2, %v633_v50  ;;  %v462_v36 = vld [vmem:[%s2465_s23 + $0x1b8] sm:$0xff] }
  0xcc   : > { %v2099_v61 = vpack.c.bf16 %v760_v53, %v744_v52  ;;  %v743_v0 = vmax.f32 %v615_v39, %v679_v54  ;;  %v759_v1 = vmax.f32 %v631_v46, %v695_v55  ;;  %v516_v2 = vmul.f32 %v2497_v41, %v428_v51  ;;  %v443_v46 = vld [vmem:[%s2465_s23 + $0x120] sm:$0xff] }
  0xcd   : > { %v2107_v4 = vpack.c.bf16 %v762_v57, %v746_v56  ;;  %v745_v5 = vmax.f32 %v617_v49, %v681_v58  ;;  %v761_v6 = vmax.f32 %v633_v50, %v697_v59  ;;  %v652_v7 = vmul.f32 0.2, %v2500_v42  ;;  %v459_v55 = vld [vmem:[%s2465_s23 + $0x1a0] sm:$0xff] }
  0xce   : > { %2100 = vmatprep.subr.bf16.mxu0 %v2099_v61  ;;  %v2101_v9 = vpack.c.bf16 %v759_v1, %v743_v0  ;;  %v604_v10 = vadd.f32 %v2495_v40, %v516_v2  ;;  %v518_v11 = vmul.f32 %v2497_v41, %v430_v60  ;;  %v654_v12 = vmul.f32 0.2, %v2503_v43  ;;  %v445_v60 = vld [vmem:[%s2465_s23 + $0x130] sm:$0xff] }
  0xcf   : > { %2108 = vmatprep.subr.bf16.mxu1 %v2107_v4  ;;  %v2109_v15 = vpack.c.bf16 %v761_v6, %v745_v5  ;;  %v716_v16 = vmax.f32 %v2500_v42, %v652_v7  ;;  %v515_v17 = vmul.f32 %v2497_v41, %v427_v3  ;;  %v651_v18 = vmul.f32 0.2, %v2506_v44  ;;  %v446_v42 = vld [vmem:[%s2465_s23 + $0x138] sm:$0xff]  ;;  %v461_v3 = vld [vmem:[%s2465_s23 + $0x1b0] sm:$0xff]  ;;  %v416_v4 = vld [vmem:[%s2465_s23 + $0x48] sm:$0xff] }
  0xd0   : > { %2102 = vmatpush1.bf16.msra.mxu0 %v2101_v9  ;;  %v668_v20 = vmul.f32 0.2, %v604_v10  ;;  %v606_v25 = vadd.f32 %v2495_v40, %v518_v11  ;;  %v718_v26 = vmax.f32 %v2503_v43, %v654_v12  ;;  %v517_v28 = vmul.f32 %v2497_v41, %v429_v8  ;;  %v432_v8 = vld [vmem:[%s2465_s23 + $0xc8] sm:$0xff]  ;;  %v2614_v9 = vld [vmem:[%s3157_s3 + $0x10] sm:$0xff] }
  0xd1   : > { %2110 = vmatpush1.bf16.msra.mxu1 %v2109_v15  ;;  %v603_v29 = vadd.f32 %v2495_v40, %v515_v17  ;;  %v715_v30 = vmax.f32 %v2506_v44, %v651_v18  ;;  %v653_v31 = vmul.f32 0.2, %v2509_v45  ;;  %v532_v32 = vmul.f32 %v2523_v63, %v444_v14  ;;  %v418_v15 = vld [vmem:[%s2465_s23 + $0x58] sm:$0xff] }
  0xd2   : > { %v732_v33 = vmax.f32 %v604_v10, %v668_v20  ;;  %v670_v43 = vmul.f32 0.2, %v606_v25  ;;  %v605_v34 = vadd.f32 %v2495_v40, %v517_v28  ;;  %v548_v35 = vmul.f32 %v2521_v62, %v460_v19 }
  0xd3   : > { %2055 = vmatmul.mubr.msk.f32.vlgmr.msra.gmra.mrb[0].mxu0 %vm803_vm0, %v2570_v27  ;;  %v667_v37 = vmul.f32 0.2, %v603_v29  ;;  %v717_v38 = vmax.f32 %v2509_v45, %v653_v31  ;;  %v620_v44 = vadd.f32 %v2539_v24, %v532_v32  ;;  %v534_v39 = vmul.f32 %v2523_v63, %v446_v42  ;;  %v2594_v45 = vld [vmem:[%s3157_s3 + $0x8] sm:$0xff]  ;;  %v434_v42 = vld [vmem:[%s2465_s23 + $0xd8] sm:$0xff] }
  0xd4   : > { %v2111_v47 = vpack.c.bf16 %v732_v33, %v716_v16  ;;  %v734_v48 = vmax.f32 %v606_v25, %v670_v43  ;;  %2059 = vmatmul.mubr.msk.f32.vlgmr.msra.gmra.mrb[0].mxu1 %vm803_vm0, %v2570_v27  ;;  %v669_v49 = vmul.f32 0.2, %v605_v34  ;;  %v636_v50 = vadd.f32 %v2537_v21, %v548_v35  ;;  %886 = vmatprep.mubr.f32.mxu0 %v2212_v13  ;;  %v2637_v33 = vld [vmem:[%s3157_s3 + $0x18] sm:$0xff]  ;;  %v415_v43 = vld [vmem:[%s2465_s23 + $0x40] sm:$0xff] }
  0xd5   : > { %v731_v51 = vmax.f32 %v603_v29, %v667_v37  ;;  %v684_v52 = vmul.f32 0.2, %v620_v44  ;;  %v550_v53 = vmul.f32 %v2521_v62, %v462_v36  ;;  %v622_v54 = vadd.f32 %v2539_v24, %v534_v39  ;;  %975 = vmatprep.mubr.f32.mxu1 %v2212_v13 }
  0xd6   : > { %2112 = vmatprep.subr.bf16.mxu0 %v2111_v47  ;;  %v2119_v56 = vpack.c.bf16 %v734_v48, %v718_v26  ;;  %v733_v57 = vmax.f32 %v605_v34, %v669_v49  ;;  %v700_v58 = vmul.f32 0.2, %v636_v50  ;;  %v531_v59 = vmul.f32 %v2523_v63, %v443_v46  ;;  %v431_v47 = vld [vmem:[%s2465_s23 + $0xc0] sm:$0xff] }
  0xd7   : > { %v2113_v61 = vpack.c.bf16 %v731_v51, %v715_v30  ;;  %v748_v0 = vmax.f32 %v620_v44, %v684_v52  ;;  %v638_v1 = vadd.f32 %v2537_v21, %v550_v53  ;;  %v686_v2 = vmul.f32 0.2, %v622_v54  ;;  %2056 = vmatmul.mubr.msk.f32.gmra.mrb[2].mxu0 %vm803_vm0, %v2594_v45  ;;  %v417_v52 = vld [vmem:[%s2465_s23 + $0x50] sm:$0xff] }
  0xd8   : > { %2120 = vmatprep.subr.bf16.mxu1 %v2119_v56  ;;  %v2121_v5 = vpack.c.bf16 %v733_v57, %v717_v38  ;;  %v764_v6 = vmax.f32 %v636_v50, %v700_v58  ;;  %2060 = vmatmul.mubr.msk.f32.gmra.mrb[2].mxu1 %vm803_vm0, %v2594_v45  ;;  %v547_v7 = vmul.f32 %v2521_v62, %v459_v55  ;;  %v433_v53 = vld [vmem:[%s2465_s23 + $0xd0] sm:$0xff] }
  0xd9   : > { %2114 = vmatpush1.bf16.msra.mxu0 %v2113_v61  ;;  %v702_v10 = vmul.f32 0.2, %v638_v1  ;;  %v750_v11 = vmax.f32 %v622_v54, %v686_v2  ;;  %v619_v12 = vadd.f32 %v2539_v24, %v531_v59  ;;  %v533_v14 = vmul.f32 %v2523_v63, %v445_v60  ;;  %892 = vmatprep.mubr.f32.mxu0 %v2212_v13 }
  0xda   : > { %2122 = vmatpush1.bf16.msra.mxu1 %v2121_v5  ;;  %v2115_v16 = vpack.c.bf16 %v764_v6, %v748_v0  ;;  %v635_v17 = vadd.f32 %v2537_v21, %v547_v7  ;;  %v549_v18 = vmul.f32 %v2521_v62, %v461_v3  ;;  %v504_v19 = vmul.f32 %v2477_v23, %v416_v4  ;;  %v448_v0 = vld [vmem:[%s2465_s23 + $0x148] sm:$0xff]  ;;  %v450_v6 = vld [vmem:[%s2465_s23 + $0x158] sm:$0xff] }
  0xdb   : > { %v766_v20 = vmax.f32 %v638_v1, %v702_v10  ;;  %v683_v25 = vmul.f32 0.2, %v619_v12  ;;  %v621_v26 = vadd.f32 %v2539_v24, %v533_v14  ;;  %v520_v28 = vmul.f32 %v2497_v41, %v432_v8  ;;  %981 = vmatprep.mubr.f32.mxu1 %v2212_v13  ;;  %2057 = vmatmul.mubr.msk.f32.gmra.mrb[4].mxu0 %vm803_vm0, %v2614_v9  ;;  %v464_v5 = vld [vmem:[%s2465_s23 + $0x1c8] sm:$0xff] }
  0xdc   : > { %2116 = vmatprep.subr.bf16.mxu0 %v2115_v16  ;;  %v699_v29 = vmul.f32 0.2, %v635_v17  ;;  %v637_v30 = vadd.f32 %v2537_v21, %v549_v18  ;;  %v592_v31 = vadd.f32 %v2475_v22, %v504_v19  ;;  %v506_v32 = vmul.f32 %v2477_v23, %v418_v15  ;;  %2061 = vmatmul.mubr.msk.f32.gmra.mrb[4].mxu1 %vm803_vm0, %v2614_v9 }
  0xdd   : > { %v2123_v34 = vpack.c.bf16 %v766_v20, %v750_v11  ;;  %v747_v35 = vmax.f32 %v619_v12, %v683_v25  ;;  %v685_v36 = vmul.f32 0.2, %v621_v26  ;;  %v608_v37 = vadd.f32 %v2495_v40, %v520_v28  ;;  %898 = vmatprep.mubr.f32.mxu0 %v2212_v13  ;;  %987 = vmatprep.mubr.f32.mxu1 %v2212_v13 }
  0xde   : > { %v763_v38 = vmax.f32 %v635_v17, %v699_v29  ;;  %v701_v44 = vmul.f32 0.2, %v637_v30  ;;  %v656_v39 = vmul.f32 0.2, %v592_v31  ;;  %v522_v46 = vmul.f32 %v2497_v41, %v434_v42  ;;  %v466_v17 = vld [vmem:[%s2465_s23 + $0x1d8] sm:$0xff] }
  0xdf   : > { %2124 = vmatprep.subr.bf16.mxu1 %v2123_v34  ;;  %v749_v48 = vmax.f32 %v621_v26, %v685_v36  ;;  %v672_v49 = vmul.f32 0.2, %v608_v37  ;;  %v594_v50 = vadd.f32 %v2475_v22, %v506_v32  ;;  %2058 = vmatmul.mubr.msk.f32.gmra.mrb[6].mxu0 %vm803_vm0, %v2637_v33  ;;  %v503_v51 = vmul.f32 %v2477_v23, %v415_v43  ;;  %v447_v26 = vld [vmem:[%s2465_s23 + $0x140] sm:$0xff] }
  0xe0   : > { %v2117_v54 = vpack.c.bf16 %v763_v38, %v747_v35  ;;  %v765_v55 = vmax.f32 %v637_v30, %v701_v44  ;;  %v720_v56 = vmax.f32 %v592_v31, %v656_v39  ;;  %v610_v57 = vadd.f32 %v2495_v40, %v522_v46  ;;  %2062 = vmatmul.mubr.msk.f32.gmra.mrb[6].mxu1 %vm803_vm0, %v2637_v33  ;;  %v463_v35 = vld [vmem:[%s2465_s23 + $0x1c0] sm:$0xff]  ;;  %v449_v39 = vld [vmem:[%s2465_s23 + $0x150] sm:$0xff] }
  0xe1   : > { %v736_v58 = vmax.f32 %v608_v37, %v672_v49  ;;  %v658_v59 = vmul.f32 0.2, %v594_v50  ;;  %1058 = vmatprep.mubr.f32.mxu0 %v2212_v13  ;;  %1147 = vmatprep.mubr.f32.mxu1 %v2212_v13  ;;  %v519_v60 = vmul.f32 %v2497_v41, %v431_v47  ;;  %v591_v61 = vadd.f32 %v2475_v22, %v503_v51  ;;  %v420_v51 = vld [vmem:[%s2465_s23 + $0x68] sm:$0xff] }
  0xe2   : > { %2118 = vmatpush1.bf16.msra.mxu0 %v2117_v54  ;;  %v2125_v1 = vpack.c.bf16 %v765_v55, %v749_v48  ;;  %v674_v2 = vmul.f32 0.2, %v610_v57  ;;  %v505_v3 = vmul.f32 %v2477_v23, %v417_v52  ;;  %v521_v4 = vmul.f32 %v2497_v41, %v433_v53 }
  0xe3   : > { %v2127_v7 = vpack.c.bf16 %v736_v58, %v720_v56  ;;  %v722_v8 = vmax.f32 %v594_v50, %v658_v59  ;;  %v607_v10 = vadd.f32 %v2495_v40, %v519_v60  ;;  %v655_v11 = vmul.f32 0.2, %v591_v61  ;;  %v465_v50 = vld [vmem:[%s2465_s23 + $0x1d0] sm:$0xff]  ;;  %v436_v56 = vld [vmem:[%s2465_s23 + $0xe8] sm:$0xff] }
  0xe4   : > { %2126 = vmatpush1.bf16.msra.mxu1 %v2125_v1  ;;  %v738_v12 = vmax.f32 %v610_v57, %v674_v2  ;;  %v593_v14 = vadd.f32 %v2475_v22, %v505_v3  ;;  %v609_v15 = vadd.f32 %v2495_v40, %v521_v4  ;;  %v536_v16 = vmul.f32 %v2523_v63, %v448_v0  ;;  %v422_v3 = vld [vmem:[%s2465_s23 + $0x78] sm:$0xff] }
  0xe5   : > { %2128 = vmatprep.subr.bf16.mxu0 %v2127_v7  ;;  %2063 = vmatmul.mubr.msk.f32.vlgmr.msra.gmra.mrb[8].mxu0 %vm803_vm0, %v2570_v27  ;;  %v671_v18 = vmul.f32 0.2, %v607_v10  ;;  %v719_v19 = vmax.f32 %v591_v61, %v655_v11  ;;  %v552_v20 = vmul.f32 %v2521_v62, %v464_v5  ;;  %v538_v25 = vmul.f32 %v2523_v63, %v450_v6 }
  0xe6   : > { %v2135_v28 = vpack.c.bf16 %v738_v12, %v722_v8  ;;  %v657_v42 = vmul.f32 0.2, %v593_v14  ;;  %v673_v29 = vmul.f32 0.2, %v609_v15  ;;  %v624_v30 = vadd.f32 %v2539_v24, %v536_v16  ;;  %1064 = vmatprep.mubr.f32.mxu0 %v2212_v13  ;;  %v438_v8 = vld [vmem:[%s2465_s23 + $0xf8] sm:$0xff] }
  0xe7   : > { %2067 = vmatmul.mubr.msk.f32.vlgmr.msra.gmra.mrb[8].mxu1 %vm803_vm0, %v2570_v27  ;;  %v735_v31 = vmax.f32 %v607_v10, %v671_v18  ;;  %v640_v32 = vadd.f32 %v2537_v21, %v552_v20  ;;  %v554_v43 = vmul.f32 %v2521_v62, %v466_v17  ;;  %v626_v34 = vadd.f32 %v2539_v24, %v538_v25 }
  0xe8   : > { %2136 = vmatprep.subr.bf16.mxu1 %v2135_v28  ;;  %v721_v36 = vmax.f32 %v593_v14, %v657_v42  ;;  %v737_v37 = vmax.f32 %v609_v15, %v673_v29  ;;  %v688_v38 = vmul.f32 0.2, %v624_v30  ;;  %1153 = vmatprep.mubr.f32.mxu1 %v2212_v13  ;;  %v535_v44 = vmul.f32 %v2523_v63, %v447_v26  ;;  %v419_v15 = vld [vmem:[%s2465_s23 + $0x60] sm:$0xff] }
  0xe9   : > { %v2129_v46 = vpack.c.bf16 %v735_v31, %v719_v19  ;;  %v704_v47 = vmul.f32 0.2, %v640_v32  ;;  %v642_v48 = vadd.f32 %v2537_v21, %v554_v43  ;;  %v690_v49 = vmul.f32 0.2, %v626_v34  ;;  %2064 = vmatmul.mubr.msk.f32.gmra.mrb[10].mxu0 %vm803_vm0, %v2594_v45  ;;  %v435_v42 = vld [vmem:[%s2465_s23 + $0xe0] sm:$0xff]  ;;  %v421_v43 = vld [vmem:[%s2465_s23 + $0x70] sm:$0xff] }
  0xea   : > { %v2137_v52 = vpack.c.bf16 %v737_v37, %v721_v36  ;;  %v752_v53 = vmax.f32 %v624_v30, %v688_v38  ;;  %v551_v54 = vmul.f32 %v2521_v62, %v463_v35  ;;  %v623_v55 = vadd.f32 %v2539_v24, %v535_v44  ;;  %1070 = vmatprep.mubr.f32.mxu0 %v2212_v13 }
  0xeb   : > { %2130 = vmatpush1.bf16.msra.mxu0 %v2129_v46  ;;  %v768_v57 = vmax.f32 %v640_v32, %v704_v47  ;;  %v706_v58 = vmul.f32 0.2, %v642_v48  ;;  %v754_v59 = vmax.f32 %v626_v34, %v690_v49  ;;  %2068 = vmatmul.mubr.msk.f32.gmra.mrb[10].mxu1 %vm803_vm0, %v2594_v45  ;;  %v537_v60 = vmul.f32 %v2523_v63, %v449_v39  ;;  %v437_v34 = vld [vmem:[%s2465_s23 + $0xf0] sm:$0xff] }
  0xec   : > { %2138 = vmatpush1.bf16.msra.mxu1 %v2137_v52  ;;  %v639_v61 = vadd.f32 %v2537_v21, %v551_v54  ;;  %v687_v0 = vmul.f32 0.2, %v623_v55  ;;  %v553_v1 = vmul.f32 %v2521_v62, %v465_v50  ;;  %v508_v2 = vmul.f32 %v2477_v23, %v420_v51  ;;  %1159 = vmatprep.mubr.f32.mxu1 %v2212_v13  ;;  %v454_v54 = vld [vmem:[%s2465_s23 + $0x178] sm:$0xff] }
  0xed   : > { %v2131_v4 = vpack.c.bf16 %v768_v57, %v752_v53  ;;  %v770_v5 = vmax.f32 %v642_v48, %v706_v58  ;;  %v625_v6 = vadd.f32 %v2539_v24, %v537_v60  ;;  %v524_v7 = vmul.f32 %v2497_v41, %v436_v56  ;;  %2065 = vmatmul.mubr.msk.f32.gmra.mrb[12].mxu0 %vm803_vm0, %v2614_v9  ;;  %v452_v48 = vld [vmem:[%s2465_s23 + $0x168] sm:$0xff] }
  0xee   : > { %v703_v10 = vmul.f32 0.2, %v639_v61  ;;  %v751_v11 = vmax.f32 %v623_v55, %v687_v0  ;;  %v641_v12 = vadd.f32 %v2537_v21, %v553_v1  ;;  %v596_v14 = vadd.f32 %v2475_v22, %v508_v2  ;;  %1076 = vmatprep.mubr.f32.mxu0 %v2212_v13  ;;  %v468_v53 = vld [vmem:[%s2465_s23 + $0x1e8] sm:$0xff]  ;;  %v470_v1 = vld [vmem:[%s2465_s23 + $0x1f8] sm:$0xff] }
  0xef   : > { %2132 = vmatprep.subr.bf16.mxu0 %v2131_v4  ;;  %v2139_v16 = vpack.c.bf16 %v770_v5, %v754_v59  ;;  %v689_v17 = vmul.f32 0.2, %v625_v6  ;;  %v612_v18 = vadd.f32 %v2495_v40, %v524_v7  ;;  %v510_v19 = vmul.f32 %v2477_v23, %v422_v3  ;;  %2069 = vmatmul.mubr.msk.f32.gmra.mrb[12].mxu1 %vm803_vm0, %v2614_v9  ;;  %v451_v4 = vld [vmem:[%s2465_s23 + $0x160] sm:$0xff] }
  0xf0   : > { %v767_v20 = vmax.f32 %v639_v61, %v703_v10  ;;  %v705_v25 = vmul.f32 0.2, %v641_v12  ;;  %v660_v26 = vmul.f32 0.2, %v596_v14  ;;  %v526_v28 = vmul.f32 %v2497_v41, %v438_v8  ;;  %1165 = vmatprep.mubr.f32.mxu1 %v2212_v13 }
  0xf1   : > { %2140 = vmatprep.subr.bf16.mxu1 %v2139_v16  ;;  %v753_v29 = vmax.f32 %v625_v6, %v689_v17  ;;  %v676_v30 = vmul.f32 0.2, %v612_v18  ;;  %v598_v31 = vadd.f32 %v2475_v22, %v510_v19  ;;  %2066 = vmatmul.mubr.msk.f32.gmra.mrb[14].mxu0 %vm803_vm0, %v2637_v33  ;;  %v507_v32 = vmul.f32 %v2477_v23, %v419_v15 }
  0xf2   : > { %v2133_v35 = vpack.c.bf16 %v767_v20, %v751_v11  ;;  %v769_v36 = vmax.f32 %v641_v12, %v705_v25  ;;  %v724_v37 = vmax.f32 %v596_v14, %v660_v26  ;;  %v614_v38 = vadd.f32 %v2495_v40, %v526_v28  ;;  %1236 = vmatprep.mubr.f32.mxu0 %v2212_v13  ;;  %v467_v12 = vld [vmem:[%s2465_s23 + $0x1e0] sm:$0xff]  ;;  %v469_v28 = vld [vmem:[%s2465_s23 + $0x1f0] sm:$0xff] }
  0xf3   : > { %v740_v44 = vmax.f32 %v612_v18, %v676_v30  ;;  %v662_v39 = vmul.f32 0.2, %v598_v31  ;;  %2070 = vmatmul.mubr.msk.f32.gmra.mrb[14].mxu1 %vm803_vm0, %v2637_v33  ;;  %v523_v46 = vmul.f32 %v2497_v41, %v435_v42  ;;  %v595_v47 = vadd.f32 %v2475_v22, %v507_v32  ;;  %v453_v18 = vld [vmem:[%s2465_s23 + $0x170] sm:$0xff] }
  0xf4   : > { %2134 = vmatpush1.bf16.msra.mxu0 %v2133_v35  ;;  %v2141_v49 = vpack.c.bf16 %v769_v36, %v753_v29  ;;  %v678_v50 = vmul.f32 0.2, %v614_v38  ;;  %1325 = vmatprep.mubr.f32.mxu1 %v2212_v13  ;;  %v509_v51 = vmul.f32 %v2477_v23, %v421_v43  ;;  %v525_v52 = vmul.f32 %v2497_v41, %v437_v34 }
  0xf5   : > { %v2143_v55 = vpack.c.bf16 %v740_v44, %v724_v37  ;;  %v726_v56 = vmax.f32 %v598_v31, %v662_v39  ;;  %v611_v57 = vadd.f32 %v2495_v40, %v523_v46  ;;  %v659_v58 = vmul.f32 0.2, %v595_v47 }
  0xf6   : > { %2142 = vmatpush1.bf16.msra.mxu1 %v2141_v49  ;;  %v742_v59 = vmax.f32 %v614_v38, %v678_v50  ;;  %v597_v60 = vadd.f32 %v2475_v22, %v509_v51  ;;  %v613_v61 = vadd.f32 %v2495_v40, %v525_v52  ;;  %v540_v0 = vmul.f32 %v2523_v63, %v452_v48 }
  0xf7   : > { %2144 = vmatprep.subr.bf16.mxu0 %v2143_v55  ;;  %2071 = vmatmul.mubr.msk.f32.vlgmr.msra.gmra.mrb[16].mxu0 %vm803_vm0, %v2570_v27  ;;  %v675_v23 = vmul.f32 0.2, %v611_v57  ;;  %v723_v41 = vmax.f32 %v595_v47, %v659_v58  ;;  %v556_v2 = vmul.f32 %v2521_v62, %v468_v53  ;;  %v542_v3 = vmul.f32 %v2523_v63, %v454_v54 }
  0xf8   : > { %v2151_v5 = vpack.c.bf16 %v742_v59, %v726_v56  ;;  %v661_v6 = vmul.f32 0.2, %v597_v60  ;;  %v677_v22 = vmul.f32 0.2, %v613_v61  ;;  %v628_v40 = vadd.f32 %v2539_v24, %v540_v0  ;;  %1242 = vmatprep.mubr.f32.mxu0 %v2212_v13  ;;  %v2815_v59 = vpop.permute.xlu1 %790 }
  0xf9   : > { %2075 = vmatmul.mubr.msk.f32.vlgmr.msra.gmra.mrb[16].mxu1 %vm803_vm0, %v2570_v27  ;;  %v739_v7 = vmax.f32 %v611_v57, %v675_v23  ;;  %v644_v8 = vadd.f32 %v2537_v21, %v556_v2  ;;  %v558_v10 = vmul.f32 %v2521_v62, %v470_v1  ;;  %v630_v11 = vadd.f32 %v2539_v24, %v542_v3 }
  0xfa   : > { %2152 = vmatprep.subr.bf16.mxu1 %v2151_v5  ;;  %v725_v14 = vmax.f32 %v597_v60, %v661_v6  ;;  %v741_v15 = vmax.f32 %v613_v61, %v677_v22  ;;  %v692_v16 = vmul.f32 0.2, %v628_v40  ;;  %1331 = vmatprep.mubr.f32.mxu1 %v2212_v13  ;;  %v539_v17 = vmul.f32 %v2523_v63, %v451_v4 }
  0xfb   : > { %v2145_v19 = vpack.c.bf16 %v739_v7, %v723_v41  ;;  %v708_v20 = vmul.f32 0.2, %v644_v8  ;;  %v646_v25 = vadd.f32 %v2537_v21, %v558_v10  ;;  %v694_v26 = vmul.f32 0.2, %v630_v11  ;;  %2072 = vmatmul.mubr.msk.f32.gmra.mrb[18].mxu0 %vm803_vm0, %v2594_v45 }
  0xfc   : > { %v2153_v42 = vpack.c.bf16 %v741_v15, %v725_v14  ;;  %v756_v29 = vmax.f32 %v628_v40, %v692_v16  ;;  %v555_v30 = vmul.f32 %v2521_v62, %v467_v12  ;;  %v627_v31 = vadd.f32 %v2539_v24, %v539_v17  ;;  %1248 = vmatprep.mubr.f32.mxu0 %v2212_v13 }
  0xfd   : > { %2146 = vmatpush1.bf16.msra.mxu0 %v2145_v19  ;;  %v772_v32 = vmax.f32 %v644_v8, %v708_v20  ;;  %v710_v43 = vmul.f32 0.2, %v646_v25  ;;  %v758_v34 = vmax.f32 %v630_v11, %v694_v26  ;;  %2076 = vmatmul.mubr.msk.f32.gmra.mrb[18].mxu1 %vm803_vm0, %v2594_v45  ;;  %v541_v35 = vmul.f32 %v2523_v63, %v453_v18 }
  0xfe   : > { %2154 = vmatpush1.bf16.msra.mxu1 %v2153_v42  ;;  %v643_v36 = vadd.f32 %v2537_v21, %v555_v30  ;;  %v691_v37 = vmul.f32 0.2, %v627_v31  ;;  %v557_v38 = vmul.f32 %v2521_v62, %v469_v28  ;;  %1337 = vmatprep.mubr.f32.mxu1 %v2212_v13 }
  0xff   : > { %v2147_v44 = vpack.c.bf16 %v772_v32, %v756_v29  ;;  %v774_v39 = vmax.f32 %v646_v25, %v710_v43  ;;  %v629_v46 = vadd.f32 %v2539_v24, %v541_v35  ;;  %2073 = vmatmul.mubr.msk.f32.gmra.mrb[20].mxu0 %vm803_vm0, %v2614_v9  ;;  %v2839_v43 = vpop.permute.xlu1 %800 }
 0x100   : > { %v707_v47 = vmul.f32 0.2, %v643_v36  ;;  %v755_v48 = vmax.f32 %v627_v31, %v691_v37  ;;  %v645_v49 = vadd.f32 %v2537_v21, %v557_v38  ;;  %1254 = vmatprep.mubr.f32.mxu0 %v2212_v13 }
 0x101   : > { %2148 = vmatprep.subr.bf16.mxu0 %v2147_v44  ;;  %v2155_v63 = vpack.c.bf16 %v774_v39, %v758_v34  ;;  %v693_v50 = vmul.f32 0.2, %v629_v46  ;;  %2077 = vmatmul.mubr.msk.f32.gmra.mrb[20].mxu1 %vm803_vm0, %v2614_v9 }
 0x102   : > { %v771_v62 = vmax.f32 %v643_v36, %v707_v47  ;;  %v709_v51 = vmul.f32 0.2, %v645_v49  ;;  %1343 = vmatprep.mubr.f32.mxu1 %v2212_v13 }
 0x103   : > { %2156 = vmatprep.subr.bf16.mxu1 %v2155_v63  ;;  %v757_v24 = vmax.f32 %v629_v46, %v693_v50  ;;  %2074 = vmatmul.mubr.msk.f32.gmra.mrb[22].mxu0 %vm803_vm0, %v2637_v33 }
 0x104   : > { %v2149_v52 = vpack.c.bf16 %v771_v62, %v755_v48  ;;  %v773_v53 = vmax.f32 %v645_v49, %v709_v51  ;;  %1414 = vmatprep.mubr.f32.mxu0 %v2212_v13 }
 0x105   : > { %2078 = vmatmul.mubr.msk.f32.gmra.mrb[22].mxu1 %vm803_vm0, %v2637_v33 }
 0x106   : > { %2150 = vmatpush1.bf16.msra.mxu0 %v2149_v52  ;;  %v2157_v21 = vpack.c.bf16 %v773_v53, %v757_v24  ;;  %1503 = vmatprep.mubr.f32.mxu1 %v2212_v13 }
 0x108   : > { %2158 = vmatpush1.bf16.msra.mxu1 %v2157_v21 }
 0x109   : > { %2079 = vmatmul.mubr.msk.f32.vlgmr.msra.gmra.mrb[24].mxu0 %vm803_vm0, %v2570_v27 }
 0x10a   : > { %1420 = vmatprep.mubr.f32.mxu0 %v2212_v13 }
 0x10b   : > { %2083 = vmatmul.mubr.msk.f32.vlgmr.msra.gmra.mrb[24].mxu1 %vm803_vm0, %v2570_v27  ;;  %v2805_v27 = vpop.permute.xlu0 %785 }
 0x10c   : > { %1509 = vmatprep.mubr.f32.mxu1 %v2212_v13 }
 0x10d   : > { %2080 = vmatmul.mubr.msk.f32.gmra.mrb[26].mxu0 %vm803_vm0, %v2594_v45 }
 0x10e   : > { %1426 = vmatprep.mubr.f32.mxu0 %v2212_v13 }
 0x10f   : > { %2084 = vmatmul.mubr.msk.f32.gmra.mrb[26].mxu1 %vm803_vm0, %v2594_v45  ;;  %v2825_v8 = vpop.permute.xlu0 %795 }
 0x110   : > { %1515 = vmatprep.mubr.f32.mxu1 %v2212_v13 }
 0x111   : > { %2081 = vmatmul.mubr.msk.f32.gmra.mrb[28].mxu0 %vm803_vm0, %v2614_v9 }
 0x112   : > { %1432 = vmatprep.mubr.f32.mxu0 %v2212_v13 }
 0x113   : > { %2085 = vmatmul.mubr.msk.f32.gmra.mrb[28].mxu1 %vm803_vm0, %v2614_v9 }
 0x114   : > { %1521 = vmatprep.mubr.f32.mxu1 %v2212_v13 }
 0x115   : > { %2082 = vmatmul.mubr.msk.f32.gmra.mrb[30].mxu0 %vm803_vm0, %v2637_v33 }
 0x117   : > { %2086 = vmatmul.mubr.msk.f32.gmra.mrb[30].mxu1 %vm803_vm0, %v2637_v33 }
 0x1a6   : > { %v882_v45 = vpop.f32.mrb[0].mxu0 }
 0x1a7   : > { %v883_v54 = vadd.f32 %v882_v45, %v2805_v27  ;;  %v971_v55 = vpop.f32.mrb[0].mxu1  ;;  %v884_v56 = vpop.f32.mrb[1].mxu0 }
 0x1a8   : > { %v972_v57 = vadd.f32 %v971_v55, %v2805_v27  ;;  %v885_v58 = vadd.f32 %v884_v56, %v2805_v27  ;;  %v973_v9 = vpop.f32.mrb[1].mxu1 }
 0x1a9   : > { %1528 = vst [vmem:[%s2811_s11] sm:$0xff] %v883_v54  ;;  %v1660_v13 = vmul.f32 %v883_v54, %v883_v54  ;;  %v974_v33 = vadd.f32 %v973_v9, %v2805_v27 }
 0x1aa   : > { %1530 = vst [vmem:[%s2811_s11 + $0x10] sm:$0xff] %v972_v57  ;;  %1529 = vst [vmem:[%s2811_s11 + $0x8] sm:$0xff] %v885_v58  ;;  %v1592_v60 = vadd.f32 %v885_v58, %v883_v54  ;;  %v1661_v61 = vmul.f32 %v885_v58, %v885_v58  ;;  %v888_v0 = vpop.f32.mrb[2].mxu0  ;;  %v1662_v1 = vmul.f32 %v972_v57, %v972_v57 }
 0x1ab   : > { %1531 = vst [vmem:[%s2811_s11 + $0x18] sm:$0xff] %v974_v33  ;;  %v889_v23 = vadd.f32 %v888_v0, %v2815_v59  ;;  %v977_v41 = vpop.f32.mrb[2].mxu1  ;;  %v890_v2 = vpop.f32.mrb[3].mxu0  ;;  %v1663_v11 = vmul.f32 %v974_v33, %v974_v33 }
 0x1ac   : > { %v1724_v3 = vadd.f32 %v1661_v61, %v1660_v13  ;;  %v1593_v4 = vadd.f32 %v1592_v60, %v972_v57  ;;  %v978_v5 = vadd.f32 %v977_v41, %v2815_v59  ;;  %v891_v6 = vadd.f32 %v890_v2, %v2815_v59  ;;  %v979_v22 = vpop.f32.mrb[3].mxu1 }
 0x1ad   : > { %1544 = vst [vmem:[%s2811_s11 + $0x80] sm:$0xff] %v889_v23  ;;  %v1676_v40 = vmul.f32 %v889_v23, %v889_v23  ;;  %v980_v7 = vadd.f32 %v979_v22, %v2815_v59 }
 0x1ae   : > { %v2827_v10 = vadd.f32 %v1593_v4, %v974_v33  ;;  %v1725_v12 = vadd.f32 %v1724_v3, %v1662_v1  ;;  %1546 = vst [vmem:[%s2811_s11 + $0x90] sm:$0xff] %v978_v5  ;;  %1545 = vst [vmem:[%s2811_s11 + $0x88] sm:$0xff] %v891_v6  ;;  %v1609_v14 = vadd.f32 %v891_v6, %v889_v23  ;;  %v894_v15 = vpop.f32.mrb[4].mxu0 }
 0x1af   : > { %v1677_v16 = vmul.f32 %v891_v6, %v891_v6  ;;  %1547 = vst [vmem:[%s2811_s11 + $0x98] sm:$0xff] %v980_v7  ;;  %v895_v17 = vadd.f32 %v894_v15, %v2825_v8  ;;  %v983_v18 = vpop.f32.mrb[4].mxu1  ;;  %v896_v19 = vpop.f32.mrb[5].mxu0  ;;  %v1678_v29 = vmul.f32 %v978_v5, %v978_v5  ;;  %v1679_v38 = vmul.f32 %v980_v7, %v980_v7 }
 0x1b0   : > { %v2833_v20 = vadd.f32 %v1725_v12, %v1663_v11  ;;  %v1610_v25 = vadd.f32 %v1609_v14, %v978_v5  ;;  %v984_v26 = vadd.f32 %v983_v18, %v2825_v8  ;;  %v897_v28 = vadd.f32 %v896_v19, %v2825_v8  ;;  %v985_v42 = vpop.f32.mrb[5].mxu1 }
 0x1b1   : > { %v1741_v30 = vadd.f32 %v1677_v16, %v1676_v40  ;;  %1560 = vst [vmem:[%s2811_s11 + $0x100] sm:$0xff] %v895_v17  ;;  %v1692_v31 = vmul.f32 %v895_v17, %v895_v17  ;;  %v986_v32 = vadd.f32 %v985_v42, %v2825_v8 }
 0x1b2   : > { %v2841_v34 = vadd.f32 %v1610_v25, %v980_v7  ;;  %1562 = vst [vmem:[%s2811_s11 + $0x110] sm:$0xff] %v984_v26  ;;  %1561 = vst [vmem:[%s2811_s11 + $0x108] sm:$0xff] %v897_v28  ;;  %v1626_v35 = vadd.f32 %v897_v28, %v895_v17  ;;  %v1693_v36 = vmul.f32 %v897_v28, %v897_v28  ;;  %v900_v37 = vpop.f32.mrb[6].mxu0 }
 0x1b3   : > { %v1742_v44 = vadd.f32 %v1741_v30, %v1678_v29  ;;  %v1694_v39 = vmul.f32 %v984_v26, %v984_v26  ;;  %1563 = vst [vmem:[%s2811_s11 + $0x118] sm:$0xff] %v986_v32  ;;  %v901_v46 = vadd.f32 %v900_v37, %v2839_v43  ;;  %v989_v47 = vpop.f32.mrb[6].mxu1  ;;  %v902_v48 = vpop.f32.mrb[7].mxu0  ;;  %v1695_v45 = vmul.f32 %v986_v32, %v986_v32 }
 0x1b4   : > { %v1758_v49 = vadd.f32 %v1693_v36, %v1692_v31  ;;  %v1627_v63 = vadd.f32 %v1626_v35, %v984_v26  ;;  %v990_v50 = vadd.f32 %v989_v47, %v2839_v43  ;;  %v903_v62 = vadd.f32 %v902_v48, %v2839_v43  ;;  %v991_v51 = vpop.f32.mrb[7].mxu1 }
 0x1b5   : > { %v1743_v24 = vadd.f32 %v1742_v44, %v1679_v38  ;;  %1576 = vst [vmem:[%s2811_s11 + $0x180] sm:$0xff] %v901_v46  ;;  %v1708_v52 = vmul.f32 %v901_v46, %v901_v46  ;;  %v992_v53 = vadd.f32 %v991_v51, %v2839_v43 }
 0x1b6   : > { %v2851_v21 = vadd.f32 %v1627_v63, %v986_v32  ;;  %v1759_v54 = vadd.f32 %v1758_v49, %v1694_v39  ;;  %1578 = vst [vmem:[%s2811_s11 + $0x190] sm:$0xff] %v990_v50  ;;  %1577 = vst [vmem:[%s2811_s11 + $0x188] sm:$0xff] %v903_v62  ;;  %v1643_v55 = vadd.f32 %v903_v62, %v901_v46 }
 0x1b7   : > { %v1709_v56 = vmul.f32 %v903_v62, %v903_v62  ;;  %1579 = vst [vmem:[%s2811_s11 + $0x198] sm:$0xff] %v992_v53  ;;  %v1710_v13 = vmul.f32 %v990_v50, %v990_v50  ;;  %v1711_v1 = vmul.f32 %v992_v53, %v992_v53 }
 0x1b8   : > { %v2856_v57 = vadd.f32 %v1759_v54, %v1695_v45  ;;  %v1644_v58 = vadd.f32 %v1643_v55, %v990_v50  ;;  %v1060_v9 = vpop.f32.mrb[8].mxu0 }
 0x1b9   : > { %v1775_v33 = vadd.f32 %v1709_v56, %v1708_v52  ;;  %v1061_v60 = vadd.f32 %v1060_v9, %v2805_v27  ;;  %v1062_v61 = vpop.f32.mrb[9].mxu0 }
 0x1ba   : > { %v2859_v0 = vadd.f32 %v1644_v58, %v992_v53  ;;  %v1149_v23 = vpop.f32.mrb[8].mxu1  ;;  %v1063_v41 = vadd.f32 %v1062_v61, %v2805_v27 }
 0x1bb   : > { %v1776_v2 = vadd.f32 %v1775_v33, %v1710_v13  ;;  %1532 = vst [vmem:[%s2811_s11 + $0x20] sm:$0xff] %v1061_v60  ;;  %v1595_v3 = vadd.f32 %v2827_v10, %v1061_v60  ;;  %v1664_v4 = vmul.f32 %v1061_v60, %v1061_v60  ;;  %v1150_v5 = vadd.f32 %v1149_v23, %v2805_v27  ;;  %v1151_v6 = vpop.f32.mrb[9].mxu1 }
 0x1bc   : > { %1533 = vst [vmem:[%s2811_s11 + $0x28] sm:$0xff] %v1063_v41  ;;  %v1665_v22 = vmul.f32 %v1063_v41, %v1063_v41  ;;  %v1152_v40 = vadd.f32 %v1151_v6, %v2805_v27  ;;  %v1066_v7 = vpop.f32.mrb[10].mxu0 }
 0x1bd   : > { %v2867_v11 = vadd.f32 %v1776_v2, %v1711_v1  ;;  %v1727_v12 = vadd.f32 %v2833_v20, %v1664_v4  ;;  %1534 = vst [vmem:[%s2811_s11 + $0x30] sm:$0xff] %v1150_v5  ;;  %v1596_v14 = vadd.f32 %v1595_v3, %v1063_v41  ;;  %v1068_v15 = vpop.f32.mrb[11].mxu0  ;;  %v1666_v16 = vmul.f32 %v1150_v5, %v1150_v5 }
 0x1be   : > { %1535 = vst [vmem:[%s2811_s11 + $0x38] sm:$0xff] %v1152_v40  ;;  %v1067_v10 = vadd.f32 %v1066_v7, %v2815_v59  ;;  %v1155_v17 = vpop.f32.mrb[10].mxu1  ;;  %v1069_v18 = vadd.f32 %v1068_v15, %v2815_v59  ;;  %v1667_v26 = vmul.f32 %v1152_v40, %v1152_v40 }
 0x1bf   : > { %v1728_v19 = vadd.f32 %v1727_v12, %v1665_v22  ;;  %v1597_v25 = vadd.f32 %v1596_v14, %v1150_v5  ;;  %v1156_v28 = vadd.f32 %v1155_v17, %v2815_v59  ;;  %v1157_v42 = vpop.f32.mrb[11].mxu1 }
 0x1c0   : > { %1548 = vst [vmem:[%s2811_s11 + $0xa0] sm:$0xff] %v1067_v10  ;;  %v1612_v20 = vadd.f32 %v2841_v34, %v1067_v10  ;;  %v1680_v29 = vmul.f32 %v1067_v10, %v1067_v10  ;;  %1549 = vst [vmem:[%s2811_s11 + $0xa8] sm:$0xff] %v1069_v18  ;;  %v1681_v30 = vmul.f32 %v1069_v18, %v1069_v18  ;;  %v1072_v32 = vpop.f32.mrb[12].mxu0 }
 0x1c1   : > { %v1158_v31 = vadd.f32 %v1157_v42, %v2815_v59  ;;  %v2879_v35 = vadd.f32 %v1597_v25, %v1152_v40  ;;  %v1729_v36 = vadd.f32 %v1728_v19, %v1666_v16  ;;  %1550 = vst [vmem:[%s2811_s11 + $0xb0] sm:$0xff] %v1156_v28  ;;  %v1682_v37 = vmul.f32 %v1156_v28, %v1156_v28  ;;  %v1074_v44 = vpop.f32.mrb[13].mxu0 }
 0x1c2   : > { %v1073_v38 = vadd.f32 %v1072_v32, %v2825_v8  ;;  %v1744_v39 = vadd.f32 %v1743_v24, %v1680_v29  ;;  %v1613_v46 = vadd.f32 %v1612_v20, %v1069_v18  ;;  %v1161_v47 = vpop.f32.mrb[12].mxu1  ;;  %v1075_v48 = vadd.f32 %v1074_v44, %v2825_v8 }
 0x1c3   : > { %1551 = vst [vmem:[%s2811_s11 + $0xb8] sm:$0xff] %v1158_v31  ;;  %v1683_v34 = vmul.f32 %v1158_v31, %v1158_v31  ;;  %v2885_v49 = vadd.f32 %v1729_v36, %v1667_v26  ;;  %v1162_v62 = vadd.f32 %v1161_v47, %v2825_v8  ;;  %v1163_v51 = vpop.f32.mrb[13].mxu1 }
 0x1c4   : > { %1564 = vst [vmem:[%s2811_s11 + $0x120] sm:$0xff] %v1073_v38  ;;  %v1629_v63 = vadd.f32 %v2851_v21, %v1073_v38  ;;  %v1696_v50 = vmul.f32 %v1073_v38, %v1073_v38  ;;  %v1745_v52 = vadd.f32 %v1744_v39, %v1681_v30  ;;  %v1614_v53 = vadd.f32 %v1613_v46, %v1156_v28  ;;  %v1078_v54 = vpop.f32.mrb[14].mxu0 }
 0x1c5   : > { %1565 = vst [vmem:[%s2811_s11 + $0x128] sm:$0xff] %v1075_v48  ;;  %v1697_v24 = vmul.f32 %v1075_v48, %v1075_v48  ;;  %v1164_v45 = vadd.f32 %v1163_v51, %v2825_v8  ;;  %1566 = vst [vmem:[%s2811_s11 + $0x130] sm:$0xff] %v1162_v62  ;;  %v1698_v56 = vmul.f32 %v1162_v62, %v1162_v62  ;;  %v1080_v9 = vpop.f32.mrb[15].mxu0 }
 0x1c6   : > { %v1761_v55 = vadd.f32 %v2856_v57, %v1696_v50  ;;  %v1630_v58 = vadd.f32 %v1629_v63, %v1075_v48  ;;  %v1079_v21 = vadd.f32 %v1078_v54, %v2839_v43  ;;  %v1615_v13 = vadd.f32 %v1614_v53, %v1158_v31  ;;  %v1167_v61 = vpop.f32.mrb[14].mxu1 }
 0x1c7   : > { %v1746_v33 = vadd.f32 %v1745_v52, %v1682_v37  ;;  %1567 = vst [vmem:[%s2811_s11 + $0x138] sm:$0xff] %v1164_v45  ;;  %v1699_v60 = vmul.f32 %v1164_v45, %v1164_v45  ;;  %v1081_v1 = vadd.f32 %v1080_v9, %v2839_v43  ;;  %v1169_v3 = vpop.f32.mrb[15].mxu1  ;;  %v1168_v5 = vadd.f32 %v1167_v61, %v2839_v43 }
 0x1c8   : > { %v1762_v23 = vadd.f32 %v1761_v55, %v1697_v24  ;;  %v1631_v41 = vadd.f32 %v1630_v58, %v1162_v62  ;;  %1580 = vst [vmem:[%s2811_s11 + $0x1a0] sm:$0xff] %v1079_v21  ;;  %v1646_v57 = vadd.f32 %v2859_v0, %v1079_v21  ;;  %v1712_v2 = vmul.f32 %v1079_v21, %v1079_v21 }
 0x1c9   : > { %v1747_v4 = vadd.f32 %v1746_v33, %v1683_v34  ;;  %1581 = vst [vmem:[%s2811_s11 + $0x1a8] sm:$0xff] %v1081_v1  ;;  %v1713_v6 = vmul.f32 %v1081_v1, %v1081_v1  ;;  %v1170_v22 = vadd.f32 %v1169_v3, %v2839_v43  ;;  %1582 = vst [vmem:[%s2811_s11 + $0x1b0] sm:$0xff] %v1168_v5 }
 0x1ca   : > { %v2902_v40 = vadd.f32 %v1631_v41, %v1164_v45  ;;  %v1763_v7 = vadd.f32 %v1762_v23, %v1698_v56  ;;  %v1778_v12 = vadd.f32 %v2867_v11, %v1712_v2  ;;  %v1647_v14 = vadd.f32 %v1646_v57, %v1081_v1  ;;  %v1238_v0 = vpop.f32.mrb[16].mxu0 }
 0x1cb   : > { %v1714_v15 = vmul.f32 %v1168_v5, %v1168_v5  ;;  %1583 = vst [vmem:[%s2811_s11 + $0x1b8] sm:$0xff] %v1170_v22  ;;  %v1239_v18 = vadd.f32 %v1238_v0, %v2805_v27  ;;  %v1240_v19 = vpop.f32.mrb[17].mxu0  ;;  %v1715_v25 = vmul.f32 %v1170_v22, %v1170_v22 }
 0x1cc   : > { %v2907_v16 = vadd.f32 %v1763_v7, %v1699_v60  ;;  %v1779_v10 = vadd.f32 %v1778_v12, %v1713_v6  ;;  %v1648_v17 = vadd.f32 %v1647_v14, %v1168_v5  ;;  %v1327_v26 = vpop.f32.mrb[16].mxu1  ;;  %v1241_v28 = vadd.f32 %v1240_v19, %v2805_v27 }
 0x1cd   : > { %1536 = vst [vmem:[%s2811_s11 + $0x40] sm:$0xff] %v1239_v18  ;;  %v1599_v20 = vadd.f32 %v2879_v35, %v1239_v18  ;;  %v1668_v29 = vmul.f32 %v1239_v18, %v1239_v18  ;;  %v1329_v30 = vpop.f32.mrb[17].mxu1  ;;  %v1328_v31 = vadd.f32 %v1327_v26, %v2805_v27 }
 0x1ce   : > { %v2911_v42 = vadd.f32 %v1648_v17, %v1170_v22  ;;  %v1780_v11 = vadd.f32 %v1779_v10, %v1714_v15  ;;  %1537 = vst [vmem:[%s2811_s11 + $0x48] sm:$0xff] %v1241_v28  ;;  %v1669_v32 = vmul.f32 %v1241_v28, %v1241_v28  ;;  %v1330_v36 = vadd.f32 %v1329_v30, %v2805_v27  ;;  %v1244_v37 = vpop.f32.mrb[18].mxu0 }
 0x1cf   : > { %v1731_v44 = vadd.f32 %v2885_v49, %v1668_v29  ;;  %v1600_v39 = vadd.f32 %v1599_v20, %v1241_v28  ;;  %v1245_v46 = vadd.f32 %v1244_v37, %v2815_v59  ;;  %v1246_v34 = vpop.f32.mrb[19].mxu0  ;;  %1538 = vst [vmem:[%s2811_s11 + $0x50] sm:$0xff] %v1328_v31  ;;  %v1670_v35 = vmul.f32 %v1328_v31, %v1328_v31 }
 0x1d0   : > { %v2918_v38 = vadd.f32 %v1780_v11, %v1715_v25  ;;  %1539 = vst [vmem:[%s2811_s11 + $0x58] sm:$0xff] %v1330_v36  ;;  %v1333_v47 = vpop.f32.mrb[18].mxu1  ;;  %v1247_v48 = vadd.f32 %v1246_v34, %v2815_v59  ;;  %v1671_v49 = vmul.f32 %v1330_v36, %v1330_v36 }
 0x1d1   : > { %v1732_v63 = vadd.f32 %v1731_v44, %v1669_v32  ;;  %v1601_v50 = vadd.f32 %v1600_v39, %v1328_v31  ;;  %1552 = vst [vmem:[%s2811_s11 + $0xc0] sm:$0xff] %v1245_v46  ;;  %v1616_v62 = vadd.f32 %v1615_v13, %v1245_v46  ;;  %v1684_v51 = vmul.f32 %v1245_v46, %v1245_v46  ;;  %v1335_v52 = vpop.f32.mrb[19].mxu1 }
 0x1d2   : > { %v1334_v53 = vadd.f32 %v1333_v47, %v2815_v59  ;;  %1553 = vst [vmem:[%s2811_s11 + $0xc8] sm:$0xff] %v1247_v48  ;;  %v1685_v24 = vmul.f32 %v1247_v48, %v1247_v48  ;;  %v1336_v45 = vadd.f32 %v1335_v52, %v2815_v59  ;;  %v1250_v54 = vpop.f32.mrb[20].mxu0 }
 0x1d3   : > { %v2929_v55 = vadd.f32 %v1601_v50, %v1330_v36  ;;  %v1733_v56 = vadd.f32 %v1732_v63, %v1670_v35  ;;  %v1748_v58 = vadd.f32 %v1747_v4, %v1684_v51  ;;  %v1617_v21 = vadd.f32 %v1616_v62, %v1247_v48  ;;  %v1252_v9 = vpop.f32.mrb[21].mxu0 }
 0x1d4   : > { %1554 = vst [vmem:[%s2811_s11 + $0xd0] sm:$0xff] %v1334_v53  ;;  %v1686_v13 = vmul.f32 %v1334_v53, %v1334_v53  ;;  %1555 = vst [vmem:[%s2811_s11 + $0xd8] sm:$0xff] %v1336_v45  ;;  %v1251_v33 = vadd.f32 %v1250_v54, %v2825_v8  ;;  %v1339_v60 = vpop.f32.mrb[20].mxu1  ;;  %v1253_v61 = vadd.f32 %v1252_v9, %v2825_v8 }
 0x1d5   : > { %v2935_v1 = vadd.f32 %v1733_v56, %v1671_v49  ;;  %v1749_v23 = vadd.f32 %v1748_v58, %v1685_v24  ;;  %v1618_v41 = vadd.f32 %v1617_v21, %v1334_v53  ;;  %v1340_v57 = vadd.f32 %v1339_v60, %v2825_v8  ;;  %v1341_v2 = vpop.f32.mrb[21].mxu1 }
 0x1d6   : > { %1568 = vst [vmem:[%s2811_s11 + $0x140] sm:$0xff] %v1251_v33  ;;  %v1633_v3 = vadd.f32 %v2902_v40, %v1251_v33  ;;  %v1700_v4 = vmul.f32 %v1251_v33, %v1251_v33  ;;  %1569 = vst [vmem:[%s2811_s11 + $0x148] sm:$0xff] %v1253_v61  ;;  %v1701_v5 = vmul.f32 %v1253_v61, %v1253_v61  ;;  %v1256_v22 = vpop.f32.mrb[22].mxu0 }
 0x1d7   : > { %v1342_v6 = vadd.f32 %v1341_v2, %v2825_v8  ;;  %v1619_v7 = vadd.f32 %v1618_v41, %v1336_v45  ;;  %v1687_v12 = vmul.f32 %v1336_v45, %v1336_v45  ;;  %v1750_v14 = vadd.f32 %v1749_v23, %v1686_v13  ;;  %1570 = vst [vmem:[%s2811_s11 + $0x150] sm:$0xff] %v1340_v57  ;;  %v1258_v0 = vpop.f32.mrb[23].mxu0 }
 0x1d8   : > { %v1257_v15 = vadd.f32 %v1256_v22, %v2839_v43  ;;  %v1765_v10 = vadd.f32 %v2907_v16, %v1700_v4  ;;  %v1702_v17 = vmul.f32 %v1340_v57, %v1340_v57  ;;  %v1634_v18 = vadd.f32 %v1633_v3, %v1253_v61  ;;  %v1345_v40 = vpop.f32.mrb[22].mxu1 }
 0x1d9   : > { %1571 = vst [vmem:[%s2811_s11 + $0x158] sm:$0xff] %v1342_v6  ;;  %v1259_v19 = vadd.f32 %v1258_v0, %v2839_v43  ;;  %v1751_v25 = vadd.f32 %v1750_v14, %v1687_v12  ;;  %v1346_v11 = vadd.f32 %v1345_v40, %v2839_v43  ;;  %v1347_v20 = vpop.f32.mrb[23].mxu1  ;;  %v1703_v44 = vmul.f32 %v1342_v6, %v1342_v6 }
 0x1da   : > { %1584 = vst [vmem:[%s2811_s11 + $0x1c0] sm:$0xff] %v1257_v15  ;;  %v1650_v26 = vadd.f32 %v2911_v42, %v1257_v15  ;;  %v1716_v28 = vmul.f32 %v1257_v15, %v1257_v15  ;;  %v1766_v29 = vadd.f32 %v1765_v10, %v1701_v5  ;;  %v1635_v30 = vadd.f32 %v1634_v18, %v1340_v57 }
 0x1db   : > { %1585 = vst [vmem:[%s2811_s11 + $0x1c8] sm:$0xff] %v1259_v19  ;;  %v1717_v16 = vmul.f32 %v1259_v19, %v1259_v19  ;;  %v1348_v31 = vadd.f32 %v1347_v20, %v2839_v43  ;;  %1586 = vst [vmem:[%s2811_s11 + $0x1d0] sm:$0xff] %v1346_v11  ;;  %v1718_v46 = vmul.f32 %v1346_v11, %v1346_v11 }
 0x1dc   : > { %v1782_v32 = vadd.f32 %v2918_v38, %v1716_v28  ;;  %v1651_v36 = vadd.f32 %v1650_v26, %v1259_v19  ;;  %v1636_v37 = vadd.f32 %v1635_v30, %v1342_v6  ;;  %v1767_v39 = vadd.f32 %v1766_v29, %v1702_v17  ;;  %v1416_v42 = vpop.f32.mrb[24].mxu0 }
 0x1dd   : > { %1587 = vst [vmem:[%s2811_s11 + $0x1d8] sm:$0xff] %v1348_v31  ;;  %v1417_v47 = vadd.f32 %v1416_v42, %v2805_v27  ;;  %v1418_v48 = vpop.f32.mrb[25].mxu0  ;;  %v1719_v50 = vmul.f32 %v1348_v31, %v1348_v31 }
 0x1de   : > { %v1783_v34 = vadd.f32 %v1782_v32, %v1717_v16  ;;  %v1652_v35 = vadd.f32 %v1651_v36, %v1346_v11  ;;  %v1768_v63 = vadd.f32 %v1767_v39, %v1703_v44  ;;  %v1505_v62 = vpop.f32.mrb[24].mxu1  ;;  %v1419_v38 = vadd.f32 %v1418_v48, %v2805_v27 }
 0x1df   : > { %1540 = vst [vmem:[%s2811_s11 + $0x60] sm:$0xff] %v1417_v47  ;;  %v1603_v49 = vadd.f32 %v2929_v55, %v1417_v47  ;;  %v1672_v53 = vmul.f32 %v1417_v47, %v1417_v47  ;;  %v1507_v24 = vpop.f32.mrb[25].mxu1  ;;  %v1506_v45 = vadd.f32 %v1505_v62, %v2805_v27 }
 0x1e0   : > { %v2957_v51 = vadd.f32 %v1652_v35, %v1348_v31  ;;  %v1784_v52 = vadd.f32 %v1783_v34, %v1718_v46  ;;  %1541 = vst [vmem:[%s2811_s11 + $0x68] sm:$0xff] %v1419_v38  ;;  %v1673_v54 = vmul.f32 %v1419_v38, %v1419_v38  ;;  %v1508_v56 = vadd.f32 %v1507_v24, %v2805_v27  ;;  %v1422_v58 = vpop.f32.mrb[26].mxu0 }
 0x1e1   : > { %v1735_v9 = vadd.f32 %v2935_v1, %v1672_v53  ;;  %v1604_v13 = vadd.f32 %v1603_v49, %v1419_v38  ;;  %v1423_v33 = vadd.f32 %v1422_v58, %v2815_v59  ;;  %v1424_v60 = vpop.f32.mrb[27].mxu0  ;;  %1542 = vst [vmem:[%s2811_s11 + $0x70] sm:$0xff] %v1506_v45  ;;  %v1674_v3 = vmul.f32 %v1506_v45, %v1506_v45 }
 0x1e2   : > { %v2964_v21 = vadd.f32 %v1784_v52, %v1719_v50  ;;  %1543 = vst [vmem:[%s2811_s11 + $0x78] sm:$0xff] %v1508_v56  ;;  %v1511_v55 = vpop.f32.mrb[26].mxu1  ;;  %v1425_v61 = vadd.f32 %v1424_v60, %v2815_v59  ;;  %v1675_v15 = vmul.f32 %v1508_v56, %v1508_v56 }
 0x1e3   : > { %1556 = vst [vmem:[%s2811_s11 + $0xe0] sm:$0xff] %v1423_v33  ;;  %v1620_v23 = vadd.f32 %v1619_v7, %v1423_v33  ;;  %v1688_v41 = vmul.f32 %v1423_v33, %v1423_v33  ;;  %v1512_v27 = vadd.f32 %v1511_v55, %v2815_v59  ;;  %v1513_v57 = vpop.f32.mrb[27].mxu1  ;;  %v1605_v2 = vadd.f32 %v1604_v13, %v1506_v45 }
 0x1e4   : > { %1557 = vst [vmem:[%s2811_s11 + $0xe8] sm:$0xff] %v1425_v61  ;;  %v1689_v1 = vmul.f32 %v1425_v61, %v1425_v61  ;;  %v1514_v4 = vadd.f32 %v1513_v57, %v2815_v59  ;;  %v1428_v5 = vpop.f32.mrb[28].mxu0  ;;  %v1736_v6 = vadd.f32 %v1735_v9, %v1673_v54 }
 0x1e5   : > { %v1752_v22 = vadd.f32 %v1751_v25, %v1688_v41  ;;  %1558 = vst [vmem:[%s2811_s11 + $0xf0] sm:$0xff] %v1512_v27  ;;  %v1621_v12 = vadd.f32 %v1620_v23, %v1425_v61  ;;  %v1429_v7 = vadd.f32 %v1428_v5, %v2825_v8  ;;  %v1430_v14 = vpop.f32.mrb[29].mxu0  ;;  %v1690_v0 = vmul.f32 %v1512_v27, %v1512_v27  ;;  %v1832_v5 = vld [vmem:[%s2811_s11 + $0x10] sm:$0xff] (%p2279_p5) }
 0x1e6   : > { %1559 = vst [vmem:[%s2811_s11 + $0xf8] sm:$0xff] %v1514_v4  ;;  %v1517_v10 = vpop.f32.mrb[28].mxu1  ;;  %v1431_v17 = vadd.f32 %v1430_v14, %v2825_v8  ;;  %v1606_v18 = vadd.f32 %v1605_v2, %v1508_v56  ;;  %v1737_v40 = vadd.f32 %v1736_v6, %v1674_v3  ;;  %v1691_v44 = vmul.f32 %v1514_v4, %v1514_v4  ;;  %v1834_v6 = vld [vmem:[%s2811_s11 + $0x18] sm:$0xff] (%p2279_p5) }
 0x1e7   : > { %1572 = vst [vmem:[%s2811_s11 + $0x160] sm:$0xff] %v1429_v7  ;;  %v1637_v59 = vadd.f32 %v1636_v37, %v1429_v7  ;;  %v1704_v19 = vmul.f32 %v1429_v7, %v1429_v7  ;;  %v1518_v25 = vadd.f32 %v1517_v10, %v2825_v8  ;;  %v1519_v26 = vpop.f32.mrb[29].mxu1  ;;  %v1622_v28 = vadd.f32 %v1621_v12, %v1512_v27  ;;  %v1838_v12 = vld [vmem:[%s2811_s11 + $0x28] sm:$0xff] (%p2279_p5)  ;;  %v1840_v7 = vld [vmem:[%s2811_s11 + $0x30] sm:$0xff] (%p2279_p5)  ;;  %v1842_v14 = vld [vmem:[%s2811_s11 + $0x38] sm:$0xff] (%p2279_p5) }
 0x1e8   : > { %1573 = vst [vmem:[%s2811_s11 + $0x168] sm:$0xff] %v1431_v17  ;;  %v1705_v11 = vmul.f32 %v1431_v17, %v1431_v17  ;;  %v1520_v20 = vadd.f32 %v1519_v26, %v2825_v8  ;;  %1607 = vadd.xlane.f32.xlu0 %v1606_v18  ;;  %v1434_v29 = vpop.f32.mrb[30].mxu0  ;;  %v1738_v30 = vadd.f32 %v1737_v40, %v1675_v15  ;;  %1833 = vst [vmem:[%s3017_s20 + $0x10] sm:$0xff] (%p2279_p5), %v1832_v5  ;;  %v1844_v15 = vld [vmem:[%s2811_s11 + $0x40] sm:$0xff] (%p2279_p5)  ;;  %v1848_v10 = vld [vmem:[%s2811_s11 + $0x50] sm:$0xff] (%p2279_p5) }
 0x1e9   : > { %v1753_v16 = vadd.f32 %v1752_v22, %v1689_v1  ;;  %v1769_v31 = vadd.f32 %v1768_v63, %v1704_v19  ;;  %1574 = vst [vmem:[%s2811_s11 + $0x170] sm:$0xff] %v1518_v25  ;;  %v1638_v32 = vadd.f32 %v1637_v59, %v1431_v17  ;;  %v1435_v36 = vadd.f32 %v1434_v29, %v2839_v43  ;;  %v1436_v37 = vpop.f32.mrb[31].mxu0  ;;  %v1828_v1 = vld [vmem:[%s2811_s11] sm:$0xff] (%p2279_p5)  ;;  %v1850_v17 = vld [vmem:[%s2811_s11 + $0x58] sm:$0xff] (%p2279_p5)  ;;  %v1854_v40 = vld [vmem:[%s2811_s11 + $0x68] sm:$0xff] (%p2279_p5) }
 0x1ea   : > { %v1706_v39 = vmul.f32 %v1518_v25, %v1518_v25  ;;  %1575 = vst [vmem:[%s2811_s11 + $0x178] sm:$0xff] %v1520_v20  ;;  %v1523_v42 = vpop.f32.mrb[30].mxu1  ;;  %v1437_v46 = vadd.f32 %v1436_v37, %v2839_v43  ;;  %1739 = vadd.xlane.f32.xlu1 %v1738_v30  ;;  %v1623_v8 = vadd.f32 %v1622_v28, %v1514_v4  ;;  %v1830_v4 = vld [vmem:[%s2811_s11 + $0x8] sm:$0xff] (%p2279_p5)  ;;  %v1836_v22 = vld [vmem:[%s2811_s11 + $0x20] sm:$0xff] (%p2279_p5)  ;;  %1829 = vst [vmem:[%s3017_s20] sm:$0xff] (%p2279_p5), %v1828_v1 }
 0x1eb   : > { %v1754_v34 = vadd.f32 %v1753_v16, %v1690_v0  ;;  %1588 = vst [vmem:[%s2811_s11 + $0x1e0] sm:$0xff] %v1435_v36  ;;  %v1654_v35 = vadd.f32 %v2957_v51, %v1435_v36  ;;  %v1720_v47 = vmul.f32 %v1435_v36, %v1435_v36  ;;  %v1524_v48 = vadd.f32 %v1523_v42, %v2839_v43  ;;  %v1525_v63 = vpop.f32.mrb[31].mxu1  ;;  %v1846_v0 = vld [vmem:[%s2811_s11 + $0x48] sm:$0xff] (%p2279_p5)  ;;  %v1852_v18 = vld [vmem:[%s2811_s11 + $0x60] sm:$0xff] (%p2279_p5)  ;;  %v1856_v59 = vld [vmem:[%s2811_s11 + $0x70] sm:$0xff] (%p2279_p5) }
 0x1ec   : > { %v1770_v50 = vadd.f32 %v1769_v31, %v1705_v11  ;;  %1589 = vst [vmem:[%s2811_s11 + $0x1e8] sm:$0xff] %v1437_v46  ;;  %v1721_v62 = vmul.f32 %v1437_v46, %v1437_v46  ;;  %v1526_v38 = vadd.f32 %v1525_v63, %v2839_v43  ;;  %v1639_v49 = vadd.f32 %v1638_v32, %v1518_v25  ;;  %v1858_v19 = vld [vmem:[%s2811_s11 + $0x78] sm:$0xff] (%p2279_p5)  ;;  %v1860_v25 = vld [vmem:[%s2811_s11 + $0x80] sm:$0xff] (%p2279_p5)  ;;  %v1862_v26 = vld [vmem:[%s2811_s11 + $0x88] sm:$0xff] (%p2279_p5) }
 0x1ed   : > { %v1755_v52 = vadd.f32 %v1754_v34, %v1691_v44  ;;  %v1786_v53 = vadd.f32 %v2964_v21, %v1720_v47  ;;  %1590 = vst [vmem:[%s2811_s11 + $0x1f0] sm:$0xff] %v1524_v48  ;;  %v1655_v24 = vadd.f32 %v1654_v35, %v1437_v46  ;;  %v1707_v45 = vmul.f32 %v1520_v20, %v1520_v20  ;;  %v1864_v28 = vld [vmem:[%s2811_s11 + $0x90] sm:$0xff] (%p2279_p5)  ;;  %v1866_v11 = vld [vmem:[%s2811_s11 + $0x98] sm:$0xff] (%p2279_p5)  ;;  %v1870_v29 = vld [vmem:[%s2811_s11 + $0xa8] sm:$0xff] (%p2279_p5) }
 0x1ee   : > { %v1771_v54 = vadd.f32 %v1770_v50, %v1706_v39  ;;  %1591 = vst [vmem:[%s2811_s11 + $0x1f8] sm:$0xff] %v1526_v38  ;;  %1624 = vadd.xlane.f32.xlu1 %v1623_v8  ;;  %v1640_v51 = vadd.f32 %v1639_v49, %v1520_v20  ;;  %v1722_v56 = vmul.f32 %v1524_v48, %v1524_v48  ;;  %1831 = vst [vmem:[%s3017_s20 + $0x8] sm:$0xff] (%p2279_p5), %v1830_v4  ;;  %v1868_v20 = vld [vmem:[%s2811_s11 + $0xa0] sm:$0xff] (%p2279_p5)  ;;  %v1872_v30 = vld [vmem:[%s2811_s11 + $0xb0] sm:$0xff] (%p2279_p5) }
 0x1ef   : > { %1756 = vadd.xlane.f32.xlu0 %v1755_v52  ;;  %v1656_v9 = vadd.f32 %v1655_v24, %v1524_v48  ;;  %v1787_v13 = vadd.f32 %v1786_v53, %v1721_v62  ;;  %v1723_v43 = vmul.f32 %v1526_v38, %v1526_v38  ;;  %1835 = vst [vmem:[%s3017_s20 + $0x18] sm:$0xff] (%p2279_p5), %v1834_v6  ;;  %1837 = vst [vmem:[%s3017_s20 + $0x20] sm:$0xff] (%p2279_p5), %v1836_v22  ;;  %v1874_v16 = vld [vmem:[%s2811_s11 + $0xb8] sm:$0xff] (%p2279_p5)  ;;  %v1876_v31 = vld [vmem:[%s2811_s11 + $0xc0] sm:$0xff] (%p2279_p5) }
 0x1f0   : > { %v1772_v58 = vadd.f32 %v1771_v54, %v1707_v45  ;;  %1839 = vst [vmem:[%s3017_s20 + $0x28] sm:$0xff] (%p2279_p5), %v1838_v12  ;;  %1841 = vst [vmem:[%s3017_s20 + $0x30] sm:$0xff] (%p2279_p5), %v1840_v7  ;;  %v1878_v32 = vld [vmem:[%s2811_s11 + $0xc8] sm:$0xff] (%p2279_p5)  ;;  %v1880_v36 = vld [vmem:[%s2811_s11 + $0xd0] sm:$0xff] (%p2279_p5) }
 0x1f1   : > { %v1657_v33 = vadd.f32 %v1656_v9, %v1526_v38  ;;  %v1788_v60 = vadd.f32 %v1787_v13, %v1722_v56  ;;  %1843 = vst [vmem:[%s3017_s20 + $0x38] sm:$0xff] (%p2279_p5), %v1842_v14  ;;  %1845 = vst [vmem:[%s3017_s20 + $0x40] sm:$0xff] (%p2279_p5), %v1844_v15  ;;  %v1882_v37 = vld [vmem:[%s2811_s11 + $0xd8] sm:$0xff] (%p2279_p5)  ;;  %v1884_v44 = vld [vmem:[%s2811_s11 + $0xe0] sm:$0xff] (%p2279_p5) }
 0x1f2   : > { %1773 = vadd.xlane.f32.xlu1 %v1772_v58  ;;  %1847 = vst [vmem:[%s3017_s20 + $0x48] sm:$0xff] (%p2279_p5), %v1846_v0  ;;  %1849 = vst [vmem:[%s3017_s20 + $0x50] sm:$0xff] (%p2279_p5), %v1848_v10  ;;  %v1886_v39 = vld [vmem:[%s2811_s11 + $0xe8] sm:$0xff] (%p2279_p5)  ;;  %v1888_v42 = vld [vmem:[%s2811_s11 + $0xf0] sm:$0xff] (%p2279_p5) }
 0x1f3   : > { %1641 = vadd.xlane.f32.xlu0 %v1640_v51  ;;  %v1789_v21 = vadd.f32 %v1788_v60, %v1723_v43  ;;  %1851 = vst [vmem:[%s3017_s20 + $0x58] sm:$0xff] (%p2279_p5), %v1850_v17  ;;  %1853 = vst [vmem:[%s3017_s20 + $0x60] sm:$0xff] (%p2279_p5), %v1852_v18  ;;  %v1890_v46 = vld [vmem:[%s2811_s11 + $0xf8] sm:$0xff] (%p2279_p5)  ;;  %v1892_v8 = vld [vmem:[%s2811_s11 + $0x100] sm:$0xff] (%p2279_p5) }
 0x1f4   : > { %1855 = vst [vmem:[%s3017_s20 + $0x68] sm:$0xff] (%p2279_p5), %v1854_v40  ;;  %1857 = vst [vmem:[%s3017_s20 + $0x70] sm:$0xff] (%p2279_p5), %v1856_v59  ;;  %v1894_v34 = vld [vmem:[%s2811_s11 + $0x108] sm:$0xff] (%p2279_p5)  ;;  %v1896_v35 = vld [vmem:[%s2811_s11 + $0x110] sm:$0xff] (%p2279_p5) }
 0x1f5   : > { %1859 = vst [vmem:[%s3017_s20 + $0x78] sm:$0xff] (%p2279_p5), %v1858_v19  ;;  %1861 = vst [vmem:[%s3017_s20 + $0x100] sm:$0xff] (%p2279_p5), %v1860_v25  ;;  %v1898_v47 = vld [vmem:[%s2811_s11 + $0x118] sm:$0xff] (%p2279_p5)  ;;  %v1900_v48 = vld [vmem:[%s2811_s11 + $0x120] sm:$0xff] (%p2279_p5) }
 0x1f6   : > { %1863 = vst [vmem:[%s3017_s20 + $0x108] sm:$0xff] (%p2279_p5), %v1862_v26  ;;  %1865 = vst [vmem:[%s3017_s20 + $0x110] sm:$0xff] (%p2279_p5), %v1864_v28  ;;  %v1902_v63 = vld [vmem:[%s2811_s11 + $0x128] sm:$0xff] (%p2279_p5)  ;;  %v1904_v50 = vld [vmem:[%s2811_s11 + $0x130] sm:$0xff] (%p2279_p5) }
 0x1f7   : > { %1658 = vadd.xlane.f32.xlu0 %v1657_v33  ;;  %1867 = vst [vmem:[%s3017_s20 + $0x118] sm:$0xff] (%p2279_p5), %v1866_v11  ;;  %1869 = vst [vmem:[%s3017_s20 + $0x120] sm:$0xff] (%p2279_p5), %v1868_v20  ;;  %v1906_v62 = vld [vmem:[%s2811_s11 + $0x138] sm:$0xff] (%p2279_p5)  ;;  %v1908_v38 = vld [vmem:[%s2811_s11 + $0x140] sm:$0xff] (%p2279_p5) }
 0x1f8   : > { %1871 = vst [vmem:[%s3017_s20 + $0x128] sm:$0xff] (%p2279_p5), %v1870_v29  ;;  %1873 = vst [vmem:[%s3017_s20 + $0x130] sm:$0xff] (%p2279_p5), %v1872_v30  ;;  %v1910_v52 = vld [vmem:[%s2811_s11 + $0x148] sm:$0xff] (%p2279_p5)  ;;  %v1912_v49 = vld [vmem:[%s2811_s11 + $0x150] sm:$0xff] (%p2279_p5) }
 0x1f9   : > { %1875 = vst [vmem:[%s3017_s20 + $0x138] sm:$0xff] (%p2279_p5), %v1874_v16  ;;  %1877 = vst [vmem:[%s3017_s20 + $0x140] sm:$0xff] (%p2279_p5), %v1876_v31  ;;  %v1914_v53 = vld [vmem:[%s2811_s11 + $0x158] sm:$0xff] (%p2279_p5)  ;;  %v1916_v24 = vld [vmem:[%s2811_s11 + $0x160] sm:$0xff] (%p2279_p5) }
 0x1fa   : > { %1879 = vst [vmem:[%s3017_s20 + $0x148] sm:$0xff] (%p2279_p5), %v1878_v32  ;;  %1881 = vst [vmem:[%s3017_s20 + $0x150] sm:$0xff] (%p2279_p5), %v1880_v36  ;;  %v1918_v45 = vld [vmem:[%s2811_s11 + $0x168] sm:$0xff] (%p2279_p5)  ;;  %v1920_v54 = vld [vmem:[%s2811_s11 + $0x170] sm:$0xff] (%p2279_p5) }
 0x1fb   : > { %1790 = vadd.xlane.f32.xlu0 %v1789_v21  ;;  %1883 = vst [vmem:[%s3017_s20 + $0x158] sm:$0xff] (%p2279_p5), %v1882_v37  ;;  %1885 = vst [vmem:[%s3017_s20 + $0x160] sm:$0xff] (%p2279_p5), %v1884_v44  ;;  %v1922_v51 = vld [vmem:[%s2811_s11 + $0x178] sm:$0xff] (%p2279_p5)  ;;  %v1924_v56 = vld [vmem:[%s2811_s11 + $0x180] sm:$0xff] (%p2279_p5) }
 0x1fc   : > { %1887 = vst [vmem:[%s3017_s20 + $0x168] sm:$0xff] (%p2279_p5), %v1886_v39  ;;  %1889 = vst [vmem:[%s3017_s20 + $0x170] sm:$0xff] (%p2279_p5), %v1888_v42  ;;  %v1926_v58 = vld [vmem:[%s2811_s11 + $0x188] sm:$0xff] (%p2279_p5)  ;;  %v1928_v9 = vld [vmem:[%s2811_s11 + $0x190] sm:$0xff] (%p2279_p5) }
 0x1fd   : > { %1891 = vst [vmem:[%s3017_s20 + $0x178] sm:$0xff] (%p2279_p5), %v1890_v46  ;;  %1893 = vst [vmem:[%s3017_s20 + $0x200] sm:$0xff] (%p2279_p5), %v1892_v8  ;;  %v1930_v13 = vld [vmem:[%s2811_s11 + $0x198] sm:$0xff] (%p2279_p5)  ;;  %v1932_v33 = vld [vmem:[%s2811_s11 + $0x1a0] sm:$0xff] (%p2279_p5) }
 0x1fe   : > { %1895 = vst [vmem:[%s3017_s20 + $0x208] sm:$0xff] (%p2279_p5), %v1894_v34  ;;  %1897 = vst [vmem:[%s3017_s20 + $0x210] sm:$0xff] (%p2279_p5), %v1896_v35  ;;  %v1934_v43 = vld [vmem:[%s2811_s11 + $0x1a8] sm:$0xff] (%p2279_p5)  ;;  %v1936_v60 = vld [vmem:[%s2811_s11 + $0x1b0] sm:$0xff] (%p2279_p5) }
 0x1ff   : > { %1899 = vst [vmem:[%s3017_s20 + $0x218] sm:$0xff] (%p2279_p5), %v1898_v47  ;;  %1901 = vst [vmem:[%s3017_s20 + $0x220] sm:$0xff] (%p2279_p5), %v1900_v48  ;;  %v1938_v21 = vld [vmem:[%s2811_s11 + $0x1b8] sm:$0xff] (%p2279_p5) }
 0x200   : > { %1903 = vst [vmem:[%s3017_s20 + $0x228] sm:$0xff] (%p2279_p5), %v1902_v63  ;;  %1905 = vst [vmem:[%s3017_s20 + $0x230] sm:$0xff] (%p2279_p5), %v1904_v50 }
 0x201   : > { %1907 = vst [vmem:[%s3017_s20 + $0x238] sm:$0xff] (%p2279_p5), %v1906_v62  ;;  %1909 = vst [vmem:[%s3017_s20 + $0x240] sm:$0xff] (%p2279_p5), %v1908_v38 }
 0x202   : > { %1911 = vst [vmem:[%s3017_s20 + $0x248] sm:$0xff] (%p2279_p5), %v1910_v52  ;;  %1913 = vst [vmem:[%s3017_s20 + $0x250] sm:$0xff] (%p2279_p5), %v1912_v49 }
 0x203   : > { %1915 = vst [vmem:[%s3017_s20 + $0x258] sm:$0xff] (%p2279_p5), %v1914_v53  ;;  %1917 = vst [vmem:[%s3017_s20 + $0x260] sm:$0xff] (%p2279_p5), %v1916_v24 }
 0x204   : > { %1919 = vst [vmem:[%s3017_s20 + $0x268] sm:$0xff] (%p2279_p5), %v1918_v45  ;;  %1921 = vst [vmem:[%s3017_s20 + $0x270] sm:$0xff] (%p2279_p5), %v1920_v54 }
 0x205   : > { %1923 = vst [vmem:[%s3017_s20 + $0x278] sm:$0xff] (%p2279_p5), %v1922_v51  ;;  %1925 = vst [vmem:[%s3017_s20 + $0x300] sm:$0xff] (%p2279_p5), %v1924_v56 }
 0x206   : > { %1927 = vst [vmem:[%s3017_s20 + $0x308] sm:$0xff] (%p2279_p5), %v1926_v58  ;;  %1929 = vst [vmem:[%s3017_s20 + $0x310] sm:$0xff] (%p2279_p5), %v1928_v9 }
 0x207   : > { %1931 = vst [vmem:[%s3017_s20 + $0x318] sm:$0xff] (%p2279_p5), %v1930_v13  ;;  %1933 = vst [vmem:[%s3017_s20 + $0x320] sm:$0xff] (%p2279_p5), %v1932_v33 }
 0x208   : > { %1935 = vst [vmem:[%s3017_s20 + $0x328] sm:$0xff] (%p2279_p5), %v1934_v43  ;;  %1937 = vst [vmem:[%s3017_s20 + $0x330] sm:$0xff] (%p2279_p5), %v1936_v60 }
 0x209   : > { %1939 = vst [vmem:[%s3017_s20 + $0x338] sm:$0xff] (%p2279_p5), %v1938_v21 }
 0x275   : > { %v1608_v55 = vpop.xlane.xlu0 %1607 }
 0x276   : > { %1793 = vst.msk [vmem:[%s406_s16] sm:$0xff] %vm1792_vm1, %v1608_v55  ;;  %v1940_v55 = vld [vmem:[%s2811_s11 + $0x1c0] sm:$0xff] (%p2279_p5) }
 0x277   : > { %v1740_v61 = vpop.xlane.xlu1 %1739  ;;  %1941 = vst [vmem:[%s3017_s20 + $0x340] sm:$0xff] (%p2279_p5), %v1940_v55 }
 0x278   : > { %1797 = vst.msk [vmem:[%s406_s16 + $0x20] sm:$0xff] %vm1792_vm1, %v1740_v61  ;;  %v1942_v61 = vld [vmem:[%s2811_s11 + $0x1c8] sm:$0xff] (%p2279_p5) }
 0x279   : > { %1943 = vst [vmem:[%s3017_s20 + $0x348] sm:$0xff] (%p2279_p5), %v1942_v61 }
 0x27b   : > { %v1625_v23 = vpop.xlane.xlu1 %1624 }
 0x27c   : > { %v1757_v41 = vpop.xlane.xlu0 %1756  ;;  %1794 = vst.msk [vmem:[%s406_s16 + $0x8] sm:$0xff] %vm1792_vm1, %v1625_v23  ;;  %v1944_v23 = vld [vmem:[%s2811_s11 + $0x1d0] sm:$0xff] (%p2279_p5) }
 0x27d   : > { %1798 = vst.msk [vmem:[%s406_s16 + $0x28] sm:$0xff] %vm1792_vm1, %v1757_v41  ;;  %v1946_v41 = vld [vmem:[%s2811_s11 + $0x1d8] sm:$0xff] (%p2279_p5)  ;;  %1945 = vst [vmem:[%s3017_s20 + $0x350] sm:$0xff] (%p2279_p5), %v1944_v23 }
 0x27e   : > { %1947 = vst [vmem:[%s3017_s20 + $0x358] sm:$0xff] (%p2279_p5), %v1946_v41 }
 0x27f   : > { %v1774_v27 = vpop.xlane.xlu1 %1773 }
 0x280   : > { %v1642_v57 = vpop.xlane.xlu0 %1641  ;;  %1799 = vst.msk [vmem:[%s406_s16 + $0x30] sm:$0xff] %vm1792_vm1, %v1774_v27  ;;  %v1948_v27 = vld [vmem:[%s2811_s11 + $0x1e0] sm:$0xff] (%p2279_p5) }
 0x281   : > { %1795 = vst.msk [vmem:[%s406_s16 + $0x10] sm:$0xff] %vm1792_vm1, %v1642_v57  ;;  %v1950_v57 = vld [vmem:[%s2811_s11 + $0x1e8] sm:$0xff] (%p2279_p5)  ;;  %1949 = vst [vmem:[%s3017_s20 + $0x360] sm:$0xff] (%p2279_p5), %v1948_v27 }
 0x282   : > { %1951 = vst [vmem:[%s3017_s20 + $0x368] sm:$0xff] (%p2279_p5), %v1950_v57 }
 0x283   : > { %1812 = sbr.rel (!%p2279_p5) target bundleno = 651 (0x28b), region = 67 }
 0x284   : > { %v1659_v2 = vpop.xlane.xlu0 %1658 }
 0x285   : > { %1796 = vst.msk [vmem:[%s406_s16 + $0x18] sm:$0xff] %vm1792_vm1, %v1659_v2  ;;  %v1952_v2 = vld [vmem:[%s2811_s11 + $0x1f0] sm:$0xff] (%p2279_p5) }
 0x286   : > { %1953 = vst [vmem:[%s3017_s20 + $0x370] sm:$0xff] (%p2279_p5), %v1952_v2 }
 0x288   : > { %v1791_v3 = vpop.xlane.xlu0 %1790 }
 0x289   : > { %1800 = vst.msk [vmem:[%s406_s16 + $0x38] sm:$0xff] %vm1792_vm1, %v1791_v3  ;;  %v1954_v3 = vld [vmem:[%s2811_s11 + $0x1f8] sm:$0xff] (%p2279_p5) }
 0x28a   : > { %1955 = vst [vmem:[%s3017_s20 + $0x378] sm:$0xff] %v1954_v3 }
 0x28b PF: > { %p14_p11 = scmp.ge.s32.totalorder %s2267_s25, 4   ;;  %s3162_s21 = smov %s2205_s22 }
 0x28c   : > { %s3163_s22 = smov %s2277_s28  ;;  %s3164_s23 = smov %s2267_s25 }
 0x28d   :  { %16 = sbr.rel (!%p14_p11) target bundleno = 2 (0x2), region = 133 }

// kernel: _lambda_.9
= control target key start
LH: loop header
LB: loop body
LE: loop exit
PB: predicated region body
PF: predicated region fallthrough
CT: control target
= control target key end

     0   :  { %11 = vsyncpa [#allocation5], 0  ;;  %s2958_s0 = inlined_call_operand.vmem [shape: f32[32,4096], index: 0, kind: input, shape index: {}]   ;;  %s2959_s1 = inlined_call_operand.vmem [shape: f32[32,1], index: 1, kind: input, shape index: {}]   ;;  %s2960_s2 = inlined_call_operand.vmem [shape: f32[32,1], index: 2, kind: input, shape index: {}]   ;;  %s2961_s3 = inlined_call_operand.vmem [shape: f32[32,4096], index: 3, kind: input, shape index: {}]   ;;  %s2962_s4 = inlined_call_operand.vmem [shape: f32[16,32], index: 4, kind: input, shape index: {}]   ;;  %s2963_s5 = inlined_call_operand.vmem [shape: f32[16,1], index: 5, kind: input, shape index: {}]   ;;  %s2964_s6 = inlined_call_operand.hbm [shape: f32[16,4096], index: 6, kind: output, shape index: {}]  }
   0x1   :  { %13 = vsyncpa [#allocation5 + $0x1], 0  ;;  %s2114_s21 = smov 0   ;;  %s2116_s22 = smov 0  }
   0x2   :  { %s2118_s23 = smov 0   ;;  %s2120_s24 = smov 0  }
   0x3 LB: > { %s1861_s25 = sadd.s32 4294967295, %s2071_s24   ;;  %s1862_s26 = sadd.s32 4294967294, %s2071_s24   ;;  %s2071_s24 = sphi %s2120_s24, %s2971_s24   ;;  %s2067_s23 = sphi %s2118_s23, %s2970_s23   ;;  %s2063_s22 = sphi %s2116_s22, %s2969_s22   ;;  %s2059_s21 = sphi %s2114_s21, %s2968_s21  }
   0x4   : > { %s2137_s27 = sadd.s32 1, %s2071_s24   ;;  %s26_s28 = sadd.s32 1, %s2067_s23 }
   0x5   : > { %s23_s29 = ssub.s32 %s2071_s24, %s2137_s27  ;;  %p33_p0 = scmp.ne.s32.totalorder %s2067_s23, %s2063_s22 }
   0x6   : > { %p24_p1 = scmp.eq.s32.totalorder %s23_s29, 0  ;;  %p34_p2 = scmp.eq.s32.totalorder %s2071_s24, 0 }
   0x7   : > { %p173_p3 = scmp.eq.s32.totalorder %s1861_s25, 1  ;;  %p178_p4 = scmp.ne.s32.totalorder %s2063_s22, %s2059_s21 }
   0x8   : > { %s2150_s30 = scalar_select %p24_p1, %s2067_s23, %s26_s28  }
   0x9   : > { %p2152_p5 = por %p34_p2, %p33_p0  ;;  %p2156_p6 = por %p173_p3, %p33_p0 }
   0xa   : > { %p179_p7 = scmp.eq.s32.totalorder %s1862_s26, 1  ;;  %p1864_p9 = scmp.ge.s32.totalorder %s2071_s24, 2 }
   0xc   : > { %p2160_p8 = por %p179_p7, %p178_p4  ;;  %207 = sbr.rel (%p1864_p9) target bundleno = 91 (0x5b), region = 32 }
  0x13   : > { %210 = sbr.rel (!%p2152_p5) target bundleno = 55 (0x37), region = 36  ;;  %s212_s10 = sand.u32 (%p2152_p5), 1, %s2067_s23  }
  0x14   : > { %s1896_s11 = sshll.u32 (%p2152_p5), %s2071_s24, 7  ;;  %s1865_s12 = sshll.u32 (%p2152_p5), %s212_s10, 9 }
  0x15   : > { %s2174_s15 = scalar_lea.vmem (%p2152_p5), %s2958_s0, %s1896_s11  ;;  %s2179_s16 = scalar_lea.vmem (%p2152_p5), [#allocation2], %s1865_s12 }
  0x16   : > { %v230_v0 = vld [vmem:[%s2174_s15] sm:$0xff] (%p2152_p5)  ;;  %v232_v1 = vld [vmem:[%s2174_s15 + $0x8] sm:$0xff] (%p2152_p5)  ;;  %v234_v2 = vld [vmem:[%s2174_s15 + $0x10] sm:$0xff] (%p2152_p5) }
  0x17   : > { %231 = vst [vmem:[%s2179_s16] sm:$0xff] (%p2152_p5), %v230_v0  ;;  %233 = vst [vmem:[%s2179_s16 + $0x8] sm:$0xff] (%p2152_p5), %v232_v1  ;;  %v236_v3 = vld [vmem:[%s2174_s15 + $0x18] sm:$0xff] (%p2152_p5)  ;;  %v238_v4 = vld [vmem:[%s2174_s15 + $0x20] sm:$0xff] (%p2152_p5) }
  0x18   : > { %235 = vst [vmem:[%s2179_s16 + $0x10] sm:$0xff] (%p2152_p5), %v234_v2  ;;  %v240_v5 = vld [vmem:[%s2174_s15 + $0x28] sm:$0xff] (%p2152_p5)  ;;  %237 = vst [vmem:[%s2179_s16 + $0x18] sm:$0xff] (%p2152_p5), %v236_v3  ;;  %v242_v6 = vld [vmem:[%s2174_s15 + $0x30] sm:$0xff] (%p2152_p5) }
  0x19   : > { %239 = vst [vmem:[%s2179_s16 + $0x20] sm:$0xff] (%p2152_p5), %v238_v4  ;;  %241 = vst [vmem:[%s2179_s16 + $0x28] sm:$0xff] (%p2152_p5), %v240_v5  ;;  %v244_v7 = vld [vmem:[%s2174_s15 + $0x38] sm:$0xff] (%p2152_p5)  ;;  %v246_v8 = vld [vmem:[%s2174_s15 + $0x40] sm:$0xff] (%p2152_p5) }
  0x1a   : > { %243 = vst [vmem:[%s2179_s16 + $0x30] sm:$0xff] %v242_v6  ;;  %245 = vst [vmem:[%s2179_s16 + $0x38] sm:$0xff] %v244_v7  ;;  %v248_v9 = vld [vmem:[%s2174_s15 + $0x48] sm:$0xff]  ;;  %v250_v10 = vld [vmem:[%s2174_s15 + $0x50] sm:$0xff] }
  0x1b   : > { %247 = vst [vmem:[%s2179_s16 + $0x40] sm:$0xff] %v246_v8  ;;  %v252_v11 = vld [vmem:[%s2174_s15 + $0x58] sm:$0xff]  ;;  %249 = vst [vmem:[%s2179_s16 + $0x48] sm:$0xff] %v248_v9  ;;  %v254_v12 = vld [vmem:[%s2174_s15 + $0x60] sm:$0xff] }
  0x1c   : > { %251 = vst [vmem:[%s2179_s16 + $0x50] sm:$0xff] %v250_v10  ;;  %253 = vst [vmem:[%s2179_s16 + $0x58] sm:$0xff] %v252_v11  ;;  %v256_v13 = vld [vmem:[%s2174_s15 + $0x68] sm:$0xff]  ;;  %v258_v14 = vld [vmem:[%s2174_s15 + $0x70] sm:$0xff] }
  0x1d   : > { %255 = vst [vmem:[%s2179_s16 + $0x60] sm:$0xff] %v254_v12  ;;  %257 = vst [vmem:[%s2179_s16 + $0x68] sm:$0xff] %v256_v13  ;;  %v260_v15 = vld [vmem:[%s2174_s15 + $0x78] sm:$0xff]  ;;  %v262_v16 = vld [vmem:[%s2174_s15 + $0x100] sm:$0xff] }
  0x1e   : > { %259 = vst [vmem:[%s2179_s16 + $0x70] sm:$0xff] %v258_v14  ;;  %v264_v17 = vld [vmem:[%s2174_s15 + $0x108] sm:$0xff]  ;;  %261 = vst [vmem:[%s2179_s16 + $0x78] sm:$0xff] %v260_v15  ;;  %v266_v18 = vld [vmem:[%s2174_s15 + $0x110] sm:$0xff] }
  0x1f   : > { %263 = vst [vmem:[%s2179_s16 + $0x80] sm:$0xff] %v262_v16  ;;  %265 = vst [vmem:[%s2179_s16 + $0x88] sm:$0xff] %v264_v17  ;;  %v268_v19 = vld [vmem:[%s2174_s15 + $0x118] sm:$0xff]  ;;  %v270_v20 = vld [vmem:[%s2174_s15 + $0x120] sm:$0xff] }
  0x20   : > { %267 = vst [vmem:[%s2179_s16 + $0x90] sm:$0xff] %v266_v18  ;;  %269 = vst [vmem:[%s2179_s16 + $0x98] sm:$0xff] %v268_v19  ;;  %v272_v21 = vld [vmem:[%s2174_s15 + $0x128] sm:$0xff]  ;;  %v274_v22 = vld [vmem:[%s2174_s15 + $0x130] sm:$0xff] }
  0x21   : > { %271 = vst [vmem:[%s2179_s16 + $0xa0] sm:$0xff] %v270_v20  ;;  %v276_v23 = vld [vmem:[%s2174_s15 + $0x138] sm:$0xff]  ;;  %273 = vst [vmem:[%s2179_s16 + $0xa8] sm:$0xff] %v272_v21  ;;  %v278_v24 = vld [vmem:[%s2174_s15 + $0x140] sm:$0xff] }
  0x22   : > { %275 = vst [vmem:[%s2179_s16 + $0xb0] sm:$0xff] %v274_v22  ;;  %277 = vst [vmem:[%s2179_s16 + $0xb8] sm:$0xff] %v276_v23  ;;  %v280_v25 = vld [vmem:[%s2174_s15 + $0x148] sm:$0xff]  ;;  %v282_v26 = vld [vmem:[%s2174_s15 + $0x150] sm:$0xff] }
  0x23   : > { %279 = vst [vmem:[%s2179_s16 + $0xc0] sm:$0xff] %v278_v24  ;;  %281 = vst [vmem:[%s2179_s16 + $0xc8] sm:$0xff] %v280_v25  ;;  %v284_v27 = vld [vmem:[%s2174_s15 + $0x158] sm:$0xff]  ;;  %v286_v28 = vld [vmem:[%s2174_s15 + $0x160] sm:$0xff] }
  0x24   : > { %283 = vst [vmem:[%s2179_s16 + $0xd0] sm:$0xff] %v282_v26  ;;  %v288_v29 = vld [vmem:[%s2174_s15 + $0x168] sm:$0xff]  ;;  %285 = vst [vmem:[%s2179_s16 + $0xd8] sm:$0xff] %v284_v27  ;;  %v290_v30 = vld [vmem:[%s2174_s15 + $0x170] sm:$0xff] }
  0x25   : > { %287 = vst [vmem:[%s2179_s16 + $0xe0] sm:$0xff] %v286_v28  ;;  %289 = vst [vmem:[%s2179_s16 + $0xe8] sm:$0xff] %v288_v29  ;;  %v292_v31 = vld [vmem:[%s2174_s15 + $0x178] sm:$0xff]  ;;  %v294_v32 = vld [vmem:[%s2174_s15 + $0x200] sm:$0xff] }
  0x26   : > { %291 = vst [vmem:[%s2179_s16 + $0xf0] sm:$0xff] %v290_v30  ;;  %293 = vst [vmem:[%s2179_s16 + $0xf8] sm:$0xff] %v292_v31  ;;  %v296_v33 = vld [vmem:[%s2174_s15 + $0x208] sm:$0xff]  ;;  %v298_v34 = vld [vmem:[%s2174_s15 + $0x210] sm:$0xff] }
  0x27   : > { %295 = vst [vmem:[%s2179_s16 + $0x100] sm:$0xff] %v294_v32  ;;  %v300_v35 = vld [vmem:[%s2174_s15 + $0x218] sm:$0xff]  ;;  %297 = vst [vmem:[%s2179_s16 + $0x108] sm:$0xff] %v296_v33  ;;  %v302_v36 = vld [vmem:[%s2174_s15 + $0x220] sm:$0xff] }
  0x28   : > { %299 = vst [vmem:[%s2179_s16 + $0x110] sm:$0xff] %v298_v34  ;;  %301 = vst [vmem:[%s2179_s16 + $0x118] sm:$0xff] %v300_v35  ;;  %v304_v37 = vld [vmem:[%s2174_s15 + $0x228] sm:$0xff]  ;;  %v306_v38 = vld [vmem:[%s2174_s15 + $0x230] sm:$0xff] }
  0x29   : > { %303 = vst [vmem:[%s2179_s16 + $0x120] sm:$0xff] %v302_v36  ;;  %305 = vst [vmem:[%s2179_s16 + $0x128] sm:$0xff] %v304_v37  ;;  %v308_v39 = vld [vmem:[%s2174_s15 + $0x238] sm:$0xff]  ;;  %v310_v40 = vld [vmem:[%s2174_s15 + $0x240] sm:$0xff] }
  0x2a   : > { %307 = vst [vmem:[%s2179_s16 + $0x130] sm:$0xff] %v306_v38  ;;  %v312_v41 = vld [vmem:[%s2174_s15 + $0x248] sm:$0xff]  ;;  %309 = vst [vmem:[%s2179_s16 + $0x138] sm:$0xff] %v308_v39  ;;  %v314_v42 = vld [vmem:[%s2174_s15 + $0x250] sm:$0xff] }
  0x2b   : > { %311 = vst [vmem:[%s2179_s16 + $0x140] sm:$0xff] %v310_v40  ;;  %313 = vst [vmem:[%s2179_s16 + $0x148] sm:$0xff] %v312_v41  ;;  %v316_v43 = vld [vmem:[%s2174_s15 + $0x258] sm:$0xff]  ;;  %v318_v44 = vld [vmem:[%s2174_s15 + $0x260] sm:$0xff] }
  0x2c   : > { %315 = vst [vmem:[%s2179_s16 + $0x150] sm:$0xff] %v314_v42  ;;  %317 = vst [vmem:[%s2179_s16 + $0x158] sm:$0xff] %v316_v43  ;;  %v320_v45 = vld [vmem:[%s2174_s15 + $0x268] sm:$0xff]  ;;  %v322_v46 = vld [vmem:[%s2174_s15 + $0x270] sm:$0xff] }
  0x2d   : > { %319 = vst [vmem:[%s2179_s16 + $0x160] sm:$0xff] %v318_v44  ;;  %v324_v47 = vld [vmem:[%s2174_s15 + $0x278] sm:$0xff]  ;;  %321 = vst [vmem:[%s2179_s16 + $0x168] sm:$0xff] %v320_v45  ;;  %v326_v48 = vld [vmem:[%s2174_s15 + $0x300] sm:$0xff] }
  0x2e   : > { %323 = vst [vmem:[%s2179_s16 + $0x170] sm:$0xff] %v322_v46  ;;  %325 = vst [vmem:[%s2179_s16 + $0x178] sm:$0xff] %v324_v47  ;;  %v328_v49 = vld [vmem:[%s2174_s15 + $0x308] sm:$0xff]  ;;  %v330_v50 = vld [vmem:[%s2174_s15 + $0x310] sm:$0xff] }
  0x2f   : > { %327 = vst [vmem:[%s2179_s16 + $0x180] sm:$0xff] %v326_v48  ;;  %329 = vst [vmem:[%s2179_s16 + $0x188] sm:$0xff] %v328_v49  ;;  %v332_v51 = vld [vmem:[%s2174_s15 + $0x318] sm:$0xff]  ;;  %v334_v52 = vld [vmem:[%s2174_s15 + $0x320] sm:$0xff] }
  0x30   : > { %331 = vst [vmem:[%s2179_s16 + $0x190] sm:$0xff] %v330_v50  ;;  %v336_v53 = vld [vmem:[%s2174_s15 + $0x328] sm:$0xff]  ;;  %333 = vst [vmem:[%s2179_s16 + $0x198] sm:$0xff] %v332_v51  ;;  %v338_v54 = vld [vmem:[%s2174_s15 + $0x330] sm:$0xff] }
  0x31   : > { %335 = vst [vmem:[%s2179_s16 + $0x1a0] sm:$0xff] %v334_v52  ;;  %337 = vst [vmem:[%s2179_s16 + $0x1a8] sm:$0xff] %v336_v53  ;;  %v340_v55 = vld [vmem:[%s2174_s15 + $0x338] sm:$0xff]  ;;  %v342_v56 = vld [vmem:[%s2174_s15 + $0x340] sm:$0xff] }
  0x32   : > { %339 = vst [vmem:[%s2179_s16 + $0x1b0] sm:$0xff] %v338_v54  ;;  %341 = vst [vmem:[%s2179_s16 + $0x1b8] sm:$0xff] %v340_v55  ;;  %v344_v57 = vld [vmem:[%s2174_s15 + $0x348] sm:$0xff]  ;;  %v346_v58 = vld [vmem:[%s2174_s15 + $0x350] sm:$0xff] }
  0x33   : > { %343 = vst [vmem:[%s2179_s16 + $0x1c0] sm:$0xff] %v342_v56  ;;  %v348_v59 = vld [vmem:[%s2174_s15 + $0x358] sm:$0xff]  ;;  %345 = vst [vmem:[%s2179_s16 + $0x1c8] sm:$0xff] %v344_v57  ;;  %v350_v60 = vld [vmem:[%s2174_s15 + $0x360] sm:$0xff] }
  0x34   : > { %347 = vst [vmem:[%s2179_s16 + $0x1d0] sm:$0xff] %v346_v58  ;;  %349 = vst [vmem:[%s2179_s16 + $0x1d8] sm:$0xff] %v348_v59  ;;  %v352_v61 = vld [vmem:[%s2174_s15 + $0x368] sm:$0xff]  ;;  %v354_v62 = vld [vmem:[%s2174_s15 + $0x370] sm:$0xff] }
  0x35   : > { %351 = vst [vmem:[%s2179_s16 + $0x1e0] sm:$0xff] %v350_v60  ;;  %353 = vst [vmem:[%s2179_s16 + $0x1e8] sm:$0xff] %v352_v61  ;;  %v356_v63 = vld [vmem:[%s2174_s15 + $0x378] sm:$0xff] }
  0x36   : > { %355 = vst [vmem:[%s2179_s16 + $0x1f0] sm:$0xff] %v354_v62  ;;  %357 = vst [vmem:[%s2179_s16 + $0x1f8] sm:$0xff] %v356_v63 }
  0x37 PF: > { %363 = sbr.rel (!%p2152_p5) target bundleno = 91 (0x5b), region = 59  ;;  %s365_s17 = sand.u32 (%p2152_p5), 1, %s2067_s23  }
  0x38   : > { %s1897_s18 = sshll.u32 (%p2152_p5), %s2071_s24, 7  ;;  %s1868_s19 = sshll.u32 (%p2152_p5), %s365_s17, 9 }
  0x39   : > { %s2313_s28 = scalar_lea.vmem (%p2152_p5), %s2961_s3, %s1897_s18  ;;  %s2318_s29 = scalar_lea.vmem (%p2152_p5), [#allocation3], %s1868_s19 }
  0x3a   : > { %v383_v0 = vld [vmem:[%s2313_s28] sm:$0xff] (%p2152_p5)  ;;  %v385_v1 = vld [vmem:[%s2313_s28 + $0x8] sm:$0xff] (%p2152_p5)  ;;  %v387_v2 = vld [vmem:[%s2313_s28 + $0x10] sm:$0xff] (%p2152_p5) }
  0x3b   : > { %384 = vst [vmem:[%s2318_s29] sm:$0xff] (%p2152_p5), %v383_v0  ;;  %386 = vst [vmem:[%s2318_s29 + $0x8] sm:$0xff] (%p2152_p5), %v385_v1  ;;  %v389_v3 = vld [vmem:[%s2313_s28 + $0x18] sm:$0xff] (%p2152_p5)  ;;  %v391_v4 = vld [vmem:[%s2313_s28 + $0x20] sm:$0xff] (%p2152_p5) }
  0x3c   : > { %388 = vst [vmem:[%s2318_s29 + $0x10] sm:$0xff] (%p2152_p5), %v387_v2  ;;  %v393_v5 = vld [vmem:[%s2313_s28 + $0x28] sm:$0xff] (%p2152_p5)  ;;  %390 = vst [vmem:[%s2318_s29 + $0x18] sm:$0xff] (%p2152_p5), %v389_v3  ;;  %v395_v6 = vld [vmem:[%s2313_s28 + $0x30] sm:$0xff] (%p2152_p5) }
  0x3d   : > { %392 = vst [vmem:[%s2318_s29 + $0x20] sm:$0xff] (%p2152_p5), %v391_v4  ;;  %394 = vst [vmem:[%s2318_s29 + $0x28] sm:$0xff] (%p2152_p5), %v393_v5  ;;  %v397_v7 = vld [vmem:[%s2313_s28 + $0x38] sm:$0xff] (%p2152_p5)  ;;  %v399_v8 = vld [vmem:[%s2313_s28 + $0x40] sm:$0xff] (%p2152_p5) }
  0x3e   : > { %396 = vst [vmem:[%s2318_s29 + $0x30] sm:$0xff] %v395_v6  ;;  %398 = vst [vmem:[%s2318_s29 + $0x38] sm:$0xff] %v397_v7  ;;  %v401_v9 = vld [vmem:[%s2313_s28 + $0x48] sm:$0xff]  ;;  %v403_v10 = vld [vmem:[%s2313_s28 + $0x50] sm:$0xff] }
  0x3f   : > { %400 = vst [vmem:[%s2318_s29 + $0x40] sm:$0xff] %v399_v8  ;;  %v405_v11 = vld [vmem:[%s2313_s28 + $0x58] sm:$0xff]  ;;  %402 = vst [vmem:[%s2318_s29 + $0x48] sm:$0xff] %v401_v9  ;;  %v407_v12 = vld [vmem:[%s2313_s28 + $0x60] sm:$0xff] }
  0x40   : > { %404 = vst [vmem:[%s2318_s29 + $0x50] sm:$0xff] %v403_v10  ;;  %406 = vst [vmem:[%s2318_s29 + $0x58] sm:$0xff] %v405_v11  ;;  %v409_v13 = vld [vmem:[%s2313_s28 + $0x68] sm:$0xff]  ;;  %v411_v14 = vld [vmem:[%s2313_s28 + $0x70] sm:$0xff] }
  0x41   : > { %408 = vst [vmem:[%s2318_s29 + $0x60] sm:$0xff] %v407_v12  ;;  %410 = vst [vmem:[%s2318_s29 + $0x68] sm:$0xff] %v409_v13  ;;  %v413_v15 = vld [vmem:[%s2313_s28 + $0x78] sm:$0xff]  ;;  %v415_v16 = vld [vmem:[%s2313_s28 + $0x100] sm:$0xff] }
  0x42   : > { %412 = vst [vmem:[%s2318_s29 + $0x70] sm:$0xff] %v411_v14  ;;  %v417_v17 = vld [vmem:[%s2313_s28 + $0x108] sm:$0xff]  ;;  %414 = vst [vmem:[%s2318_s29 + $0x78] sm:$0xff] %v413_v15  ;;  %v419_v18 = vld [vmem:[%s2313_s28 + $0x110] sm:$0xff] }
  0x43   : > { %416 = vst [vmem:[%s2318_s29 + $0x80] sm:$0xff] %v415_v16  ;;  %418 = vst [vmem:[%s2318_s29 + $0x88] sm:$0xff] %v417_v17  ;;  %v421_v19 = vld [vmem:[%s2313_s28 + $0x118] sm:$0xff]  ;;  %v423_v20 = vld [vmem:[%s2313_s28 + $0x120] sm:$0xff] }
  0x44   : > { %420 = vst [vmem:[%s2318_s29 + $0x90] sm:$0xff] %v419_v18  ;;  %422 = vst [vmem:[%s2318_s29 + $0x98] sm:$0xff] %v421_v19  ;;  %v425_v21 = vld [vmem:[%s2313_s28 + $0x128] sm:$0xff]  ;;  %v427_v22 = vld [vmem:[%s2313_s28 + $0x130] sm:$0xff] }
  0x45   : > { %424 = vst [vmem:[%s2318_s29 + $0xa0] sm:$0xff] %v423_v20  ;;  %v429_v23 = vld [vmem:[%s2313_s28 + $0x138] sm:$0xff]  ;;  %426 = vst [vmem:[%s2318_s29 + $0xa8] sm:$0xff] %v425_v21  ;;  %v431_v24 = vld [vmem:[%s2313_s28 + $0x140] sm:$0xff] }
  0x46   : > { %428 = vst [vmem:[%s2318_s29 + $0xb0] sm:$0xff] %v427_v22  ;;  %430 = vst [vmem:[%s2318_s29 + $0xb8] sm:$0xff] %v429_v23  ;;  %v433_v25 = vld [vmem:[%s2313_s28 + $0x148] sm:$0xff]  ;;  %v435_v26 = vld [vmem:[%s2313_s28 + $0x150] sm:$0xff] }
  0x47   : > { %432 = vst [vmem:[%s2318_s29 + $0xc0] sm:$0xff] %v431_v24  ;;  %434 = vst [vmem:[%s2318_s29 + $0xc8] sm:$0xff] %v433_v25  ;;  %v437_v27 = vld [vmem:[%s2313_s28 + $0x158] sm:$0xff]  ;;  %v439_v28 = vld [vmem:[%s2313_s28 + $0x160] sm:$0xff] }
  0x48   : > { %436 = vst [vmem:[%s2318_s29 + $0xd0] sm:$0xff] %v435_v26  ;;  %v441_v29 = vld [vmem:[%s2313_s28 + $0x168] sm:$0xff]  ;;  %438 = vst [vmem:[%s2318_s29 + $0xd8] sm:$0xff] %v437_v27  ;;  %v443_v30 = vld [vmem:[%s2313_s28 + $0x170] sm:$0xff] }
  0x49   : > { %440 = vst [vmem:[%s2318_s29 + $0xe0] sm:$0xff] %v439_v28  ;;  %442 = vst [vmem:[%s2318_s29 + $0xe8] sm:$0xff] %v441_v29  ;;  %v445_v31 = vld [vmem:[%s2313_s28 + $0x178] sm:$0xff]  ;;  %v447_v32 = vld [vmem:[%s2313_s28 + $0x200] sm:$0xff] }
  0x4a   : > { %444 = vst [vmem:[%s2318_s29 + $0xf0] sm:$0xff] %v443_v30  ;;  %446 = vst [vmem:[%s2318_s29 + $0xf8] sm:$0xff] %v445_v31  ;;  %v449_v33 = vld [vmem:[%s2313_s28 + $0x208] sm:$0xff]  ;;  %v451_v34 = vld [vmem:[%s2313_s28 + $0x210] sm:$0xff] }
  0x4b   : > { %448 = vst [vmem:[%s2318_s29 + $0x100] sm:$0xff] %v447_v32  ;;  %v453_v35 = vld [vmem:[%s2313_s28 + $0x218] sm:$0xff]  ;;  %450 = vst [vmem:[%s2318_s29 + $0x108] sm:$0xff] %v449_v33  ;;  %v455_v36 = vld [vmem:[%s2313_s28 + $0x220] sm:$0xff] }
  0x4c   : > { %452 = vst [vmem:[%s2318_s29 + $0x110] sm:$0xff] %v451_v34  ;;  %454 = vst [vmem:[%s2318_s29 + $0x118] sm:$0xff] %v453_v35  ;;  %v457_v37 = vld [vmem:[%s2313_s28 + $0x228] sm:$0xff]  ;;  %v459_v38 = vld [vmem:[%s2313_s28 + $0x230] sm:$0xff] }
  0x4d   : > { %456 = vst [vmem:[%s2318_s29 + $0x120] sm:$0xff] %v455_v36  ;;  %458 = vst [vmem:[%s2318_s29 + $0x128] sm:$0xff] %v457_v37  ;;  %v461_v39 = vld [vmem:[%s2313_s28 + $0x238] sm:$0xff]  ;;  %v463_v40 = vld [vmem:[%s2313_s28 + $0x240] sm:$0xff] }
  0x4e   : > { %460 = vst [vmem:[%s2318_s29 + $0x130] sm:$0xff] %v459_v38  ;;  %v465_v41 = vld [vmem:[%s2313_s28 + $0x248] sm:$0xff]  ;;  %462 = vst [vmem:[%s2318_s29 + $0x138] sm:$0xff] %v461_v39  ;;  %v467_v42 = vld [vmem:[%s2313_s28 + $0x250] sm:$0xff] }
  0x4f   : > { %464 = vst [vmem:[%s2318_s29 + $0x140] sm:$0xff] %v463_v40  ;;  %466 = vst [vmem:[%s2318_s29 + $0x148] sm:$0xff] %v465_v41  ;;  %v469_v43 = vld [vmem:[%s2313_s28 + $0x258] sm:$0xff]  ;;  %v471_v44 = vld [vmem:[%s2313_s28 + $0x260] sm:$0xff] }
  0x50   : > { %468 = vst [vmem:[%s2318_s29 + $0x150] sm:$0xff] %v467_v42  ;;  %470 = vst [vmem:[%s2318_s29 + $0x158] sm:$0xff] %v469_v43  ;;  %v473_v45 = vld [vmem:[%s2313_s28 + $0x268] sm:$0xff]  ;;  %v475_v46 = vld [vmem:[%s2313_s28 + $0x270] sm:$0xff] }
  0x51   : > { %472 = vst [vmem:[%s2318_s29 + $0x160] sm:$0xff] %v471_v44  ;;  %v477_v47 = vld [vmem:[%s2313_s28 + $0x278] sm:$0xff]  ;;  %474 = vst [vmem:[%s2318_s29 + $0x168] sm:$0xff] %v473_v45  ;;  %v479_v48 = vld [vmem:[%s2313_s28 + $0x300] sm:$0xff] }
  0x52   : > { %476 = vst [vmem:[%s2318_s29 + $0x170] sm:$0xff] %v475_v46  ;;  %478 = vst [vmem:[%s2318_s29 + $0x178] sm:$0xff] %v477_v47  ;;  %v481_v49 = vld [vmem:[%s2313_s28 + $0x308] sm:$0xff]  ;;  %v483_v50 = vld [vmem:[%s2313_s28 + $0x310] sm:$0xff] }
  0x53   : > { %480 = vst [vmem:[%s2318_s29 + $0x180] sm:$0xff] %v479_v48  ;;  %482 = vst [vmem:[%s2318_s29 + $0x188] sm:$0xff] %v481_v49  ;;  %v485_v51 = vld [vmem:[%s2313_s28 + $0x318] sm:$0xff]  ;;  %v487_v52 = vld [vmem:[%s2313_s28 + $0x320] sm:$0xff] }
  0x54   : > { %484 = vst [vmem:[%s2318_s29 + $0x190] sm:$0xff] %v483_v50  ;;  %v489_v53 = vld [vmem:[%s2313_s28 + $0x328] sm:$0xff]  ;;  %486 = vst [vmem:[%s2318_s29 + $0x198] sm:$0xff] %v485_v51  ;;  %v491_v54 = vld [vmem:[%s2313_s28 + $0x330] sm:$0xff] }
  0x55   : > { %488 = vst [vmem:[%s2318_s29 + $0x1a0] sm:$0xff] %v487_v52  ;;  %490 = vst [vmem:[%s2318_s29 + $0x1a8] sm:$0xff] %v489_v53  ;;  %v493_v55 = vld [vmem:[%s2313_s28 + $0x338] sm:$0xff]  ;;  %v495_v56 = vld [vmem:[%s2313_s28 + $0x340] sm:$0xff] }
  0x56   : > { %492 = vst [vmem:[%s2318_s29 + $0x1b0] sm:$0xff] %v491_v54  ;;  %494 = vst [vmem:[%s2318_s29 + $0x1b8] sm:$0xff] %v493_v55  ;;  %v497_v57 = vld [vmem:[%s2313_s28 + $0x348] sm:$0xff]  ;;  %v499_v58 = vld [vmem:[%s2313_s28 + $0x350] sm:$0xff] }
  0x57   : > { %496 = vst [vmem:[%s2318_s29 + $0x1c0] sm:$0xff] %v495_v56  ;;  %v501_v59 = vld [vmem:[%s2313_s28 + $0x358] sm:$0xff]  ;;  %498 = vst [vmem:[%s2318_s29 + $0x1c8] sm:$0xff] %v497_v57  ;;  %v503_v60 = vld [vmem:[%s2313_s28 + $0x360] sm:$0xff] }
  0x58   : > { %500 = vst [vmem:[%s2318_s29 + $0x1d0] sm:$0xff] %v499_v58  ;;  %502 = vst [vmem:[%s2318_s29 + $0x1d8] sm:$0xff] %v501_v59  ;;  %v505_v61 = vld [vmem:[%s2313_s28 + $0x368] sm:$0xff]  ;;  %v507_v62 = vld [vmem:[%s2313_s28 + $0x370] sm:$0xff] }
  0x59   : > { %504 = vst [vmem:[%s2318_s29 + $0x1e0] sm:$0xff] %v503_v60  ;;  %506 = vst [vmem:[%s2318_s29 + $0x1e8] sm:$0xff] %v505_v61  ;;  %v509_v63 = vld [vmem:[%s2313_s28 + $0x378] sm:$0xff] }
  0x5a   : > { %508 = vst [vmem:[%s2318_s29 + $0x1f0] sm:$0xff] %v507_v62  ;;  %510 = vst [vmem:[%s2318_s29 + $0x1f8] sm:$0xff] %v509_v63 }
  0x5b PF: > { %p1871_p10 = scmp.ge.s32.totalorder %s2071_s24, 1  ;;  %p515_p11 = scmp.lt.s32.totalorder %s2071_s24, 3 }
  0x5d   : > { %p516_p12 = pnand %p1871_p10, %p515_p11 }
  0x5e   : > { %v717_v0 = vld [vmem:[%s2960_s2] sm:$0xff] (!%p516_p12)  ;;  %v2073_v2 = vmov (!%p516_p12), 0   ;;  %v718_v3 = vld [vmem:[%s2960_s2 + $0x8] sm:$0xff] (!%p516_p12)  ;;  %v632_v5 = vld [vmem:[%s2959_s1 + $0x18] sm:$0xff] (!%p516_p12)  ;;  %v2074_v11 = vmov (!%p516_p12), 0.0   ;;  %s2480_s14 = sand.u32 (!%p516_p12), 1, %s2063_s22  }
  0x5f   : > { %519 = sbr.rel (%p516_p12) target bundleno = 559 (0x22f), region = 82  ;;  %v629_v1 = vld [vmem:[%s2959_s1] sm:$0xff] (!%p516_p12)  ;;  %2008 = vset.pattern.permute.xlu1 (!%p516_p12), %v2073_v2  ;;  %2007 = vset.pattern.permute.xlu0 (!%p516_p12), %v2073_v2  ;;  %v630_v4 = vld [vmem:[%s2959_s1 + $0x8] sm:$0xff] (!%p516_p12)  ;;  %v631_v6 = vld [vmem:[%s2959_s1 + $0x10] sm:$0xff] (!%p516_p12)  ;;  %s1872_s15 = sshll.u32 (!%p516_p12), %s2480_s14, 9  ;;  %vm1075_vm0 = vcmask (!%p516_p12), 261120  }
  0x60   : > { %723 = vperm.xlu1 (!%p516_p12), %2008, %v717_v0   ;;  %635 = vperm.xlu0 (!%p516_p12), %2007, %v629_v1   ;;  %v720_v7 = vld [vmem:[%s2960_s2 + $0x18] sm:$0xff] (!%p516_p12)  ;;  %v719_v8 = vld [vmem:[%s2960_s2 + $0x10] sm:$0xff] (!%p516_p12)  ;;  %v1064_v9 = vld [vmem:[%s2963_s5 + $0x8] sm:$0xff] (!%p516_p12)  ;;  %s2485_s16 = scalar_lea.vmem (!%p516_p12), [#allocation2], %s1872_s15  ;;  %s2535_s17 = scalar_lea.vmem (!%p516_p12), [#allocation3], %s1872_s15 }
  0x61   : > { %v1063_v10 = vld [vmem:[%s2963_s5] sm:$0xff] (!%p516_p12)  ;;  %1146 = vmatprep.mubr.f32.mxu0 (!%p516_p12), %v2074_v11  ;;  %1223 = vmatprep.mubr.f32.mxu1 (!%p516_p12), %v2074_v11  ;;  %v566_v12 = vld [vmem:[%s2485_s16 + $0x8] sm:$0xff] (!%p516_p12)  ;;  %v568_v13 = vld [vmem:[%s2485_s16 + $0x18] sm:$0xff] (!%p516_p12)  ;;  %s1874_s28 = sshll.u32 (!%p516_p12), %s2480_s14, 8  ;;  %s1898_s7 = sshll.u32 (!%p516_p12), %s1861_s25, 11 }
  0x62   : > { %v565_v14 = vld [vmem:[%s2485_s16] sm:$0xff] (!%p516_p12)  ;;  %v567_v15 = vld [vmem:[%s2485_s16 + $0x10] sm:$0xff] (!%p516_p12)  ;;  %v570_v16 = vld [vmem:[%s2485_s16 + $0x28] sm:$0xff] (!%p516_p12)  ;;  %s2844_s29 = scalar_lea.vmem (!%p516_p12), [#allocation4], %s1874_s28  ;;  %s2909_s25 = scalar_lea.hbm (!%p516_p12), %s2964_s6, %s1898_s7 }
  0x63   : > { %v572_v17 = vld [vmem:[%s2485_s16 + $0x38] sm:$0xff] (!%p516_p12)  ;;  %v569_v18 = vld [vmem:[%s2485_s16 + $0x20] sm:$0xff] (!%p516_p12)  ;;  %v571_v19 = vld [vmem:[%s2485_s16 + $0x30] sm:$0xff] (!%p516_p12)  ;;  %s1776_s10 = sshll.u32 (!%p516_p12), %s2844_s29, 4  ;;  %s1763_s13 = scalar_lea.sflag (!%p516_p12), [#allocation5], %s2480_s14  ;;  %s2912_s10 = int_to_ptr.vmem [resolvable:$true] %s1776_s10 }
  0x64   : > { %728 = vperm.xlu1 (!%p516_p12), %2008, %v718_v3   ;;  %640 = vperm.xlu0 (!%p516_p12), %2007, %v630_v4   ;;  %v582_v26 = vld [vmem:[%s2485_s16 + $0x88] sm:$0xff] (!%p516_p12)  ;;  %v584_v27 = vld [vmem:[%s2485_s16 + $0x98] sm:$0xff] (!%p516_p12)  ;;  %v581_v34 = vld [vmem:[%s2485_s16 + $0x80] sm:$0xff] (!%p516_p12)  ;;  %s2009_s15 = scalar_lea.vmem (!%p516_p12), %s2912_s10, 4096 }
  0x65   : > { %v583_v36 = vld [vmem:[%s2485_s16 + $0x90] sm:$0xff] (!%p516_p12)  ;;  %v934_v48 = vld [vmem:[%s2535_s17 + $0x8] sm:$0xff] (!%p516_p12)  ;;  %v936_v49 = vld [vmem:[%s2535_s17 + $0x18] sm:$0xff] (!%p516_p12)  ;;  %p2010_p13 = scmp.ne.s32.totalorder (!%p516_p12), %s2912_s10, %s2009_s15 }
  0x66   : > { %v933_v58 = vld [vmem:[%s2535_s17] sm:$0xff]  ;;  %v935_v59 = vld [vmem:[%s2535_s17 + $0x10] sm:$0xff]  ;;  %v598_v2 = vld [vmem:[%s2485_s16 + $0x108] sm:$0xff] }
  0x67   : > { %v614_v3 = vld [vmem:[%s2485_s16 + $0x188] sm:$0xff]  ;;  %p2011_p0 = pnand %p2010_p13, %p2156_p6 }
  0x68   : > { %650 = vperm.xlu1 %2008, %v632_v5   ;;  %645 = vperm.xlu0 %2007, %v631_v6  }
  0x69   : > { %p2012_p1 = pneg %p2011_p0 }
  0x6c   : > { %738 = vperm.xlu1 %2008, %v720_v7   ;;  %733 = vperm.xlu0 %2007, %v719_v8   ;;  %v600_v8 = vld [vmem:[%s2485_s16 + $0x118] sm:$0xff] }
  0x70   : > { %1072 = vperm.xlu1 %2008, %v1064_v9   ;;  %1067 = vperm.xlu0 %2007, %v1063_v10   ;;  %v616_v9 = vld [vmem:[%s2485_s16 + $0x198] sm:$0xff]  ;;  %v950_v10 = vld [vmem:[%s2535_s17 + $0x88] sm:$0xff] }
  0xdf   : > { %v2495_v20 = vpop.permute.xlu1 %723  ;;  %v2497_v21 = vpop.permute.xlu0 %635 }
  0xe0   : > { %v654_v22 = vmul.f32 %v2497_v21, %v566_v12  ;;  %v656_v23 = vmul.f32 %v2497_v21, %v568_v13  ;;  %v653_v24 = vmul.f32 %v2497_v21, %v565_v14  ;;  %v655_v25 = vmul.f32 %v2497_v21, %v567_v15  ;;  %v952_v12 = vld [vmem:[%s2535_s17 + $0x98] sm:$0xff] }
  0xe1   : > { %v658_v28 = vmul.f32 %v2497_v21, %v570_v16  ;;  %v660_v29 = vmul.f32 %v2497_v21, %v572_v17  ;;  %v657_v30 = vmul.f32 %v2497_v21, %v569_v18  ;;  %v659_v31 = vmul.f32 %v2497_v21, %v571_v19  ;;  %v949_v19 = vld [vmem:[%s2535_s17 + $0x80] sm:$0xff] }
  0xe2   : > { %v742_v32 = vadd.f32 %v2495_v20, %v654_v22  ;;  %v744_v33 = vadd.f32 %v2495_v20, %v656_v23  ;;  %v741_v35 = vadd.f32 %v2495_v20, %v653_v24  ;;  %v743_v37 = vadd.f32 %v2495_v20, %v655_v25  ;;  %v951_v22 = vld [vmem:[%s2535_s17 + $0x90] sm:$0xff] }
  0xe3   : > { %v2515_v38 = vpop.permute.xlu1 %728  ;;  %v2517_v39 = vpop.permute.xlu0 %640  ;;  %v2520_v40 = vadd.f32 %v2495_v20, %v658_v28  ;;  %v2523_v41 = vadd.f32 %v2495_v20, %v660_v29  ;;  %v2526_v42 = vadd.f32 %v2495_v20, %v657_v30  ;;  %v2529_v43 = vadd.f32 %v2495_v20, %v659_v31 }
  0xe4   : > { %v670_v44 = vmul.f32 %v2517_v39, %v582_v26  ;;  %v806_v45 = vmul.f32 0.2, %v742_v32  ;;  %v672_v46 = vmul.f32 %v2517_v39, %v584_v27  ;;  %v808_v47 = vmul.f32 0.2, %v744_v33 }
  0xe5   : > { %v669_v50 = vmul.f32 %v2517_v39, %v581_v34  ;;  %v805_v51 = vmul.f32 0.2, %v741_v35  ;;  %v671_v52 = vmul.f32 %v2517_v39, %v583_v36  ;;  %v807_v53 = vmul.f32 0.2, %v743_v37 }
  0xe6   : > { %v758_v54 = vadd.f32 %v2515_v38, %v670_v44  ;;  %v870_v55 = vmax.f32 %v742_v32, %v806_v45  ;;  %v760_v56 = vadd.f32 %v2515_v38, %v672_v46  ;;  %v872_v57 = vmax.f32 %v744_v33, %v808_v47  ;;  %v597_v45 = vld [vmem:[%s2485_s16 + $0x100] sm:$0xff] }
  0xe7   : > { %v2545_v60 = vpop.permute.xlu1 %650  ;;  %v2547_v61 = vpop.permute.xlu0 %645  ;;  %v757_v62 = vadd.f32 %v2515_v38, %v669_v50  ;;  %v869_v63 = vmax.f32 %v741_v35, %v805_v51  ;;  %v759_v0 = vadd.f32 %v2515_v38, %v671_v52  ;;  %v871_v1 = vmax.f32 %v743_v37, %v807_v53  ;;  %v613_v50 = vld [vmem:[%s2485_s16 + $0x180] sm:$0xff]  ;;  %v599_v51 = vld [vmem:[%s2485_s16 + $0x110] sm:$0xff] }
  0xe8   : > { %v822_v4 = vmul.f32 0.2, %v758_v54  ;;  %v998_v5 = vmul.f32 %v934_v48, %v870_v55  ;;  %v824_v6 = vmul.f32 0.2, %v760_v56  ;;  %v1000_v7 = vmul.f32 %v936_v49, %v872_v57  ;;  %v982_v55 = vld [vmem:[%s2535_s17 + $0x188] sm:$0xff] }
  0xe9   : > { %v821_v13 = vmul.f32 0.2, %v757_v62  ;;  %v997_v14 = vmul.f32 %v933_v58, %v869_v63  ;;  %v823_v15 = vmul.f32 0.2, %v759_v0  ;;  %v999_v16 = vmul.f32 %v935_v59, %v871_v1  ;;  %v984_v63 = vld [vmem:[%s2535_s17 + $0x198] sm:$0xff]  ;;  %v615_v1 = vld [vmem:[%s2485_s16 + $0x190] sm:$0xff] }
  0xea   : > { %v886_v17 = vmax.f32 %v758_v54, %v822_v4  ;;  %v888_v18 = vmax.f32 %v760_v56, %v824_v6  ;;  %v686_v23 = vmul.f32 %v2547_v61, %v598_v2  ;;  %v702_v24 = vmul.f32 %v2545_v60, %v614_v3  ;;  %v966_v54 = vld [vmem:[%s2535_s17 + $0x108] sm:$0xff] }
  0xeb   : > { %v2561_v25 = vpop.permute.xlu1 %738  ;;  %v2563_v26 = vpop.permute.xlu0 %733  ;;  %v885_v27 = vmax.f32 %v757_v62, %v821_v13  ;;  %v887_v28 = vmax.f32 %v759_v0, %v823_v15  ;;  %v688_v29 = vmul.f32 %v2547_v61, %v600_v8  ;;  %v704_v30 = vmul.f32 %v2545_v60, %v616_v9  ;;  %v968_v62 = vld [vmem:[%s2535_s17 + $0x118] sm:$0xff]  ;;  %v586_v6 = vld [vmem:[%s2485_s16 + $0xa8] sm:$0xff] }
  0xec   : > { %v1014_v31 = vmul.f32 %v950_v10, %v886_v17  ;;  %v1016_v32 = vmul.f32 %v952_v12, %v888_v18  ;;  %v774_v33 = vadd.f32 %v2563_v26, %v686_v23  ;;  %v790_v34 = vadd.f32 %v2561_v25, %v702_v24  ;;  %v588_v17 = vld [vmem:[%s2485_s16 + $0xb8] sm:$0xff]  ;;  %v938_v24 = vld [vmem:[%s2535_s17 + $0x28] sm:$0xff] }
  0xed   : > { %v1013_v35 = vmul.f32 %v949_v19, %v885_v27  ;;  %v1015_v36 = vmul.f32 %v951_v22, %v887_v28  ;;  %v776_v37 = vadd.f32 %v2563_v26, %v688_v29  ;;  %v792_v44 = vadd.f32 %v2561_v25, %v704_v30  ;;  %v965_v29 = vld [vmem:[%s2535_s17 + $0x100] sm:$0xff] }
  0xee   : > { %v1899_v46 = vpack.c.bf16 %v1014_v31, %v998_v5  ;;  %v1907_v47 = vpack.c.bf16 %v1016_v32, %v1000_v7  ;;  %v838_v48 = vmul.f32 0.2, %v774_v33  ;;  %v854_v49 = vmul.f32 0.2, %v790_v34 }
  0xef   : > { %v1901_v52 = vpack.c.bf16 %v1013_v35, %v997_v14  ;;  %v1909_v53 = vpack.c.bf16 %v1015_v36, %v999_v16  ;;  %v840_v56 = vmul.f32 0.2, %v776_v37  ;;  %v856_v57 = vmul.f32 0.2, %v792_v44 }
  0xf0   : > { %1900 = vmatprep.subr.bf16.mxu0 %v1899_v46  ;;  %1908 = vmatprep.subr.bf16.mxu1 %v1907_v47  ;;  %v902_v58 = vmax.f32 %v774_v33, %v838_v48  ;;  %v918_v59 = vmax.f32 %v790_v34, %v854_v49  ;;  %v685_v0 = vmul.f32 %v2547_v61, %v597_v45  ;;  %v810_v2 = vmul.f32 0.2, %v2520_v40  ;;  %v981_v33 = vld [vmem:[%s2535_s17 + $0x180] sm:$0xff]  ;;  %v967_v47 = vld [vmem:[%s2535_s17 + $0x110] sm:$0xff] }
  0xf1   : > { %1902 = vmatpush1.bf16.msra.mxu0 %v1901_v52  ;;  %1910 = vmatpush1.bf16.msra.mxu1 %v1909_v53  ;;  %v904_v3 = vmax.f32 %v776_v37, %v840_v56  ;;  %v920_v4 = vmax.f32 %v792_v44, %v856_v57  ;;  %v701_v5 = vmul.f32 %v2545_v60, %v613_v50  ;;  %v812_v7 = vmul.f32 0.2, %v2523_v41  ;;  %v940_v37 = vld [vmem:[%s2535_s17 + $0x38] sm:$0xff]  ;;  %v585_v44 = vld [vmem:[%s2485_s16 + $0xa0] sm:$0xff]  ;;  %v954_v57 = vld [vmem:[%s2535_s17 + $0xa8] sm:$0xff] }
  0xf2   : > { %v1030_v8 = vmul.f32 %v966_v54, %v902_v58  ;;  %v1046_v9 = vmul.f32 %v982_v55, %v918_v59  ;;  %v773_v10 = vadd.f32 %v2563_v26, %v685_v0  ;;  %v687_v12 = vmul.f32 %v2547_v61, %v599_v51  ;;  %v983_v51 = vld [vmem:[%s2535_s17 + $0x190] sm:$0xff] }
  0xf3   : > { %v1032_v13 = vmul.f32 %v968_v62, %v904_v3  ;;  %v1048_v14 = vmul.f32 %v984_v63, %v920_v4  ;;  %v789_v15 = vadd.f32 %v2561_v25, %v701_v5  ;;  %v703_v16 = vmul.f32 %v2545_v60, %v615_v1  ;;  %v587_v54 = vld [vmem:[%s2485_s16 + $0xb0] sm:$0xff]  ;;  %v602_v1 = vld [vmem:[%s2485_s16 + $0x128] sm:$0xff]  ;;  %v956_v4 = vld [vmem:[%s2535_s17 + $0xb8] sm:$0xff] }
  0xf4   : > { %v1903_v18 = vpack.c.bf16 %v1046_v9, %v1030_v8  ;;  %v837_v19 = vmul.f32 0.2, %v773_v10  ;;  %v775_v22 = vadd.f32 %v2563_v26, %v687_v12  ;;  %v674_v23 = vmul.f32 %v2517_v39, %v586_v6  ;;  %v937_v6 = vld [vmem:[%s2535_s17 + $0x20] sm:$0xff] }
  0xf5   : > { %v1911_v27 = vpack.c.bf16 %v1048_v14, %v1032_v13  ;;  %v853_v28 = vmul.f32 0.2, %v789_v15  ;;  %v791_v30 = vadd.f32 %v2561_v25, %v703_v16  ;;  %v874_v31 = vmax.f32 %v2520_v40, %v810_v2  ;;  %v618_v13 = vld [vmem:[%s2485_s16 + $0x1a8] sm:$0xff] }
  0xf6   : > { %1904 = vmatprep.subr.bf16.mxu0 %v1903_v18  ;;  %v901_v32 = vmax.f32 %v773_v10, %v837_v19  ;;  %v839_v34 = vmul.f32 0.2, %v775_v22  ;;  %v762_v35 = vadd.f32 %v2515_v38, %v674_v23  ;;  %v676_v36 = vmul.f32 %v2517_v39, %v588_v17  ;;  %v939_v18 = vld [vmem:[%s2535_s17 + $0x30] sm:$0xff] }
  0xf7   : > { %1912 = vmatprep.subr.bf16.mxu1 %v1911_v27  ;;  %v917_v45 = vmax.f32 %v789_v15, %v853_v28  ;;  %v855_v46 = vmul.f32 0.2, %v791_v30  ;;  %v1002_v48 = vmul.f32 %v938_v24, %v874_v31  ;;  %v876_v40 = vmax.f32 %v2523_v41, %v812_v7  ;;  %v2619_v15 = vld [vmem:[%s2962_s4] sm:$0xff] }
  0xf8   : > { %v1029_v49 = vmul.f32 %v965_v29, %v901_v32  ;;  %v903_v50 = vmax.f32 %v775_v22, %v839_v34  ;;  %v826_v52 = vmul.f32 0.2, %v762_v35  ;;  %v764_v53 = vadd.f32 %v2515_v38, %v676_v36  ;;  %v604_v22 = vld [vmem:[%s2485_s16 + $0x138] sm:$0xff]  ;;  %v953_v24 = vld [vmem:[%s2535_s17 + $0xa0] sm:$0xff]  ;;  %v955_v36 = vld [vmem:[%s2535_s17 + $0xb0] sm:$0xff] }
  0xf9   : > { %v1045_v55 = vmul.f32 %v981_v33, %v917_v45  ;;  %v919_v56 = vmax.f32 %v791_v30, %v855_v46  ;;  %v1004_v58 = vmul.f32 %v940_v37, %v876_v40  ;;  %v673_v59 = vmul.f32 %v2517_v39, %v585_v44  ;;  %v620_v33 = vld [vmem:[%s2485_s16 + $0x1b8] sm:$0xff]  ;;  %v601_v34 = vld [vmem:[%s2485_s16 + $0x120] sm:$0xff] }
  0xfa   : > { %v1031_v62 = vmul.f32 %v967_v47, %v903_v50  ;;  %v890_v63 = vmax.f32 %v762_v35, %v826_v52  ;;  %v828_v41 = vmul.f32 0.2, %v764_v53  ;;  %v809_v0 = vmul.f32 0.2, %v2526_v42  ;;  %v617_v40 = vld [vmem:[%s2485_s16 + $0x1a0] sm:$0xff] }
  0xfb   : > { %v1905_v2 = vpack.c.bf16 %v1045_v55, %v1029_v49  ;;  %v1047_v3 = vmul.f32 %v983_v51, %v919_v56  ;;  %v761_v5 = vadd.f32 %v2515_v38, %v673_v59  ;;  %v675_v7 = vmul.f32 %v2517_v39, %v587_v54  ;;  %v970_v49 = vld [vmem:[%s2535_s17 + $0x128] sm:$0xff] }
  0xfc   : > { %v1018_v8 = vmul.f32 %v954_v57, %v890_v63  ;;  %v892_v9 = vmax.f32 %v764_v53, %v828_v41  ;;  %v873_v10 = vmax.f32 %v2526_v42, %v809_v0  ;;  %v811_v12 = vmul.f32 0.2, %v2529_v43  ;;  %v603_v53 = vld [vmem:[%s2485_s16 + $0x130] sm:$0xff] }
  0xfd   : > { %1906 = vmatpush1.bf16.msra.mxu0 %v1905_v2  ;;  %v1913_v14 = vpack.c.bf16 %v1047_v3, %v1031_v62  ;;  %v825_v16 = vmul.f32 0.2, %v761_v5  ;;  %v763_v17 = vadd.f32 %v2515_v38, %v675_v7  ;;  %v690_v19 = vmul.f32 %v2547_v61, %v602_v1  ;;  %v619_v0 = vld [vmem:[%s2485_s16 + $0x1b0] sm:$0xff]  ;;  %v574_v1 = vld [vmem:[%s2485_s16 + $0x48] sm:$0xff] }
  0xfe   : > { %v1915_v42 = vpack.c.bf16 %v1018_v8, %v1002_v48  ;;  %v1020_v23 = vmul.f32 %v956_v4, %v892_v9  ;;  %v1001_v27 = vmul.f32 %v937_v6, %v873_v10  ;;  %v875_v28 = vmax.f32 %v2529_v43, %v811_v12  ;;  %v2640_v48 = vld [vmem:[%s2962_s4 + $0x8] sm:$0xff] }
  0xff   : > { %1914 = vmatpush1.bf16.msra.mxu1 %v1913_v14  ;;  %v889_v29 = vmax.f32 %v761_v5, %v825_v16  ;;  %v827_v30 = vmul.f32 0.2, %v763_v17  ;;  %v706_v31 = vmul.f32 %v2545_v60, %v618_v13  ;;  %v778_v32 = vadd.f32 %v2563_v26, %v690_v19  ;;  %v972_v5 = vld [vmem:[%s2535_s17 + $0x138] sm:$0xff]  ;;  %v590_v12 = vld [vmem:[%s2485_s16 + $0xc8] sm:$0xff]  ;;  %v969_v16 = vld [vmem:[%s2535_s17 + $0x120] sm:$0xff] }
 0x100   : > { %1916 = vmatprep.subr.bf16.mxu0 %v1915_v42  ;;  %v1923_v35 = vpack.c.bf16 %v1020_v23, %v1004_v58  ;;  %1875 = vmatmul.mubr.msk.f32.vlgmr.msra.gmra.mrb[0].mxu0 %vm1075_vm0, %v2619_v15  ;;  %v1003_v37 = vmul.f32 %v939_v18, %v875_v28  ;;  %v692_v43 = vmul.f32 %v2547_v61, %v604_v22  ;;  %v986_v58 = vld [vmem:[%s2535_s17 + $0x1a8] sm:$0xff]  ;;  %v988_v14 = vld [vmem:[%s2535_s17 + $0x1b8] sm:$0xff] }
 0x101   : > { %v1017_v44 = vmul.f32 %v953_v24, %v889_v29  ;;  %v891_v45 = vmax.f32 %v763_v17, %v827_v30  ;;  %v794_v46 = vadd.f32 %v2561_v25, %v706_v31  ;;  %v842_v47 = vmul.f32 0.2, %v778_v32  ;;  %1152 = vmatprep.mubr.f32.mxu0 %v2074_v11  ;;  %v985_v29 = vld [vmem:[%s2535_s17 + $0x1a0] sm:$0xff] }
 0x102   : > { %1924 = vmatprep.subr.bf16.mxu1 %v1923_v35  ;;  %1877 = vmatmul.mubr.msk.f32.vlgmr.msra.gmra.mrb[0].mxu1 %vm1075_vm0, %v2619_v15  ;;  %v708_v50 = vmul.f32 %v2545_v60, %v620_v33  ;;  %v780_v51 = vadd.f32 %v2563_v26, %v692_v43  ;;  %v689_v52 = vmul.f32 %v2547_v61, %v601_v34  ;;  %v592_v33 = vld [vmem:[%s2485_s16 + $0xd8] sm:$0xff] }
 0x103   : > { %v1917_v54 = vpack.c.bf16 %v1017_v44, %v1001_v27  ;;  %v1019_v55 = vmul.f32 %v955_v36, %v891_v45  ;;  %v858_v56 = vmul.f32 0.2, %v794_v46  ;;  %v906_v57 = vmax.f32 %v778_v32, %v842_v47  ;;  %1229 = vmatprep.mubr.f32.mxu1 %v2074_v11  ;;  %v576_v27 = vld [vmem:[%s2485_s16 + $0x58] sm:$0xff] }
 0x104   : > { %v796_v59 = vadd.f32 %v2561_v25, %v708_v50  ;;  %v844_v62 = vmul.f32 0.2, %v780_v51  ;;  %1876 = vmatmul.mubr.msk.f32.gmra.mrb[2].mxu0 %vm1075_vm0, %v2640_v48  ;;  %v705_v63 = vmul.f32 %v2545_v60, %v617_v40  ;;  %v777_v41 = vadd.f32 %v2563_v26, %v689_v52  ;;  %v573_v40 = vld [vmem:[%s2485_s16 + $0x40] sm:$0xff] }
 0x105   : > { %1918 = vmatpush1.bf16.msra.mxu0 %v1917_v54  ;;  %v1925_v2 = vpack.c.bf16 %v1019_v55, %v1003_v37  ;;  %v922_v3 = vmax.f32 %v794_v46, %v858_v56  ;;  %v1034_v4 = vmul.f32 %v970_v49, %v906_v57  ;;  %v691_v6 = vmul.f32 %v2547_v61, %v603_v53  ;;  %v971_v37 = vld [vmem:[%s2535_s17 + $0x130] sm:$0xff]  ;;  %v589_v54 = vld [vmem:[%s2485_s16 + $0xc0] sm:$0xff] }
 0x106   : > { %v860_v7 = vmul.f32 0.2, %v796_v59  ;;  %v908_v8 = vmax.f32 %v780_v51, %v844_v62  ;;  %1878 = vmatmul.mubr.msk.f32.gmra.mrb[2].mxu1 %vm1075_vm0, %v2640_v48  ;;  %v793_v9 = vadd.f32 %v2561_v25, %v705_v63  ;;  %v841_v10 = vmul.f32 0.2, %v777_v41  ;;  %1300 = vmatprep.mubr.f32.mxu0 %v2074_v11  ;;  %v987_v51 = vld [vmem:[%s2535_s17 + $0x1b0] sm:$0xff] }
 0x107   : > { %1926 = vmatpush1.bf16.msra.mxu1 %v1925_v2  ;;  %v1050_v13 = vmul.f32 %v986_v58, %v922_v3  ;;  %v707_v17 = vmul.f32 %v2545_v60, %v619_v0  ;;  %v779_v18 = vadd.f32 %v2563_v26, %v691_v6  ;;  %v662_v19 = vmul.f32 %v2497_v21, %v574_v1  ;;  %v942_v58 = vld [vmem:[%s2535_s17 + $0x48] sm:$0xff]  ;;  %v575_v62 = vld [vmem:[%s2485_s16 + $0x50] sm:$0xff] }
 0x108   : > { %v924_v22 = vmax.f32 %v796_v59, %v860_v7  ;;  %v1036_v42 = vmul.f32 %v972_v5, %v908_v8  ;;  %v857_v23 = vmul.f32 0.2, %v793_v9  ;;  %v905_v24 = vmax.f32 %v777_v41, %v841_v10  ;;  %1377 = vmatprep.mubr.f32.mxu1 %v2074_v11  ;;  %v958_v0 = vld [vmem:[%s2535_s17 + $0xc8] sm:$0xff]  ;;  %v591_v7 = vld [vmem:[%s2485_s16 + $0xd0] sm:$0xff]  ;;  %v944_v10 = vld [vmem:[%s2535_s17 + $0x58] sm:$0xff] }
 0x109   : > { %v1919_v28 = vpack.c.bf16 %v1050_v13, %v1034_v4  ;;  %v795_v30 = vadd.f32 %v2561_v25, %v707_v17  ;;  %v843_v31 = vmul.f32 0.2, %v779_v18  ;;  %v678_v32 = vmul.f32 %v2517_v39, %v590_v12 }
 0x10a   : > { %v1052_v34 = vmul.f32 %v988_v14, %v924_v22  ;;  %v921_v35 = vmax.f32 %v793_v9, %v857_v23  ;;  %v1033_v36 = vmul.f32 %v969_v16, %v905_v24  ;;  %v750_v43 = vadd.f32 %v2495_v20, %v662_v19  ;;  %v606_v14 = vld [vmem:[%s2485_s16 + $0x148] sm:$0xff]  ;;  %v960_v19 = vld [vmem:[%s2535_s17 + $0xd8] sm:$0xff] }
 0x10b   : > { %1920 = vmatprep.subr.bf16.mxu0 %v1919_v28  ;;  %v859_v44 = vmul.f32 0.2, %v795_v30  ;;  %v907_v45 = vmax.f32 %v779_v18, %v843_v31  ;;  %v766_v46 = vadd.f32 %v2515_v38, %v678_v32  ;;  %v664_v47 = vmul.f32 %v2497_v21, %v576_v27  ;;  %v622_v28 = vld [vmem:[%s2485_s16 + $0x1c8] sm:$0xff] }
 0x10c   : > { %v1927_v49 = vpack.c.bf16 %v1052_v34, %v1036_v42  ;;  %v1049_v50 = vmul.f32 %v985_v29, %v921_v35  ;;  %v814_v52 = vmul.f32 0.2, %v750_v43  ;;  %v680_v53 = vmul.f32 %v2517_v39, %v592_v33  ;;  %v608_v29 = vld [vmem:[%s2485_s16 + $0x158] sm:$0xff]  ;;  %v941_v33 = vld [vmem:[%s2535_s17 + $0x40] sm:$0xff] }
 0x10d   : > { %v923_v55 = vmax.f32 %v795_v30, %v859_v44  ;;  %v1035_v56 = vmul.f32 %v971_v37, %v907_v45  ;;  %v830_v57 = vmul.f32 0.2, %v766_v46  ;;  %v752_v59 = vadd.f32 %v2495_v20, %v664_v47  ;;  %v957_v37 = vld [vmem:[%s2535_s17 + $0xc0] sm:$0xff]  ;;  %v624_v45 = vld [vmem:[%s2485_s16 + $0x1d8] sm:$0xff]  ;;  %v943_v47 = vld [vmem:[%s2535_s17 + $0x50] sm:$0xff] }
 0x10e   : > { %1928 = vmatprep.subr.bf16.mxu1 %v1927_v49  ;;  %v1921_v63 = vpack.c.bf16 %v1049_v50, %v1033_v36  ;;  %v878_v41 = vmax.f32 %v750_v43, %v814_v52  ;;  %v768_v1 = vadd.f32 %v2515_v38, %v680_v53  ;;  %v661_v2 = vmul.f32 %v2497_v21, %v573_v40 }
 0x10f   : > { %v1051_v3 = vmul.f32 %v987_v51, %v923_v55  ;;  %v894_v4 = vmax.f32 %v766_v46, %v830_v57  ;;  %v816_v5 = vmul.f32 0.2, %v752_v59  ;;  %v677_v6 = vmul.f32 %v2517_v39, %v589_v54  ;;  %v605_v51 = vld [vmem:[%s2485_s16 + $0x140] sm:$0xff]  ;;  %v959_v57 = vld [vmem:[%s2535_s17 + $0xd0] sm:$0xff] }
 0x110   : > { %1922 = vmatpush1.bf16.msra.mxu0 %v1921_v63  ;;  %v1006_v8 = vmul.f32 %v942_v58, %v878_v41  ;;  %v832_v9 = vmul.f32 0.2, %v768_v1  ;;  %v749_v12 = vadd.f32 %v2495_v20, %v661_v2  ;;  %v663_v13 = vmul.f32 %v2497_v21, %v575_v62  ;;  %v621_v63 = vld [vmem:[%s2485_s16 + $0x1c0] sm:$0xff] }
 0x111   : > { %v1929_v16 = vpack.c.bf16 %v1051_v3, %v1035_v56  ;;  %v1022_v17 = vmul.f32 %v958_v0, %v894_v4  ;;  %v880_v18 = vmax.f32 %v752_v59, %v816_v5  ;;  %v765_v22 = vadd.f32 %v2515_v38, %v677_v6  ;;  %v607_v4 = vld [vmem:[%s2485_s16 + $0x150] sm:$0xff] }
 0x112   : > { %v896_v42 = vmax.f32 %v768_v1, %v832_v9  ;;  %v813_v23 = vmul.f32 0.2, %v749_v12  ;;  %v679_v24 = vmul.f32 %v2517_v39, %v591_v7  ;;  %v751_v27 = vadd.f32 %v2495_v20, %v663_v13  ;;  %v974_v1 = vld [vmem:[%s2535_s17 + $0x148] sm:$0xff] }
 0x113   : > { %1930 = vmatpush1.bf16.msra.mxu1 %v1929_v16  ;;  %v1931_v30 = vpack.c.bf16 %v1022_v17, %v1006_v8  ;;  %v1008_v31 = vmul.f32 %v944_v10, %v880_v18  ;;  %1879 = vmatmul.mubr.msk.f32.vlgmr.msra.gmra.mrb[4].mxu0 %vm1075_vm0, %v2619_v15  ;;  %v829_v32 = vmul.f32 0.2, %v765_v22  ;;  %v694_v34 = vmul.f32 %v2547_v61, %v606_v14  ;;  %v990_v10 = vld [vmem:[%s2535_s17 + $0x1c8] sm:$0xff]  ;;  %v623_v16 = vld [vmem:[%s2485_s16 + $0x1d0] sm:$0xff] }
 0x114   : > { %v1024_v35 = vmul.f32 %v960_v19, %v896_v42  ;;  %v877_v36 = vmax.f32 %v749_v12, %v813_v23  ;;  %v767_v43 = vadd.f32 %v2515_v38, %v679_v24  ;;  %v815_v44 = vmul.f32 0.2, %v751_v27  ;;  %1306 = vmatprep.mubr.f32.mxu0 %v2074_v11  ;;  %v578_v23 = vld [vmem:[%s2485_s16 + $0x68] sm:$0xff] }
 0x115   : > { %1932 = vmatprep.subr.bf16.mxu0 %v1931_v30  ;;  %v893_v46 = vmax.f32 %v765_v22, %v829_v32  ;;  %v710_v40 = vmul.f32 %v2545_v60, %v622_v28  ;;  %v782_v49 = vadd.f32 %v2563_v26, %v694_v34  ;;  %v696_v50 = vmul.f32 %v2547_v61, %v608_v29  ;;  %v976_v22 = vld [vmem:[%s2535_s17 + $0x158] sm:$0xff] }
 0x116   : > { %v1939_v52 = vpack.c.bf16 %v1024_v35, %v1008_v31  ;;  %1881 = vmatmul.mubr.msk.f32.vlgmr.msra.gmra.mrb[4].mxu1 %vm1075_vm0, %v2619_v15  ;;  %v1005_v53 = vmul.f32 %v941_v33, %v877_v36  ;;  %v831_v54 = vmul.f32 0.2, %v767_v43  ;;  %v879_v55 = vmax.f32 %v751_v27, %v815_v44  ;;  %v992_v28 = vld [vmem:[%s2535_s17 + $0x1d8] sm:$0xff]  ;;  %v973_v33 = vld [vmem:[%s2535_s17 + $0x140] sm:$0xff]  ;;  %v594_v36 = vld [vmem:[%s2485_s16 + $0xe8] sm:$0xff] }
 0x117   : > { %v1021_v56 = vmul.f32 %v957_v37, %v893_v46  ;;  %v798_v58 = vadd.f32 %v2561_v25, %v710_v40  ;;  %v846_v59 = vmul.f32 0.2, %v782_v49  ;;  %v712_v62 = vmul.f32 %v2545_v60, %v624_v45  ;;  %1383 = vmatprep.mubr.f32.mxu1 %v2074_v11  ;;  %1880 = vmatmul.mubr.msk.f32.gmra.mrb[6].mxu0 %vm1075_vm0, %v2640_v48  ;;  %v580_v46 = vld [vmem:[%s2485_s16 + $0x78] sm:$0xff] }
 0x118   : > { %1940 = vmatprep.subr.bf16.mxu1 %v1939_v52  ;;  %v895_v41 = vmax.f32 %v767_v43, %v831_v54  ;;  %v1007_v0 = vmul.f32 %v943_v47, %v879_v55  ;;  %v784_v2 = vadd.f32 %v2563_v26, %v696_v50  ;;  %v693_v3 = vmul.f32 %v2547_v61, %v605_v51  ;;  %v596_v52 = vld [vmem:[%s2485_s16 + $0xf8] sm:$0xff]  ;;  %v975_v55 = vld [vmem:[%s2535_s17 + $0x150] sm:$0xff] }
 0x119   : > { %v1933_v5 = vpack.c.bf16 %v1021_v56, %v1005_v53  ;;  %v862_v6 = vmul.f32 0.2, %v798_v58  ;;  %v910_v7 = vmax.f32 %v782_v49, %v846_v59  ;;  %v800_v8 = vadd.f32 %v2561_v25, %v712_v62  ;;  %1454 = vmatprep.mubr.f32.mxu0 %v2074_v11  ;;  %v989_v49 = vld [vmem:[%s2535_s17 + $0x1c0] sm:$0xff] }
 0x11a   : > { %v1023_v9 = vmul.f32 %v959_v57, %v895_v41  ;;  %v848_v12 = vmul.f32 0.2, %v784_v2  ;;  %1882 = vmatmul.mubr.msk.f32.gmra.mrb[6].mxu1 %vm1075_vm0, %v2640_v48  ;;  %v709_v13 = vmul.f32 %v2545_v60, %v621_v63  ;;  %v781_v14 = vadd.f32 %v2563_v26, %v693_v3 }
 0x11b   : > { %1934 = vmatpush1.bf16.msra.mxu0 %v1933_v5  ;;  %v926_v17 = vmax.f32 %v798_v58, %v862_v6  ;;  %v1038_v18 = vmul.f32 %v974_v1, %v910_v7  ;;  %v864_v19 = vmul.f32 0.2, %v800_v8  ;;  %v695_v42 = vmul.f32 %v2547_v61, %v607_v4  ;;  %1531 = vmatprep.mubr.f32.mxu1 %v2074_v11  ;;  %v577_v58 = vld [vmem:[%s2485_s16 + $0x60] sm:$0xff]  ;;  %v991_v1 = vld [vmem:[%s2535_s17 + $0x1d0] sm:$0xff] }
 0x11c   : > { %v1941_v24 = vpack.c.bf16 %v1023_v9, %v1007_v0  ;;  %v912_v27 = vmax.f32 %v784_v2, %v848_v12  ;;  %v797_v29 = vadd.f32 %v2561_v25, %v709_v13  ;;  %v845_v30 = vmul.f32 0.2, %v781_v14  ;;  %v593_v5 = vld [vmem:[%s2485_s16 + $0xe0] sm:$0xff]  ;;  %v579_v12 = vld [vmem:[%s2485_s16 + $0x70] sm:$0xff] }
 0x11d   : > { %v1054_v31 = vmul.f32 %v990_v10, %v926_v17  ;;  %v928_v32 = vmax.f32 %v800_v8, %v864_v19  ;;  %v711_v34 = vmul.f32 %v2545_v60, %v623_v16  ;;  %v783_v35 = vadd.f32 %v2563_v26, %v695_v42  ;;  %v946_v8 = vld [vmem:[%s2535_s17 + $0x68] sm:$0xff] }
 0x11e   : > { %1942 = vmatpush1.bf16.msra.mxu1 %v1941_v24  ;;  %v1040_v37 = vmul.f32 %v976_v22, %v912_v27  ;;  %v861_v43 = vmul.f32 0.2, %v797_v29  ;;  %v909_v44 = vmax.f32 %v781_v14, %v845_v30  ;;  %v666_v45 = vmul.f32 %v2497_v21, %v578_v23  ;;  %v962_v19 = vld [vmem:[%s2535_s17 + $0xe8] sm:$0xff]  ;;  %v595_v24 = vld [vmem:[%s2485_s16 + $0xf0] sm:$0xff]  ;;  %v948_v30 = vld [vmem:[%s2535_s17 + $0x78] sm:$0xff] }
 0x11f   : > { %v1935_v47 = vpack.c.bf16 %v1054_v31, %v1038_v18  ;;  %v1056_v40 = vmul.f32 %v992_v28, %v928_v32  ;;  %v799_v50 = vadd.f32 %v2561_v25, %v711_v34  ;;  %v847_v51 = vmul.f32 0.2, %v783_v35  ;;  %v610_v32 = vld [vmem:[%s2485_s16 + $0x168] sm:$0xff] }
 0x120   : > { %v925_v53 = vmax.f32 %v797_v29, %v861_v43  ;;  %v1037_v54 = vmul.f32 %v973_v33, %v909_v44  ;;  %v682_v56 = vmul.f32 %v2517_v39, %v594_v36  ;;  %v754_v57 = vadd.f32 %v2495_v20, %v666_v45  ;;  %v945_v45 = vld [vmem:[%s2535_s17 + $0x60] sm:$0xff] }
 0x121   : > { %1936 = vmatprep.subr.bf16.mxu0 %v1935_v47  ;;  %v1943_v59 = vpack.c.bf16 %v1056_v40, %v1040_v37  ;;  %v863_v62 = vmul.f32 0.2, %v799_v50  ;;  %v911_v63 = vmax.f32 %v783_v35, %v847_v51  ;;  %v668_v41 = vmul.f32 %v2497_v21, %v580_v46  ;;  %v964_v35 = vld [vmem:[%s2535_s17 + $0xf8] sm:$0xff]  ;;  %v626_v40 = vld [vmem:[%s2485_s16 + $0x1e8] sm:$0xff] }
 0x122   : > { %v1053_v0 = vmul.f32 %v989_v49, %v925_v53  ;;  %v770_v2 = vadd.f32 %v2515_v38, %v682_v56  ;;  %v818_v3 = vmul.f32 0.2, %v754_v57  ;;  %v684_v4 = vmul.f32 %v2517_v39, %v596_v52  ;;  %v612_v52 = vld [vmem:[%s2485_s16 + $0x178] sm:$0xff] }
 0x123   : > { %1944 = vmatprep.subr.bf16.mxu1 %v1943_v59  ;;  %v927_v6 = vmax.f32 %v799_v50, %v863_v62  ;;  %v1039_v7 = vmul.f32 %v975_v55, %v911_v63  ;;  %v756_v9 = vadd.f32 %v2495_v20, %v668_v41  ;;  %v665_v10 = vmul.f32 %v2497_v21, %v577_v58  ;;  %v961_v55 = vld [vmem:[%s2535_s17 + $0xe0] sm:$0xff]  ;;  %v947_v59 = vld [vmem:[%s2535_s17 + $0x70] sm:$0xff] }
 0x124   : > { %v1937_v13 = vpack.c.bf16 %v1053_v0, %v1037_v54  ;;  %v834_v14 = vmul.f32 0.2, %v770_v2  ;;  %v882_v16 = vmax.f32 %v754_v57, %v818_v3  ;;  %v772_v17 = vadd.f32 %v2515_v38, %v684_v4  ;;  %v609_v41 = vld [vmem:[%s2485_s16 + $0x160] sm:$0xff]  ;;  %v963_v4 = vld [vmem:[%s2535_s17 + $0xf0] sm:$0xff] }
 0x125   : > { %v1055_v18 = vmul.f32 %v991_v1, %v927_v6  ;;  %v820_v22 = vmul.f32 0.2, %v756_v9  ;;  %v681_v42 = vmul.f32 %v2517_v39, %v593_v5  ;;  %v753_v23 = vadd.f32 %v2495_v20, %v665_v10 }
 0x126   : > { %1938 = vmatpush1.bf16.msra.mxu0 %v1937_v13  ;;  %v898_v27 = vmax.f32 %v770_v2, %v834_v14  ;;  %v1010_v28 = vmul.f32 %v946_v8, %v882_v16  ;;  %v836_v29 = vmul.f32 0.2, %v772_v17  ;;  %v667_v31 = vmul.f32 %v2497_v21, %v579_v12  ;;  %v625_v8 = vld [vmem:[%s2485_s16 + $0x1e0] sm:$0xff]  ;;  %v978_v12 = vld [vmem:[%s2535_s17 + $0x168] sm:$0xff]  ;;  %v611_v16 = vld [vmem:[%s2485_s16 + $0x170] sm:$0xff] }
 0x127   : > { %v1945_v33 = vpack.c.bf16 %v1055_v18, %v1039_v7  ;;  %v884_v34 = vmax.f32 %v756_v9, %v820_v22  ;;  %v769_v36 = vadd.f32 %v2515_v38, %v681_v42  ;;  %v817_v37 = vmul.f32 0.2, %v753_v23 }
 0x128   : > { %v1026_v43 = vmul.f32 %v962_v19, %v898_v27  ;;  %v900_v44 = vmax.f32 %v772_v17, %v836_v29  ;;  %v683_v46 = vmul.f32 %v2517_v39, %v595_v24  ;;  %v755_v47 = vadd.f32 %v2495_v20, %v667_v31  ;;  %v628_v20 = vld [vmem:[%s2485_s16 + $0x1f8] sm:$0xff]  ;;  %v627_v29 = vld [vmem:[%s2485_s16 + $0x1f0] sm:$0xff]  ;;  %s2075_s16 = smov [#allocation4]  }
 0x129   : > { %1946 = vmatpush1.bf16.msra.mxu1 %v1945_v33  ;;  %v1012_v21 = vmul.f32 %v948_v30, %v884_v34  ;;  %1883 = vmatmul.mubr.msk.f32.vlgmr.msra.gmra.mrb[8].mxu0 %vm1075_vm0, %v2619_v15  ;;  %v833_v49 = vmul.f32 0.2, %v769_v36  ;;  %v881_v50 = vmax.f32 %v753_v23, %v817_v37  ;;  %v698_v51 = vmul.f32 %v2547_v61, %v610_v32  ;;  %v994_v23 = vld [vmem:[%s2535_s17 + $0x1e8] sm:$0xff]  ;;  %v980_v33 = vld [vmem:[%s2535_s17 + $0x178] sm:$0xff] }
 0x12a   : > { %v1947_v53 = vpack.c.bf16 %v1026_v43, %v1010_v28  ;;  %v1028_v54 = vmul.f32 %v964_v35, %v900_v44  ;;  %v771_v39 = vadd.f32 %v2515_v38, %v683_v46  ;;  %v819_v56 = vmul.f32 0.2, %v755_v47  ;;  %1460 = vmatprep.mubr.f32.mxu0 %v2074_v11  ;;  %v996_v37 = vld [vmem:[%s2535_s17 + $0x1f8] sm:$0xff] }
 0x12b   : > { %v897_v57 = vmax.f32 %v769_v36, %v833_v49  ;;  %v1009_v58 = vmul.f32 %v945_v45, %v881_v50  ;;  %v714_v62 = vmul.f32 %v2545_v60, %v626_v40  ;;  %v786_v63 = vadd.f32 %v2563_v26, %v698_v51 }
 0x12c   : > { %1948 = vmatprep.subr.bf16.mxu0 %v1947_v53  ;;  %v1955_v0 = vpack.c.bf16 %v1028_v54, %v1012_v21  ;;  %1885 = vmatmul.mubr.msk.f32.vlgmr.msra.gmra.mrb[8].mxu1 %vm1075_vm0, %v2619_v15  ;;  %v835_v38 = vmul.f32 0.2, %v771_v39  ;;  %v883_v1 = vmax.f32 %v755_v47, %v819_v56  ;;  %v700_v2 = vmul.f32 %v2547_v61, %v612_v52  ;;  %v977_v47 = vld [vmem:[%s2535_s17 + $0x160] sm:$0xff] }
 0x12d   : > { %v1025_v3 = vmul.f32 %v961_v55, %v897_v57  ;;  %v802_v5 = vadd.f32 %v2561_v25, %v714_v62  ;;  %v850_v6 = vmul.f32 0.2, %v786_v63  ;;  %v716_v7 = vmul.f32 %v2545_v60, %v628_v20  ;;  %1537 = vmatprep.mubr.f32.mxu1 %v2074_v11  ;;  %1884 = vmatmul.mubr.msk.f32.gmra.mrb[10].mxu0 %vm1075_vm0, %v2640_v48  ;;  %v993_v53 = vld [vmem:[%s2535_s17 + $0x1e0] sm:$0xff]  ;;  %v979_v20 = vld [vmem:[%s2535_s17 + $0x170] sm:$0xff] }
 0x12e   : > { %1956 = vmatprep.subr.bf16.mxu1 %v1955_v0  ;;  %v899_v9 = vmax.f32 %v771_v39, %v835_v38  ;;  %v1011_v10 = vmul.f32 %v947_v59, %v883_v1  ;;  %v788_v13 = vadd.f32 %v2563_v26, %v700_v2  ;;  %v697_v14 = vmul.f32 %v2547_v61, %v609_v41 }
 0x12f   : > { %v1949_v17 = vpack.c.bf16 %v1025_v3, %v1009_v58  ;;  %v866_v18 = vmul.f32 0.2, %v802_v5  ;;  %v914_v19 = vmax.f32 %v786_v63, %v850_v6  ;;  %v804_v22 = vadd.f32 %v2561_v25, %v716_v7  ;;  %1608 = vmatprep.mubr.f32.mxu0 %v2074_v11  ;;  %v2841_v7 = vpop.permute.xlu1 %1072 }
 0x130   : > { %v1027_v42 = vmul.f32 %v963_v4, %v899_v9  ;;  %v852_v24 = vmul.f32 0.2, %v788_v13  ;;  %1886 = vmatmul.mubr.msk.f32.gmra.mrb[10].mxu1 %vm1075_vm0, %v2640_v48  ;;  %v713_v27 = vmul.f32 %v2545_v60, %v625_v8  ;;  %v785_v28 = vadd.f32 %v2563_v26, %v697_v14 }
 0x131   : > { %1950 = vmatpush1.bf16.msra.mxu0 %v1949_v17  ;;  %v930_v30 = vmax.f32 %v802_v5, %v866_v18  ;;  %v1042_v31 = vmul.f32 %v978_v12, %v914_v19  ;;  %v868_v32 = vmul.f32 0.2, %v804_v22  ;;  %v699_v34 = vmul.f32 %v2547_v61, %v611_v16  ;;  %1685 = vmatprep.mubr.f32.mxu1 %v2074_v11 }
 0x132   : > { %v1957_v35 = vpack.c.bf16 %v1027_v42, %v1011_v10  ;;  %v916_v36 = vmax.f32 %v788_v13, %v852_v24  ;;  %v801_v43 = vadd.f32 %v2561_v25, %v713_v27  ;;  %v849_v44 = vmul.f32 0.2, %v785_v28 }
 0x133   : > { %v1058_v45 = vmul.f32 %v994_v23, %v930_v30  ;;  %v932_v46 = vmax.f32 %v804_v22, %v868_v32  ;;  %v715_v40 = vmul.f32 %v2545_v60, %v627_v29  ;;  %v787_v21 = vadd.f32 %v2563_v26, %v699_v34  ;;  %v995_v26 = vld [vmem:[%s2535_s17 + $0x1f0] sm:$0xff]  ;;  %s2013_s17 = sshll.u32 %s2075_s16, 4  ;;  %s2014_s17 = int_to_ptr.vmem [resolvable:$false] %s2013_s17 }
 0x134   : > { %1958 = vmatpush1.bf16.msra.mxu1 %v1957_v35  ;;  %v1044_v49 = vmul.f32 %v980_v33, %v916_v36  ;;  %v865_v61 = vmul.f32 0.2, %v801_v43  ;;  %v913_v50 = vmax.f32 %v785_v28, %v849_v44  ;;  %s2015_s18 = scalar_lea.vmem %s2014_s17, 8192  ;;  %p2016_p2 = scmp.lt.s32.totalorder %s2912_s10, %s2014_s17 }
 0x135   : > { %v1951_v51 = vpack.c.bf16 %v1058_v45, %v1042_v31  ;;  %v1060_v52 = vmul.f32 %v996_v37, %v932_v46  ;;  %v803_v54 = vadd.f32 %v2561_v25, %v715_v40  ;;  %v851_v55 = vmul.f32 0.2, %v787_v21  ;;  %v2836_v25 = vpop.permute.xlu0 %1067  ;;  %p2017_p3 = scmp.lt.s32.totalorder %s2015_s18, %s2009_s15 }
 0x136   : > { %v929_v39 = vmax.f32 %v801_v43, %v865_v61  ;;  %v1041_v56 = vmul.f32 %v977_v47, %v913_v50 }
 0x137   : > { %1952 = vmatprep.subr.bf16.mxu0 %v1951_v51  ;;  %v1959_v57 = vpack.c.bf16 %v1060_v52, %v1044_v49  ;;  %v867_v58 = vmul.f32 0.2, %v803_v54  ;;  %v915_v60 = vmax.f32 %v787_v21, %v851_v55  ;;  %p2018_p4 = por %p2017_p3, %p2016_p2 }
 0x138   : > { %v1057_v59 = vmul.f32 %v993_v53, %v929_v39 }
 0x139   : > { %1960 = vmatprep.subr.bf16.mxu1 %v1959_v57  ;;  %v931_v62 = vmax.f32 %v803_v54, %v867_v58  ;;  %v1043_v63 = vmul.f32 %v979_v20, %v915_v60  ;;  %p2019_p5 = pnand %p2018_p4, %p2012_p1 }
 0x13a   : > { %v1953_v41 = vpack.c.bf16 %v1057_v59, %v1041_v56 }
 0x13b   : > { %v1059_v0 = vmul.f32 %v995_v26, %v931_v62 }
 0x13c   : > { %1954 = vmatpush1.bf16.msra.mxu0 %v1953_v41 }
 0x13d   : > { %v1961_v38 = vpack.c.bf16 %v1059_v0, %v1043_v63 }
 0x13f   : > { %1962 = vmatpush1.bf16.msra.mxu1 %v1961_v38  ;;  %1887 = vmatmul.mubr.msk.f32.vlgmr.msra.gmra.mrb[12].mxu0 %vm1075_vm0, %v2619_v15 }
 0x140   : > { %1614 = vmatprep.mubr.f32.mxu0 %v2074_v11 }
 0x142   : > { %1889 = vmatmul.mubr.msk.f32.vlgmr.msra.gmra.mrb[12].mxu1 %vm1075_vm0, %v2619_v15 }
 0x143   : > { %1691 = vmatprep.mubr.f32.mxu1 %v2074_v11  ;;  %1888 = vmatmul.mubr.msk.f32.gmra.mrb[14].mxu0 %vm1075_vm0, %v2640_v48 }
 0x146   : > { %1890 = vmatmul.mubr.msk.f32.gmra.mrb[14].mxu1 %vm1075_vm0, %v2640_v48 }
 0x1d3   : > { %v1148_v1 = vpop.f32.mrb[0].mxu0 }
 0x1d4   : > { %v1149_v2 = vadd.f32 %v1148_v1, %v2836_v25  ;;  %v1150_v3 = vpop.f32.mrb[1].mxu0 }
 0x1d5   : > { %v1225_v4 = vpop.f32.mrb[0].mxu1  ;;  %v1151_v5 = vadd.f32 %v1150_v3, %v2836_v25 }
 0x1d6   : > { %v1698_v6 = vmax.f32 %v1149_v2, 0.0  ;;  %v1226_v15 = vadd.f32 %v1225_v4, %v2836_v25  ;;  %v1227_v11 = vpop.f32.mrb[1].mxu1 }
 0x1d7   : > { %v1699_v8 = vmax.f32 %v1151_v5, 0.0  ;;  %v1228_v9 = vadd.f32 %v1227_v11, %v2836_v25  ;;  %v1154_v48 = vpop.f32.mrb[2].mxu0 }
 0x1d8   : > { %1730 = vst [vmem:[%s2844_s29] sm:$0xff] %v1698_v6  ;;  %v1700_v10 = vmax.f32 %v1226_v15, 0.0  ;;  %v1155_v12 = vadd.f32 %v1154_v48, %v2841_v7  ;;  %v1156_v13 = vpop.f32.mrb[3].mxu0 }
 0x1d9   : > { %1731 = vst [vmem:[%s2844_s29 + $0x8] sm:$0xff] %v1699_v8  ;;  %v1701_v14 = vmax.f32 %v1228_v9, 0.0  ;;  %v1231_v16 = vpop.f32.mrb[2].mxu1  ;;  %v1157_v17 = vadd.f32 %v1156_v13, %v2841_v7 }
 0x1da   : > { %1732 = vst [vmem:[%s2844_s29 + $0x10] sm:$0xff] %v1700_v10  ;;  %v1714_v18 = vmax.f32 %v1155_v12, 0.0  ;;  %v1232_v19 = vadd.f32 %v1231_v16, %v2841_v7  ;;  %v1233_v22 = vpop.f32.mrb[3].mxu1 }
 0x1db   : > { %1733 = vst [vmem:[%s2844_s29 + $0x18] sm:$0xff] %v1701_v14  ;;  %v1715_v42 = vmax.f32 %v1157_v17, 0.0  ;;  %v1234_v23 = vadd.f32 %v1233_v22, %v2841_v7 }
 0x1dc   : > { %1746 = vst [vmem:[%s2844_s29 + $0x80] sm:$0xff] %v1714_v18  ;;  %v1716_v24 = vmax.f32 %v1232_v19, 0.0 }
 0x1dd   : > { %1747 = vst [vmem:[%s2844_s29 + $0x88] sm:$0xff] %v1715_v42  ;;  %v1717_v27 = vmax.f32 %v1234_v23, 0.0 }
 0x1de   : > { %1748 = vst [vmem:[%s2844_s29 + $0x90] sm:$0xff] %v1716_v24 }
 0x1df   : > { %1749 = vst [vmem:[%s2844_s29 + $0x98] sm:$0xff] %v1717_v27 }
 0x1e6   : > { %v1302_v28 = vpop.f32.mrb[4].mxu0 }
 0x1e7   : > { %v1303_v29 = vadd.f32 %v1302_v28, %v2836_v25  ;;  %v1304_v30 = vpop.f32.mrb[5].mxu0 }
 0x1e8   : > { %v1305_v31 = vadd.f32 %v1304_v30, %v2836_v25 }
 0x1e9   : > { %v1702_v32 = vmax.f32 %v1303_v29, 0.0  ;;  %v1379_v33 = vpop.f32.mrb[4].mxu1 }
 0x1ea   : > { %v1380_v34 = vadd.f32 %v1379_v33, %v2836_v25  ;;  %v1703_v35 = vmax.f32 %v1305_v31, 0.0  ;;  %v1381_v36 = vpop.f32.mrb[5].mxu1  ;;  %v1308_v37 = vpop.f32.mrb[6].mxu0 }
 0x1eb   : > { %1734 = vst [vmem:[%s2844_s29 + $0x20] sm:$0xff] %v1702_v32  ;;  %v1382_v43 = vadd.f32 %v1381_v36, %v2836_v25  ;;  %v1309_v44 = vadd.f32 %v1308_v37, %v2841_v7  ;;  %v1310_v45 = vpop.f32.mrb[7].mxu0 }
 0x1ec   : > { %v1704_v46 = vmax.f32 %v1380_v34, 0.0  ;;  %1735 = vst [vmem:[%s2844_s29 + $0x28] sm:$0xff] %v1703_v35  ;;  %v1311_v47 = vadd.f32 %v1310_v45, %v2841_v7 }
 0x1ed   : > { %v1705_v40 = vmax.f32 %v1382_v43, 0.0  ;;  %v1718_v21 = vmax.f32 %v1309_v44, 0.0  ;;  %v1385_v49 = vpop.f32.mrb[6].mxu1 }
 0x1ee   : > { %1736 = vst [vmem:[%s2844_s29 + $0x30] sm:$0xff] %v1704_v46  ;;  %v1386_v61 = vadd.f32 %v1385_v49, %v2841_v7  ;;  %v1719_v50 = vmax.f32 %v1311_v47, 0.0  ;;  %v1387_v51 = vpop.f32.mrb[7].mxu1 }
 0x1ef   : > { %1737 = vst [vmem:[%s2844_s29 + $0x38] sm:$0xff] %v1705_v40  ;;  %1750 = vst [vmem:[%s2844_s29 + $0xa0] sm:$0xff] %v1718_v21  ;;  %v1388_v52 = vadd.f32 %v1387_v51, %v2841_v7 }
 0x1f0   : > { %v1720_v53 = vmax.f32 %v1386_v61, 0.0  ;;  %1751 = vst [vmem:[%s2844_s29 + $0xa8] sm:$0xff] %v1719_v50 }
 0x1f1   : > { %v1721_v54 = vmax.f32 %v1388_v52, 0.0 }
 0x1f2   : > { %1752 = vst [vmem:[%s2844_s29 + $0xb0] sm:$0xff] %v1720_v53 }
 0x1f3   : > { %1753 = vst [vmem:[%s2844_s29 + $0xb8] sm:$0xff] %v1721_v54 }
 0x1fc   : > { %v1456_v55 = vpop.f32.mrb[8].mxu0 }
 0x1fd   : > { %v1457_v39 = vadd.f32 %v1456_v55, %v2836_v25  ;;  %v1458_v56 = vpop.f32.mrb[9].mxu0 }
 0x1fe   : > { %v1459_v20 = vadd.f32 %v1458_v56, %v2836_v25 }
 0x1ff   : > { %v1706_v57 = vmax.f32 %v1457_v39, 0.0  ;;  %v1533_v58 = vpop.f32.mrb[8].mxu1 }
 0x200   : > { %v1534_v60 = vadd.f32 %v1533_v58, %v2836_v25  ;;  %v1707_v59 = vmax.f32 %v1459_v20, 0.0  ;;  %v1535_v26 = vpop.f32.mrb[9].mxu1  ;;  %v1462_v62 = vpop.f32.mrb[10].mxu0 }
 0x201   : > { %1738 = vst [vmem:[%s2844_s29 + $0x40] sm:$0xff] %v1706_v57  ;;  %v1536_v63 = vadd.f32 %v1535_v26, %v2836_v25  ;;  %v1463_v41 = vadd.f32 %v1462_v62, %v2841_v7  ;;  %v1464_v0 = vpop.f32.mrb[11].mxu0 }
 0x202   : > { %v1708_v38 = vmax.f32 %v1534_v60, 0.0  ;;  %1739 = vst [vmem:[%s2844_s29 + $0x48] sm:$0xff] %v1707_v59  ;;  %v1465_v1 = vadd.f32 %v1464_v0, %v2841_v7 }
 0x203   : > { %v1709_v2 = vmax.f32 %v1536_v63, 0.0  ;;  %v1722_v3 = vmax.f32 %v1463_v41, 0.0  ;;  %v1539_v4 = vpop.f32.mrb[10].mxu1 }
 0x204   : > { %1740 = vst [vmem:[%s2844_s29 + $0x50] sm:$0xff] %v1708_v38  ;;  %v1540_v5 = vadd.f32 %v1539_v4, %v2841_v7  ;;  %v1723_v6 = vmax.f32 %v1465_v1, 0.0  ;;  %v1541_v15 = vpop.f32.mrb[11].mxu1 }
 0x205   : > { %1741 = vst [vmem:[%s2844_s29 + $0x58] sm:$0xff] %v1709_v2  ;;  %1754 = vst [vmem:[%s2844_s29 + $0xc0] sm:$0xff] %v1722_v3  ;;  %v1542_v11 = vadd.f32 %v1541_v15, %v2841_v7 }
 0x206   : > { %v1724_v8 = vmax.f32 %v1540_v5, 0.0  ;;  %1755 = vst [vmem:[%s2844_s29 + $0xc8] sm:$0xff] %v1723_v6 }
 0x207   : > { %v1725_v9 = vmax.f32 %v1542_v11, 0.0 }
 0x208   : > { %1756 = vst [vmem:[%s2844_s29 + $0xd0] sm:$0xff] %v1724_v8 }
 0x209   : > { %1757 = vst [vmem:[%s2844_s29 + $0xd8] sm:$0xff] %v1725_v9 }
 0x212   : > { %v1610_v48 = vpop.f32.mrb[12].mxu0 }
 0x213   : > { %v1611_v10 = vadd.f32 %v1610_v48, %v2836_v25  ;;  %v1612_v12 = vpop.f32.mrb[13].mxu0 }
 0x214   : > { %v1613_v13 = vadd.f32 %v1612_v12, %v2836_v25 }
 0x215   : > { %v1710_v14 = vmax.f32 %v1611_v10, 0.0  ;;  %v1687_v16 = vpop.f32.mrb[12].mxu1 }
 0x216   : > { %v1688_v17 = vadd.f32 %v1687_v16, %v2836_v25  ;;  %v1711_v18 = vmax.f32 %v1613_v13, 0.0  ;;  %v1689_v19 = vpop.f32.mrb[13].mxu1  ;;  %v1616_v22 = vpop.f32.mrb[14].mxu0 }
 0x217   : > { %1742 = vst [vmem:[%s2844_s29 + $0x60] sm:$0xff] %v1710_v14  ;;  %v1690_v42 = vadd.f32 %v1689_v19, %v2836_v25  ;;  %v1617_v23 = vadd.f32 %v1616_v22, %v2841_v7  ;;  %v1618_v24 = vpop.f32.mrb[15].mxu0 }
 0x218   : > { %v1712_v27 = vmax.f32 %v1688_v17, 0.0  ;;  %1743 = vst [vmem:[%s2844_s29 + $0x68] sm:$0xff] %v1711_v18  ;;  %v1619_v28 = vadd.f32 %v1618_v24, %v2841_v7 }
 0x219   : > { %v1713_v29 = vmax.f32 %v1690_v42, 0.0  ;;  %v1726_v30 = vmax.f32 %v1617_v23, 0.0  ;;  %v1693_v31 = vpop.f32.mrb[14].mxu1 }
 0x21a   : > { %1744 = vst [vmem:[%s2844_s29 + $0x70] sm:$0xff] %v1712_v27  ;;  %v1694_v25 = vadd.f32 %v1693_v31, %v2841_v7  ;;  %v1727_v32 = vmax.f32 %v1619_v28, 0.0  ;;  %v1695_v33 = vpop.f32.mrb[15].mxu1 }
 0x21b   : > { %1745 = vst [vmem:[%s2844_s29 + $0x78] sm:$0xff] %v1713_v29  ;;  %1758 = vst [vmem:[%s2844_s29 + $0xe0] sm:$0xff] %v1726_v30  ;;  %v1696_v34 = vadd.f32 %v1695_v33, %v2841_v7 }
 0x21c   : > { %v1728_v35 = vmax.f32 %v1694_v25, 0.0  ;;  %1759 = vst [vmem:[%s2844_s29 + $0xe8] sm:$0xff] %v1727_v32 }
 0x21d   : > { %v1729_v36 = vmax.f32 %v1696_v34, 0.0 }
 0x21e   : > { %1760 = vst [vmem:[%s2844_s29 + $0xf0] sm:$0xff] %v1728_v35 }
 0x21f   : > { %1761 = vst [vmem:[%s2844_s29 + $0xf8] sm:$0xff] %v1729_v36 }
 0x220   : > { %2022 = shalt.err (!%p2019_p5)
}
 0x221   : > { %s2023_s19 = scalar_lea.hbm %s2909_s25, 4096  ;;  %s2027_s28 = scalar_lea.hbm %s2964_s6, 8192 }
 0x222   : > { %p2024_p7 = scmp.ne.s32.totalorder %s2909_s25, %s2023_s19  ;;  %p2028_p12 = scmp.lt.u32.totalorder %s2909_s25, %s2964_s6 }
 0x223   : > { %p2029_p13 = scmp.lt.u32.totalorder %s2027_s28, %s2023_s19  ;;  %p2031_p1 = scmp.lt.u32.totalorder %s2023_s19, %s2909_s25 }
 0x224   : > { %p2025_p10 = pnand %p2024_p7, %p2156_p6 }
 0x225   : > { %p2030_p0 = por %p2029_p13, %p2028_p12 }
 0x226   : > { %p2026_p11 = pneg %p2025_p10 }
 0x227   : > { %p2032_p2 = por %p2031_p1, %p2030_p0 }
 0x229   : > { %p2033_p3 = pnand %p2032_p2, %p2026_p11 }
 0x22b   : > { %2036 = shalt.err (!%p2033_p3)
}
 0x22c   : > { %s2076_s11 = smov 2048   ;;  %s2077_s12 = smov 4096  }
 0x22d   : > { %s2078_s15 = smov 128  }
 0x22e   : > { %1963 = dma.vmem_to_hbm [thread:$0]  (%p2156_p6), %s2912_s10, 4096, %s2909_s25, %s1763_s13, %s2076_s11, %s2077_s12, %s2078_s15  }
 0x22f PF: > { %s1791_s16 = sand.u32 1, %s2059_s21   ;;  %p1966_p4 = pnand %p1864_p9, %p2160_p8 }
 0x230   : > { %s1792_s17 = scalar_lea.sflag [#allocation5], %s1791_s16 }
 0x231   : > { %2054 = dma.done.wait (!%p1966_p4), %s1792_s17, 4096  }
 0x232   : > { %2056 = vsyncadd (!%p1966_p4), %s1792_s17, 4294963200  ;;  %p16_p5 = scmp.ge.s32.totalorder %s2137_s27, 4   ;;  %s2968_s21 = smov %s2063_s22 }
 0x233   : > { %s2969_s22 = smov %s2067_s23  ;;  %s2970_s23 = smov %s2150_s30 }
 0x234   : > { %s2971_s24 = smov %s2137_s27  ;;  %18 = sbr.rel (!%p16_p5) target bundleno = 3 (0x3), region = 138 }
 0x23b   :  { %1797 = vsyncpa [#allocation5], 1 }
 0x23c   :  { %1799 = vsyncpa [#allocation5 + $0x1], 1 }

// kernel: _lambda_.5
= control target key start
LH: loop header
LB: loop body
LE: loop exit
PB: predicated region body
PF: predicated region fallthrough
CT: control target
= control target key end

     0   :  { %s3786_s0 = inlined_call_operand.hbm [shape: f32[16,4096], index: 0, kind: input, shape index: {}]   ;;  %s3787_s1 = inlined_call_operand.hbm [shape: f32[16,4096], index: 1, kind: input, shape index: {}]   ;;  %s3788_s2 = inlined_call_operand.vmem [shape: f32[32,16], index: 2, kind: input, shape index: {}]   ;;  %s3789_s3 = inlined_call_operand.vmem [shape: f32[32,16], index: 3, kind: input, shape index: {}]   ;;  %s3790_s4 = inlined_call_operand.hbm [shape: f32[32,1], index: 4, kind: input, shape index: {}]   ;;  %s3791_s5 = inlined_call_operand.vmem [shape: f32[32,4096], index: 5, kind: output, shape index: {0}]   ;;  %s3792_s6 = inlined_call_operand.vmem [shape: f32[2,64,1], index: 6, kind: output, shape index: {1}]  }
   0x1   :  { %3797 = sst [smem:[#allocation11_spill]] %s3786_s0 }
   0x2   :  { %3798 = sst [smem:[#allocation12_spill]] %s3790_s4 }
   0x3   :  { %12 = vsyncpa [#allocation3], 0 }
   0x4   :  { %14 = vsyncpa [#allocation3 + $0x1], 0 }
   0x5   :  { %15 = vsyncpa [#allocation5], 0 }
   0x6   :  { %17 = vsyncpa [#allocation5 + $0x1], 0  ;;  %s2955_s21 = smov 0   ;;  %s2957_s22 = smov 0  }
   0x7   :  { %s2959_s23 = smov 0   ;;  %s2961_s24 = smov 0  }
   0x8 LB: > { %s2974_s25 = sadd.s32 4294967295, %s2909_s24   ;;  %s2977_s26 = sadd.s32 1, %s2909_s24   ;;  %s2909_s24 = sphi %s2961_s24, %s3816_s24   ;;  %s2905_s23 = sphi %s2959_s23, %s3815_s23   ;;  %s2901_s22 = sphi %s2957_s22, %s3814_s22   ;;  %s2897_s21 = sphi %s2955_s21, %s3813_s21  }
   0x9   : > { %s27_s27 = ssub.s32 %s2909_s24, %s2977_s26  ;;  %s30_s28 = sadd.s32 1, %s2905_s23 }
   0xa   : > { %p28_p0 = scmp.eq.s32.totalorder %s27_s27, 0  ;;  %p37_p1 = scmp.ne.s32.totalorder %s2905_s23, %s2901_s22 }
   0xb   : > { %p38_p2 = scmp.eq.s32.totalorder %s2909_s24, 0  ;;  %p43_p3 = scmp.ne.s32.totalorder %s2901_s22, %s2897_s21 }
   0xc   : > { %s2987_s29 = scalar_select %p28_p0, %s2905_s23, %s30_s28  }
   0xd   : > { %p2989_p4 = por %p38_p2, %p37_p1  ;;  %p3793_p5 = scmp.eq.s32.totalorder %s2974_s25, 0 }
   0xe   : > { %p156_p6 = scmp.eq.s32.totalorder %s2974_s25, 1  ;;  %p2499_p7 = scmp.ge.s32.totalorder %s2909_s24, 1 }
   0xf   : > { %p2998_p8 = por %p3793_p5, %p43_p3  ;;  %p195_p9 = scmp.lt.s32.totalorder %s2909_s24, 3 }
  0x10   : > { %p3003_p10 = por %p156_p6, %p37_p1  ;;  %s2911_s10 = smov [#allocation6]  }
  0x11   : > { %s3800_s7 = scalar_select %p2998_p8, 1, 0 }
  0x12   : > { %s3801_s8 = scalar_select %p3003_p10, 1, 0 }
  0x13   : > { %p3007_p11 = pnand %p2499_p7, %p195_p9  ;;  %s213_s11 = sshll.u32 %s2911_s10, 4  ;;  %s214_s11 = int_to_ptr.vmem [resolvable:$true] %s213_s11 }
  0x14   : > { %p2736_p0 = scmp.lt.s32.totalorder %s2909_s24, 2  ;;  %s227_s13 = sand.u32 1, %s2905_s23  }
  0x15   : > { %s3802_s9 = scalar_select %p3007_p11, 1, 0 }
  0x16   : > { %p2724_p12 = pneg %p3007_p11  ;;  %s2584_s14 = sshll.u32 %s2909_s24, 11 }
  0x17   : > { %p3024_p1 = pnand %p2736_p0, %p2989_p4  ;;  %s3805_s4 = sld [smem:[#allocation12_spill]] }
  0x18   : > { %p3015_p13 = pnand %p2724_p12, %p3793_p5 }
  0x19   : > { %s3804_s15 = scalar_select %p3024_p1, 1, 0 }
  0x1a   : > { %p2781_p3 = pneg %p3015_p13 }
  0x1d   : > { %s2779_s18 = scalar_lea.hbm %s3805_s4, 512 }
  0x1e   : > { %p2780_p2 = scmp.ne.s32.totalorder %s3805_s4, %s2779_s18  ;;  %p2786_p9 = scmp.lt.u32.totalorder %s2779_s18, %s3805_s4 }
  0x20   : > { %p2782_p6 = pnand %p2781_p3, %p2780_p2 }
  0x22   : > { %p2783_p7 = pneg %p2782_p6 }
  0x24   : > { %p2788_p4 = pnand %p2786_p9, %p2783_p7 }
  0x26   : > { %2791 = shalt.err (!%p2788_p4)
}
  0x27   : > { %s2792_s28 = scalar_lea.vmem %s214_s11, 512  ;;  %p2800_p10 = scmp.lt.s32.totalorder %s214_s11, %s214_s11 }
  0x28   : > { %p2793_p12 = scmp.ne.s32.totalorder %s214_s11, %s2792_s28  ;;  %p2801_p8 = scmp.lt.s32.totalorder %s2792_s28, %s2792_s28 }
  0x2a   : > { %p2795_p0 = pnand %p2793_p12, %p2781_p3  ;;  %p2802_p11 = por %p2801_p8, %p2800_p10 }
  0x2c   : > { %p2796_p5 = pneg %p2795_p0 }
  0x2e   : > { %p2803_p1 = pnand %p2802_p11, %p2796_p5 }
  0x30   : > { %2806 = shalt.err (!%p2803_p1)
}
  0x31   : > { %s2912_s30 = smov 128   ;;  %s2913_s10 = smov 8  }
  0x32   : > { %2727 = dma.hbm_to_vmem [thread:$0]  (!%p3015_p13), %s3805_s4, 512, %s214_s11, [#allocation5], %s2912_s30, %s2912_s30, %s2913_s10  }
  0x33   : > { %s3046_s18 = sshll.u32 %s227_s13, 8  ;;  %s3806_s0 = sld [smem:[#allocation11_spill]] }
  0x34   : > { %s231_s12 = scalar_lea.vmem [#allocation2], %s3046_s18  ;;  %s3058_s28 = scalar_lea.sflag [#allocation3], %s227_s13 }
  0x35   : > { %s238_s27 = sshll.u32 %s231_s12, 4  ;;  %p3807_p8 = scmp.ne.s32.totalorder %s3804_s15, 0  ;;  %s3056_s27 = int_to_ptr.vmem [resolvable:$true] %s238_s27 }
  0x37   : > { %p2809_p10 = pneg %p3807_p8 }
  0x39   : > { %s3053_s21 = scalar_lea.hbm %s3806_s0, %s2584_s14  ;;  %s2812_s17 = scalar_lea.hbm %s3806_s0, 8192 }
  0x3a   : > { %s2807_s11 = scalar_lea.hbm %s3053_s21, 4096  ;;  %p2813_p1 = scmp.lt.u32.totalorder %s3053_s21, %s3806_s0 }
  0x3b   : > { %p2808_p5 = scmp.ne.s32.totalorder %s3053_s21, %s2807_s11  ;;  %p2814_p2 = scmp.lt.u32.totalorder %s2812_s17, %s2807_s11 }
  0x3c   : > { %p2816_p6 = scmp.lt.u32.totalorder %s2807_s11, %s3053_s21 }
  0x3d   : > { %p2810_p11 = pnand %p2809_p10, %p2808_p5  ;;  %p2815_p3 = por %p2814_p2, %p2813_p1 }
  0x3f   : > { %p2811_p13 = pneg %p2810_p11  ;;  %p2817_p7 = por %p2816_p6, %p2815_p3 }
  0x41   : > { %p2818_p9 = pnand %p2817_p7, %p2811_p13 }
  0x43   : > { %2821 = shalt.err (!%p2818_p9)
}
  0x44   : > { %s2822_s13 = scalar_lea.vmem %s3056_s27, 4096  ;;  %s2914_s12 = smov [#allocation2]  }
  0x45   : > { %p2823_p4 = scmp.ne.s32.totalorder %s3056_s27, %s2822_s13  ;;  %s2827_s10 = sshll.u32 %s2914_s12, 4  ;;  %s2828_s10 = int_to_ptr.vmem [resolvable:$false] %s2827_s10 }
  0x46   : > { %s2829_s16 = scalar_lea.vmem %s2828_s10, 8192  ;;  %p2830_p5 = scmp.lt.s32.totalorder %s3056_s27, %s2828_s10 }
  0x47   : > { %p2825_p12 = pnand %p2823_p4, %p2809_p10  ;;  %p2831_p11 = scmp.lt.s32.totalorder %s2829_s16, %s2822_s13 }
  0x49   : > { %p2826_p0 = pneg %p2825_p12  ;;  %p2832_p1 = por %p2831_p11, %p2830_p5 }
  0x4b   : > { %p2833_p2 = pnand %p2832_p1, %p2826_p0 }
  0x4d   : > { %2836 = shalt.err (!%p2833_p2)
}
  0x4e   : > { %s2915_s11 = smov 4096   ;;  %s2916_s17 = smov 2048  }
  0x4f   : > { %2731 = dma.hbm_to_vmem [thread:$0]  (!%p3807_p8), %s3053_s21, 4096, %s3056_s27, %s3058_s28, %s2915_s11, %s2916_s17, %s2912_s30  }
  0x50   : > { %s3094_s13 = scalar_lea.hbm %s3787_s1, %s2584_s14  ;;  %s252_s12 = scalar_lea.vmem [#allocation4], %s3046_s18 }
  0x51   : > { %s259_s10 = sshll.u32 %s252_s12, 4  ;;  %s248_s16 = sand.u32 1, %s2909_s24   ;;  %s3097_s10 = int_to_ptr.vmem [resolvable:$true] %s259_s10 }
  0x52   : > { %s3100_s0 = scalar_lea.sflag [#allocation5], %s248_s16  ;;  %s2837_s4 = scalar_lea.hbm %s3094_s13, 4096 }
  0x53   : > { %p2838_p13 = scmp.ne.s32.totalorder %s3094_s13, %s2837_s4  ;;  %s2842_s27 = scalar_lea.hbm %s3787_s1, 8192 }
  0x54   : > { %p2843_p7 = scmp.lt.u32.totalorder %s3094_s13, %s3787_s1  ;;  %p2844_p9 = scmp.lt.u32.totalorder %s2842_s27, %s2837_s4 }
  0x55   : > { %p2840_p3 = pnand %p2838_p13, %p2809_p10  ;;  %p2846_p12 = scmp.lt.u32.totalorder %s2837_s4, %s3094_s13 }
  0x56   : > { %p2845_p4 = por %p2844_p9, %p2843_p7 }
  0x57   : > { %p2841_p6 = pneg %p2840_p3 }
  0x58   : > { %p2847_p0 = por %p2846_p12, %p2845_p4 }
  0x5a   : > { %p2848_p5 = pnand %p2847_p0, %p2841_p6 }
  0x5c   : > { %2851 = shalt.err (!%p2848_p5)
}
  0x5d   : > { %s2852_s24 = scalar_lea.vmem %s3097_s10, 4096  ;;  %s2917_s18 = smov [#allocation4]  }
  0x5e   : > { %p2853_p11 = scmp.ne.s32.totalorder %s3097_s10, %s2852_s24  ;;  %s2857_s20 = sshll.u32 %s2917_s18, 4  ;;  %s2858_s20 = int_to_ptr.vmem [resolvable:$false] %s2857_s20 }
  0x5f   : > { %s2859_s12 = scalar_lea.vmem %s2858_s20, 8192  ;;  %p2860_p13 = scmp.lt.s32.totalorder %s3097_s10, %s2858_s20 }
  0x60   : > { %p2855_p1 = pnand %p2853_p11, %p2809_p10  ;;  %p2861_p3 = scmp.lt.s32.totalorder %s2859_s12, %s2852_s24 }
  0x62   : > { %p2856_p2 = pneg %p2855_p1  ;;  %p2862_p7 = por %p2861_p3, %p2860_p13 }
  0x64   : > { %p2863_p9 = pnand %p2862_p7, %p2856_p2 }
  0x66   : > { %2866 = shalt.err (!%p2863_p9)
}
  0x67   : > { %2734 = dma.hbm_to_vmem [thread:$0]  (!%p3807_p8), %s3094_s13, 4096, %s3097_s10, %s3100_s0, %s2915_s11, %s2916_s17, %s2912_s30  }
  0x68   : > { %p3808_p10 = scmp.ne.s32.totalorder %s3802_s9, 0 }
  0x69   : > { %s3132_s4 = sand.u32 (!%p3808_p10), 1, %s2901_s22   ;;  %p3809_p6 = scmp.ne.s32.totalorder (!%p3808_p10), %s3800_s7, 0 }
  0x6a   : > { %271 = sbr.rel (%p3808_p10) target bundleno = 627 (0x273), region = 40  ;;  %s2509_s16 = sshll.u32 (!%p3808_p10), %s3132_s4, 8 }
  0x6b   : > { %s274_s21 = scalar_lea.sflag (!%p3808_p10), [#allocation3], %s3132_s4  ;;  %s3136_s14 = scalar_lea.vmem (!%p3808_p10), [#allocation2], %s2509_s16 }
  0x71   : > { %2884 = dma.done.wait (%p3809_p6), %s274_s21, 4096  }
  0x72   : > { %2886 = vsyncadd (%p3809_p6), %s274_s21, 4294963200  ;;  %s282_s0 = sand.u32 1, %s2974_s25   ;;  %s3143_s15 = scalar_lea.vmem [#allocation4], %s2509_s16 }
  0x73   : > { %s283_s9 = scalar_lea.sflag [#allocation5], %s282_s0 }
  0x74   : > { %2888 = dma.done.wait (%p3809_p6), %s283_s9, 4096  }
  0x75   : > { %2890 = vsyncadd (%p3809_p6), %s283_s9, 4294963200  ;;  %p3810_p8 = scmp.eq.s32.totalorder %s2974_s25, 0 }
  0x77   : > { %2892 = dma.done.wait (%p3810_p8), [#allocation5], 512   ;;  %p3811_p4 = pmov %p3810_p8 }
  0x78   : > { %v2918_v0 = vmov 0.0   ;;  %v377_v1 = vld [vmem:[%s3143_s15 + $0x8] sm:$0xff]  ;;  %v379_v3 = vld [vmem:[%s3143_s15 + $0x18] sm:$0xff]  ;;  %v376_v6 = vld [vmem:[%s3143_s15] sm:$0xff]  ;;  %vm408_vm0 = vcmask 130048   ;;  %v2919_v24 = vmov 0  }
  0x79   : > { %2894 = vsyncadd (%p3811_p4), [#allocation5], 4294966784  ;;  %485 = vmatprep.mubr.f32.mxu0 %v2918_v0  ;;  %574 = vmatprep.mubr.f32.mxu1 %v2918_v0  ;;  %v393_v2 = vld [vmem:[%s3143_s15 + $0x88] sm:$0xff]  ;;  %v395_v5 = vld [vmem:[%s3143_s15 + $0x98] sm:$0xff]  ;;  %p331_p12 = scmp.lt.s32.totalorder %s2974_s25, 1  ;;  %vm2209_vm1 = vcmask 7168  }
  0x7a   : > { %v2588_v4 = vpack.c.bf16 %v393_v2, %v377_v1  ;;  %v392_v7 = vld [vmem:[%s3143_s15 + $0x80] sm:$0xff]  ;;  %v2592_v8 = vpack.c.bf16 %v395_v5, %v379_v3  ;;  %v378_v10 = vld [vmem:[%s3143_s15 + $0x10] sm:$0xff]  ;;  %v381_v13 = vld [vmem:[%s3143_s15 + $0x28] sm:$0xff]  ;;  %2777 = vset.pattern.permute.xlu0 %v2919_v24  ;;  %2778 = vset.pattern.permute.xlu1 %v2919_v24  ;;  %p3812_p0 = scmp.ne.s32.totalorder %s3801_s8, 0 }
  0x7b   : > { %v2590_v9 = vpack.c.bf16 %v392_v7, %v376_v6  ;;  %v394_v11 = vld [vmem:[%s3143_s15 + $0x90] sm:$0xff]  ;;  %v397_v14 = vld [vmem:[%s3143_s15 + $0xa8] sm:$0xff]  ;;  %v380_v15 = vld [vmem:[%s3143_s15 + $0x20] sm:$0xff]  ;;  %s2587_s17 = sshll.u32 (%p3812_p0), %s2974_s25, 7 }
  0x7c   : > { %2589 = vmatprep.subr.bf16.mxu0 %v2588_v4  ;;  %v2594_v12 = vpack.c.bf16 %v394_v11, %v378_v10  ;;  %2593 = vmatprep.subr.bf16.mxu1 %v2592_v8  ;;  %v3169_v16 = vld [vmem:[%s3789_s3] sm:$0xff]  ;;  %v2596_v17 = vpack.c.bf16 %v397_v14, %v381_v13  ;;  %v383_v19 = vld [vmem:[%s3143_s15 + $0x38] sm:$0xff]  ;;  %v382_v22 = vld [vmem:[%s3143_s15 + $0x30] sm:$0xff]  ;;  %s3646_s27 = scalar_lea.vmem (%p3812_p0), %s3791_s5, %s2587_s17 }
  0x7d   : > { %2591 = vmatpush1.bf16.msra.mxu0 %v2590_v9  ;;  %v396_v18 = vld [vmem:[%s3143_s15 + $0xa0] sm:$0xff]  ;;  %v399_v21 = vld [vmem:[%s3143_s15 + $0xb8] sm:$0xff]  ;;  %v398_v23 = vld [vmem:[%s3143_s15 + $0xb0] sm:$0xff] }
  0x7e   : > { %2595 = vmatpush1.bf16.msra.mxu1 %v2594_v12  ;;  %v2598_v20 = vpack.c.bf16 %v396_v18, %v380_v15  ;;  %2597 = vmatprep.subr.bf16.mxu0 %v2596_v17  ;;  %v2600_v25 = vpack.c.bf16 %v399_v21, %v383_v19  ;;  %v385_v26 = vld [vmem:[%s3143_s15 + $0x48] sm:$0xff]  ;;  %v2602_v27 = vpack.c.bf16 %v398_v23, %v382_v22  ;;  %v387_v31 = vld [vmem:[%s3143_s15 + $0x58] sm:$0xff]  ;;  %v3199_v34 = vld [vmem:[%s3789_s3 + $0x10] sm:$0xff] }
  0x7f   : > { %v401_v28 = vld [vmem:[%s3143_s15 + $0xc8] sm:$0xff]  ;;  %v403_v32 = vld [vmem:[%s3143_s15 + $0xd8] sm:$0xff]  ;;  %v384_v36 = vld [vmem:[%s3143_s15 + $0x40] sm:$0xff] }
  0x80   : > { %2515 = vmatmul.mubr.msk.f32.vlgmr.msra.gmra.mrb[0].mxu0 %vm408_vm0, %v3169_v16  ;;  %v3185_v29 = vld [vmem:[%s3789_s3 + $0x8] sm:$0xff]  ;;  %v2604_v30 = vpack.c.bf16 %v401_v28, %v385_v26  ;;  %v2608_v33 = vpack.c.bf16 %v403_v32, %v387_v31  ;;  %2601 = vmatprep.subr.bf16.mxu1 %v2600_v25  ;;  %v3210_v35 = vld [vmem:[%s3789_s3 + $0x18] sm:$0xff]  ;;  %v400_v37 = vld [vmem:[%s3143_s15 + $0xc0] sm:$0xff] }
  0x81   : > { %2519 = vmatmul.mubr.msk.f32.vlgmr.msra.gmra.mrb[0].mxu1 %vm408_vm0, %v3169_v16  ;;  %2599 = vmatpush1.bf16.msra.mxu0 %v2598_v20  ;;  %v386_v38 = vld [vmem:[%s3143_s15 + $0x50] sm:$0xff]  ;;  %v389_v40 = vld [vmem:[%s3143_s15 + $0x68] sm:$0xff]  ;;  %v2606_v42 = vpack.c.bf16 %v400_v37, %v384_v36  ;;  %v391_v43 = vld [vmem:[%s3143_s15 + $0x78] sm:$0xff] }
  0x82   : > { %491 = vmatprep.mubr.f32.mxu0 %v2918_v0  ;;  %580 = vmatprep.mubr.f32.mxu1 %v2918_v0  ;;  %v402_v39 = vld [vmem:[%s3143_s15 + $0xd0] sm:$0xff]  ;;  %v405_v41 = vld [vmem:[%s3143_s15 + $0xe8] sm:$0xff]  ;;  %v407_v44 = vld [vmem:[%s3143_s15 + $0xf8] sm:$0xff] }
  0x83   : > { %2605 = vmatprep.subr.bf16.mxu0 %v2604_v30  ;;  %2603 = vmatpush1.bf16.msra.mxu1 %v2602_v27  ;;  %v2610_v45 = vpack.c.bf16 %v402_v39, %v386_v38  ;;  %v2612_v46 = vpack.c.bf16 %v405_v41, %v389_v40  ;;  %v2616_v47 = vpack.c.bf16 %v407_v44, %v391_v43  ;;  %v1857_v48 = vld [vmem:[#allocation6] sm:$0xff]  ;;  %v1859_v49 = vld [vmem:[#allocation6 + $0x10] sm:$0xff]  ;;  %v1858_v50 = vld [vmem:[#allocation6 + $0x8] sm:$0xff] }
  0x84   : > { %2516 = vmatmul.mubr.msk.f32.gmra.mrb[2].mxu0 %vm408_vm0, %v3185_v29  ;;  %2609 = vmatprep.subr.bf16.mxu1 %v2608_v33  ;;  %v1860_v51 = vld [vmem:[#allocation6 + $0x18] sm:$0xff]  ;;  %v388_v52 = vld [vmem:[%s3143_s15 + $0x60] sm:$0xff]  ;;  %v390_v54 = vld [vmem:[%s3143_s15 + $0x70] sm:$0xff] }
  0x85   : > { %2520 = vmatmul.mubr.msk.f32.gmra.mrb[2].mxu1 %vm408_vm0, %v3185_v29  ;;  %497 = vmatprep.mubr.f32.mxu0 %v2918_v0  ;;  %v404_v53 = vld [vmem:[%s3143_s15 + $0xe0] sm:$0xff]  ;;  %v406_v55 = vld [vmem:[%s3143_s15 + $0xf0] sm:$0xff]  ;;  %v341_v56 = vld [vmem:[%s3136_s14 + $0x8] sm:$0xff] }
  0x86   : > { %586 = vmatprep.mubr.f32.mxu1 %v2918_v0  ;;  %1863 = vperm.xlu0 %2777, %v1857_v48   ;;  %v357_v57 = vld [vmem:[%s3136_s14 + $0x88] sm:$0xff]  ;;  %v2614_v58 = vpack.c.bf16 %v404_v53, %v388_v52  ;;  %v343_v59 = vld [vmem:[%s3136_s14 + $0x18] sm:$0xff]  ;;  %v2618_v61 = vpack.c.bf16 %v406_v55, %v390_v54  ;;  %v340_v1 = vld [vmem:[%s3136_s14] sm:$0xff] }
  0x87   : > { %1873 = vperm.xlu1 %2778, %v1859_v49   ;;  %v359_v60 = vld [vmem:[%s3136_s14 + $0x98] sm:$0xff]  ;;  %v2620_v62 = vpack.c.bf16 %v357_v57, %v341_v56  ;;  %v356_v2 = vld [vmem:[%s3136_s14 + $0x80] sm:$0xff]  ;;  %v342_v3 = vld [vmem:[%s3136_s14 + $0x10] sm:$0xff] }
  0x88   : > { %2517 = vmatmul.mubr.msk.f32.gmra.mrb[4].mxu0 %vm408_vm0, %v3199_v34  ;;  %v2624_v63 = vpack.c.bf16 %v359_v60, %v343_v59  ;;  %v358_v4 = vld [vmem:[%s3136_s14 + $0x90] sm:$0xff]  ;;  %v345_v5 = vld [vmem:[%s3136_s14 + $0x28] sm:$0xff]  ;;  %v2622_v7 = vpack.c.bf16 %v356_v2, %v340_v1  ;;  %v347_v8 = vld [vmem:[%s3136_s14 + $0x38] sm:$0xff] }
  0x89   : > { %2521 = vmatmul.mubr.msk.f32.gmra.mrb[4].mxu1 %vm408_vm0, %v3199_v34  ;;  %503 = vmatprep.mubr.f32.mxu0 %v2918_v0  ;;  %v361_v6 = vld [vmem:[%s3136_s14 + $0xa8] sm:$0xff]  ;;  %v363_v9 = vld [vmem:[%s3136_s14 + $0xb8] sm:$0xff]  ;;  %v2626_v10 = vpack.c.bf16 %v358_v4, %v342_v3  ;;  %v344_v13 = vld [vmem:[%s3136_s14 + $0x20] sm:$0xff] }
  0x8a   : > { %592 = vmatprep.mubr.f32.mxu1 %v2918_v0  ;;  %1868 = vperm.xlu0 %2777, %v1858_v50   ;;  %v2628_v11 = vpack.c.bf16 %v361_v6, %v345_v5  ;;  %v2632_v12 = vpack.c.bf16 %v363_v9, %v347_v8  ;;  %v360_v14 = vld [vmem:[%s3136_s14 + $0xa0] sm:$0xff]  ;;  %v346_v15 = vld [vmem:[%s3136_s14 + $0x30] sm:$0xff]  ;;  %v349_v17 = vld [vmem:[%s3136_s14 + $0x48] sm:$0xff] }
  0x8b   : > { %1878 = vperm.xlu1 %2778, %v1860_v51   ;;  %v365_v18 = vld [vmem:[%s3136_s14 + $0xc8] sm:$0xff]  ;;  %v3323_v19 = vld [vmem:[%s3788_s2] sm:$0xff]  ;;  %v2630_v20 = vpack.c.bf16 %v360_v14, %v344_v13  ;;  %v351_v21 = vld [vmem:[%s3136_s14 + $0x58] sm:$0xff] }
  0x8c   : > { %2518 = vmatmul.mubr.msk.f32.gmra.mrb[6].mxu0 %vm408_vm0, %v3210_v35  ;;  %v367_v22 = vld [vmem:[%s3136_s14 + $0xd8] sm:$0xff]  ;;  %v2636_v24 = vpack.c.bf16 %v365_v18, %v349_v17  ;;  %v3335_v26 = vld [vmem:[%s3788_s2 + $0x8] sm:$0xff]  ;;  %v3347_v27 = vld [vmem:[%s3788_s2 + $0x10] sm:$0xff] }
  0x8d   : > { %2522 = vmatmul.mubr.msk.f32.gmra.mrb[6].mxu1 %vm408_vm0, %v3210_v35  ;;  %663 = vmatprep.mubr.f32.mxu0 %v2918_v0  ;;  %v2640_v25 = vpack.c.bf16 %v367_v22, %v351_v21  ;;  %v3358_v28 = vld [vmem:[%s3788_s2 + $0x18] sm:$0xff]  ;;  %v364_v30 = vld [vmem:[%s3136_s14 + $0xc0] sm:$0xff]  ;;  %v350_v31 = vld [vmem:[%s3136_s14 + $0x50] sm:$0xff] }
  0x8e   : > { %752 = vmatprep.mubr.f32.mxu1 %v2918_v0  ;;  %v366_v32 = vld [vmem:[%s3136_s14 + $0xd0] sm:$0xff]  ;;  %v353_v33 = vld [vmem:[%s3136_s14 + $0x68] sm:$0xff]  ;;  %v355_v36 = vld [vmem:[%s3136_s14 + $0x78] sm:$0xff] }
  0x8f   : > { %v371_v37 = vld [vmem:[%s3136_s14 + $0xf8] sm:$0xff]  ;;  %v2642_v38 = vpack.c.bf16 %v366_v32, %v350_v31  ;;  %v352_v41 = vld [vmem:[%s3136_s14 + $0x60] sm:$0xff]  ;;  %v354_v43 = vld [vmem:[%s3136_s14 + $0x70] sm:$0xff] }
  0x90   : > { %2523 = vmatmul.mubr.msk.f32.vlgmr.msra.gmra.mrb[8].mxu0 %vm408_vm0, %v3169_v16  ;;  %v2648_v40 = vpack.c.bf16 %v371_v37, %v355_v36  ;;  %v370_v44 = vld [vmem:[%s3136_s14 + $0xf0] sm:$0xff] }
  0x91   : > { %2527 = vmatmul.mubr.msk.f32.vlgmr.msra.gmra.mrb[8].mxu1 %vm408_vm0, %v3169_v16  ;;  %2607 = vmatpush1.bf16.msra.mxu0 %v2606_v42  ;;  %v368_v42 = vld [vmem:[%s3136_s14 + $0xe0] sm:$0xff] }
  0x92   : > { %669 = vmatprep.mubr.f32.mxu0 %v2918_v0  ;;  %758 = vmatprep.mubr.f32.mxu1 %v2918_v0 }
  0x93   : > { %2611 = vmatpush1.bf16.msra.mxu1 %v2610_v45  ;;  %2613 = vmatprep.subr.bf16.mxu0 %v2612_v46  ;;  %v2646_v45 = vpack.c.bf16 %v368_v42, %v352_v41  ;;  %v2650_v46 = vpack.c.bf16 %v370_v44, %v354_v43 }
  0x94   : > { %2524 = vmatmul.mubr.msk.f32.gmra.mrb[10].mxu0 %vm408_vm0, %v3185_v29  ;;  %2617 = vmatprep.subr.bf16.mxu1 %v2616_v47 }
  0x95   : > { %2528 = vmatmul.mubr.msk.f32.gmra.mrb[10].mxu1 %vm408_vm0, %v3185_v29  ;;  %675 = vmatprep.mubr.f32.mxu0 %v2918_v0 }
  0x96   : > { %764 = vmatprep.mubr.f32.mxu1 %v2918_v0 }
  0x98   : > { %2525 = vmatmul.mubr.msk.f32.gmra.mrb[12].mxu0 %vm408_vm0, %v3199_v34 }
  0x99   : > { %2529 = vmatmul.mubr.msk.f32.gmra.mrb[12].mxu1 %vm408_vm0, %v3199_v34  ;;  %681 = vmatprep.mubr.f32.mxu0 %v2918_v0 }
  0x9a   : > { %770 = vmatprep.mubr.f32.mxu1 %v2918_v0 }
  0x9c   : > { %2526 = vmatmul.mubr.msk.f32.gmra.mrb[14].mxu0 %vm408_vm0, %v3210_v35 }
  0x9d   : > { %2530 = vmatmul.mubr.msk.f32.gmra.mrb[14].mxu1 %vm408_vm0, %v3210_v35  ;;  %841 = vmatprep.mubr.f32.mxu0 %v2918_v0 }
  0x9e   : > { %930 = vmatprep.mubr.f32.mxu1 %v2918_v0 }
  0xa0   : > { %2531 = vmatmul.mubr.msk.f32.vlgmr.msra.gmra.mrb[16].mxu0 %vm408_vm0, %v3169_v16 }
  0xa1   : > { %2535 = vmatmul.mubr.msk.f32.vlgmr.msra.gmra.mrb[16].mxu1 %vm408_vm0, %v3169_v16  ;;  %2615 = vmatpush1.bf16.msra.mxu0 %v2614_v58 }
  0xa2   : > { %847 = vmatprep.mubr.f32.mxu0 %v2918_v0  ;;  %936 = vmatprep.mubr.f32.mxu1 %v2918_v0 }
  0xa3   : > { %2619 = vmatpush1.bf16.msra.mxu1 %v2618_v61  ;;  %2621 = vmatprep.subr.bf16.mxu0 %v2620_v62 }
  0xa4   : > { %2532 = vmatmul.mubr.msk.f32.gmra.mrb[18].mxu0 %vm408_vm0, %v3185_v29  ;;  %2625 = vmatprep.subr.bf16.mxu1 %v2624_v63 }
  0xa5   : > { %2536 = vmatmul.mubr.msk.f32.gmra.mrb[18].mxu1 %vm408_vm0, %v3185_v29  ;;  %853 = vmatprep.mubr.f32.mxu0 %v2918_v0 }
  0xa6   : > { %942 = vmatprep.mubr.f32.mxu1 %v2918_v0 }
  0xa8   : > { %2533 = vmatmul.mubr.msk.f32.gmra.mrb[20].mxu0 %vm408_vm0, %v3199_v34 }
  0xa9   : > { %2537 = vmatmul.mubr.msk.f32.gmra.mrb[20].mxu1 %vm408_vm0, %v3199_v34  ;;  %859 = vmatprep.mubr.f32.mxu0 %v2918_v0 }
  0xaa   : > { %948 = vmatprep.mubr.f32.mxu1 %v2918_v0 }
  0xac   : > { %2534 = vmatmul.mubr.msk.f32.gmra.mrb[22].mxu0 %vm408_vm0, %v3210_v35 }
  0xad   : > { %2538 = vmatmul.mubr.msk.f32.gmra.mrb[22].mxu1 %vm408_vm0, %v3210_v35  ;;  %1019 = vmatprep.mubr.f32.mxu0 %v2918_v0 }
  0xae   : > { %1108 = vmatprep.mubr.f32.mxu1 %v2918_v0 }
  0xb0   : > { %2539 = vmatmul.mubr.msk.f32.vlgmr.msra.gmra.mrb[24].mxu0 %vm408_vm0, %v3169_v16 }
  0xb1   : > { %2543 = vmatmul.mubr.msk.f32.vlgmr.msra.gmra.mrb[24].mxu1 %vm408_vm0, %v3169_v16  ;;  %2623 = vmatpush1.bf16.msra.mxu0 %v2622_v7  ;;  %v362_v16 = vld [vmem:[%s3136_s14 + $0xb0] sm:$0xff] }
  0xb2   : > { %1025 = vmatprep.mubr.f32.mxu0 %v2918_v0  ;;  %1114 = vmatprep.mubr.f32.mxu1 %v2918_v0  ;;  %v2634_v23 = vpack.c.bf16 %v362_v16, %v346_v15 }
  0xb3   : > { %2627 = vmatpush1.bf16.msra.mxu1 %v2626_v10  ;;  %2629 = vmatprep.subr.bf16.mxu0 %v2628_v11 }
  0xb4   : > { %2540 = vmatmul.mubr.msk.f32.gmra.mrb[26].mxu0 %vm408_vm0, %v3185_v29  ;;  %2633 = vmatprep.subr.bf16.mxu1 %v2632_v12 }
  0xb5   : > { %2544 = vmatmul.mubr.msk.f32.gmra.mrb[26].mxu1 %vm408_vm0, %v3185_v29  ;;  %1031 = vmatprep.mubr.f32.mxu0 %v2918_v0  ;;  %v348_v29 = vld [vmem:[%s3136_s14 + $0x40] sm:$0xff] }
  0xb6   : > { %1120 = vmatprep.mubr.f32.mxu1 %v2918_v0 }
  0xb8   : > { %2541 = vmatmul.mubr.msk.f32.gmra.mrb[28].mxu0 %vm408_vm0, %v3199_v34 }
  0xb9   : > { %2545 = vmatmul.mubr.msk.f32.gmra.mrb[28].mxu1 %vm408_vm0, %v3199_v34  ;;  %1037 = vmatprep.mubr.f32.mxu0 %v2918_v0  ;;  %v369_v34 = vld [vmem:[%s3136_s14 + $0xe8] sm:$0xff]  ;;  %s2512_s14 = sshll.u32 %s3132_s4, 9 }
  0xba   : > { %1126 = vmatprep.mubr.f32.mxu1 %v2918_v0  ;;  %v2644_v39 = vpack.c.bf16 %v369_v34, %v353_v33  ;;  %s3457_s9 = scalar_lea.vmem [#allocation7], %s2512_s14 }
  0xbb   : > { %s332_s4 = scalar_select %p331_p12, %s2974_s25, 1 }
  0xbc   : > { %2542 = vmatmul.mubr.msk.f32.gmra.mrb[30].mxu0 %vm408_vm0, %v3210_v35 }
  0xbd   : > { %2546 = vmatmul.mubr.msk.f32.gmra.mrb[30].mxu1 %vm408_vm0, %v3210_v35  ;;  %1209 = vmatprep.mubr.f32.mxu0 %v2918_v0  ;;  %v2638_v35 = vpack.c.bf16 %v364_v30, %v348_v29  ;;  %s2586_s15 = sshll.u32 %s332_s4, 6 }
  0xbe   : > { %1298 = vmatprep.mubr.f32.mxu1 %v2918_v0  ;;  %s335_s11 = scalar_lea.vmem %s3792_s6, %s2586_s15 }
  0xc0   : > { %2547 = vmatmul.mubr.msk.f32.vlgmr.msra.gmra.mrb[0].mxu0 %vm408_vm0, %v3323_v19 }
  0xc1   : > { %2551 = vmatmul.mubr.msk.f32.vlgmr.msra.gmra.mrb[0].mxu1 %vm408_vm0, %v3323_v19  ;;  %2631 = vmatpush1.bf16.msra.mxu0 %v2630_v20 }
  0xc2   : > { %1215 = vmatprep.mubr.f32.mxu0 %v2918_v0  ;;  %1304 = vmatprep.mubr.f32.mxu1 %v2918_v0 }
  0xc3   : > { %2635 = vmatpush1.bf16.msra.mxu1 %v2634_v23  ;;  %2637 = vmatprep.subr.bf16.mxu0 %v2636_v24 }
  0xc4   : > { %2548 = vmatmul.mubr.msk.f32.gmra.mrb[2].mxu0 %vm408_vm0, %v3335_v26  ;;  %2641 = vmatprep.subr.bf16.mxu1 %v2640_v25 }
  0xc5   : > { %2552 = vmatmul.mubr.msk.f32.gmra.mrb[2].mxu1 %vm408_vm0, %v3335_v26  ;;  %1221 = vmatprep.mubr.f32.mxu0 %v2918_v0 }
  0xc6   : > { %1310 = vmatprep.mubr.f32.mxu1 %v2918_v0 }
  0xc8   : > { %2549 = vmatmul.mubr.msk.f32.gmra.mrb[4].mxu0 %vm408_vm0, %v3347_v27 }
  0xc9   : > { %2553 = vmatmul.mubr.msk.f32.gmra.mrb[4].mxu1 %vm408_vm0, %v3347_v27  ;;  %1227 = vmatprep.mubr.f32.mxu0 %v2918_v0 }
  0xca   : > { %1316 = vmatprep.mubr.f32.mxu1 %v2918_v0 }
  0xcc   : > { %2550 = vmatmul.mubr.msk.f32.gmra.mrb[6].mxu0 %vm408_vm0, %v3358_v28 }
  0xcd   : > { %2554 = vmatmul.mubr.msk.f32.gmra.mrb[6].mxu1 %vm408_vm0, %v3358_v28  ;;  %1387 = vmatprep.mubr.f32.mxu0 %v2918_v0 }
  0xce   : > { %1476 = vmatprep.mubr.f32.mxu1 %v2918_v0 }
  0xd0   : > { %2555 = vmatmul.mubr.msk.f32.vlgmr.msra.gmra.mrb[8].mxu0 %vm408_vm0, %v3323_v19 }
  0xd1   : > { %2559 = vmatmul.mubr.msk.f32.vlgmr.msra.gmra.mrb[8].mxu1 %vm408_vm0, %v3323_v19  ;;  %2639 = vmatpush1.bf16.msra.mxu0 %v2638_v35 }
  0xd2   : > { %1393 = vmatprep.mubr.f32.mxu0 %v2918_v0  ;;  %1482 = vmatprep.mubr.f32.mxu1 %v2918_v0 }
  0xd3   : > { %2643 = vmatpush1.bf16.msra.mxu1 %v2642_v38  ;;  %2645 = vmatprep.subr.bf16.mxu0 %v2644_v39 }
  0xd4   : > { %2556 = vmatmul.mubr.msk.f32.gmra.mrb[10].mxu0 %vm408_vm0, %v3335_v26  ;;  %2649 = vmatprep.subr.bf16.mxu1 %v2648_v40 }
  0xd5   : > { %2560 = vmatmul.mubr.msk.f32.gmra.mrb[10].mxu1 %vm408_vm0, %v3335_v26  ;;  %1399 = vmatprep.mubr.f32.mxu0 %v2918_v0 }
  0xd6   : > { %1488 = vmatprep.mubr.f32.mxu1 %v2918_v0 }
  0xd8   : > { %2557 = vmatmul.mubr.msk.f32.gmra.mrb[12].mxu0 %vm408_vm0, %v3347_v27 }
  0xd9   : > { %2561 = vmatmul.mubr.msk.f32.gmra.mrb[12].mxu1 %vm408_vm0, %v3347_v27  ;;  %1405 = vmatprep.mubr.f32.mxu0 %v2918_v0 }
  0xda   : > { %1494 = vmatprep.mubr.f32.mxu1 %v2918_v0 }
  0xdc   : > { %2558 = vmatmul.mubr.msk.f32.gmra.mrb[14].mxu0 %vm408_vm0, %v3358_v28 }
  0xdd   : > { %2562 = vmatmul.mubr.msk.f32.gmra.mrb[14].mxu1 %vm408_vm0, %v3358_v28  ;;  %1565 = vmatprep.mubr.f32.mxu0 %v2918_v0 }
  0xde   : > { %1654 = vmatprep.mubr.f32.mxu1 %v2918_v0 }
  0xe0   : > { %2563 = vmatmul.mubr.msk.f32.vlgmr.msra.gmra.mrb[16].mxu0 %vm408_vm0, %v3323_v19 }
  0xe1   : > { %2567 = vmatmul.mubr.msk.f32.vlgmr.msra.gmra.mrb[16].mxu1 %vm408_vm0, %v3323_v19  ;;  %2647 = vmatpush1.bf16.msra.mxu0 %v2646_v45 }
  0xe2   : > { %1571 = vmatprep.mubr.f32.mxu0 %v2918_v0  ;;  %1660 = vmatprep.mubr.f32.mxu1 %v2918_v0 }
  0xe3   : > { %2651 = vmatpush1.bf16.msra.mxu1 %v2650_v46 }
  0xe4   : > { %2564 = vmatmul.mubr.msk.f32.gmra.mrb[18].mxu0 %vm408_vm0, %v3335_v26 }
  0xe5   : > { %2568 = vmatmul.mubr.msk.f32.gmra.mrb[18].mxu1 %vm408_vm0, %v3335_v26  ;;  %1577 = vmatprep.mubr.f32.mxu0 %v2918_v0 }
  0xe6   : > { %1666 = vmatprep.mubr.f32.mxu1 %v2918_v0 }
  0xe8   : > { %2565 = vmatmul.mubr.msk.f32.gmra.mrb[20].mxu0 %vm408_vm0, %v3347_v27 }
  0xe9   : > { %2569 = vmatmul.mubr.msk.f32.gmra.mrb[20].mxu1 %vm408_vm0, %v3347_v27  ;;  %1583 = vmatprep.mubr.f32.mxu0 %v2918_v0 }
  0xea   : > { %1672 = vmatprep.mubr.f32.mxu1 %v2918_v0 }
  0xec   : > { %2566 = vmatmul.mubr.msk.f32.gmra.mrb[22].mxu0 %vm408_vm0, %v3358_v28 }
  0xed   : > { %2570 = vmatmul.mubr.msk.f32.gmra.mrb[22].mxu1 %vm408_vm0, %v3358_v28  ;;  %1743 = vmatprep.mubr.f32.mxu0 %v2918_v0 }
  0xee   : > { %1832 = vmatprep.mubr.f32.mxu1 %v2918_v0 }
  0xf0   : > { %2571 = vmatmul.mubr.msk.f32.vlgmr.msra.gmra.mrb[24].mxu0 %vm408_vm0, %v3323_v19 }
  0xf1   : > { %2575 = vmatmul.mubr.msk.f32.vlgmr.msra.gmra.mrb[24].mxu1 %vm408_vm0, %v3323_v19  ;;  %1749 = vmatprep.mubr.f32.mxu0 %v2918_v0 }
  0xf2   : > { %1838 = vmatprep.mubr.f32.mxu1 %v2918_v0 }
  0xf4   : > { %2572 = vmatmul.mubr.msk.f32.gmra.mrb[26].mxu0 %vm408_vm0, %v3335_v26 }
  0xf5   : > { %2576 = vmatmul.mubr.msk.f32.gmra.mrb[26].mxu1 %vm408_vm0, %v3335_v26  ;;  %1755 = vmatprep.mubr.f32.mxu0 %v2918_v0 }
  0xf6   : > { %1844 = vmatprep.mubr.f32.mxu1 %v2918_v0 }
  0xf8   : > { %2573 = vmatmul.mubr.msk.f32.gmra.mrb[28].mxu0 %vm408_vm0, %v3347_v27 }
  0xf9   : > { %2577 = vmatmul.mubr.msk.f32.gmra.mrb[28].mxu1 %vm408_vm0, %v3347_v27  ;;  %1761 = vmatprep.mubr.f32.mxu0 %v2918_v0 }
  0xfa   : > { %1850 = vmatprep.mubr.f32.mxu1 %v2918_v0 }
  0xfc   : > { %2574 = vmatmul.mubr.msk.f32.gmra.mrb[30].mxu0 %vm408_vm0, %v3358_v28 }
  0xfd   : > { %2578 = vmatmul.mubr.msk.f32.gmra.mrb[30].mxu1 %vm408_vm0, %v3358_v28 }
 0x105   : > { %v3449_v47 = vpop.permute.xlu0 %1863 }
 0x106   : > { %v3463_v60 = vpop.permute.xlu1 %1873 }
 0x109   : > { %v3455_v0 = vpop.permute.xlu0 %1868 }
 0x10a   : > { %v3481_v23 = vpop.permute.xlu1 %1878 }
 0x193   : > { %v1211_v48 = vpop.f32.mrb[0].mxu0 }
 0x194   : > { %v1881_v49 = vadd.f32 %v3449_v47, %v1211_v48  ;;  %v1300_v50 = vpop.f32.mrb[0].mxu1  ;;  %v1213_v51 = vpop.f32.mrb[1].mxu0 }
 0x195   : > { %v1883_v52 = vadd.f32 %v3449_v47, %v1300_v50  ;;  %v1882_v53 = vadd.f32 %v3449_v47, %v1213_v51  ;;  %v1302_v54 = vpop.f32.mrb[1].mxu1 }
 0x196   : > { %1945 = vst [vmem:[%s3457_s9] sm:$0xff] %v1881_v49  ;;  %v2077_v55 = vmul.f32 %v1881_v49, %v1881_v49  ;;  %v1884_v56 = vadd.f32 %v3449_v47, %v1302_v54 }
 0x197   : > { %1947 = vst [vmem:[%s3457_s9 + $0x10] sm:$0xff] %v1883_v52  ;;  %1946 = vst [vmem:[%s3457_s9 + $0x8] sm:$0xff] %v1882_v53  ;;  %v2009_v57 = vadd.f32 %v1882_v53, %v1881_v49  ;;  %v2078_v58 = vmul.f32 %v1882_v53, %v1882_v53  ;;  %v1217_v59 = vpop.f32.mrb[2].mxu0  ;;  %v2079_v61 = vmul.f32 %v1883_v52, %v1883_v52 }
 0x198   : > { %1948 = vst [vmem:[%s3457_s9 + $0x18] sm:$0xff] %v1884_v56  ;;  %v1897_v62 = vadd.f32 %v3455_v0, %v1217_v59  ;;  %v1306_v63 = vpop.f32.mrb[2].mxu1  ;;  %v1219_v1 = vpop.f32.mrb[3].mxu0  ;;  %v2080_v10 = vmul.f32 %v1884_v56, %v1884_v56 }
 0x199   : > { %v2141_v2 = vadd.f32 %v2078_v58, %v2077_v55  ;;  %v2010_v3 = vadd.f32 %v2009_v57, %v1883_v52  ;;  %v1899_v4 = vadd.f32 %v3455_v0, %v1306_v63  ;;  %v1898_v5 = vadd.f32 %v3455_v0, %v1219_v1  ;;  %v1308_v6 = vpop.f32.mrb[3].mxu1 }
 0x19a   : > { %1961 = vst [vmem:[%s3457_s9 + $0x80] sm:$0xff] %v1897_v62  ;;  %v2093_v7 = vmul.f32 %v1897_v62, %v1897_v62  ;;  %v1900_v8 = vadd.f32 %v3455_v0, %v1308_v6 }
 0x19b   : > { %v3471_v9 = vadd.f32 %v2010_v3, %v1884_v56  ;;  %v2142_v11 = vadd.f32 %v2141_v2, %v2079_v61  ;;  %1963 = vst [vmem:[%s3457_s9 + $0x90] sm:$0xff] %v1899_v4  ;;  %1962 = vst [vmem:[%s3457_s9 + $0x88] sm:$0xff] %v1898_v5  ;;  %v2026_v12 = vadd.f32 %v1898_v5, %v1897_v62  ;;  %v1223_v13 = vpop.f32.mrb[4].mxu0 }
 0x19c   : > { %v2094_v14 = vmul.f32 %v1898_v5, %v1898_v5  ;;  %1964 = vst [vmem:[%s3457_s9 + $0x98] sm:$0xff] %v1900_v8  ;;  %v1913_v15 = vadd.f32 %v3463_v60, %v1223_v13  ;;  %v1312_v16 = vpop.f32.mrb[4].mxu1  ;;  %v1225_v17 = vpop.f32.mrb[5].mxu0  ;;  %v2095_v24 = vmul.f32 %v1899_v4, %v1899_v4  ;;  %v2096_v32 = vmul.f32 %v1900_v8, %v1900_v8 }
 0x19d   : > { %v3477_v18 = vadd.f32 %v2142_v11, %v2080_v10  ;;  %v2027_v19 = vadd.f32 %v2026_v12, %v1899_v4  ;;  %v1915_v20 = vadd.f32 %v3463_v60, %v1312_v16  ;;  %v1914_v21 = vadd.f32 %v3463_v60, %v1225_v17  ;;  %v1314_v22 = vpop.f32.mrb[5].mxu1 }
 0x19e   : > { %v2158_v25 = vadd.f32 %v2094_v14, %v2093_v7  ;;  %1977 = vst [vmem:[%s3457_s9 + $0x100] sm:$0xff] %v1913_v15  ;;  %v2109_v26 = vmul.f32 %v1913_v15, %v1913_v15  ;;  %v1916_v27 = vadd.f32 %v3463_v60, %v1314_v22 }
 0x19f   : > { %v3485_v28 = vadd.f32 %v2027_v19, %v1900_v8  ;;  %1979 = vst [vmem:[%s3457_s9 + $0x110] sm:$0xff] %v1915_v20  ;;  %1978 = vst [vmem:[%s3457_s9 + $0x108] sm:$0xff] %v1914_v21  ;;  %v2043_v29 = vadd.f32 %v1914_v21, %v1913_v15  ;;  %v2110_v30 = vmul.f32 %v1914_v21, %v1914_v21  ;;  %v1229_v31 = vpop.f32.mrb[6].mxu0 }
 0x1a0   : > { %v2159_v33 = vadd.f32 %v2158_v25, %v2095_v24  ;;  %v2111_v34 = vmul.f32 %v1915_v20, %v1915_v20  ;;  %1980 = vst [vmem:[%s3457_s9 + $0x118] sm:$0xff] %v1916_v27  ;;  %v1929_v35 = vadd.f32 %v3481_v23, %v1229_v31  ;;  %v1318_v36 = vpop.f32.mrb[6].mxu1  ;;  %v1231_v37 = vpop.f32.mrb[7].mxu0  ;;  %v2112_v48 = vmul.f32 %v1916_v27, %v1916_v27 }
 0x1a1   : > { %v2175_v38 = vadd.f32 %v2110_v30, %v2109_v26  ;;  %v2044_v39 = vadd.f32 %v2043_v29, %v1915_v20  ;;  %v1931_v40 = vadd.f32 %v3481_v23, %v1318_v36  ;;  %v1930_v41 = vadd.f32 %v3481_v23, %v1231_v37  ;;  %v1320_v42 = vpop.f32.mrb[7].mxu1 }
 0x1a2   : > { %v3493_v43 = vadd.f32 %v2159_v33, %v2096_v32  ;;  %1993 = vst [vmem:[%s3457_s9 + $0x180] sm:$0xff] %v1929_v35  ;;  %v2125_v44 = vmul.f32 %v1929_v35, %v1929_v35  ;;  %v1932_v45 = vadd.f32 %v3481_v23, %v1320_v42 }
 0x1a3   : > { %v3497_v46 = vadd.f32 %v2044_v39, %v1916_v27  ;;  %v2176_v49 = vadd.f32 %v2175_v38, %v2111_v34  ;;  %1995 = vst [vmem:[%s3457_s9 + $0x190] sm:$0xff] %v1931_v40  ;;  %1994 = vst [vmem:[%s3457_s9 + $0x188] sm:$0xff] %v1930_v41  ;;  %v2060_v50 = vadd.f32 %v1930_v41, %v1929_v35  ;;  %v1389_v51 = vpop.f32.mrb[8].mxu0 }
 0x1a4   : > { %v2127_v52 = vmul.f32 %v1931_v40, %v1931_v40  ;;  %v2126_v53 = vmul.f32 %v1930_v41, %v1930_v41  ;;  %1996 = vst [vmem:[%s3457_s9 + $0x198] sm:$0xff] %v1932_v45  ;;  %v1885_v54 = vadd.f32 %v3449_v47, %v1389_v51  ;;  %v1478_v55 = vpop.f32.mrb[8].mxu1  ;;  %v1391_v56 = vpop.f32.mrb[9].mxu0  ;;  %v2128_v7 = vmul.f32 %v1932_v45, %v1932_v45 }
 0x1a5   : > { %v3503_v57 = vadd.f32 %v2176_v49, %v2112_v48  ;;  %v2061_v58 = vadd.f32 %v2060_v50, %v1931_v40  ;;  %v1887_v59 = vadd.f32 %v3449_v47, %v1478_v55  ;;  %v1886_v61 = vadd.f32 %v3449_v47, %v1391_v56  ;;  %v1480_v62 = vpop.f32.mrb[9].mxu1 }
 0x1a6   : > { %v2192_v63 = vadd.f32 %v2126_v53, %v2125_v44  ;;  %1949 = vst [vmem:[%s3457_s9 + $0x20] sm:$0xff] %v1885_v54  ;;  %v2012_v1 = vadd.f32 %v3471_v9, %v1885_v54  ;;  %v2081_v2 = vmul.f32 %v1885_v54, %v1885_v54  ;;  %v1888_v3 = vadd.f32 %v3449_v47, %v1480_v62 }
 0x1a7   : > { %v3510_v4 = vadd.f32 %v2061_v58, %v1932_v45  ;;  %1951 = vst [vmem:[%s3457_s9 + $0x30] sm:$0xff] %v1887_v59  ;;  %1950 = vst [vmem:[%s3457_s9 + $0x28] sm:$0xff] %v1886_v61  ;;  %v2082_v5 = vmul.f32 %v1886_v61, %v1886_v61  ;;  %v1395_v6 = vpop.f32.mrb[10].mxu0  ;;  %v2083_v13 = vmul.f32 %v1887_v59, %v1887_v59 }
 0x1a8   : > { %v2193_v8 = vadd.f32 %v2192_v63, %v2127_v52  ;;  %v2144_v10 = vadd.f32 %v3477_v18, %v2081_v2  ;;  %v2013_v11 = vadd.f32 %v2012_v1, %v1886_v61  ;;  %1952 = vst [vmem:[%s3457_s9 + $0x38] sm:$0xff] %v1888_v3  ;;  %v1484_v12 = vpop.f32.mrb[10].mxu1  ;;  %v1397_v9 = vpop.f32.mrb[11].mxu0  ;;  %v1901_v14 = vadd.f32 %v3455_v0, %v1395_v6 }
 0x1a9   : > { %v1903_v15 = vadd.f32 %v3455_v0, %v1484_v12  ;;  %v1902_v16 = vadd.f32 %v3455_v0, %v1397_v9  ;;  %v1486_v17 = vpop.f32.mrb[11].mxu1  ;;  %v2084_v22 = vmul.f32 %v1888_v3, %v1888_v3 }
 0x1aa   : > { %v2194_v19 = vadd.f32 %v2193_v8, %v2128_v7  ;;  %v2145_v20 = vadd.f32 %v2144_v10, %v2082_v5  ;;  %v2014_v21 = vadd.f32 %v2013_v11, %v1887_v59  ;;  %v1904_v18 = vadd.f32 %v3455_v0, %v1486_v17  ;;  %1965 = vst [vmem:[%s3457_s9 + $0xa0] sm:$0xff] %v1901_v14 }
 0x1ab   : > { %v2029_v24 = vadd.f32 %v3485_v28, %v1901_v14  ;;  %v2097_v25 = vmul.f32 %v1901_v14, %v1901_v14  ;;  %1967 = vst [vmem:[%s3457_s9 + $0xb0] sm:$0xff] %v1903_v15  ;;  %1966 = vst [vmem:[%s3457_s9 + $0xa8] sm:$0xff] %v1902_v16  ;;  %v2098_v26 = vmul.f32 %v1902_v16, %v1902_v16  ;;  %v1401_v27 = vpop.f32.mrb[12].mxu0 }
 0x1ac   : > { %v3524_v29 = vadd.f32 %v2014_v21, %v1888_v3  ;;  %v2146_v30 = vadd.f32 %v2145_v20, %v2083_v13  ;;  %v2099_v31 = vmul.f32 %v1903_v15, %v1903_v15  ;;  %1968 = vst [vmem:[%s3457_s9 + $0xb8] sm:$0xff] %v1904_v18  ;;  %v1917_v32 = vadd.f32 %v3463_v60, %v1401_v27  ;;  %v1490_v33 = vpop.f32.mrb[12].mxu1  ;;  %v1403_v34 = vpop.f32.mrb[13].mxu0 }
 0x1ad   : > { %v2161_v35 = vadd.f32 %v3493_v43, %v2097_v25  ;;  %v2030_v28 = vadd.f32 %v2029_v24, %v1902_v16  ;;  %v1919_v36 = vadd.f32 %v3463_v60, %v1490_v33  ;;  %v1918_v37 = vadd.f32 %v3463_v60, %v1403_v34  ;;  %v1492_v38 = vpop.f32.mrb[13].mxu1 }
 0x1ae   : > { %v3531_v39 = vadd.f32 %v2146_v30, %v2084_v22  ;;  %1981 = vst [vmem:[%s3457_s9 + $0x120] sm:$0xff] %v1917_v32  ;;  %v2046_v40 = vadd.f32 %v3497_v46, %v1917_v32  ;;  %v2113_v41 = vmul.f32 %v1917_v32, %v1917_v32  ;;  %v1920_v42 = vadd.f32 %v3463_v60, %v1492_v38 }
 0x1af   : > { %v2162_v44 = vadd.f32 %v2161_v35, %v2098_v26  ;;  %v2031_v45 = vadd.f32 %v2030_v28, %v1903_v15  ;;  %v2100_v48 = vmul.f32 %v1904_v18, %v1904_v18  ;;  %1983 = vst [vmem:[%s3457_s9 + $0x130] sm:$0xff] %v1919_v36  ;;  %1982 = vst [vmem:[%s3457_s9 + $0x128] sm:$0xff] %v1918_v37  ;;  %v1407_v49 = vpop.f32.mrb[14].mxu0 }
 0x1b0   : > { %v2114_v43 = vmul.f32 %v1918_v37, %v1918_v37  ;;  %v2178_v50 = vadd.f32 %v3503_v57, %v2113_v41  ;;  %v2115_v51 = vmul.f32 %v1919_v36, %v1919_v36  ;;  %v2047_v52 = vadd.f32 %v2046_v40, %v1918_v37  ;;  %1984 = vst [vmem:[%s3457_s9 + $0x138] sm:$0xff] %v1920_v42  ;;  %v1496_v46 = vpop.f32.mrb[14].mxu1  ;;  %v1409_v54 = vpop.f32.mrb[15].mxu0 }
 0x1b1   : > { %v1933_v53 = vadd.f32 %v3481_v23, %v1407_v49  ;;  %v2032_v55 = vadd.f32 %v2031_v45, %v1904_v18  ;;  %v2163_v56 = vadd.f32 %v2162_v44, %v2099_v31  ;;  %v1935_v58 = vadd.f32 %v3481_v23, %v1496_v46  ;;  %v1498_v61 = vpop.f32.mrb[15].mxu1 }
 0x1b2   : > { %v1934_v59 = vadd.f32 %v3481_v23, %v1409_v54  ;;  %v2179_v62 = vadd.f32 %v2178_v50, %v2114_v43  ;;  %v2048_v63 = vadd.f32 %v2047_v52, %v1919_v36  ;;  %v2116_v3 = vmul.f32 %v1920_v42, %v1920_v42 }
 0x1b3   : > { %1997 = vst [vmem:[%s3457_s9 + $0x1a0] sm:$0xff] %v1933_v53  ;;  %v2063_v57 = vadd.f32 %v3510_v4, %v1933_v53  ;;  %v2129_v1 = vmul.f32 %v1933_v53, %v1933_v53  ;;  %v2164_v2 = vadd.f32 %v2163_v56, %v2100_v48  ;;  %1999 = vst [vmem:[%s3457_s9 + $0x1b0] sm:$0xff] %v1935_v58  ;;  %v1567_v7 = vpop.f32.mrb[16].mxu0 }
 0x1b4   : > { %1998 = vst [vmem:[%s3457_s9 + $0x1a8] sm:$0xff] %v1934_v59  ;;  %v2130_v5 = vmul.f32 %v1934_v59, %v1934_v59  ;;  %v1936_v6 = vadd.f32 %v3481_v23, %v1498_v61  ;;  %v3548_v8 = vadd.f32 %v2048_v63, %v1920_v42  ;;  %v2180_v10 = vadd.f32 %v2179_v62, %v2115_v51  ;;  %v1656_v9 = vpop.f32.mrb[16].mxu1  ;;  %v1569_v13 = vpop.f32.mrb[17].mxu0 }
 0x1b5   : > { %v2195_v11 = vadd.f32 %v2194_v19, %v2129_v1  ;;  %v2064_v12 = vadd.f32 %v2063_v57, %v1934_v59  ;;  %v2131_v4 = vmul.f32 %v1935_v58, %v1935_v58  ;;  %v1889_v14 = vadd.f32 %v3449_v47, %v1567_v7  ;;  %v1658_v17 = vpop.f32.mrb[17].mxu1 }
 0x1b6   : > { %2000 = vst [vmem:[%s3457_s9 + $0x1b8] sm:$0xff] %v1936_v6  ;;  %v1891_v15 = vadd.f32 %v3449_v47, %v1656_v9  ;;  %v1890_v16 = vadd.f32 %v3449_v47, %v1569_v13  ;;  %v2181_v20 = vadd.f32 %v2180_v10, %v2116_v3  ;;  %v1892_v19 = vadd.f32 %v3449_v47, %v1658_v17 }
 0x1b7   : > { %v2196_v21 = vadd.f32 %v2195_v11, %v2130_v5  ;;  %v2065_v18 = vadd.f32 %v2064_v12, %v1935_v58  ;;  %v2132_v22 = vmul.f32 %v1936_v6, %v1936_v6  ;;  %1953 = vst [vmem:[%s3457_s9 + $0x40] sm:$0xff] %v1889_v14  ;;  %v2016_v24 = vadd.f32 %v3524_v29, %v1889_v14  ;;  %v1573_v27 = vpop.f32.mrb[18].mxu0 }
 0x1b8   : > { %v2085_v25 = vmul.f32 %v1889_v14, %v1889_v14  ;;  %1955 = vst [vmem:[%s3457_s9 + $0x50] sm:$0xff] %v1891_v15  ;;  %1954 = vst [vmem:[%s3457_s9 + $0x48] sm:$0xff] %v1890_v16  ;;  %v2086_v26 = vmul.f32 %v1890_v16, %v1890_v16  ;;  %v2087_v32 = vmul.f32 %v1891_v15, %v1891_v15  ;;  %v1662_v34 = vpop.f32.mrb[18].mxu1  ;;  %v1575_v35 = vpop.f32.mrb[19].mxu0 }
 0x1b9   : > { %v3559_v30 = vadd.f32 %v2065_v18, %v1936_v6  ;;  %v2197_v31 = vadd.f32 %v2196_v21, %v2131_v4  ;;  %1956 = vst [vmem:[%s3457_s9 + $0x58] sm:$0xff] %v1892_v19  ;;  %v1905_v33 = vadd.f32 %v3455_v0, %v1573_v27  ;;  %v2017_v29 = vadd.f32 %v2016_v24, %v1890_v16  ;;  %v1664_v38 = vpop.f32.mrb[19].mxu1 }
 0x1ba   : > { %v2148_v28 = vadd.f32 %v3531_v39, %v2085_v25  ;;  %v1907_v36 = vadd.f32 %v3455_v0, %v1662_v34  ;;  %v1906_v37 = vadd.f32 %v3455_v0, %v1575_v35  ;;  %v1908_v44 = vadd.f32 %v3455_v0, %v1664_v38 }
 0x1bb   : > { %v3566_v40 = vadd.f32 %v2197_v31, %v2132_v22  ;;  %1969 = vst [vmem:[%s3457_s9 + $0xc0] sm:$0xff] %v1905_v33  ;;  %v2033_v41 = vadd.f32 %v2032_v55, %v1905_v33  ;;  %v2101_v42 = vmul.f32 %v1905_v33, %v1905_v33  ;;  %v2018_v48 = vadd.f32 %v2017_v29, %v1891_v15  ;;  %v1579_v49 = vpop.f32.mrb[20].mxu0 }
 0x1bc   : > { %v2149_v45 = vadd.f32 %v2148_v28, %v2086_v26  ;;  %v2088_v43 = vmul.f32 %v1892_v19, %v1892_v19  ;;  %1971 = vst [vmem:[%s3457_s9 + $0xd0] sm:$0xff] %v1907_v36  ;;  %1970 = vst [vmem:[%s3457_s9 + $0xc8] sm:$0xff] %v1906_v37  ;;  %v2102_v39 = vmul.f32 %v1906_v37, %v1906_v37  ;;  %v1668_v46 = vpop.f32.mrb[20].mxu1  ;;  %v1581_v54 = vpop.f32.mrb[21].mxu0 }
 0x1bd   : > { %v2165_v50 = vadd.f32 %v2164_v2, %v2101_v42  ;;  %v2103_v51 = vmul.f32 %v1907_v36, %v1907_v36  ;;  %v2034_v52 = vadd.f32 %v2033_v41, %v1906_v37  ;;  %1972 = vst [vmem:[%s3457_s9 + $0xd8] sm:$0xff] %v1908_v44  ;;  %v1921_v53 = vadd.f32 %v3463_v60, %v1579_v49  ;;  %v1670_v61 = vpop.f32.mrb[21].mxu1 }
 0x1be   : > { %v2019_v55 = vadd.f32 %v2018_v48, %v1892_v19  ;;  %v2150_v56 = vadd.f32 %v2149_v45, %v2087_v32  ;;  %v1923_v58 = vadd.f32 %v3463_v60, %v1668_v46  ;;  %v1922_v59 = vadd.f32 %v3463_v60, %v1581_v54 }
 0x1bf   : > { %v2166_v62 = vadd.f32 %v2165_v50, %v2102_v39  ;;  %v2035_v63 = vadd.f32 %v2034_v52, %v1907_v36  ;;  %1985 = vst [vmem:[%s3457_s9 + $0x140] sm:$0xff] %v1921_v53  ;;  %v2050_v57 = vadd.f32 %v3548_v8, %v1921_v53  ;;  %v2117_v1 = vmul.f32 %v1921_v53, %v1921_v53  ;;  %v1585_v7 = vpop.f32.mrb[22].mxu0 }
 0x1c0   : > { %v2151_v2 = vadd.f32 %v2150_v56, %v2088_v43  ;;  %v2104_v3 = vmul.f32 %v1908_v44, %v1908_v44  ;;  %1987 = vst [vmem:[%s3457_s9 + $0x150] sm:$0xff] %v1923_v58  ;;  %1986 = vst [vmem:[%s3457_s9 + $0x148] sm:$0xff] %v1922_v59  ;;  %v2118_v5 = vmul.f32 %v1922_v59, %v1922_v59  ;;  %v1674_v13 = vpop.f32.mrb[22].mxu1  ;;  %v1587_v4 = vpop.f32.mrb[23].mxu0 }
 0x1c1   : > { %v1924_v6 = vadd.f32 %v3463_v60, %v1670_v61  ;;  %v2036_v10 = vadd.f32 %v2035_v63, %v1908_v44  ;;  %v2167_v11 = vadd.f32 %v2166_v62, %v2103_v51  ;;  %v2182_v12 = vadd.f32 %v2181_v20, %v2117_v1  ;;  %v1676_v17 = vpop.f32.mrb[23].mxu1 }
 0x1c2   : > { %v2051_v9 = vadd.f32 %v2050_v57, %v1922_v59  ;;  %v2119_v8 = vmul.f32 %v1923_v58, %v1923_v58  ;;  %v1937_v14 = vadd.f32 %v3481_v23, %v1585_v7  ;;  %v1939_v15 = vadd.f32 %v3481_v23, %v1674_v13 }
 0x1c3   : > { %1988 = vst [vmem:[%s3457_s9 + $0x158] sm:$0xff] %v1924_v6  ;;  %v1938_v16 = vadd.f32 %v3481_v23, %v1587_v4  ;;  %v2168_v21 = vadd.f32 %v2167_v11, %v2104_v3  ;;  %v2183_v18 = vadd.f32 %v2182_v12, %v2118_v5  ;;  %v1940_v20 = vadd.f32 %v3481_v23, %v1676_v17  ;;  %v1745_v27 = vpop.f32.mrb[24].mxu0 }
 0x1c4   : > { %v2052_v19 = vadd.f32 %v2051_v9, %v1923_v58  ;;  %v2120_v22 = vmul.f32 %v1924_v6, %v1924_v6  ;;  %2001 = vst [vmem:[%s3457_s9 + $0x1c0] sm:$0xff] %v1937_v14  ;;  %v2067_v24 = vadd.f32 %v3559_v30, %v1937_v14  ;;  %v2133_v25 = vmul.f32 %v1937_v14, %v1937_v14  ;;  %v1834_v35 = vpop.f32.mrb[24].mxu1  ;;  %v1747_v28 = vpop.f32.mrb[25].mxu0 }
 0x1c5   : > { %2003 = vst [vmem:[%s3457_s9 + $0x1d0] sm:$0xff] %v1939_v15  ;;  %2002 = vst [vmem:[%s3457_s9 + $0x1c8] sm:$0xff] %v1938_v16  ;;  %v2134_v26 = vmul.f32 %v1938_v16, %v1938_v16  ;;  %v2184_v32 = vadd.f32 %v2183_v18, %v2119_v8  ;;  %v2135_v33 = vmul.f32 %v1939_v15, %v1939_v15  ;;  %v1836_v38 = vpop.f32.mrb[25].mxu1 }
 0x1c6   : > { %v2053_v31 = vadd.f32 %v2052_v19, %v1924_v6  ;;  %2004 = vst [vmem:[%s3457_s9 + $0x1d8] sm:$0xff] %v1940_v20  ;;  %v1893_v34 = vadd.f32 %v3449_v47, %v1745_v27  ;;  %v2199_v29 = vadd.f32 %v3566_v40, %v2133_v25  ;;  %v2068_v36 = vadd.f32 %v2067_v24, %v1938_v16 }
 0x1c7   : > { %v1895_v30 = vadd.f32 %v3449_v47, %v1834_v35  ;;  %v1894_v37 = vadd.f32 %v3449_v47, %v1747_v28  ;;  %v2185_v41 = vadd.f32 %v2184_v32, %v2120_v22  ;;  %v1896_v45 = vadd.f32 %v3449_v47, %v1836_v38  ;;  %v1751_v49 = vpop.f32.mrb[26].mxu0 }
 0x1c8   : > { %1957 = vst [vmem:[%s3457_s9 + $0x60] sm:$0xff] %v1893_v34  ;;  %v2020_v42 = vadd.f32 %v2019_v55, %v1893_v34  ;;  %v2089_v44 = vmul.f32 %v1893_v34, %v1893_v34  ;;  %v2200_v48 = vadd.f32 %v2199_v29, %v2134_v26  ;;  %v2069_v43 = vadd.f32 %v2068_v36, %v1939_v15  ;;  %v1840_v46 = vpop.f32.mrb[26].mxu1  ;;  %v1753_v54 = vpop.f32.mrb[27].mxu0 }
 0x1c9   : > { %v2136_v39 = vmul.f32 %v1940_v20, %v1940_v20  ;;  %1959 = vst [vmem:[%s3457_s9 + $0x70] sm:$0xff] %v1895_v30  ;;  %1958 = vst [vmem:[%s3457_s9 + $0x68] sm:$0xff] %v1894_v37  ;;  %v2090_v40 = vmul.f32 %v1894_v37, %v1894_v37  ;;  %v2091_v51 = vmul.f32 %v1895_v30, %v1895_v30  ;;  %v1842_v59 = vpop.f32.mrb[27].mxu1 }
 0x1ca   : > { %v2152_v50 = vadd.f32 %v2151_v2, %v2089_v44  ;;  %v2021_v52 = vadd.f32 %v2020_v42, %v1894_v37  ;;  %1960 = vst [vmem:[%s3457_s9 + $0x78] sm:$0xff] %v1896_v45  ;;  %v1909_v53 = vadd.f32 %v3455_v0, %v1751_v49  ;;  %v2070_v55 = vadd.f32 %v2069_v43, %v1940_v20 }
 0x1cb   : > { %v2201_v47 = vadd.f32 %v2200_v48, %v2135_v33  ;;  %v1911_v56 = vadd.f32 %v3455_v0, %v1840_v46  ;;  %v1910_v58 = vadd.f32 %v3455_v0, %v1753_v54  ;;  %v1912_v63 = vadd.f32 %v3455_v0, %v1842_v59  ;;  %v1757_v3 = vpop.f32.mrb[28].mxu0 }
 0x1cc   : > { %1973 = vst [vmem:[%s3457_s9 + $0xe0] sm:$0xff] %v1909_v53  ;;  %v2037_v61 = vadd.f32 %v2036_v10, %v1909_v53  ;;  %v2105_v62 = vmul.f32 %v1909_v53, %v1909_v53  ;;  %v2022_v57 = vadd.f32 %v2021_v52, %v1895_v30  ;;  %v2092_v5 = vmul.f32 %v1896_v45, %v1896_v45  ;;  %v1846_v10 = vpop.f32.mrb[28].mxu1  ;;  %v1759_v9 = vpop.f32.mrb[29].mxu0 }
 0x1cd   : > { %v2202_v1 = vadd.f32 %v2201_v47, %v2136_v39  ;;  %1975 = vst [vmem:[%s3457_s9 + $0xf0] sm:$0xff] %v1911_v56  ;;  %1974 = vst [vmem:[%s3457_s9 + $0xe8] sm:$0xff] %v1910_v58  ;;  %v2106_v2 = vmul.f32 %v1910_v58, %v1910_v58  ;;  %v2153_v6 = vadd.f32 %v2152_v50, %v2090_v40  ;;  %v1848_v14 = vpop.f32.mrb[29].mxu1 }
 0x1ce   : > { %v2169_v7 = vadd.f32 %v2168_v21, %v2105_v62  ;;  %v2038_v11 = vadd.f32 %v2037_v61, %v1910_v58  ;;  %1976 = vst [vmem:[%s3457_s9 + $0xf8] sm:$0xff] %v1912_v63  ;;  %v1925_v12 = vadd.f32 %v3463_v60, %v1757_v3  ;;  %v2023_v13 = vadd.f32 %v2022_v57, %v1896_v45  ;;  %v2249_v3 = vld [vmem:[%s3457_s9 + $0x10] sm:$0xff] (%p3812_p0) }
 0x1cf   : > { %v2107_v0 = vmul.f32 %v1911_v56, %v1911_v56  ;;  %v1927_v4 = vadd.f32 %v3463_v60, %v1846_v10  ;;  %v1926_v8 = vadd.f32 %v3463_v60, %v1759_v9  ;;  %v2154_v15 = vadd.f32 %v2153_v6, %v2091_v51  ;;  %v1763_v20 = vpop.f32.mrb[30].mxu0  ;;  %v2253_v6 = vld [vmem:[%s3457_s9 + $0x20] sm:$0xff] (%p3812_p0)  ;;  %2250 = vst [vmem:[%s3646_s27 + $0x10] sm:$0xff] (%p3812_p0), %v2249_v3  ;;  %v2263_v9 = vld [vmem:[%s3457_s9 + $0x48] sm:$0xff] (%p3812_p0) }
 0x1d0   : > { %1989 = vst [vmem:[%s3457_s9 + $0x160] sm:$0xff] %v1925_v12  ;;  %v2054_v16 = vadd.f32 %v2053_v31, %v1925_v12  ;;  %v2121_v17 = vmul.f32 %v1925_v12, %v1925_v12  ;;  %v1928_v21 = vadd.f32 %v3463_v60, %v1848_v14  ;;  %2024 = vadd.xlane.f32.xlu0 %v2023_v13  ;;  %v1852_v31 = vpop.f32.mrb[30].mxu1  ;;  %v1765_v33 = vpop.f32.mrb[31].mxu0  ;;  %2254 = vst [vmem:[%s3646_s27 + $0x20] sm:$0xff] (%p3812_p0), %v2253_v6  ;;  %v2259_v12 = vld [vmem:[%s3457_s9 + $0x38] sm:$0xff] (%p3812_p0)  ;;  %v2261_v10 = vld [vmem:[%s3457_s9 + $0x40] sm:$0xff] (%p3812_p0) }
 0x1d1   : > { %v2170_v18 = vadd.f32 %v2169_v7, %v2106_v2  ;;  %1991 = vst [vmem:[%s3457_s9 + $0x170] sm:$0xff] %v1927_v4  ;;  %1990 = vst [vmem:[%s3457_s9 + $0x168] sm:$0xff] %v1926_v8  ;;  %v2122_v19 = vmul.f32 %v1926_v8, %v1926_v8  ;;  %v2155_v22 = vadd.f32 %v2154_v15, %v2092_v5  ;;  %v1854_v35 = vpop.f32.mrb[31].mxu1  ;;  %v2247_v2 = vld [vmem:[%s3457_s9 + $0x8] sm:$0xff] (%p3812_p0)  ;;  %v2251_v5 = vld [vmem:[%s3457_s9 + $0x18] sm:$0xff] (%p3812_p0) }
 0x1d2   : > { %v2108_v24 = vmul.f32 %v1912_v63, %v1912_v63  ;;  %v2039_v25 = vadd.f32 %v2038_v11, %v1911_v56  ;;  %v2186_v26 = vadd.f32 %v2185_v41, %v2121_v17  ;;  %v2055_v27 = vadd.f32 %v2054_v16, %v1926_v8  ;;  %1992 = vst [vmem:[%s3457_s9 + $0x178] sm:$0xff] %v1928_v21  ;;  %v2255_v7 = vld [vmem:[%s3457_s9 + $0x28] sm:$0xff] (%p3812_p0)  ;;  %v2257_v11 = vld [vmem:[%s3457_s9 + $0x30] sm:$0xff] (%p3812_p0)  ;;  %v2275_v15 = vld [vmem:[%s3457_s9 + $0x78] sm:$0xff] (%p3812_p0) }
 0x1d3   : > { %v1941_v32 = vadd.f32 %v3481_v23, %v1763_v20  ;;  %v2171_v60 = vadd.f32 %v2170_v18, %v2107_v0  ;;  %v1943_v34 = vadd.f32 %v3481_v23, %v1852_v31  ;;  %2156 = vadd.xlane.f32.xlu1 %v2155_v22  ;;  %v1942_v28 = vadd.f32 %v3481_v23, %v1765_v33  ;;  %v2265_v13 = vld [vmem:[%s3457_s9 + $0x50] sm:$0xff] (%p3812_p0)  ;;  %v2267_v0 = vld [vmem:[%s3457_s9 + $0x58] sm:$0xff] (%p3812_p0)  ;;  %v2271_v8 = vld [vmem:[%s3457_s9 + $0x68] sm:$0xff] (%p3812_p0) }
 0x1d4   : > { %v2040_v29 = vadd.f32 %v2039_v25, %v1912_v63  ;;  %v1944_v37 = vadd.f32 %v3481_v23, %v1854_v35  ;;  %v2123_v41 = vmul.f32 %v1927_v4, %v1927_v4  ;;  %v2187_v44 = vadd.f32 %v2186_v26, %v2122_v19  ;;  %2248 = vst [vmem:[%s3646_s27 + $0x8] sm:$0xff] (%p3812_p0), %v2247_v2  ;;  %v2273_v14 = vld [vmem:[%s3457_s9 + $0x70] sm:$0xff] (%p3812_p0)  ;;  %v2277_v16 = vld [vmem:[%s3457_s9 + $0x80] sm:$0xff] (%p3812_p0)  ;;  %v2279_v17 = vld [vmem:[%s3457_s9 + $0x88] sm:$0xff] (%p3812_p0) }
 0x1d5   : > { %2005 = vst [vmem:[%s3457_s9 + $0x1e0] sm:$0xff] %v1941_v32  ;;  %v2071_v36 = vadd.f32 %v2070_v55, %v1941_v32  ;;  %v2137_v30 = vmul.f32 %v1941_v32, %v1941_v32  ;;  %v2172_v38 = vadd.f32 %v2171_v60, %v2108_v24  ;;  %2007 = vst [vmem:[%s3457_s9 + $0x1f0] sm:$0xff] %v1943_v34  ;;  %v2283_v18 = vld [vmem:[%s3457_s9 + $0x98] sm:$0xff] (%p3812_p0)  ;;  %v2285_v19 = vld [vmem:[%s3457_s9 + $0xa0] sm:$0xff] (%p3812_p0) }
 0x1d6   : > { %2006 = vst [vmem:[%s3457_s9 + $0x1e8] sm:$0xff] %v1942_v28  ;;  %v2138_v42 = vmul.f32 %v1942_v28, %v1942_v28  ;;  %v2056_v45 = vadd.f32 %v2055_v27, %v1927_v4  ;;  %2008 = vst [vmem:[%s3457_s9 + $0x1f8] sm:$0xff] %v1944_v37  ;;  %v2124_v39 = vmul.f32 %v1928_v21, %v1928_v21  ;;  %v2269_v4 = vld [vmem:[%s3457_s9 + $0x60] sm:$0xff] (%p3812_p0)  ;;  %v2287_v20 = vld [vmem:[%s3457_s9 + $0xa8] sm:$0xff] (%p3812_p0) }
 0x1d7   : > { %v2203_v48 = vadd.f32 %v2202_v1, %v2137_v30  ;;  %v2072_v43 = vadd.f32 %v2071_v36, %v1942_v28  ;;  %2173 = vadd.xlane.f32.xlu0 %v2172_v38  ;;  %2041 = vadd.xlane.f32.xlu1 %v2040_v29  ;;  %v2188_v40 = vadd.f32 %v2187_v44, %v2123_v41  ;;  %v2245_v1 = vld [vmem:[%s3457_s9] sm:$0xff] (%p3812_p0)  ;;  %v2289_v22 = vld [vmem:[%s3457_s9 + $0xb0] sm:$0xff] (%p3812_p0)  ;;  %v2291_v24 = vld [vmem:[%s3457_s9 + $0xb8] sm:$0xff] (%p3812_p0) }
 0x1d8   : > { %v2057_v49 = vadd.f32 %v2056_v45, %v1928_v21  ;;  %v2139_v50 = vmul.f32 %v1943_v34, %v1943_v34  ;;  %v2140_v46 = vmul.f32 %v1944_v37, %v1944_v37  ;;  %2246 = vst [vmem:[%s3646_s27] sm:$0xff] (%p3812_p0), %v2245_v1  ;;  %2252 = vst [vmem:[%s3646_s27 + $0x18] sm:$0xff] (%p3812_p0), %v2251_v5  ;;  %v2281_v21 = vld [vmem:[%s3457_s9 + $0x90] sm:$0xff] (%p3812_p0)  ;;  %v2293_v25 = vld [vmem:[%s3457_s9 + $0xc0] sm:$0xff] (%p3812_p0) }
 0x1d9   : > { %v2073_v51 = vadd.f32 %v2072_v43, %v1943_v34  ;;  %v2204_v23 = vadd.f32 %v2203_v48, %v2138_v42  ;;  %v2189_v52 = vadd.f32 %v2188_v40, %v2124_v39  ;;  %2256 = vst [vmem:[%s3646_s27 + $0x28] sm:$0xff] (%p3812_p0), %v2255_v7  ;;  %2258 = vst [vmem:[%s3646_s27 + $0x30] sm:$0xff] (%p3812_p0), %v2257_v11  ;;  %v2295_v26 = vld [vmem:[%s3457_s9 + $0xc8] sm:$0xff] (%p3812_p0)  ;;  %v2297_v27 = vld [vmem:[%s3457_s9 + $0xd0] sm:$0xff] (%p3812_p0) }
 0x1da   : > { %2260 = vst [vmem:[%s3646_s27 + $0x38] sm:$0xff] (%p3812_p0), %v2259_v12  ;;  %2262 = vst [vmem:[%s3646_s27 + $0x40] sm:$0xff] (%p3812_p0), %v2261_v10  ;;  %v2299_v32 = vld [vmem:[%s3457_s9 + $0xd8] sm:$0xff] (%p3812_p0)  ;;  %v2301_v31 = vld [vmem:[%s3457_s9 + $0xe0] sm:$0xff] (%p3812_p0) }
 0x1db   : > { %2058 = vadd.xlane.f32.xlu0 %v2057_v49  ;;  %v2074_v53 = vadd.f32 %v2073_v51, %v1944_v37  ;;  %v2205_v54 = vadd.f32 %v2204_v23, %v2139_v50  ;;  %2190 = vadd.xlane.f32.xlu1 %v2189_v52  ;;  %2264 = vst [vmem:[%s3646_s27 + $0x48] sm:$0xff] (%p3812_p0), %v2263_v9  ;;  %2266 = vst [vmem:[%s3646_s27 + $0x50] sm:$0xff] (%p3812_p0), %v2265_v13  ;;  %v2303_v33 = vld [vmem:[%s3457_s9 + $0xe8] sm:$0xff] (%p3812_p0)  ;;  %v2305_v60 = vld [vmem:[%s3457_s9 + $0xf0] sm:$0xff] (%p3812_p0) }
 0x1dc   : > { %2268 = vst [vmem:[%s3646_s27 + $0x58] sm:$0xff] (%p3812_p0), %v2267_v0  ;;  %2270 = vst [vmem:[%s3646_s27 + $0x60] sm:$0xff] (%p3812_p0), %v2269_v4  ;;  %v2307_v34 = vld [vmem:[%s3457_s9 + $0xf8] sm:$0xff] (%p3812_p0)  ;;  %v2309_v35 = vld [vmem:[%s3457_s9 + $0x100] sm:$0xff] (%p3812_p0) }
 0x1dd   : > { %v2206_v55 = vadd.f32 %v2205_v54, %v2140_v46  ;;  %2272 = vst [vmem:[%s3646_s27 + $0x68] sm:$0xff] (%p3812_p0), %v2271_v8  ;;  %2274 = vst [vmem:[%s3646_s27 + $0x70] sm:$0xff] (%p3812_p0), %v2273_v14  ;;  %v2311_v28 = vld [vmem:[%s3457_s9 + $0x108] sm:$0xff] (%p3812_p0)  ;;  %v2313_v29 = vld [vmem:[%s3457_s9 + $0x110] sm:$0xff] (%p3812_p0) }
 0x1de   : > { %2276 = vst [vmem:[%s3646_s27 + $0x78] sm:$0xff] (%p3812_p0), %v2275_v15  ;;  %2278 = vst [vmem:[%s3646_s27 + $0x100] sm:$0xff] (%p3812_p0), %v2277_v16  ;;  %v2315_v36 = vld [vmem:[%s3457_s9 + $0x118] sm:$0xff] (%p3812_p0)  ;;  %v2317_v30 = vld [vmem:[%s3457_s9 + $0x120] sm:$0xff] (%p3812_p0) }
 0x1df   : > { %2075 = vadd.xlane.f32.xlu0 %v2074_v53  ;;  %2280 = vst [vmem:[%s3646_s27 + $0x108] sm:$0xff] (%p3812_p0), %v2279_v17  ;;  %2282 = vst [vmem:[%s3646_s27 + $0x110] sm:$0xff] (%p3812_p0), %v2281_v21  ;;  %v2319_v37 = vld [vmem:[%s3457_s9 + $0x128] sm:$0xff] (%p3812_p0)  ;;  %v2321_v38 = vld [vmem:[%s3457_s9 + $0x130] sm:$0xff] (%p3812_p0) }
 0x1e0   : > { %2284 = vst [vmem:[%s3646_s27 + $0x118] sm:$0xff] (%p3812_p0), %v2283_v18  ;;  %2286 = vst [vmem:[%s3646_s27 + $0x120] sm:$0xff] (%p3812_p0), %v2285_v19  ;;  %v2323_v41 = vld [vmem:[%s3457_s9 + $0x138] sm:$0xff] (%p3812_p0)  ;;  %v2325_v42 = vld [vmem:[%s3457_s9 + $0x140] sm:$0xff] (%p3812_p0) }
 0x1e1   : > { %2288 = vst [vmem:[%s3646_s27 + $0x128] sm:$0xff] (%p3812_p0), %v2287_v20  ;;  %2290 = vst [vmem:[%s3646_s27 + $0x130] sm:$0xff] (%p3812_p0), %v2289_v22  ;;  %v2327_v44 = vld [vmem:[%s3457_s9 + $0x148] sm:$0xff] (%p3812_p0)  ;;  %v2329_v45 = vld [vmem:[%s3457_s9 + $0x150] sm:$0xff] (%p3812_p0) }
 0x1e2   : > { %2292 = vst [vmem:[%s3646_s27 + $0x138] sm:$0xff] (%p3812_p0), %v2291_v24  ;;  %2294 = vst [vmem:[%s3646_s27 + $0x140] sm:$0xff] (%p3812_p0), %v2293_v25  ;;  %v2331_v48 = vld [vmem:[%s3457_s9 + $0x158] sm:$0xff] (%p3812_p0)  ;;  %v2333_v43 = vld [vmem:[%s3457_s9 + $0x160] sm:$0xff] (%p3812_p0) }
 0x1e3   : > { %2207 = vadd.xlane.f32.xlu0 %v2206_v55  ;;  %2296 = vst [vmem:[%s3646_s27 + $0x148] sm:$0xff] (%p3812_p0), %v2295_v26  ;;  %2298 = vst [vmem:[%s3646_s27 + $0x150] sm:$0xff] (%p3812_p0), %v2297_v27  ;;  %v2335_v39 = vld [vmem:[%s3457_s9 + $0x168] sm:$0xff] (%p3812_p0)  ;;  %v2337_v40 = vld [vmem:[%s3457_s9 + $0x170] sm:$0xff] (%p3812_p0) }
 0x1e4   : > { %2300 = vst [vmem:[%s3646_s27 + $0x158] sm:$0xff] (%p3812_p0), %v2299_v32  ;;  %2302 = vst [vmem:[%s3646_s27 + $0x160] sm:$0xff] (%p3812_p0), %v2301_v31  ;;  %v2339_v49 = vld [vmem:[%s3457_s9 + $0x178] sm:$0xff] (%p3812_p0)  ;;  %v2341_v50 = vld [vmem:[%s3457_s9 + $0x180] sm:$0xff] (%p3812_p0) }
 0x1e5   : > { %2304 = vst [vmem:[%s3646_s27 + $0x168] sm:$0xff] (%p3812_p0), %v2303_v33  ;;  %2306 = vst [vmem:[%s3646_s27 + $0x170] sm:$0xff] (%p3812_p0), %v2305_v60  ;;  %v2343_v51 = vld [vmem:[%s3457_s9 + $0x188] sm:$0xff] (%p3812_p0)  ;;  %v2345_v23 = vld [vmem:[%s3457_s9 + $0x190] sm:$0xff] (%p3812_p0) }
 0x1e6   : > { %2308 = vst [vmem:[%s3646_s27 + $0x178] sm:$0xff] (%p3812_p0), %v2307_v34  ;;  %2310 = vst [vmem:[%s3646_s27 + $0x200] sm:$0xff] (%p3812_p0), %v2309_v35  ;;  %v2347_v52 = vld [vmem:[%s3457_s9 + $0x198] sm:$0xff] (%p3812_p0)  ;;  %v2349_v53 = vld [vmem:[%s3457_s9 + $0x1a0] sm:$0xff] (%p3812_p0) }
 0x1e7   : > { %2312 = vst [vmem:[%s3646_s27 + $0x208] sm:$0xff] (%p3812_p0), %v2311_v28  ;;  %2314 = vst [vmem:[%s3646_s27 + $0x210] sm:$0xff] (%p3812_p0), %v2313_v29  ;;  %v2351_v46 = vld [vmem:[%s3457_s9 + $0x1a8] sm:$0xff] (%p3812_p0)  ;;  %v2353_v54 = vld [vmem:[%s3457_s9 + $0x1b0] sm:$0xff] (%p3812_p0) }
 0x1e8   : > { %2316 = vst [vmem:[%s3646_s27 + $0x218] sm:$0xff] (%p3812_p0), %v2315_v36  ;;  %2318 = vst [vmem:[%s3646_s27 + $0x220] sm:$0xff] (%p3812_p0), %v2317_v30  ;;  %v2355_v55 = vld [vmem:[%s3457_s9 + $0x1b8] sm:$0xff] (%p3812_p0) }
 0x1e9   : > { %2320 = vst [vmem:[%s3646_s27 + $0x228] sm:$0xff] (%p3812_p0), %v2319_v37  ;;  %2322 = vst [vmem:[%s3646_s27 + $0x230] sm:$0xff] (%p3812_p0), %v2321_v38 }
 0x1ea   : > { %2324 = vst [vmem:[%s3646_s27 + $0x238] sm:$0xff] (%p3812_p0), %v2323_v41  ;;  %2326 = vst [vmem:[%s3646_s27 + $0x240] sm:$0xff] (%p3812_p0), %v2325_v42 }
 0x1eb   : > { %2328 = vst [vmem:[%s3646_s27 + $0x248] sm:$0xff] (%p3812_p0), %v2327_v44  ;;  %2330 = vst [vmem:[%s3646_s27 + $0x250] sm:$0xff] (%p3812_p0), %v2329_v45 }
 0x1ec   : > { %2332 = vst [vmem:[%s3646_s27 + $0x258] sm:$0xff] (%p3812_p0), %v2331_v48  ;;  %2334 = vst [vmem:[%s3646_s27 + $0x260] sm:$0xff] (%p3812_p0), %v2333_v43 }
 0x1ed   : > { %2336 = vst [vmem:[%s3646_s27 + $0x268] sm:$0xff] (%p3812_p0), %v2335_v39  ;;  %2338 = vst [vmem:[%s3646_s27 + $0x270] sm:$0xff] (%p3812_p0), %v2337_v40 }
 0x1ee   : > { %2340 = vst [vmem:[%s3646_s27 + $0x278] sm:$0xff] (%p3812_p0), %v2339_v49  ;;  %2342 = vst [vmem:[%s3646_s27 + $0x300] sm:$0xff] (%p3812_p0), %v2341_v50 }
 0x1ef   : > { %2344 = vst [vmem:[%s3646_s27 + $0x308] sm:$0xff] (%p3812_p0), %v2343_v51  ;;  %2346 = vst [vmem:[%s3646_s27 + $0x310] sm:$0xff] (%p3812_p0), %v2345_v23 }
 0x1f0   : > { %2348 = vst [vmem:[%s3646_s27 + $0x318] sm:$0xff] (%p3812_p0), %v2347_v52  ;;  %2350 = vst [vmem:[%s3646_s27 + $0x320] sm:$0xff] (%p3812_p0), %v2349_v53 }
 0x1f1   : > { %2352 = vst [vmem:[%s3646_s27 + $0x328] sm:$0xff] (%p3812_p0), %v2351_v46  ;;  %2354 = vst [vmem:[%s3646_s27 + $0x330] sm:$0xff] (%p3812_p0), %v2353_v54 }
 0x1f2   : > { %2356 = vst [vmem:[%s3646_s27 + $0x338] sm:$0xff] (%p3812_p0), %v2355_v55 }
 0x25d   : > { %v2025_v47 = vpop.xlane.xlu0 %2024 }
 0x25e   : > { %2210 = vst.msk [vmem:[%s335_s11] sm:$0xff] %vm2209_vm1, %v2025_v47  ;;  %v2357_v47 = vld [vmem:[%s3457_s9 + $0x1c0] sm:$0xff] (%p3812_p0) }
 0x25f   : > { %2358 = vst [vmem:[%s3646_s27 + $0x340] sm:$0xff] (%p3812_p0), %v2357_v47 }
 0x260   : > { %v2157_v56 = vpop.xlane.xlu1 %2156 }
 0x261   : > { %2214 = vst.msk [vmem:[%s335_s11 + $0x20] sm:$0xff] %vm2209_vm1, %v2157_v56  ;;  %v2359_v56 = vld [vmem:[%s3457_s9 + $0x1c8] sm:$0xff] (%p3812_p0) }
 0x262   : > { %2360 = vst [vmem:[%s3646_s27 + $0x348] sm:$0xff] (%p3812_p0), %v2359_v56 }
 0x264   : > { %v2174_v58 = vpop.xlane.xlu0 %2173  ;;  %v2042_v59 = vpop.xlane.xlu1 %2041 }
 0x265   : > { %2215 = vst.msk [vmem:[%s335_s11 + $0x28] sm:$0xff] %vm2209_vm1, %v2174_v58  ;;  %2211 = vst.msk [vmem:[%s335_s11 + $0x8] sm:$0xff] %vm2209_vm1, %v2042_v59  ;;  %v2361_v58 = vld [vmem:[%s3457_s9 + $0x1d0] sm:$0xff] (%p3812_p0)  ;;  %v2363_v59 = vld [vmem:[%s3457_s9 + $0x1d8] sm:$0xff] (%p3812_p0) }
 0x266   : > { %2362 = vst [vmem:[%s3646_s27 + $0x350] sm:$0xff] (%p3812_p0), %v2361_v58  ;;  %2364 = vst [vmem:[%s3646_s27 + $0x358] sm:$0xff] (%p3812_p0), %v2363_v59 }
 0x268   : > { %v2059_v61 = vpop.xlane.xlu0 %2058  ;;  %v2191_v62 = vpop.xlane.xlu1 %2190 }
 0x269   : > { %2212 = vst.msk [vmem:[%s335_s11 + $0x10] sm:$0xff] %vm2209_vm1, %v2059_v61  ;;  %2216 = vst.msk [vmem:[%s335_s11 + $0x30] sm:$0xff] %vm2209_vm1, %v2191_v62  ;;  %v2365_v61 = vld [vmem:[%s3457_s9 + $0x1e0] sm:$0xff] (%p3812_p0)  ;;  %v2367_v62 = vld [vmem:[%s3457_s9 + $0x1e8] sm:$0xff] (%p3812_p0) }
 0x26a   : > { %2366 = vst [vmem:[%s3646_s27 + $0x360] sm:$0xff] (%p3812_p0), %v2365_v61  ;;  %2368 = vst [vmem:[%s3646_s27 + $0x368] sm:$0xff] (%p3812_p0), %v2367_v62 }
 0x26b   : > { %2229 = sbr.rel (!%p3812_p0) target bundleno = 627 (0x273), region = 56 }
 0x26c   : > { %v2076_v63 = vpop.xlane.xlu0 %2075 }
 0x26d   : > { %2213 = vst.msk [vmem:[%s335_s11 + $0x18] sm:$0xff] %vm2209_vm1, %v2076_v63  ;;  %v2369_v63 = vld [vmem:[%s3457_s9 + $0x1f0] sm:$0xff] (%p3812_p0) }
 0x26e   : > { %2370 = vst [vmem:[%s3646_s27 + $0x370] sm:$0xff] (%p3812_p0), %v2369_v63 }
 0x270   : > { %v2208_v57 = vpop.xlane.xlu0 %2207 }
 0x271   : > { %2217 = vst.msk [vmem:[%s335_s11 + $0x38] sm:$0xff] %vm2209_vm1, %v2208_v57  ;;  %v2371_v57 = vld [vmem:[%s3457_s9 + $0x1f8] sm:$0xff] (%p3812_p0) }
 0x272   : > { %2372 = vst [vmem:[%s3646_s27 + $0x378] sm:$0xff] %v2371_v57 }
 0x273 PF: > { %p20_p5 = scmp.ge.s32.totalorder %s2977_s26, 4   ;;  %s3813_s21 = smov %s2901_s22 }
 0x274   : > { %s3814_s22 = smov %s2905_s23  ;;  %s3815_s23 = smov %s2987_s29 }
 0x275   : > { %s3816_s24 = smov %s2977_s26  ;;  %22 = sbr.rel (!%p20_p5) target bundleno = 8 (0x8), region = 132 }
 0x27c   :  { %2399 = vsyncpa [#allocation3], 1 }
 0x27d   :  { %2401 = vsyncpa [#allocation3 + $0x1], 1 }
 0x27e   :  { %2402 = vsyncpa [#allocation5], 1 }
 0x27f   :  { %2404 = vsyncpa [#allocation5 + $0x1], 1 }

// kernel: _lambda_.7
= control target key start
LH: loop header
LB: loop body
LE: loop exit
PB: predicated region body
PF: predicated region fallthrough
CT: control target
= control target key end

     0   :  { %s2598_s24 = smov 0   ;;  %s2600_s25 = smov 0   ;;  %s3734_s0 = inlined_call_operand.vmem [shape: f32[32,4096], index: 0, kind: input, shape index: {}]   ;;  %s3735_s1 = inlined_call_operand.vmem [shape: f32[32,1], index: 1, kind: input, shape index: {}]   ;;  %s3736_s2 = inlined_call_operand.vmem [shape: f32[32,1], index: 2, kind: input, shape index: {}]   ;;  %s3737_s3 = inlined_call_operand.vmem [shape: f32[32,4096], index: 3, kind: input, shape index: {}]   ;;  %s3738_s4 = inlined_call_operand.vmem [shape: f32[32,32], index: 4, kind: input, shape index: {}]   ;;  %s3739_s5 = inlined_call_operand.vmem [shape: f32[32,1], index: 5, kind: input, shape index: {}]   ;;  %s3740_s6 = inlined_call_operand.vmem [shape: f32[32,4096], index: 6, kind: output, shape index: {0}]   ;;  %s3741_s7 = inlined_call_operand.vmem [shape: f32[2,64,1], index: 7, kind: output, shape index: {1}]  }
   0x1   :  { %s2602_s26 = smov 0  }
   0x2 LB: > { %s2614_s27 = sadd.s32 4294967295, %s2554_s26   ;;  %s2617_s28 = sadd.s32 1, %s2554_s26   ;;  %s2554_s26 = sphi %s2602_s26, %s3746_s26   ;;  %s2550_s25 = sphi %s2600_s25, %s3745_s25   ;;  %s2546_s24 = sphi %s2598_s24, %s3744_s24  }
   0x3   : > { %s22_s29 = ssub.s32 %s2554_s26, %s2617_s28  ;;  %s25_s30 = sadd.s32 1, %s2550_s25 }
   0x4   : > { %p23_p0 = scmp.eq.s32.totalorder %s22_s29, 0  ;;  %p32_p1 = scmp.ne.s32.totalorder %s2550_s25, %s2546_s24 }
   0x5   : > { %p33_p2 = scmp.eq.s32.totalorder %s2554_s26, 0  ;;  %p172_p3 = scmp.eq.s32.totalorder %s2614_s27, 1 }
   0x6   : > { %s2627_s8 = scalar_select %p23_p0, %s2550_s25, %s25_s30  }
   0x7   : > { %p2629_p4 = por %p33_p2, %p32_p1  ;;  %p2633_p5 = por %p172_p3, %p32_p1 }
   0x8   : > { %p2386_p6 = scmp.ge.s32.totalorder %s2554_s26, 2 }
   0xa   : > { %232 = sbr.rel (%p2386_p6) target bundleno = 89 (0x59), region = 32 }
  0x11   : > { %235 = sbr.rel (!%p2629_p4) target bundleno = 53 (0x35), region = 36  ;;  %s237_s11 = sand.u32 (%p2629_p4), 1, %s2550_s25  }
  0x12   : > { %s2436_s12 = sshll.u32 (%p2629_p4), %s2554_s26, 7  ;;  %s2387_s13 = sshll.u32 (%p2629_p4), %s237_s11, 9 }
  0x13   : > { %s2645_s16 = scalar_lea.vmem (%p2629_p4), %s3734_s0, %s2436_s12  ;;  %s2650_s17 = scalar_lea.vmem (%p2629_p4), [#allocation2], %s2387_s13 }
  0x14   : > { %v255_v0 = vld [vmem:[%s2645_s16] sm:$0xff] (%p2629_p4)  ;;  %v257_v1 = vld [vmem:[%s2645_s16 + $0x8] sm:$0xff] (%p2629_p4)  ;;  %v259_v2 = vld [vmem:[%s2645_s16 + $0x10] sm:$0xff] (%p2629_p4) }
  0x15   : > { %256 = vst [vmem:[%s2650_s17] sm:$0xff] (%p2629_p4), %v255_v0  ;;  %258 = vst [vmem:[%s2650_s17 + $0x8] sm:$0xff] (%p2629_p4), %v257_v1  ;;  %v261_v3 = vld [vmem:[%s2645_s16 + $0x18] sm:$0xff] (%p2629_p4)  ;;  %v263_v4 = vld [vmem:[%s2645_s16 + $0x20] sm:$0xff] (%p2629_p4) }
  0x16   : > { %260 = vst [vmem:[%s2650_s17 + $0x10] sm:$0xff] (%p2629_p4), %v259_v2  ;;  %v265_v5 = vld [vmem:[%s2645_s16 + $0x28] sm:$0xff] (%p2629_p4)  ;;  %262 = vst [vmem:[%s2650_s17 + $0x18] sm:$0xff] (%p2629_p4), %v261_v3  ;;  %v267_v6 = vld [vmem:[%s2645_s16 + $0x30] sm:$0xff] (%p2629_p4) }
  0x17   : > { %264 = vst [vmem:[%s2650_s17 + $0x20] sm:$0xff] (%p2629_p4), %v263_v4  ;;  %266 = vst [vmem:[%s2650_s17 + $0x28] sm:$0xff] (%p2629_p4), %v265_v5  ;;  %v269_v7 = vld [vmem:[%s2645_s16 + $0x38] sm:$0xff] (%p2629_p4)  ;;  %v271_v8 = vld [vmem:[%s2645_s16 + $0x40] sm:$0xff] (%p2629_p4) }
  0x18   : > { %268 = vst [vmem:[%s2650_s17 + $0x30] sm:$0xff] %v267_v6  ;;  %270 = vst [vmem:[%s2650_s17 + $0x38] sm:$0xff] %v269_v7  ;;  %v273_v9 = vld [vmem:[%s2645_s16 + $0x48] sm:$0xff]  ;;  %v275_v10 = vld [vmem:[%s2645_s16 + $0x50] sm:$0xff] }
  0x19   : > { %272 = vst [vmem:[%s2650_s17 + $0x40] sm:$0xff] %v271_v8  ;;  %v277_v11 = vld [vmem:[%s2645_s16 + $0x58] sm:$0xff]  ;;  %274 = vst [vmem:[%s2650_s17 + $0x48] sm:$0xff] %v273_v9  ;;  %v279_v12 = vld [vmem:[%s2645_s16 + $0x60] sm:$0xff] }
  0x1a   : > { %276 = vst [vmem:[%s2650_s17 + $0x50] sm:$0xff] %v275_v10  ;;  %278 = vst [vmem:[%s2650_s17 + $0x58] sm:$0xff] %v277_v11  ;;  %v281_v13 = vld [vmem:[%s2645_s16 + $0x68] sm:$0xff]  ;;  %v283_v14 = vld [vmem:[%s2645_s16 + $0x70] sm:$0xff] }
  0x1b   : > { %280 = vst [vmem:[%s2650_s17 + $0x60] sm:$0xff] %v279_v12  ;;  %282 = vst [vmem:[%s2650_s17 + $0x68] sm:$0xff] %v281_v13  ;;  %v285_v15 = vld [vmem:[%s2645_s16 + $0x78] sm:$0xff]  ;;  %v287_v16 = vld [vmem:[%s2645_s16 + $0x100] sm:$0xff] }
  0x1c   : > { %284 = vst [vmem:[%s2650_s17 + $0x70] sm:$0xff] %v283_v14  ;;  %v289_v17 = vld [vmem:[%s2645_s16 + $0x108] sm:$0xff]  ;;  %286 = vst [vmem:[%s2650_s17 + $0x78] sm:$0xff] %v285_v15  ;;  %v291_v18 = vld [vmem:[%s2645_s16 + $0x110] sm:$0xff] }
  0x1d   : > { %288 = vst [vmem:[%s2650_s17 + $0x80] sm:$0xff] %v287_v16  ;;  %290 = vst [vmem:[%s2650_s17 + $0x88] sm:$0xff] %v289_v17  ;;  %v293_v19 = vld [vmem:[%s2645_s16 + $0x118] sm:$0xff]  ;;  %v295_v20 = vld [vmem:[%s2645_s16 + $0x120] sm:$0xff] }
  0x1e   : > { %292 = vst [vmem:[%s2650_s17 + $0x90] sm:$0xff] %v291_v18  ;;  %294 = vst [vmem:[%s2650_s17 + $0x98] sm:$0xff] %v293_v19  ;;  %v297_v21 = vld [vmem:[%s2645_s16 + $0x128] sm:$0xff]  ;;  %v299_v22 = vld [vmem:[%s2645_s16 + $0x130] sm:$0xff] }
  0x1f   : > { %296 = vst [vmem:[%s2650_s17 + $0xa0] sm:$0xff] %v295_v20  ;;  %v301_v23 = vld [vmem:[%s2645_s16 + $0x138] sm:$0xff]  ;;  %298 = vst [vmem:[%s2650_s17 + $0xa8] sm:$0xff] %v297_v21  ;;  %v303_v24 = vld [vmem:[%s2645_s16 + $0x140] sm:$0xff] }
  0x20   : > { %300 = vst [vmem:[%s2650_s17 + $0xb0] sm:$0xff] %v299_v22  ;;  %302 = vst [vmem:[%s2650_s17 + $0xb8] sm:$0xff] %v301_v23  ;;  %v305_v25 = vld [vmem:[%s2645_s16 + $0x148] sm:$0xff]  ;;  %v307_v26 = vld [vmem:[%s2645_s16 + $0x150] sm:$0xff] }
  0x21   : > { %304 = vst [vmem:[%s2650_s17 + $0xc0] sm:$0xff] %v303_v24  ;;  %306 = vst [vmem:[%s2650_s17 + $0xc8] sm:$0xff] %v305_v25  ;;  %v309_v27 = vld [vmem:[%s2645_s16 + $0x158] sm:$0xff]  ;;  %v311_v28 = vld [vmem:[%s2645_s16 + $0x160] sm:$0xff] }
  0x22   : > { %308 = vst [vmem:[%s2650_s17 + $0xd0] sm:$0xff] %v307_v26  ;;  %v313_v29 = vld [vmem:[%s2645_s16 + $0x168] sm:$0xff]  ;;  %310 = vst [vmem:[%s2650_s17 + $0xd8] sm:$0xff] %v309_v27  ;;  %v315_v30 = vld [vmem:[%s2645_s16 + $0x170] sm:$0xff] }
  0x23   : > { %312 = vst [vmem:[%s2650_s17 + $0xe0] sm:$0xff] %v311_v28  ;;  %314 = vst [vmem:[%s2650_s17 + $0xe8] sm:$0xff] %v313_v29  ;;  %v317_v31 = vld [vmem:[%s2645_s16 + $0x178] sm:$0xff]  ;;  %v319_v32 = vld [vmem:[%s2645_s16 + $0x200] sm:$0xff] }
  0x24   : > { %316 = vst [vmem:[%s2650_s17 + $0xf0] sm:$0xff] %v315_v30  ;;  %318 = vst [vmem:[%s2650_s17 + $0xf8] sm:$0xff] %v317_v31  ;;  %v321_v33 = vld [vmem:[%s2645_s16 + $0x208] sm:$0xff]  ;;  %v323_v34 = vld [vmem:[%s2645_s16 + $0x210] sm:$0xff] }
  0x25   : > { %320 = vst [vmem:[%s2650_s17 + $0x100] sm:$0xff] %v319_v32  ;;  %v325_v35 = vld [vmem:[%s2645_s16 + $0x218] sm:$0xff]  ;;  %322 = vst [vmem:[%s2650_s17 + $0x108] sm:$0xff] %v321_v33  ;;  %v327_v36 = vld [vmem:[%s2645_s16 + $0x220] sm:$0xff] }
  0x26   : > { %324 = vst [vmem:[%s2650_s17 + $0x110] sm:$0xff] %v323_v34  ;;  %326 = vst [vmem:[%s2650_s17 + $0x118] sm:$0xff] %v325_v35  ;;  %v329_v37 = vld [vmem:[%s2645_s16 + $0x228] sm:$0xff]  ;;  %v331_v38 = vld [vmem:[%s2645_s16 + $0x230] sm:$0xff] }
  0x27   : > { %328 = vst [vmem:[%s2650_s17 + $0x120] sm:$0xff] %v327_v36  ;;  %330 = vst [vmem:[%s2650_s17 + $0x128] sm:$0xff] %v329_v37  ;;  %v333_v39 = vld [vmem:[%s2645_s16 + $0x238] sm:$0xff]  ;;  %v335_v40 = vld [vmem:[%s2645_s16 + $0x240] sm:$0xff] }
  0x28   : > { %332 = vst [vmem:[%s2650_s17 + $0x130] sm:$0xff] %v331_v38  ;;  %v337_v41 = vld [vmem:[%s2645_s16 + $0x248] sm:$0xff]  ;;  %334 = vst [vmem:[%s2650_s17 + $0x138] sm:$0xff] %v333_v39  ;;  %v339_v42 = vld [vmem:[%s2645_s16 + $0x250] sm:$0xff] }
  0x29   : > { %336 = vst [vmem:[%s2650_s17 + $0x140] sm:$0xff] %v335_v40  ;;  %338 = vst [vmem:[%s2650_s17 + $0x148] sm:$0xff] %v337_v41  ;;  %v341_v43 = vld [vmem:[%s2645_s16 + $0x258] sm:$0xff]  ;;  %v343_v44 = vld [vmem:[%s2645_s16 + $0x260] sm:$0xff] }
  0x2a   : > { %340 = vst [vmem:[%s2650_s17 + $0x150] sm:$0xff] %v339_v42  ;;  %342 = vst [vmem:[%s2650_s17 + $0x158] sm:$0xff] %v341_v43  ;;  %v345_v45 = vld [vmem:[%s2645_s16 + $0x268] sm:$0xff]  ;;  %v347_v46 = vld [vmem:[%s2645_s16 + $0x270] sm:$0xff] }
  0x2b   : > { %344 = vst [vmem:[%s2650_s17 + $0x160] sm:$0xff] %v343_v44  ;;  %v349_v47 = vld [vmem:[%s2645_s16 + $0x278] sm:$0xff]  ;;  %346 = vst [vmem:[%s2650_s17 + $0x168] sm:$0xff] %v345_v45  ;;  %v351_v48 = vld [vmem:[%s2645_s16 + $0x300] sm:$0xff] }
  0x2c   : > { %348 = vst [vmem:[%s2650_s17 + $0x170] sm:$0xff] %v347_v46  ;;  %350 = vst [vmem:[%s2650_s17 + $0x178] sm:$0xff] %v349_v47  ;;  %v353_v49 = vld [vmem:[%s2645_s16 + $0x308] sm:$0xff]  ;;  %v355_v50 = vld [vmem:[%s2645_s16 + $0x310] sm:$0xff] }
  0x2d   : > { %352 = vst [vmem:[%s2650_s17 + $0x180] sm:$0xff] %v351_v48  ;;  %354 = vst [vmem:[%s2650_s17 + $0x188] sm:$0xff] %v353_v49  ;;  %v357_v51 = vld [vmem:[%s2645_s16 + $0x318] sm:$0xff]  ;;  %v359_v52 = vld [vmem:[%s2645_s16 + $0x320] sm:$0xff] }
  0x2e   : > { %356 = vst [vmem:[%s2650_s17 + $0x190] sm:$0xff] %v355_v50  ;;  %v361_v53 = vld [vmem:[%s2645_s16 + $0x328] sm:$0xff]  ;;  %358 = vst [vmem:[%s2650_s17 + $0x198] sm:$0xff] %v357_v51  ;;  %v363_v54 = vld [vmem:[%s2645_s16 + $0x330] sm:$0xff] }
  0x2f   : > { %360 = vst [vmem:[%s2650_s17 + $0x1a0] sm:$0xff] %v359_v52  ;;  %362 = vst [vmem:[%s2650_s17 + $0x1a8] sm:$0xff] %v361_v53  ;;  %v365_v55 = vld [vmem:[%s2645_s16 + $0x338] sm:$0xff]  ;;  %v367_v56 = vld [vmem:[%s2645_s16 + $0x340] sm:$0xff] }
  0x30   : > { %364 = vst [vmem:[%s2650_s17 + $0x1b0] sm:$0xff] %v363_v54  ;;  %366 = vst [vmem:[%s2650_s17 + $0x1b8] sm:$0xff] %v365_v55  ;;  %v369_v57 = vld [vmem:[%s2645_s16 + $0x348] sm:$0xff]  ;;  %v371_v58 = vld [vmem:[%s2645_s16 + $0x350] sm:$0xff] }
  0x31   : > { %368 = vst [vmem:[%s2650_s17 + $0x1c0] sm:$0xff] %v367_v56  ;;  %v373_v59 = vld [vmem:[%s2645_s16 + $0x358] sm:$0xff]  ;;  %370 = vst [vmem:[%s2650_s17 + $0x1c8] sm:$0xff] %v369_v57  ;;  %v375_v60 = vld [vmem:[%s2645_s16 + $0x360] sm:$0xff] }
  0x32   : > { %372 = vst [vmem:[%s2650_s17 + $0x1d0] sm:$0xff] %v371_v58  ;;  %374 = vst [vmem:[%s2650_s17 + $0x1d8] sm:$0xff] %v373_v59  ;;  %v377_v61 = vld [vmem:[%s2645_s16 + $0x368] sm:$0xff]  ;;  %v379_v62 = vld [vmem:[%s2645_s16 + $0x370] sm:$0xff] }
  0x33   : > { %376 = vst [vmem:[%s2650_s17 + $0x1e0] sm:$0xff] %v375_v60  ;;  %378 = vst [vmem:[%s2650_s17 + $0x1e8] sm:$0xff] %v377_v61  ;;  %v381_v63 = vld [vmem:[%s2645_s16 + $0x378] sm:$0xff] }
  0x34   : > { %380 = vst [vmem:[%s2650_s17 + $0x1f0] sm:$0xff] %v379_v62  ;;  %382 = vst [vmem:[%s2650_s17 + $0x1f8] sm:$0xff] %v381_v63 }
  0x35 PF: > { %388 = sbr.rel (!%p2629_p4) target bundleno = 89 (0x59), region = 59  ;;  %s390_s18 = sand.u32 (%p2629_p4), 1, %s2550_s25  }
  0x36   : > { %s2437_s19 = sshll.u32 (%p2629_p4), %s2554_s26, 7  ;;  %s2390_s20 = sshll.u32 (%p2629_p4), %s390_s18, 9 }
  0x37   : > { %s2784_s23 = scalar_lea.vmem (%p2629_p4), %s3737_s3, %s2437_s19  ;;  %s2789_s29 = scalar_lea.vmem (%p2629_p4), [#allocation3], %s2390_s20 }
  0x38   : > { %v408_v0 = vld [vmem:[%s2784_s23] sm:$0xff] (%p2629_p4)  ;;  %v410_v1 = vld [vmem:[%s2784_s23 + $0x8] sm:$0xff] (%p2629_p4)  ;;  %v412_v2 = vld [vmem:[%s2784_s23 + $0x10] sm:$0xff] (%p2629_p4) }
  0x39   : > { %409 = vst [vmem:[%s2789_s29] sm:$0xff] (%p2629_p4), %v408_v0  ;;  %411 = vst [vmem:[%s2789_s29 + $0x8] sm:$0xff] (%p2629_p4), %v410_v1  ;;  %v414_v3 = vld [vmem:[%s2784_s23 + $0x18] sm:$0xff] (%p2629_p4)  ;;  %v416_v4 = vld [vmem:[%s2784_s23 + $0x20] sm:$0xff] (%p2629_p4) }
  0x3a   : > { %413 = vst [vmem:[%s2789_s29 + $0x10] sm:$0xff] (%p2629_p4), %v412_v2  ;;  %v418_v5 = vld [vmem:[%s2784_s23 + $0x28] sm:$0xff] (%p2629_p4)  ;;  %415 = vst [vmem:[%s2789_s29 + $0x18] sm:$0xff] (%p2629_p4), %v414_v3  ;;  %v420_v6 = vld [vmem:[%s2784_s23 + $0x30] sm:$0xff] (%p2629_p4) }
  0x3b   : > { %417 = vst [vmem:[%s2789_s29 + $0x20] sm:$0xff] (%p2629_p4), %v416_v4  ;;  %419 = vst [vmem:[%s2789_s29 + $0x28] sm:$0xff] (%p2629_p4), %v418_v5  ;;  %v422_v7 = vld [vmem:[%s2784_s23 + $0x38] sm:$0xff] (%p2629_p4)  ;;  %v424_v8 = vld [vmem:[%s2784_s23 + $0x40] sm:$0xff] (%p2629_p4) }
  0x3c   : > { %421 = vst [vmem:[%s2789_s29 + $0x30] sm:$0xff] %v420_v6  ;;  %423 = vst [vmem:[%s2789_s29 + $0x38] sm:$0xff] %v422_v7  ;;  %v426_v9 = vld [vmem:[%s2784_s23 + $0x48] sm:$0xff]  ;;  %v428_v10 = vld [vmem:[%s2784_s23 + $0x50] sm:$0xff] }
  0x3d   : > { %425 = vst [vmem:[%s2789_s29 + $0x40] sm:$0xff] %v424_v8  ;;  %v430_v11 = vld [vmem:[%s2784_s23 + $0x58] sm:$0xff]  ;;  %427 = vst [vmem:[%s2789_s29 + $0x48] sm:$0xff] %v426_v9  ;;  %v432_v12 = vld [vmem:[%s2784_s23 + $0x60] sm:$0xff] }
  0x3e   : > { %429 = vst [vmem:[%s2789_s29 + $0x50] sm:$0xff] %v428_v10  ;;  %431 = vst [vmem:[%s2789_s29 + $0x58] sm:$0xff] %v430_v11  ;;  %v434_v13 = vld [vmem:[%s2784_s23 + $0x68] sm:$0xff]  ;;  %v436_v14 = vld [vmem:[%s2784_s23 + $0x70] sm:$0xff] }
  0x3f   : > { %433 = vst [vmem:[%s2789_s29 + $0x60] sm:$0xff] %v432_v12  ;;  %435 = vst [vmem:[%s2789_s29 + $0x68] sm:$0xff] %v434_v13  ;;  %v438_v15 = vld [vmem:[%s2784_s23 + $0x78] sm:$0xff]  ;;  %v440_v16 = vld [vmem:[%s2784_s23 + $0x100] sm:$0xff] }
  0x40   : > { %437 = vst [vmem:[%s2789_s29 + $0x70] sm:$0xff] %v436_v14  ;;  %v442_v17 = vld [vmem:[%s2784_s23 + $0x108] sm:$0xff]  ;;  %439 = vst [vmem:[%s2789_s29 + $0x78] sm:$0xff] %v438_v15  ;;  %v444_v18 = vld [vmem:[%s2784_s23 + $0x110] sm:$0xff] }
  0x41   : > { %441 = vst [vmem:[%s2789_s29 + $0x80] sm:$0xff] %v440_v16  ;;  %443 = vst [vmem:[%s2789_s29 + $0x88] sm:$0xff] %v442_v17  ;;  %v446_v19 = vld [vmem:[%s2784_s23 + $0x118] sm:$0xff]  ;;  %v448_v20 = vld [vmem:[%s2784_s23 + $0x120] sm:$0xff] }
  0x42   : > { %445 = vst [vmem:[%s2789_s29 + $0x90] sm:$0xff] %v444_v18  ;;  %447 = vst [vmem:[%s2789_s29 + $0x98] sm:$0xff] %v446_v19  ;;  %v450_v21 = vld [vmem:[%s2784_s23 + $0x128] sm:$0xff]  ;;  %v452_v22 = vld [vmem:[%s2784_s23 + $0x130] sm:$0xff] }
  0x43   : > { %449 = vst [vmem:[%s2789_s29 + $0xa0] sm:$0xff] %v448_v20  ;;  %v454_v23 = vld [vmem:[%s2784_s23 + $0x138] sm:$0xff]  ;;  %451 = vst [vmem:[%s2789_s29 + $0xa8] sm:$0xff] %v450_v21  ;;  %v456_v24 = vld [vmem:[%s2784_s23 + $0x140] sm:$0xff] }
  0x44   : > { %453 = vst [vmem:[%s2789_s29 + $0xb0] sm:$0xff] %v452_v22  ;;  %455 = vst [vmem:[%s2789_s29 + $0xb8] sm:$0xff] %v454_v23  ;;  %v458_v25 = vld [vmem:[%s2784_s23 + $0x148] sm:$0xff]  ;;  %v460_v26 = vld [vmem:[%s2784_s23 + $0x150] sm:$0xff] }
  0x45   : > { %457 = vst [vmem:[%s2789_s29 + $0xc0] sm:$0xff] %v456_v24  ;;  %459 = vst [vmem:[%s2789_s29 + $0xc8] sm:$0xff] %v458_v25  ;;  %v462_v27 = vld [vmem:[%s2784_s23 + $0x158] sm:$0xff]  ;;  %v464_v28 = vld [vmem:[%s2784_s23 + $0x160] sm:$0xff] }
  0x46   : > { %461 = vst [vmem:[%s2789_s29 + $0xd0] sm:$0xff] %v460_v26  ;;  %v466_v29 = vld [vmem:[%s2784_s23 + $0x168] sm:$0xff]  ;;  %463 = vst [vmem:[%s2789_s29 + $0xd8] sm:$0xff] %v462_v27  ;;  %v468_v30 = vld [vmem:[%s2784_s23 + $0x170] sm:$0xff] }
  0x47   : > { %465 = vst [vmem:[%s2789_s29 + $0xe0] sm:$0xff] %v464_v28  ;;  %467 = vst [vmem:[%s2789_s29 + $0xe8] sm:$0xff] %v466_v29  ;;  %v470_v31 = vld [vmem:[%s2784_s23 + $0x178] sm:$0xff]  ;;  %v472_v32 = vld [vmem:[%s2784_s23 + $0x200] sm:$0xff] }
  0x48   : > { %469 = vst [vmem:[%s2789_s29 + $0xf0] sm:$0xff] %v468_v30  ;;  %471 = vst [vmem:[%s2789_s29 + $0xf8] sm:$0xff] %v470_v31  ;;  %v474_v33 = vld [vmem:[%s2784_s23 + $0x208] sm:$0xff]  ;;  %v476_v34 = vld [vmem:[%s2784_s23 + $0x210] sm:$0xff] }
  0x49   : > { %473 = vst [vmem:[%s2789_s29 + $0x100] sm:$0xff] %v472_v32  ;;  %v478_v35 = vld [vmem:[%s2784_s23 + $0x218] sm:$0xff]  ;;  %475 = vst [vmem:[%s2789_s29 + $0x108] sm:$0xff] %v474_v33  ;;  %v480_v36 = vld [vmem:[%s2784_s23 + $0x220] sm:$0xff] }
  0x4a   : > { %477 = vst [vmem:[%s2789_s29 + $0x110] sm:$0xff] %v476_v34  ;;  %479 = vst [vmem:[%s2789_s29 + $0x118] sm:$0xff] %v478_v35  ;;  %v482_v37 = vld [vmem:[%s2784_s23 + $0x228] sm:$0xff]  ;;  %v484_v38 = vld [vmem:[%s2784_s23 + $0x230] sm:$0xff] }
  0x4b   : > { %481 = vst [vmem:[%s2789_s29 + $0x120] sm:$0xff] %v480_v36  ;;  %483 = vst [vmem:[%s2789_s29 + $0x128] sm:$0xff] %v482_v37  ;;  %v486_v39 = vld [vmem:[%s2784_s23 + $0x238] sm:$0xff]  ;;  %v488_v40 = vld [vmem:[%s2784_s23 + $0x240] sm:$0xff] }
  0x4c   : > { %485 = vst [vmem:[%s2789_s29 + $0x130] sm:$0xff] %v484_v38  ;;  %v490_v41 = vld [vmem:[%s2784_s23 + $0x248] sm:$0xff]  ;;  %487 = vst [vmem:[%s2789_s29 + $0x138] sm:$0xff] %v486_v39  ;;  %v492_v42 = vld [vmem:[%s2784_s23 + $0x250] sm:$0xff] }
  0x4d   : > { %489 = vst [vmem:[%s2789_s29 + $0x140] sm:$0xff] %v488_v40  ;;  %491 = vst [vmem:[%s2789_s29 + $0x148] sm:$0xff] %v490_v41  ;;  %v494_v43 = vld [vmem:[%s2784_s23 + $0x258] sm:$0xff]  ;;  %v496_v44 = vld [vmem:[%s2784_s23 + $0x260] sm:$0xff] }
  0x4e   : > { %493 = vst [vmem:[%s2789_s29 + $0x150] sm:$0xff] %v492_v42  ;;  %495 = vst [vmem:[%s2789_s29 + $0x158] sm:$0xff] %v494_v43  ;;  %v498_v45 = vld [vmem:[%s2784_s23 + $0x268] sm:$0xff]  ;;  %v500_v46 = vld [vmem:[%s2784_s23 + $0x270] sm:$0xff] }
  0x4f   : > { %497 = vst [vmem:[%s2789_s29 + $0x160] sm:$0xff] %v496_v44  ;;  %v502_v47 = vld [vmem:[%s2784_s23 + $0x278] sm:$0xff]  ;;  %499 = vst [vmem:[%s2789_s29 + $0x168] sm:$0xff] %v498_v45  ;;  %v504_v48 = vld [vmem:[%s2784_s23 + $0x300] sm:$0xff] }
  0x50   : > { %501 = vst [vmem:[%s2789_s29 + $0x170] sm:$0xff] %v500_v46  ;;  %503 = vst [vmem:[%s2789_s29 + $0x178] sm:$0xff] %v502_v47  ;;  %v506_v49 = vld [vmem:[%s2784_s23 + $0x308] sm:$0xff]  ;;  %v508_v50 = vld [vmem:[%s2784_s23 + $0x310] sm:$0xff] }
  0x51   : > { %505 = vst [vmem:[%s2789_s29 + $0x180] sm:$0xff] %v504_v48  ;;  %507 = vst [vmem:[%s2789_s29 + $0x188] sm:$0xff] %v506_v49  ;;  %v510_v51 = vld [vmem:[%s2784_s23 + $0x318] sm:$0xff]  ;;  %v512_v52 = vld [vmem:[%s2784_s23 + $0x320] sm:$0xff] }
  0x52   : > { %509 = vst [vmem:[%s2789_s29 + $0x190] sm:$0xff] %v508_v50  ;;  %v514_v53 = vld [vmem:[%s2784_s23 + $0x328] sm:$0xff]  ;;  %511 = vst [vmem:[%s2789_s29 + $0x198] sm:$0xff] %v510_v51  ;;  %v516_v54 = vld [vmem:[%s2784_s23 + $0x330] sm:$0xff] }
  0x53   : > { %513 = vst [vmem:[%s2789_s29 + $0x1a0] sm:$0xff] %v512_v52  ;;  %515 = vst [vmem:[%s2789_s29 + $0x1a8] sm:$0xff] %v514_v53  ;;  %v518_v55 = vld [vmem:[%s2784_s23 + $0x338] sm:$0xff]  ;;  %v520_v56 = vld [vmem:[%s2784_s23 + $0x340] sm:$0xff] }
  0x54   : > { %517 = vst [vmem:[%s2789_s29 + $0x1b0] sm:$0xff] %v516_v54  ;;  %519 = vst [vmem:[%s2789_s29 + $0x1b8] sm:$0xff] %v518_v55  ;;  %v522_v57 = vld [vmem:[%s2784_s23 + $0x348] sm:$0xff]  ;;  %v524_v58 = vld [vmem:[%s2784_s23 + $0x350] sm:$0xff] }
  0x55   : > { %521 = vst [vmem:[%s2789_s29 + $0x1c0] sm:$0xff] %v520_v56  ;;  %v526_v59 = vld [vmem:[%s2784_s23 + $0x358] sm:$0xff]  ;;  %523 = vst [vmem:[%s2789_s29 + $0x1c8] sm:$0xff] %v522_v57  ;;  %v528_v60 = vld [vmem:[%s2784_s23 + $0x360] sm:$0xff] }
  0x56   : > { %525 = vst [vmem:[%s2789_s29 + $0x1d0] sm:$0xff] %v524_v58  ;;  %527 = vst [vmem:[%s2789_s29 + $0x1d8] sm:$0xff] %v526_v59  ;;  %v530_v61 = vld [vmem:[%s2784_s23 + $0x368] sm:$0xff]  ;;  %v532_v62 = vld [vmem:[%s2784_s23 + $0x370] sm:$0xff] }
  0x57   : > { %529 = vst [vmem:[%s2789_s29 + $0x1e0] sm:$0xff] %v528_v60  ;;  %531 = vst [vmem:[%s2789_s29 + $0x1e8] sm:$0xff] %v530_v61  ;;  %v534_v63 = vld [vmem:[%s2784_s23 + $0x378] sm:$0xff] }
  0x58   : > { %533 = vst [vmem:[%s2789_s29 + $0x1f0] sm:$0xff] %v532_v62  ;;  %535 = vst [vmem:[%s2789_s29 + $0x1f8] sm:$0xff] %v534_v63 }
  0x59 PF: > { %p2393_p7 = scmp.ge.s32.totalorder %s2554_s26, 1  ;;  %p540_p8 = scmp.lt.s32.totalorder %s2554_s26, 3 }
  0x5b   : > { %p541_p9 = pnand %p2393_p7, %p540_p8 }
  0x5c   : > { %v753_v0 = vld [vmem:[%s3736_s2] sm:$0xff] (!%p541_p9)  ;;  %v2556_v2 = vmov (!%p541_p9), 0   ;;  %v754_v3 = vld [vmem:[%s3736_s2 + $0x8] sm:$0xff] (!%p541_p9)  ;;  %v668_v5 = vld [vmem:[%s3735_s1 + $0x18] sm:$0xff] (!%p541_p9)  ;;  %v2557_v13 = vmov (!%p541_p9), 0.0   ;;  %s547_s15 = sand.u32 (!%p541_p9), 1, %s2546_s24  }
  0x5d   : > { %544 = sbr.rel (%p541_p9) target bundleno = 703 (0x2bf), region = 82  ;;  %v665_v1 = vld [vmem:[%s3735_s1] sm:$0xff] (!%p541_p9)  ;;  %2531 = vset.pattern.permute.xlu1 (!%p541_p9), %v2556_v2  ;;  %2530 = vset.pattern.permute.xlu0 (!%p541_p9), %v2556_v2  ;;  %v666_v4 = vld [vmem:[%s3735_s1 + $0x8] sm:$0xff] (!%p541_p9)  ;;  %v667_v6 = vld [vmem:[%s3735_s1 + $0x10] sm:$0xff] (!%p541_p9)  ;;  %s2957_s16 = sshll.u32 (!%p541_p9), %s547_s15, 9  ;;  %vm1125_vm0 = vcmask (!%p541_p9), 261120  }
  0x5e   : > { %759 = vperm.xlu1 (!%p541_p9), %2531, %v753_v0   ;;  %671 = vperm.xlu0 (!%p541_p9), %2530, %v665_v1   ;;  %v756_v7 = vld [vmem:[%s3736_s2 + $0x18] sm:$0xff] (!%p541_p9)  ;;  %v755_v8 = vld [vmem:[%s3736_s2 + $0x10] sm:$0xff] (!%p541_p9)  ;;  %v1102_v9 = vld [vmem:[%s3739_s5 + $0x8] sm:$0xff] (!%p541_p9)  ;;  %s2960_s17 = scalar_lea.vmem (!%p541_p9), [#allocation2], %s2957_s16  ;;  %s3009_s24 = scalar_lea.vmem (!%p541_p9), [#allocation3], %s2957_s16  ;;  %vm2114_vm1 = vcmask (!%p541_p9), 7168  }
  0x5f   : > { %v1101_v10 = vld [vmem:[%s3739_s5] sm:$0xff] (!%p541_p9)  ;;  %v1104_v11 = vld [vmem:[%s3739_s5 + $0x18] sm:$0xff] (!%p541_p9)  ;;  %v1103_v12 = vld [vmem:[%s3739_s5 + $0x10] sm:$0xff] (!%p541_p9)  ;;  %1202 = vmatprep.mubr.f32.mxu0 (!%p541_p9), %v2557_v13  ;;  %1291 = vmatprep.mubr.f32.mxu1 (!%p541_p9), %v2557_v13  ;;  %s3372_s9 = scalar_lea.vmem (!%p541_p9), [#allocation4], %s2957_s16  ;;  %p596_p10 = scmp.lt.s32.totalorder (!%p541_p9), %s2614_s27, 1 }
  0x60   : > { %v602_v14 = vld [vmem:[%s2960_s17 + $0x8] sm:$0xff] (!%p541_p9)  ;;  %v604_v15 = vld [vmem:[%s2960_s17 + $0x18] sm:$0xff] (!%p541_p9)  ;;  %v601_v16 = vld [vmem:[%s2960_s17] sm:$0xff] (!%p541_p9) }
  0x61   : > { %v603_v17 = vld [vmem:[%s2960_s17 + $0x10] sm:$0xff] (!%p541_p9)  ;;  %v606_v18 = vld [vmem:[%s2960_s17 + $0x28] sm:$0xff] (!%p541_p9)  ;;  %v608_v19 = vld [vmem:[%s2960_s17 + $0x38] sm:$0xff] (!%p541_p9) }
  0x62   : > { %764 = vperm.xlu1 (!%p541_p9), %2531, %v754_v3   ;;  %676 = vperm.xlu0 (!%p541_p9), %2530, %v666_v4   ;;  %v605_v20 = vld [vmem:[%s2960_s17 + $0x20] sm:$0xff] (!%p541_p9)  ;;  %v607_v21 = vld [vmem:[%s2960_s17 + $0x30] sm:$0xff] (!%p541_p9)  ;;  %v618_v28 = vld [vmem:[%s2960_s17 + $0x88] sm:$0xff] (!%p541_p9) }
  0x63   : > { %v620_v29 = vld [vmem:[%s2960_s17 + $0x98] sm:$0xff] (!%p541_p9)  ;;  %v617_v36 = vld [vmem:[%s2960_s17 + $0x80] sm:$0xff] (!%p541_p9)  ;;  %v619_v38 = vld [vmem:[%s2960_s17 + $0x90] sm:$0xff] (!%p541_p9) }
  0x64   : > { %v970_v50 = vld [vmem:[%s3009_s24 + $0x8] sm:$0xff]  ;;  %v972_v51 = vld [vmem:[%s3009_s24 + $0x18] sm:$0xff]  ;;  %v969_v60 = vld [vmem:[%s3009_s24] sm:$0xff]  ;;  %s597_s11 = scalar_select %p596_p10, %s2614_s27, 1 }
  0x65   : > { %v971_v61 = vld [vmem:[%s3009_s24 + $0x10] sm:$0xff]  ;;  %v634_v4 = vld [vmem:[%s2960_s17 + $0x108] sm:$0xff]  ;;  %s2439_s15 = sshll.u32 (%p2633_p5), %s2614_s27, 7 }
  0x66   : > { %686 = vperm.xlu1 %2531, %v668_v5   ;;  %681 = vperm.xlu0 %2530, %v667_v6   ;;  %v650_v5 = vld [vmem:[%s2960_s17 + $0x188] sm:$0xff]  ;;  %s2438_s12 = sshll.u32 %s597_s11, 6 }
  0x67   : > { %s600_s26 = scalar_lea.vmem %s3741_s7, %s2438_s12 }
  0x6a   : > { %774 = vperm.xlu1 %2531, %v756_v7   ;;  %769 = vperm.xlu0 %2530, %v755_v8  }
  0x6e   : > { %1112 = vperm.xlu1 %2531, %v1102_v9   ;;  %1107 = vperm.xlu0 %2530, %v1101_v10   ;;  %v636_v10 = vld [vmem:[%s2960_s17 + $0x118] sm:$0xff] }
  0x72   : > { %1122 = vperm.xlu1 %2531, %v1104_v11   ;;  %1117 = vperm.xlu0 %2530, %v1103_v12   ;;  %v652_v11 = vld [vmem:[%s2960_s17 + $0x198] sm:$0xff]  ;;  %v986_v12 = vld [vmem:[%s3009_s24 + $0x88] sm:$0xff] }
  0xdd   : > { %v2970_v22 = vpop.permute.xlu1 %759  ;;  %v2972_v23 = vpop.permute.xlu0 %671 }
  0xde   : > { %v690_v24 = vmul.f32 %v2972_v23, %v602_v14  ;;  %v692_v25 = vmul.f32 %v2972_v23, %v604_v15  ;;  %v689_v26 = vmul.f32 %v2972_v23, %v601_v16  ;;  %v691_v27 = vmul.f32 %v2972_v23, %v603_v17  ;;  %v988_v14 = vld [vmem:[%s3009_s24 + $0x98] sm:$0xff] }
  0xdf   : > { %v694_v30 = vmul.f32 %v2972_v23, %v606_v18  ;;  %v696_v31 = vmul.f32 %v2972_v23, %v608_v19  ;;  %v693_v32 = vmul.f32 %v2972_v23, %v605_v20  ;;  %v695_v33 = vmul.f32 %v2972_v23, %v607_v21  ;;  %v985_v21 = vld [vmem:[%s3009_s24 + $0x80] sm:$0xff] }
  0xe0   : > { %v778_v34 = vadd.f32 %v2970_v22, %v690_v24  ;;  %v780_v35 = vadd.f32 %v2970_v22, %v692_v25  ;;  %v777_v37 = vadd.f32 %v2970_v22, %v689_v26  ;;  %v779_v39 = vadd.f32 %v2970_v22, %v691_v27  ;;  %v987_v24 = vld [vmem:[%s3009_s24 + $0x90] sm:$0xff] }
  0xe1   : > { %v2990_v40 = vpop.permute.xlu1 %764  ;;  %v2992_v41 = vpop.permute.xlu0 %676  ;;  %v2995_v42 = vadd.f32 %v2970_v22, %v694_v30  ;;  %v2998_v43 = vadd.f32 %v2970_v22, %v696_v31  ;;  %v3001_v44 = vadd.f32 %v2970_v22, %v693_v32  ;;  %v3004_v45 = vadd.f32 %v2970_v22, %v695_v33 }
  0xe2   : > { %v706_v46 = vmul.f32 %v2992_v41, %v618_v28  ;;  %v842_v47 = vmul.f32 0.2, %v778_v34  ;;  %v708_v48 = vmul.f32 %v2992_v41, %v620_v29  ;;  %v844_v49 = vmul.f32 0.2, %v780_v35 }
  0xe3   : > { %v705_v52 = vmul.f32 %v2992_v41, %v617_v36  ;;  %v841_v53 = vmul.f32 0.2, %v777_v37  ;;  %v707_v54 = vmul.f32 %v2992_v41, %v619_v38  ;;  %v843_v55 = vmul.f32 0.2, %v779_v39 }
  0xe4   : > { %v794_v56 = vadd.f32 %v2990_v40, %v706_v46  ;;  %v906_v57 = vmax.f32 %v778_v34, %v842_v47  ;;  %v796_v58 = vadd.f32 %v2990_v40, %v708_v48  ;;  %v908_v59 = vmax.f32 %v780_v35, %v844_v49  ;;  %v633_v47 = vld [vmem:[%s2960_s17 + $0x100] sm:$0xff] }
  0xe5   : > { %v3019_v62 = vpop.permute.xlu1 %686  ;;  %v3021_v63 = vpop.permute.xlu0 %681  ;;  %v793_v0 = vadd.f32 %v2990_v40, %v705_v52  ;;  %v905_v1 = vmax.f32 %v777_v37, %v841_v53  ;;  %v795_v2 = vadd.f32 %v2990_v40, %v707_v54  ;;  %v907_v3 = vmax.f32 %v779_v39, %v843_v55  ;;  %v649_v52 = vld [vmem:[%s2960_s17 + $0x180] sm:$0xff]  ;;  %v635_v53 = vld [vmem:[%s2960_s17 + $0x110] sm:$0xff] }
  0xe6   : > { %v858_v6 = vmul.f32 0.2, %v794_v56  ;;  %v1034_v7 = vmul.f32 %v970_v50, %v906_v57  ;;  %v860_v8 = vmul.f32 0.2, %v796_v58  ;;  %v1036_v9 = vmul.f32 %v972_v51, %v908_v59  ;;  %v1018_v57 = vld [vmem:[%s3009_s24 + $0x188] sm:$0xff] }
  0xe7   : > { %v857_v15 = vmul.f32 0.2, %v793_v0  ;;  %v1033_v16 = vmul.f32 %v969_v60, %v905_v1  ;;  %v859_v17 = vmul.f32 0.2, %v795_v2  ;;  %v1035_v18 = vmul.f32 %v971_v61, %v907_v3  ;;  %v1020_v1 = vld [vmem:[%s3009_s24 + $0x198] sm:$0xff]  ;;  %v651_v3 = vld [vmem:[%s2960_s17 + $0x190] sm:$0xff] }
  0xe8   : > { %v922_v19 = vmax.f32 %v794_v56, %v858_v6  ;;  %v924_v20 = vmax.f32 %v796_v58, %v860_v8  ;;  %v722_v25 = vmul.f32 %v3021_v63, %v634_v4  ;;  %v738_v26 = vmul.f32 %v3019_v62, %v650_v5  ;;  %v1002_v56 = vld [vmem:[%s3009_s24 + $0x108] sm:$0xff] }
  0xe9   : > { %v3035_v27 = vpop.permute.xlu1 %774  ;;  %v3037_v28 = vpop.permute.xlu0 %769  ;;  %v921_v29 = vmax.f32 %v793_v0, %v857_v15  ;;  %v923_v30 = vmax.f32 %v795_v2, %v859_v17  ;;  %v724_v31 = vmul.f32 %v3021_v63, %v636_v10  ;;  %v740_v32 = vmul.f32 %v3019_v62, %v652_v11  ;;  %v1004_v0 = vld [vmem:[%s3009_s24 + $0x118] sm:$0xff]  ;;  %v622_v8 = vld [vmem:[%s2960_s17 + $0xa8] sm:$0xff] }
  0xea   : > { %v1050_v33 = vmul.f32 %v986_v12, %v922_v19  ;;  %v1052_v34 = vmul.f32 %v988_v14, %v924_v20  ;;  %v810_v35 = vadd.f32 %v3037_v28, %v722_v25  ;;  %v826_v36 = vadd.f32 %v3035_v27, %v738_v26  ;;  %v624_v19 = vld [vmem:[%s2960_s17 + $0xb8] sm:$0xff]  ;;  %v974_v26 = vld [vmem:[%s3009_s24 + $0x28] sm:$0xff] }
  0xeb   : > { %v1049_v37 = vmul.f32 %v985_v21, %v921_v29  ;;  %v1051_v38 = vmul.f32 %v987_v24, %v923_v30  ;;  %v812_v39 = vadd.f32 %v3037_v28, %v724_v31  ;;  %v828_v46 = vadd.f32 %v3035_v27, %v740_v32  ;;  %v1001_v31 = vld [vmem:[%s3009_s24 + $0x100] sm:$0xff] }
  0xec   : > { %v2440_v48 = vpack.c.bf16 %v1050_v33, %v1034_v7  ;;  %v2448_v49 = vpack.c.bf16 %v1052_v34, %v1036_v9  ;;  %v874_v50 = vmul.f32 0.2, %v810_v35  ;;  %v890_v51 = vmul.f32 0.2, %v826_v36 }
  0xed   : > { %v2442_v54 = vpack.c.bf16 %v1049_v37, %v1033_v16  ;;  %v2450_v55 = vpack.c.bf16 %v1051_v38, %v1035_v18  ;;  %v876_v58 = vmul.f32 0.2, %v812_v39  ;;  %v892_v59 = vmul.f32 0.2, %v828_v46 }
  0xee   : > { %2441 = vmatprep.subr.bf16.mxu0 %v2440_v48  ;;  %2449 = vmatprep.subr.bf16.mxu1 %v2448_v49  ;;  %v938_v60 = vmax.f32 %v810_v35, %v874_v50  ;;  %v954_v61 = vmax.f32 %v826_v36, %v890_v51  ;;  %v721_v2 = vmul.f32 %v3021_v63, %v633_v47  ;;  %v846_v4 = vmul.f32 0.2, %v2995_v42  ;;  %v1017_v35 = vld [vmem:[%s3009_s24 + $0x180] sm:$0xff]  ;;  %v1003_v49 = vld [vmem:[%s3009_s24 + $0x110] sm:$0xff] }
  0xef   : > { %2443 = vmatpush1.bf16.msra.mxu0 %v2442_v54  ;;  %2451 = vmatpush1.bf16.msra.mxu1 %v2450_v55  ;;  %v940_v5 = vmax.f32 %v812_v39, %v876_v58  ;;  %v956_v6 = vmax.f32 %v828_v46, %v892_v59  ;;  %v737_v7 = vmul.f32 %v3019_v62, %v649_v52  ;;  %v848_v9 = vmul.f32 0.2, %v2998_v43  ;;  %v976_v39 = vld [vmem:[%s3009_s24 + $0x38] sm:$0xff]  ;;  %v621_v46 = vld [vmem:[%s2960_s17 + $0xa0] sm:$0xff]  ;;  %v990_v59 = vld [vmem:[%s3009_s24 + $0xa8] sm:$0xff] }
  0xf0   : > { %v1066_v10 = vmul.f32 %v1002_v56, %v938_v60  ;;  %v1082_v11 = vmul.f32 %v1018_v57, %v954_v61  ;;  %v809_v12 = vadd.f32 %v3037_v28, %v721_v2  ;;  %v723_v14 = vmul.f32 %v3021_v63, %v635_v53  ;;  %v1019_v53 = vld [vmem:[%s3009_s24 + $0x190] sm:$0xff] }
  0xf1   : > { %v1068_v15 = vmul.f32 %v1004_v0, %v940_v5  ;;  %v1084_v16 = vmul.f32 %v1020_v1, %v956_v6  ;;  %v825_v17 = vadd.f32 %v3035_v27, %v737_v7  ;;  %v739_v18 = vmul.f32 %v3019_v62, %v651_v3  ;;  %v623_v56 = vld [vmem:[%s2960_s17 + $0xb0] sm:$0xff]  ;;  %v638_v3 = vld [vmem:[%s2960_s17 + $0x128] sm:$0xff]  ;;  %v992_v6 = vld [vmem:[%s3009_s24 + $0xb8] sm:$0xff] }
  0xf2   : > { %v2444_v20 = vpack.c.bf16 %v1082_v11, %v1066_v10  ;;  %v873_v21 = vmul.f32 0.2, %v809_v12  ;;  %v811_v24 = vadd.f32 %v3037_v28, %v723_v14  ;;  %v710_v25 = vmul.f32 %v2992_v41, %v622_v8  ;;  %v973_v8 = vld [vmem:[%s3009_s24 + $0x20] sm:$0xff] }
  0xf3   : > { %v2452_v29 = vpack.c.bf16 %v1084_v16, %v1068_v15  ;;  %v889_v30 = vmul.f32 0.2, %v825_v17  ;;  %v827_v32 = vadd.f32 %v3035_v27, %v739_v18  ;;  %v910_v33 = vmax.f32 %v2995_v42, %v846_v4  ;;  %v654_v15 = vld [vmem:[%s2960_s17 + $0x1a8] sm:$0xff] }
  0xf4   : > { %2445 = vmatprep.subr.bf16.mxu0 %v2444_v20  ;;  %v937_v34 = vmax.f32 %v809_v12, %v873_v21  ;;  %v875_v36 = vmul.f32 0.2, %v811_v24  ;;  %v798_v37 = vadd.f32 %v2990_v40, %v710_v25  ;;  %v712_v38 = vmul.f32 %v2992_v41, %v624_v19  ;;  %v975_v20 = vld [vmem:[%s3009_s24 + $0x30] sm:$0xff] }
  0xf5   : > { %2453 = vmatprep.subr.bf16.mxu1 %v2452_v29  ;;  %v953_v47 = vmax.f32 %v825_v17, %v889_v30  ;;  %v891_v48 = vmul.f32 0.2, %v827_v32  ;;  %v1038_v50 = vmul.f32 %v974_v26, %v910_v33  ;;  %v912_v42 = vmax.f32 %v2998_v43, %v848_v9  ;;  %v3093_v17 = vld [vmem:[%s3738_s4] sm:$0xff] }
  0xf6   : > { %v1065_v51 = vmul.f32 %v1001_v31, %v937_v34  ;;  %v939_v52 = vmax.f32 %v811_v24, %v875_v36  ;;  %v862_v54 = vmul.f32 0.2, %v798_v37  ;;  %v800_v55 = vadd.f32 %v2990_v40, %v712_v38  ;;  %v640_v24 = vld [vmem:[%s2960_s17 + $0x138] sm:$0xff]  ;;  %v989_v26 = vld [vmem:[%s3009_s24 + $0xa0] sm:$0xff]  ;;  %v991_v38 = vld [vmem:[%s3009_s24 + $0xb0] sm:$0xff] }
  0xf7   : > { %v1081_v57 = vmul.f32 %v1017_v35, %v953_v47  ;;  %v955_v58 = vmax.f32 %v827_v32, %v891_v48  ;;  %v1040_v60 = vmul.f32 %v976_v39, %v912_v42  ;;  %v709_v61 = vmul.f32 %v2992_v41, %v621_v46  ;;  %v656_v35 = vld [vmem:[%s2960_s17 + $0x1b8] sm:$0xff]  ;;  %v637_v36 = vld [vmem:[%s2960_s17 + $0x120] sm:$0xff] }
  0xf8   : > { %v1067_v0 = vmul.f32 %v1003_v49, %v939_v52  ;;  %v926_v1 = vmax.f32 %v798_v37, %v862_v54  ;;  %v864_v43 = vmul.f32 0.2, %v800_v55  ;;  %v845_v2 = vmul.f32 0.2, %v3001_v44  ;;  %v653_v42 = vld [vmem:[%s2960_s17 + $0x1a0] sm:$0xff] }
  0xf9   : > { %v2446_v4 = vpack.c.bf16 %v1081_v57, %v1065_v51  ;;  %v1083_v5 = vmul.f32 %v1019_v53, %v955_v58  ;;  %v797_v7 = vadd.f32 %v2990_v40, %v709_v61  ;;  %v711_v9 = vmul.f32 %v2992_v41, %v623_v56  ;;  %v1006_v51 = vld [vmem:[%s3009_s24 + $0x128] sm:$0xff] }
  0xfa   : > { %v1054_v10 = vmul.f32 %v990_v59, %v926_v1  ;;  %v928_v11 = vmax.f32 %v800_v55, %v864_v43  ;;  %v909_v12 = vmax.f32 %v3001_v44, %v845_v2  ;;  %v847_v14 = vmul.f32 0.2, %v3004_v45  ;;  %v639_v55 = vld [vmem:[%s2960_s17 + $0x130] sm:$0xff] }
  0xfb   : > { %2447 = vmatpush1.bf16.msra.mxu0 %v2446_v4  ;;  %v2454_v16 = vpack.c.bf16 %v1083_v5, %v1067_v0  ;;  %v861_v18 = vmul.f32 0.2, %v797_v7  ;;  %v799_v19 = vadd.f32 %v2990_v40, %v711_v9  ;;  %v726_v21 = vmul.f32 %v3021_v63, %v638_v3  ;;  %v655_v2 = vld [vmem:[%s2960_s17 + $0x1b0] sm:$0xff]  ;;  %v610_v3 = vld [vmem:[%s2960_s17 + $0x48] sm:$0xff] }
  0xfc   : > { %v2456_v44 = vpack.c.bf16 %v1054_v10, %v1038_v50  ;;  %v1056_v25 = vmul.f32 %v992_v6, %v928_v11  ;;  %v1037_v29 = vmul.f32 %v973_v8, %v909_v12  ;;  %v911_v30 = vmax.f32 %v3004_v45, %v847_v14  ;;  %v3114_v50 = vld [vmem:[%s3738_s4 + $0x8] sm:$0xff]  ;;  %v3138_v9 = vld [vmem:[%s3738_s4 + $0x10] sm:$0xff] }
  0xfd   : > { %2455 = vmatpush1.bf16.msra.mxu1 %v2454_v16  ;;  %v925_v31 = vmax.f32 %v797_v7, %v861_v18  ;;  %v863_v32 = vmul.f32 0.2, %v799_v19  ;;  %v742_v33 = vmul.f32 %v3019_v62, %v654_v15  ;;  %v814_v34 = vadd.f32 %v3037_v28, %v726_v21  ;;  %v1008_v7 = vld [vmem:[%s3009_s24 + $0x138] sm:$0xff]  ;;  %v626_v15 = vld [vmem:[%s2960_s17 + $0xc8] sm:$0xff] }
  0xfe   : > { %2457 = vmatprep.subr.bf16.mxu0 %v2456_v44  ;;  %v2464_v37 = vpack.c.bf16 %v1056_v25, %v1040_v60  ;;  %2399 = vmatmul.mubr.msk.f32.vlgmr.msra.gmra.mrb[0].mxu0 %vm1125_vm0, %v3093_v17  ;;  %v1039_v39 = vmul.f32 %v975_v20, %v911_v30  ;;  %v728_v45 = vmul.f32 %v3021_v63, %v640_v24  ;;  %v1022_v60 = vld [vmem:[%s3009_s24 + $0x1a8] sm:$0xff]  ;;  %v1024_v18 = vld [vmem:[%s3009_s24 + $0x1b8] sm:$0xff] }
  0xff   : > { %v1053_v46 = vmul.f32 %v989_v26, %v925_v31  ;;  %v927_v47 = vmax.f32 %v799_v19, %v863_v32  ;;  %v830_v48 = vadd.f32 %v3035_v27, %v742_v33  ;;  %v878_v49 = vmul.f32 0.2, %v814_v34  ;;  %1208 = vmatprep.mubr.f32.mxu0 %v2557_v13  ;;  %v1005_v19 = vld [vmem:[%s3009_s24 + $0x120] sm:$0xff]  ;;  %v612_v30 = vld [vmem:[%s2960_s17 + $0x58] sm:$0xff] }
 0x100   : > { %2465 = vmatprep.subr.bf16.mxu1 %v2464_v37  ;;  %2403 = vmatmul.mubr.msk.f32.vlgmr.msra.gmra.mrb[0].mxu1 %vm1125_vm0, %v3093_v17  ;;  %v744_v52 = vmul.f32 %v3019_v62, %v656_v35  ;;  %v816_v53 = vadd.f32 %v3037_v28, %v728_v45  ;;  %v725_v54 = vmul.f32 %v3021_v63, %v637_v36  ;;  %v1021_v32 = vld [vmem:[%s3009_s24 + $0x1a0] sm:$0xff]  ;;  %v628_v36 = vld [vmem:[%s2960_s17 + $0xd8] sm:$0xff] }
 0x101   : > { %v2458_v56 = vpack.c.bf16 %v1053_v46, %v1037_v29  ;;  %v1055_v57 = vmul.f32 %v991_v38, %v927_v47  ;;  %v894_v58 = vmul.f32 0.2, %v830_v48  ;;  %v942_v59 = vmax.f32 %v814_v34, %v878_v49  ;;  %1297 = vmatprep.mubr.f32.mxu1 %v2557_v13  ;;  %v3162_v37 = vld [vmem:[%s3738_s4 + $0x18] sm:$0xff]  ;;  %v1007_v46 = vld [vmem:[%s3009_s24 + $0x130] sm:$0xff] }
 0x102   : > { %v832_v61 = vadd.f32 %v3035_v27, %v744_v52  ;;  %v880_v0 = vmul.f32 0.2, %v816_v53  ;;  %2400 = vmatmul.mubr.msk.f32.gmra.mrb[2].mxu0 %vm1125_vm0, %v3114_v50  ;;  %v741_v1 = vmul.f32 %v3019_v62, %v653_v42  ;;  %v813_v43 = vadd.f32 %v3037_v28, %v725_v54  ;;  %v1023_v54 = vld [vmem:[%s3009_s24 + $0x1b0] sm:$0xff] }
 0x103   : > { %2459 = vmatpush1.bf16.msra.mxu0 %v2458_v56  ;;  %v2466_v4 = vpack.c.bf16 %v1055_v57, %v1039_v39  ;;  %v958_v5 = vmax.f32 %v830_v48, %v894_v58  ;;  %v1070_v6 = vmul.f32 %v1006_v51, %v942_v59  ;;  %v727_v8 = vmul.f32 %v3021_v63, %v639_v55  ;;  %v609_v57 = vld [vmem:[%s2960_s17 + $0x40] sm:$0xff] }
 0x104   : > { %v896_v10 = vmul.f32 0.2, %v832_v61  ;;  %v944_v11 = vmax.f32 %v816_v53, %v880_v0  ;;  %2404 = vmatmul.mubr.msk.f32.gmra.mrb[2].mxu1 %vm1125_vm0, %v3114_v50  ;;  %v829_v12 = vadd.f32 %v3035_v27, %v741_v1  ;;  %v877_v14 = vmul.f32 0.2, %v813_v43  ;;  %1214 = vmatprep.mubr.f32.mxu0 %v2557_v13  ;;  %v625_v1 = vld [vmem:[%s2960_s17 + $0xc0] sm:$0xff] }
 0x105   : > { %2467 = vmatpush1.bf16.msra.mxu1 %v2466_v4  ;;  %v1086_v16 = vmul.f32 %v1022_v60, %v958_v5  ;;  %v743_v20 = vmul.f32 %v3019_v62, %v655_v2  ;;  %v815_v21 = vadd.f32 %v3037_v28, %v727_v8  ;;  %v698_v24 = vmul.f32 %v2972_v23, %v610_v3  ;;  %v994_v4 = vld [vmem:[%s3009_s24 + $0xc8] sm:$0xff] }
 0x106   : > { %v960_v44 = vmax.f32 %v832_v61, %v896_v10  ;;  %v1072_v25 = vmul.f32 %v1008_v7, %v944_v11  ;;  %v893_v26 = vmul.f32 0.2, %v829_v12  ;;  %v941_v29 = vmax.f32 %v813_v43, %v877_v14  ;;  %1303 = vmatprep.mubr.f32.mxu1 %v2557_v13  ;;  %2401 = vmatmul.mubr.msk.f32.gmra.mrb[4].mxu0 %vm1125_vm0, %v3138_v9  ;;  %v978_v61 = vld [vmem:[%s3009_s24 + $0x48] sm:$0xff]  ;;  %v611_v43 = vld [vmem:[%s2960_s17 + $0x50] sm:$0xff] }
 0x107   : > { %v2460_v31 = vpack.c.bf16 %v1086_v16, %v1070_v6  ;;  %v831_v33 = vadd.f32 %v3035_v27, %v743_v20  ;;  %v879_v34 = vmul.f32 0.2, %v815_v21  ;;  %v714_v35 = vmul.f32 %v2992_v41, %v626_v15  ;;  %1220 = vmatprep.mubr.f32.mxu0 %v2557_v13  ;;  %v627_v11 = vld [vmem:[%s2960_s17 + $0xd0] sm:$0xff]  ;;  %v980_v15 = vld [vmem:[%s3009_s24 + $0x58] sm:$0xff] }
 0x108   : > { %v1088_v38 = vmul.f32 %v1024_v18, %v960_v44  ;;  %v957_v39 = vmax.f32 %v829_v12, %v893_v26  ;;  %v1069_v45 = vmul.f32 %v1005_v19, %v941_v29  ;;  %v786_v47 = vadd.f32 %v2970_v22, %v698_v24  ;;  %2405 = vmatmul.mubr.msk.f32.gmra.mrb[4].mxu1 %vm1125_vm0, %v3138_v9  ;;  %v642_v19 = vld [vmem:[%s2960_s17 + $0x148] sm:$0xff]  ;;  %v996_v44 = vld [vmem:[%s3009_s24 + $0xd8] sm:$0xff] }
 0x109   : > { %2461 = vmatprep.subr.bf16.mxu0 %v2460_v31  ;;  %v895_v48 = vmul.f32 0.2, %v831_v33  ;;  %v943_v49 = vmax.f32 %v815_v21, %v879_v34  ;;  %v802_v42 = vadd.f32 %v2990_v40, %v714_v35  ;;  %v700_v51 = vmul.f32 %v2972_v23, %v612_v30  ;;  %1309 = vmatprep.mubr.f32.mxu1 %v2557_v13 }
 0x10a   : > { %v2468_v52 = vpack.c.bf16 %v1088_v38, %v1072_v25  ;;  %v1085_v53 = vmul.f32 %v1021_v32, %v957_v39  ;;  %v850_v55 = vmul.f32 0.2, %v786_v47  ;;  %v716_v56 = vmul.f32 %v2992_v41, %v628_v36  ;;  %2402 = vmatmul.mubr.msk.f32.gmra.mrb[6].mxu0 %vm1125_vm0, %v3162_v37  ;;  %v658_v32 = vld [vmem:[%s2960_s17 + $0x1c8] sm:$0xff] }
 0x10b   : > { %v959_v58 = vmax.f32 %v831_v33, %v895_v48  ;;  %v1071_v59 = vmul.f32 %v1007_v46, %v943_v49  ;;  %v866_v60 = vmul.f32 0.2, %v802_v42  ;;  %v788_v0 = vadd.f32 %v2970_v22, %v700_v51  ;;  %1380 = vmatprep.mubr.f32.mxu0 %v2557_v13  ;;  %v644_v33 = vld [vmem:[%s2960_s17 + $0x158] sm:$0xff]  ;;  %v977_v46 = vld [vmem:[%s3009_s24 + $0x40] sm:$0xff] }
 0x10c   : > { %2469 = vmatprep.subr.bf16.mxu1 %v2468_v52  ;;  %v2462_v2 = vpack.c.bf16 %v1085_v53, %v1069_v45  ;;  %v914_v3 = vmax.f32 %v786_v47, %v850_v55  ;;  %v804_v5 = vadd.f32 %v2990_v40, %v716_v56  ;;  %2406 = vmatmul.mubr.msk.f32.gmra.mrb[6].mxu1 %vm1125_vm0, %v3162_v37  ;;  %v660_v49 = vld [vmem:[%s2960_s17 + $0x1d8] sm:$0xff]  ;;  %v993_v51 = vld [vmem:[%s3009_s24 + $0xc0] sm:$0xff]  ;;  %v979_v52 = vld [vmem:[%s3009_s24 + $0x50] sm:$0xff] }
 0x10d   : > { %v1087_v6 = vmul.f32 %v1023_v54, %v959_v58  ;;  %v930_v7 = vmax.f32 %v802_v42, %v866_v60  ;;  %v852_v8 = vmul.f32 0.2, %v788_v0  ;;  %1469 = vmatprep.mubr.f32.mxu1 %v2557_v13  ;;  %v697_v10 = vmul.f32 %v2972_v23, %v609_v57  ;;  %v641_v60 = vld [vmem:[%s2960_s17 + $0x140] sm:$0xff] }
 0x10e   : > { %2463 = vmatpush1.bf16.msra.mxu0 %v2462_v2  ;;  %v1042_v12 = vmul.f32 %v978_v61, %v914_v3  ;;  %v868_v14 = vmul.f32 0.2, %v804_v5  ;;  %v713_v16 = vmul.f32 %v2992_v41, %v625_v1  ;;  %v699_v18 = vmul.f32 %v2972_v23, %v611_v43  ;;  %v657_v3 = vld [vmem:[%s2960_s17 + $0x1c0] sm:$0xff] }
 0x10f   : > { %v2470_v20 = vpack.c.bf16 %v1087_v6, %v1071_v59  ;;  %v1058_v21 = vmul.f32 %v994_v4, %v930_v7  ;;  %v916_v24 = vmax.f32 %v788_v0, %v852_v8  ;;  %v785_v25 = vadd.f32 %v2970_v22, %v697_v10  ;;  %v995_v0 = vld [vmem:[%s3009_s24 + $0xd0] sm:$0xff]  ;;  %v1010_v7 = vld [vmem:[%s3009_s24 + $0x148] sm:$0xff] }
 0x110   : > { %v932_v26 = vmax.f32 %v804_v5, %v868_v14  ;;  %v801_v29 = vadd.f32 %v2990_v40, %v713_v16  ;;  %v715_v30 = vmul.f32 %v2992_v41, %v627_v11  ;;  %v787_v31 = vadd.f32 %v2970_v22, %v699_v18 }
 0x111   : > { %2471 = vmatpush1.bf16.msra.mxu1 %v2470_v20  ;;  %v2472_v34 = vpack.c.bf16 %v1058_v21, %v1042_v12  ;;  %v1044_v35 = vmul.f32 %v980_v15, %v916_v24  ;;  %2407 = vmatmul.mubr.msk.f32.vlgmr.msra.gmra.mrb[8].mxu0 %vm1125_vm0, %v3093_v17  ;;  %v849_v36 = vmul.f32 0.2, %v785_v25  ;;  %v730_v38 = vmul.f32 %v3021_v63, %v642_v19  ;;  %v643_v15 = vld [vmem:[%s2960_s17 + $0x150] sm:$0xff]  ;;  %v1026_v19 = vld [vmem:[%s3009_s24 + $0x1c8] sm:$0xff] }
 0x112   : > { %v1060_v39 = vmul.f32 %v996_v44, %v932_v26  ;;  %v865_v45 = vmul.f32 0.2, %v801_v29  ;;  %v803_v47 = vadd.f32 %v2990_v40, %v715_v30  ;;  %v851_v48 = vmul.f32 0.2, %v787_v31  ;;  %1386 = vmatprep.mubr.f32.mxu0 %v2557_v13  ;;  %v659_v24 = vld [vmem:[%s2960_s17 + $0x1d0] sm:$0xff] }
 0x113   : > { %2473 = vmatprep.subr.bf16.mxu0 %v2472_v34  ;;  %v913_v42 = vmax.f32 %v785_v25, %v849_v36  ;;  %v746_v53 = vmul.f32 %v3019_v62, %v658_v32  ;;  %v818_v54 = vadd.f32 %v3037_v28, %v730_v38  ;;  %v732_v55 = vmul.f32 %v3021_v63, %v644_v33  ;;  %v1028_v34 = vld [vmem:[%s3009_s24 + $0x1d8] sm:$0xff] }
 0x114   : > { %v2480_v56 = vpack.c.bf16 %v1060_v39, %v1044_v35  ;;  %2411 = vmatmul.mubr.msk.f32.vlgmr.msra.gmra.mrb[8].mxu1 %vm1125_vm0, %v3093_v17  ;;  %v929_v57 = vmax.f32 %v801_v29, %v865_v45  ;;  %v867_v58 = vmul.f32 0.2, %v803_v47  ;;  %v915_v59 = vmax.f32 %v787_v31, %v851_v48  ;;  %v1012_v29 = vld [vmem:[%s3009_s24 + $0x158] sm:$0xff]  ;;  %v614_v31 = vld [vmem:[%s2960_s17 + $0x68] sm:$0xff] }
 0x115   : > { %v1041_v61 = vmul.f32 %v977_v46, %v913_v42  ;;  %v834_v1 = vadd.f32 %v3035_v27, %v746_v53  ;;  %v882_v43 = vmul.f32 0.2, %v818_v54  ;;  %v748_v2 = vmul.f32 %v3019_v62, %v660_v49  ;;  %1475 = vmatprep.mubr.f32.mxu1 %v2557_v13  ;;  %2408 = vmatmul.mubr.msk.f32.gmra.mrb[10].mxu0 %vm1125_vm0, %v3114_v50  ;;  %v1009_v42 = vld [vmem:[%s3009_s24 + $0x140] sm:$0xff]  ;;  %v616_v53 = vld [vmem:[%s2960_s17 + $0x78] sm:$0xff] }
 0x116   : > { %2481 = vmatprep.subr.bf16.mxu1 %v2480_v56  ;;  %v1057_v4 = vmul.f32 %v993_v51, %v929_v57  ;;  %v931_v5 = vmax.f32 %v803_v47, %v867_v58  ;;  %v1043_v6 = vmul.f32 %v979_v52, %v915_v59  ;;  %v820_v8 = vadd.f32 %v3037_v28, %v732_v55  ;;  %v630_v47 = vld [vmem:[%s2960_s17 + $0xe8] sm:$0xff]  ;;  %v1025_v57 = vld [vmem:[%s3009_s24 + $0x1c0] sm:$0xff] }
 0x117   : > { %v898_v10 = vmul.f32 0.2, %v834_v1  ;;  %v946_v11 = vmax.f32 %v818_v54, %v882_v43  ;;  %v836_v12 = vadd.f32 %v3035_v27, %v748_v2  ;;  %v729_v14 = vmul.f32 %v3021_v63, %v641_v60  ;;  %1392 = vmatprep.mubr.f32.mxu0 %v2557_v13 }
 0x118   : > { %v2474_v16 = vpack.c.bf16 %v1057_v4, %v1041_v61  ;;  %v1059_v18 = vmul.f32 %v995_v0, %v931_v5  ;;  %v884_v20 = vmul.f32 0.2, %v820_v8  ;;  %2412 = vmatmul.mubr.msk.f32.gmra.mrb[10].mxu1 %vm1125_vm0, %v3114_v50  ;;  %v745_v21 = vmul.f32 %v3019_v62, %v657_v3  ;;  %v1011_v4 = vld [vmem:[%s3009_s24 + $0x150] sm:$0xff] }
 0x119   : > { %v962_v44 = vmax.f32 %v834_v1, %v898_v10  ;;  %v1074_v25 = vmul.f32 %v1010_v7, %v946_v11  ;;  %v900_v26 = vmul.f32 0.2, %v836_v12  ;;  %v817_v30 = vadd.f32 %v3037_v28, %v729_v14  ;;  %1481 = vmatprep.mubr.f32.mxu1 %v2557_v13  ;;  %2409 = vmatmul.mubr.msk.f32.gmra.mrb[12].mxu0 %vm1125_vm0, %v3138_v9  ;;  %v632_v1 = vld [vmem:[%s2960_s17 + $0xf8] sm:$0xff] }
 0x11a   : > { %2475 = vmatpush1.bf16.msra.mxu0 %v2474_v16  ;;  %v2482_v32 = vpack.c.bf16 %v1059_v18, %v1043_v6  ;;  %v948_v33 = vmax.f32 %v820_v8, %v884_v20  ;;  %v833_v35 = vadd.f32 %v3035_v27, %v745_v21  ;;  %v731_v36 = vmul.f32 %v3021_v63, %v643_v15  ;;  %v1027_v8 = vld [vmem:[%s3009_s24 + $0x1d0] sm:$0xff]  ;;  %v982_v15 = vld [vmem:[%s3009_s24 + $0x68] sm:$0xff] }
 0x11b   : > { %v1090_v38 = vmul.f32 %v1026_v19, %v962_v44  ;;  %v964_v39 = vmax.f32 %v836_v12, %v900_v26  ;;  %v881_v45 = vmul.f32 0.2, %v817_v30  ;;  %v747_v46 = vmul.f32 %v3019_v62, %v659_v24  ;;  %1398 = vmatprep.mubr.f32.mxu0 %v2557_v13  ;;  %v613_v12 = vld [vmem:[%s2960_s17 + $0x60] sm:$0xff]  ;;  %v615_v20 = vld [vmem:[%s2960_s17 + $0x70] sm:$0xff] }
 0x11c   : > { %2483 = vmatpush1.bf16.msra.mxu1 %v2482_v32  ;;  %v1076_v48 = vmul.f32 %v1012_v29, %v948_v33  ;;  %v897_v49 = vmul.f32 0.2, %v833_v35  ;;  %v819_v51 = vadd.f32 %v3037_v28, %v731_v36  ;;  %v702_v52 = vmul.f32 %v2972_v23, %v614_v31  ;;  %v629_v19 = vld [vmem:[%s2960_s17 + $0xe0] sm:$0xff]  ;;  %v998_v29 = vld [vmem:[%s3009_s24 + $0xe8] sm:$0xff]  ;;  %v631_v33 = vld [vmem:[%s2960_s17 + $0xf0] sm:$0xff] }
 0x11d   : > { %v2476_v54 = vpack.c.bf16 %v1090_v38, %v1074_v25  ;;  %v1092_v55 = vmul.f32 %v1028_v34, %v964_v39  ;;  %v945_v56 = vmax.f32 %v817_v30, %v881_v45  ;;  %v835_v58 = vadd.f32 %v3035_v27, %v747_v46  ;;  %2413 = vmatmul.mubr.msk.f32.gmra.mrb[12].mxu1 %vm1125_vm0, %v3138_v9  ;;  %v984_v36 = vld [vmem:[%s3009_s24 + $0x78] sm:$0xff]  ;;  %v646_v45 = vld [vmem:[%s2960_s17 + $0x168] sm:$0xff] }
 0x11e   : > { %v961_v59 = vmax.f32 %v833_v35, %v897_v49  ;;  %v883_v60 = vmul.f32 0.2, %v819_v51  ;;  %v718_v61 = vmul.f32 %v2992_v41, %v630_v47  ;;  %v790_v0 = vadd.f32 %v2970_v22, %v702_v52  ;;  %1487 = vmatprep.mubr.f32.mxu1 %v2557_v13  ;;  %2410 = vmatmul.mubr.msk.f32.gmra.mrb[14].mxu0 %vm1125_vm0, %v3162_v37 }
 0x11f   : > { %2477 = vmatprep.subr.bf16.mxu0 %v2476_v54  ;;  %v2484_v43 = vpack.c.bf16 %v1092_v55, %v1076_v48  ;;  %v1073_v2 = vmul.f32 %v1009_v42, %v945_v56  ;;  %v899_v3 = vmul.f32 0.2, %v835_v58  ;;  %v704_v5 = vmul.f32 %v2972_v23, %v616_v53  ;;  %1558 = vmatprep.mubr.f32.mxu0 %v2557_v13  ;;  %v662_v55 = vld [vmem:[%s2960_s17 + $0x1e8] sm:$0xff] }
 0x120   : > { %v1089_v6 = vmul.f32 %v1025_v57, %v961_v59  ;;  %v947_v7 = vmax.f32 %v819_v51, %v883_v60  ;;  %v806_v10 = vadd.f32 %v2990_v40, %v718_v61  ;;  %v854_v11 = vmul.f32 0.2, %v790_v0  ;;  %v1000_v51 = vld [vmem:[%s3009_s24 + $0xf8] sm:$0xff] }
 0x121   : > { %2485 = vmatprep.subr.bf16.mxu1 %v2484_v43  ;;  %v963_v14 = vmax.f32 %v835_v58, %v899_v3  ;;  %v720_v16 = vmul.f32 %v2992_v41, %v632_v1  ;;  %v792_v18 = vadd.f32 %v2970_v22, %v704_v5  ;;  %2414 = vmatmul.mubr.msk.f32.gmra.mrb[14].mxu1 %vm1125_vm0, %v3162_v37  ;;  %v648_v59 = vld [vmem:[%s2960_s17 + $0x178] sm:$0xff]  ;;  %v983_v3 = vld [vmem:[%s3009_s24 + $0x70] sm:$0xff] }
 0x122   : > { %v2478_v21 = vpack.c.bf16 %v1089_v6, %v1073_v2  ;;  %v1075_v24 = vmul.f32 %v1011_v4, %v947_v7  ;;  %v870_v44 = vmul.f32 0.2, %v806_v10  ;;  %v918_v25 = vmax.f32 %v790_v0, %v854_v11  ;;  %1647 = vmatprep.mubr.f32.mxu1 %v2557_v13  ;;  %v981_v0 = vld [vmem:[%s3009_s24 + $0x60] sm:$0xff]  ;;  %v664_v6 = vld [vmem:[%s2960_s17 + $0x1f8] sm:$0xff] }
 0x123   : > { %v1091_v26 = vmul.f32 %v1027_v8, %v963_v14  ;;  %v808_v30 = vadd.f32 %v2990_v40, %v720_v16  ;;  %v856_v31 = vmul.f32 0.2, %v792_v18  ;;  %v701_v32 = vmul.f32 %v2972_v23, %v613_v12  ;;  %v997_v2 = vld [vmem:[%s3009_s24 + $0xe0] sm:$0xff] }
 0x124   : > { %2479 = vmatpush1.bf16.msra.mxu0 %v2478_v21  ;;  %v934_v34 = vmax.f32 %v806_v10, %v870_v44  ;;  %v1046_v35 = vmul.f32 %v982_v15, %v918_v25  ;;  %v717_v38 = vmul.f32 %v2992_v41, %v629_v19  ;;  %v703_v39 = vmul.f32 %v2972_v23, %v615_v20  ;;  %v645_v11 = vld [vmem:[%s2960_s17 + $0x160] sm:$0xff]  ;;  %v999_v15 = vld [vmem:[%s3009_s24 + $0xf0] sm:$0xff]  ;;  %v1014_v44 = vld [vmem:[%s3009_s24 + $0x168] sm:$0xff] }
 0x125   : > { %v2486_v46 = vpack.c.bf16 %v1091_v26, %v1075_v24  ;;  %v872_v47 = vmul.f32 0.2, %v808_v30  ;;  %v920_v48 = vmax.f32 %v792_v18, %v856_v31  ;;  %v789_v49 = vadd.f32 %v2970_v22, %v701_v32  ;;  %v661_v19 = vld [vmem:[%s2960_s17 + $0x1e0] sm:$0xff]  ;;  %v647_v32 = vld [vmem:[%s2960_s17 + $0x170] sm:$0xff] }
 0x126   : > { %v1062_v42 = vmul.f32 %v998_v29, %v934_v34  ;;  %v805_v52 = vadd.f32 %v2990_v40, %v717_v38  ;;  %v719_v53 = vmul.f32 %v2992_v41, %v631_v33  ;;  %v791_v54 = vadd.f32 %v2970_v22, %v703_v39  ;;  %v663_v39 = vld [vmem:[%s2960_s17 + $0x1f0] sm:$0xff] }
 0x127   : > { %2487 = vmatpush1.bf16.msra.mxu1 %v2486_v46  ;;  %v936_v23 = vmax.f32 %v808_v30, %v872_v47  ;;  %v1048_v56 = vmul.f32 %v984_v36, %v920_v48  ;;  %2415 = vmatmul.mubr.msk.f32.vlgmr.msra.gmra.mrb[16].mxu0 %vm1125_vm0, %v3093_v17  ;;  %v853_v57 = vmul.f32 0.2, %v789_v49  ;;  %v734_v58 = vmul.f32 %v3021_v63, %v646_v45 }
 0x128   : > { %v2488_v60 = vpack.c.bf16 %v1062_v42, %v1046_v35  ;;  %v869_v61 = vmul.f32 0.2, %v805_v52  ;;  %v807_v41 = vadd.f32 %v2990_v40, %v719_v53  ;;  %v855_v22 = vmul.f32 0.2, %v791_v54  ;;  %1564 = vmatprep.mubr.f32.mxu0 %v2557_v13  ;;  %v1030_v35 = vld [vmem:[%s3009_s24 + $0x1e8] sm:$0xff] }
 0x129   : > { %v1064_v1 = vmul.f32 %v1000_v51, %v936_v23  ;;  %v917_v43 = vmax.f32 %v789_v49, %v853_v57  ;;  %v750_v4 = vmul.f32 %v3019_v62, %v662_v55  ;;  %v822_v5 = vadd.f32 %v3037_v28, %v734_v58  ;;  %v1016_v51 = vld [vmem:[%s3009_s24 + $0x178] sm:$0xff] }
 0x12a   : > { %2489 = vmatprep.subr.bf16.mxu0 %v2488_v60  ;;  %2419 = vmatmul.mubr.msk.f32.vlgmr.msra.gmra.mrb[16].mxu1 %vm1125_vm0, %v3093_v17  ;;  %v933_v40 = vmax.f32 %v805_v52, %v869_v61  ;;  %v871_v7 = vmul.f32 0.2, %v807_v41  ;;  %v919_v8 = vmax.f32 %v791_v54, %v855_v22  ;;  %v736_v10 = vmul.f32 %v3021_v63, %v648_v59  ;;  %v1032_v23 = vld [vmem:[%s3009_s24 + $0x1f8] sm:$0xff]  ;;  %v1013_v60 = vld [vmem:[%s3009_s24 + $0x160] sm:$0xff] }
 0x12b   : > { %v2496_v12 = vpack.c.bf16 %v1064_v1, %v1048_v56  ;;  %v1045_v14 = vmul.f32 %v981_v0, %v917_v43  ;;  %v838_v16 = vadd.f32 %v3035_v27, %v750_v4  ;;  %v886_v18 = vmul.f32 0.2, %v822_v5  ;;  %1653 = vmatprep.mubr.f32.mxu1 %v2557_v13  ;;  %2416 = vmatmul.mubr.msk.f32.gmra.mrb[18].mxu0 %vm1125_vm0, %v3114_v50  ;;  %v1029_v1 = vld [vmem:[%s3009_s24 + $0x1e0] sm:$0xff]  ;;  %v1015_v4 = vld [vmem:[%s3009_s24 + $0x170] sm:$0xff] }
 0x12c   : > { %v1061_v20 = vmul.f32 %v997_v2, %v933_v40  ;;  %v935_v21 = vmax.f32 %v807_v41, %v871_v7  ;;  %v1047_v24 = vmul.f32 %v983_v3, %v919_v8  ;;  %v752_v25 = vmul.f32 %v3019_v62, %v664_v6  ;;  %1570 = vmatprep.mubr.f32.mxu0 %v2557_v13  ;;  %v1031_v40 = vld [vmem:[%s3009_s24 + $0x1f0] sm:$0xff]  ;;  %s3597_s24 = scalar_lea.vmem (%p2633_p5), %s3740_s6, %s2439_s15 }
 0x12d   : > { %2497 = vmatprep.subr.bf16.mxu1 %v2496_v12  ;;  %v902_v26 = vmul.f32 0.2, %v838_v16  ;;  %v950_v29 = vmax.f32 %v822_v5, %v886_v18  ;;  %v824_v30 = vadd.f32 %v3037_v28, %v736_v10  ;;  %v733_v31 = vmul.f32 %v3021_v63, %v645_v11 }
 0x12e   : > { %v2490_v33 = vpack.c.bf16 %v1061_v20, %v1045_v14  ;;  %v1063_v34 = vmul.f32 %v999_v15, %v935_v21  ;;  %v840_v36 = vadd.f32 %v3035_v27, %v752_v25  ;;  %2420 = vmatmul.mubr.msk.f32.gmra.mrb[18].mxu1 %vm1125_vm0, %v3114_v50  ;;  %v749_v38 = vmul.f32 %v3019_v62, %v661_v19  ;;  %v3376_v19 = vpop.permute.xlu1 %1112 }
 0x12f   : > { %v966_v45 = vmax.f32 %v838_v16, %v902_v26  ;;  %v1078_v46 = vmul.f32 %v1014_v44, %v950_v29  ;;  %v888_v47 = vmul.f32 0.2, %v824_v30  ;;  %v821_v48 = vadd.f32 %v3037_v28, %v733_v31  ;;  %1659 = vmatprep.mubr.f32.mxu1 %v2557_v13  ;;  %2417 = vmatmul.mubr.msk.f32.gmra.mrb[20].mxu0 %vm1125_vm0, %v3138_v9 }
 0x130   : > { %2491 = vmatpush1.bf16.msra.mxu0 %v2490_v33  ;;  %v2498_v49 = vpack.c.bf16 %v1063_v34, %v1047_v24  ;;  %v904_v42 = vmul.f32 0.2, %v840_v36  ;;  %v837_v52 = vadd.f32 %v3035_v27, %v749_v38  ;;  %v735_v53 = vmul.f32 %v3021_v63, %v647_v32  ;;  %1576 = vmatprep.mubr.f32.mxu0 %v2557_v13 }
 0x131   : > { %v1094_v54 = vmul.f32 %v1030_v35, %v966_v45  ;;  %v952_v55 = vmax.f32 %v824_v30, %v888_v47  ;;  %v885_v56 = vmul.f32 0.2, %v821_v48  ;;  %v751_v57 = vmul.f32 %v3019_v62, %v663_v39 }
 0x132   : > { %2499 = vmatpush1.bf16.msra.mxu1 %v2498_v49  ;;  %v968_v58 = vmax.f32 %v840_v36, %v904_v42  ;;  %v901_v59 = vmul.f32 0.2, %v837_v52  ;;  %v823_v61 = vadd.f32 %v3037_v28, %v735_v53 }
 0x133   : > { %v2492_v0 = vpack.c.bf16 %v1094_v54, %v1078_v46  ;;  %v1080_v41 = vmul.f32 %v1016_v51, %v952_v55  ;;  %v949_v22 = vmax.f32 %v821_v48, %v885_v56  ;;  %v839_v63 = vadd.f32 %v3035_v27, %v751_v57  ;;  %2421 = vmatmul.mubr.msk.f32.gmra.mrb[20].mxu1 %vm1125_vm0, %v3138_v9 }
 0x134   : > { %v1096_v43 = vmul.f32 %v1032_v23, %v968_v58  ;;  %v965_v2 = vmax.f32 %v837_v52, %v901_v59  ;;  %v887_v62 = vmul.f32 0.2, %v823_v61  ;;  %1665 = vmatprep.mubr.f32.mxu1 %v2557_v13  ;;  %2418 = vmatmul.mubr.msk.f32.gmra.mrb[22].mxu0 %vm1125_vm0, %v3162_v37 }
 0x135   : > { %2493 = vmatprep.subr.bf16.mxu0 %v2492_v0  ;;  %v1077_v28 = vmul.f32 %v1013_v60, %v949_v22  ;;  %v903_v3 = vmul.f32 0.2, %v839_v63  ;;  %1736 = vmatprep.mubr.f32.mxu0 %v2557_v13  ;;  %v3400_v0 = vpop.permute.xlu1 %1122 }
 0x136   : > { %v2500_v5 = vpack.c.bf16 %v1096_v43, %v1080_v41  ;;  %v1093_v6 = vmul.f32 %v1029_v1, %v965_v2  ;;  %v951_v27 = vmax.f32 %v823_v61, %v887_v62 }
 0x137   : > { %v967_v7 = vmax.f32 %v839_v63, %v903_v3  ;;  %2422 = vmatmul.mubr.msk.f32.gmra.mrb[22].mxu1 %vm1125_vm0, %v3162_v37 }
 0x138   : > { %2501 = vmatprep.subr.bf16.mxu1 %v2500_v5  ;;  %v2494_v8 = vpack.c.bf16 %v1093_v6, %v1077_v28  ;;  %v1079_v10 = vmul.f32 %v1015_v4, %v951_v27  ;;  %1825 = vmatprep.mubr.f32.mxu1 %v2557_v13 }
 0x139   : > { %v1095_v11 = vmul.f32 %v1031_v40, %v967_v7 }
 0x13a   : > { %2495 = vmatpush1.bf16.msra.mxu0 %v2494_v8 }
 0x13b   : > { %v2502_v12 = vpack.c.bf16 %v1095_v11, %v1079_v10 }
 0x13d   : > { %2503 = vmatpush1.bf16.msra.mxu1 %v2502_v12  ;;  %2423 = vmatmul.mubr.msk.f32.vlgmr.msra.gmra.mrb[24].mxu0 %vm1125_vm0, %v3093_v17 }
 0x13e   : > { %1742 = vmatprep.mubr.f32.mxu0 %v2557_v13 }
 0x140   : > { %2427 = vmatmul.mubr.msk.f32.vlgmr.msra.gmra.mrb[24].mxu1 %vm1125_vm0, %v3093_v17  ;;  %v3367_v17 = vpop.permute.xlu0 %1107 }
 0x141   : > { %1831 = vmatprep.mubr.f32.mxu1 %v2557_v13  ;;  %2424 = vmatmul.mubr.msk.f32.gmra.mrb[26].mxu0 %vm1125_vm0, %v3114_v50 }
 0x142   : > { %1748 = vmatprep.mubr.f32.mxu0 %v2557_v13 }
 0x144   : > { %2428 = vmatmul.mubr.msk.f32.gmra.mrb[26].mxu1 %vm1125_vm0, %v3114_v50  ;;  %v3386_v39 = vpop.permute.xlu0 %1117 }
 0x145   : > { %1837 = vmatprep.mubr.f32.mxu1 %v2557_v13  ;;  %2425 = vmatmul.mubr.msk.f32.gmra.mrb[28].mxu0 %vm1125_vm0, %v3138_v9 }
 0x146   : > { %1754 = vmatprep.mubr.f32.mxu0 %v2557_v13 }
 0x148   : > { %2429 = vmatmul.mubr.msk.f32.gmra.mrb[28].mxu1 %vm1125_vm0, %v3138_v9 }
 0x149   : > { %1843 = vmatprep.mubr.f32.mxu1 %v2557_v13  ;;  %2426 = vmatmul.mubr.msk.f32.gmra.mrb[30].mxu0 %vm1125_vm0, %v3162_v37 }
 0x14c   : > { %2430 = vmatmul.mubr.msk.f32.gmra.mrb[30].mxu1 %vm1125_vm0, %v3162_v37 }
 0x1d1   : > { %v1204_v50 = vpop.f32.mrb[0].mxu0 }
 0x1d2   : > { %v1205_v14 = vadd.f32 %v1204_v50, %v3367_v17  ;;  %v1206_v15 = vpop.f32.mrb[1].mxu0 }
 0x1d3   : > { %v1293_v16 = vpop.f32.mrb[0].mxu1  ;;  %v1207_v18 = vadd.f32 %v1206_v15, %v3367_v17 }
 0x1d4   : > { %1850 = vst [vmem:[%s3372_s9] sm:$0xff] %v1205_v14  ;;  %v1982_v13 = vmul.f32 %v1205_v14, %v1205_v14  ;;  %v1294_v9 = vadd.f32 %v1293_v16, %v3367_v17  ;;  %v1295_v37 = vpop.f32.mrb[1].mxu1 }
 0x1d5   : > { %1851 = vst [vmem:[%s3372_s9 + $0x8] sm:$0xff] %v1207_v18  ;;  %v1914_v20 = vadd.f32 %v1207_v18, %v1205_v14  ;;  %v1983_v21 = vmul.f32 %v1207_v18, %v1207_v18  ;;  %v1296_v24 = vadd.f32 %v1295_v37, %v3367_v17  ;;  %v1210_v44 = vpop.f32.mrb[2].mxu0 }
 0x1d6   : > { %1852 = vst [vmem:[%s3372_s9 + $0x10] sm:$0xff] %v1294_v9  ;;  %v1211_v25 = vadd.f32 %v1210_v44, %v3376_v19  ;;  %v1212_v26 = vpop.f32.mrb[3].mxu0  ;;  %v1984_v29 = vmul.f32 %v1294_v9, %v1294_v9 }
 0x1d7   : > { %v2046_v30 = vadd.f32 %v1983_v21, %v1982_v13  ;;  %1853 = vst [vmem:[%s3372_s9 + $0x18] sm:$0xff] %v1296_v24  ;;  %v1915_v31 = vadd.f32 %v1914_v20, %v1294_v9  ;;  %v1299_v32 = vpop.f32.mrb[2].mxu1  ;;  %v1213_v33 = vadd.f32 %v1212_v26, %v3376_v19  ;;  %v1985_v34 = vmul.f32 %v1296_v24, %v1296_v24 }
 0x1d8   : > { %1866 = vst [vmem:[%s3372_s9 + $0x80] sm:$0xff] %v1211_v25  ;;  %v1998_v35 = vmul.f32 %v1211_v25, %v1211_v25  ;;  %v1300_v36 = vadd.f32 %v1299_v32, %v3376_v19  ;;  %v1301_v38 = vpop.f32.mrb[3].mxu1 }
 0x1d9   : > { %v3388_v45 = vadd.f32 %v1915_v31, %v1296_v24  ;;  %v2047_v46 = vadd.f32 %v2046_v30, %v1984_v29  ;;  %1867 = vst [vmem:[%s3372_s9 + $0x88] sm:$0xff] %v1213_v33  ;;  %v1931_v47 = vadd.f32 %v1213_v33, %v1211_v25  ;;  %v1999_v48 = vmul.f32 %v1213_v33, %v1213_v33  ;;  %v1216_v49 = vpop.f32.mrb[4].mxu0 }
 0x1da   : > { %1868 = vst [vmem:[%s3372_s9 + $0x90] sm:$0xff] %v1300_v36  ;;  %v2000_v42 = vmul.f32 %v1300_v36, %v1300_v36  ;;  %v1302_v51 = vadd.f32 %v1301_v38, %v3376_v19  ;;  %v1217_v52 = vadd.f32 %v1216_v49, %v3386_v39  ;;  %v1218_v53 = vpop.f32.mrb[5].mxu0 }
 0x1db   : > { %v3394_v54 = vadd.f32 %v2047_v46, %v1985_v34  ;;  %v2063_v55 = vadd.f32 %v1999_v48, %v1998_v35  ;;  %v1932_v23 = vadd.f32 %v1931_v47, %v1300_v36  ;;  %v1305_v56 = vpop.f32.mrb[4].mxu1  ;;  %v1219_v57 = vadd.f32 %v1218_v53, %v3386_v39 }
 0x1dc   : > { %1869 = vst [vmem:[%s3372_s9 + $0x98] sm:$0xff] %v1302_v51  ;;  %v2001_v58 = vmul.f32 %v1302_v51, %v1302_v51  ;;  %1882 = vst [vmem:[%s3372_s9 + $0x100] sm:$0xff] %v1217_v52  ;;  %v2014_v59 = vmul.f32 %v1217_v52, %v1217_v52  ;;  %v1306_v60 = vadd.f32 %v1305_v56, %v3386_v39  ;;  %v1307_v61 = vpop.f32.mrb[5].mxu1 }
 0x1dd   : > { %v3402_v41 = vadd.f32 %v1932_v23, %v1302_v51  ;;  %v2064_v22 = vadd.f32 %v2063_v55, %v2000_v42  ;;  %1883 = vst [vmem:[%s3372_s9 + $0x108] sm:$0xff] %v1219_v57  ;;  %v1948_v1 = vadd.f32 %v1219_v57, %v1217_v52  ;;  %v2015_v63 = vmul.f32 %v1219_v57, %v1219_v57  ;;  %v1222_v43 = vpop.f32.mrb[6].mxu0 }
 0x1de   : > { %1884 = vst [vmem:[%s3372_s9 + $0x110] sm:$0xff] %v1306_v60  ;;  %v2016_v2 = vmul.f32 %v1306_v60, %v1306_v60  ;;  %v1308_v62 = vadd.f32 %v1307_v61, %v3386_v39  ;;  %v1223_v28 = vadd.f32 %v1222_v43, %v3400_v0  ;;  %v1224_v3 = vpop.f32.mrb[7].mxu0 }
 0x1df   : > { %v3408_v4 = vadd.f32 %v2064_v22, %v2001_v58  ;;  %v2080_v5 = vadd.f32 %v2015_v63, %v2014_v59  ;;  %v1949_v6 = vadd.f32 %v1948_v1, %v1306_v60  ;;  %v1311_v27 = vpop.f32.mrb[6].mxu1  ;;  %v1225_v40 = vadd.f32 %v1224_v3, %v3400_v0 }
 0x1e0   : > { %1885 = vst [vmem:[%s3372_s9 + $0x118] sm:$0xff] %v1308_v62  ;;  %v2017_v7 = vmul.f32 %v1308_v62, %v1308_v62  ;;  %1898 = vst [vmem:[%s3372_s9 + $0x180] sm:$0xff] %v1223_v28  ;;  %v2030_v8 = vmul.f32 %v1223_v28, %v1223_v28  ;;  %v1312_v10 = vadd.f32 %v1311_v27, %v3400_v0  ;;  %v1313_v11 = vpop.f32.mrb[7].mxu1 }
 0x1e1   : > { %v3414_v12 = vadd.f32 %v1949_v6, %v1308_v62  ;;  %v2081_v50 = vadd.f32 %v2080_v5, %v2016_v2  ;;  %1899 = vst [vmem:[%s3372_s9 + $0x188] sm:$0xff] %v1225_v40  ;;  %v1965_v14 = vadd.f32 %v1225_v40, %v1223_v28  ;;  %v2031_v15 = vmul.f32 %v1225_v40, %v1225_v40 }
 0x1e2   : > { %1900 = vst [vmem:[%s3372_s9 + $0x190] sm:$0xff] %v1312_v10  ;;  %v1314_v16 = vadd.f32 %v1313_v11, %v3400_v0  ;;  %v2032_v13 = vmul.f32 %v1312_v10, %v1312_v10 }
 0x1e3   : > { %v3419_v18 = vadd.f32 %v2081_v50, %v2017_v7  ;;  %v2097_v9 = vadd.f32 %v2031_v15, %v2030_v8  ;;  %v1966_v37 = vadd.f32 %v1965_v14, %v1312_v10 }
 0x1e4   : > { %1901 = vst [vmem:[%s3372_s9 + $0x198] sm:$0xff] %v1314_v16  ;;  %v1382_v20 = vpop.f32.mrb[8].mxu0  ;;  %v2033_v24 = vmul.f32 %v1314_v16, %v1314_v16 }
 0x1e5   : > { %v3422_v21 = vadd.f32 %v1966_v37, %v1314_v16  ;;  %v2098_v44 = vadd.f32 %v2097_v9, %v2032_v13  ;;  %v1383_v25 = vadd.f32 %v1382_v20, %v3367_v17  ;;  %v1384_v26 = vpop.f32.mrb[9].mxu0 }
 0x1e6   : > { %v1385_v29 = vadd.f32 %v1384_v26, %v3367_v17 }
 0x1e7   : > { %v3426_v30 = vadd.f32 %v2098_v44, %v2033_v24  ;;  %1854 = vst [vmem:[%s3372_s9 + $0x20] sm:$0xff] %v1383_v25  ;;  %v1917_v31 = vadd.f32 %v3388_v45, %v1383_v25  ;;  %v1986_v32 = vmul.f32 %v1383_v25, %v1383_v25  ;;  %v1471_v33 = vpop.f32.mrb[8].mxu1 }
 0x1e8   : > { %v1472_v34 = vadd.f32 %v1471_v33, %v3367_v17  ;;  %1855 = vst [vmem:[%s3372_s9 + $0x28] sm:$0xff] %v1385_v29  ;;  %v1987_v35 = vmul.f32 %v1385_v29, %v1385_v29  ;;  %v1473_v36 = vpop.f32.mrb[9].mxu1  ;;  %v1388_v38 = vpop.f32.mrb[10].mxu0 }
 0x1e9   : > { %v2049_v46 = vadd.f32 %v3394_v54, %v1986_v32  ;;  %v1918_v47 = vadd.f32 %v1917_v31, %v1385_v29  ;;  %v1474_v48 = vadd.f32 %v1473_v36, %v3367_v17  ;;  %v1389_v49 = vadd.f32 %v1388_v38, %v3376_v19  ;;  %v1390_v42 = vpop.f32.mrb[11].mxu0 }
 0x1ea   : > { %1856 = vst [vmem:[%s3372_s9 + $0x30] sm:$0xff] %v1472_v34  ;;  %v1391_v45 = vadd.f32 %v1390_v42, %v3376_v19  ;;  %v1988_v51 = vmul.f32 %v1472_v34, %v1472_v34 }
 0x1eb   : > { %v2050_v52 = vadd.f32 %v2049_v46, %v1987_v35  ;;  %1857 = vst [vmem:[%s3372_s9 + $0x38] sm:$0xff] %v1474_v48  ;;  %v1919_v53 = vadd.f32 %v1918_v47, %v1472_v34  ;;  %1870 = vst [vmem:[%s3372_s9 + $0xa0] sm:$0xff] %v1389_v49  ;;  %v1934_v55 = vadd.f32 %v3402_v41, %v1389_v49  ;;  %v1477_v23 = vpop.f32.mrb[10].mxu1 }
 0x1ec   : > { %v1989_v54 = vmul.f32 %v1474_v48, %v1474_v48  ;;  %v2002_v56 = vmul.f32 %v1389_v49, %v1389_v49  ;;  %v1478_v57 = vadd.f32 %v1477_v23, %v3376_v19  ;;  %1871 = vst [vmem:[%s3372_s9 + $0xa8] sm:$0xff] %v1391_v45  ;;  %v2003_v58 = vmul.f32 %v1391_v45, %v1391_v45  ;;  %v1479_v59 = vpop.f32.mrb[11].mxu1  ;;  %v1394_v60 = vpop.f32.mrb[12].mxu0 }
 0x1ed   : > { %v3442_v61 = vadd.f32 %v1919_v53, %v1474_v48  ;;  %v2051_v22 = vadd.f32 %v2050_v52, %v1988_v51  ;;  %v1935_v1 = vadd.f32 %v1934_v55, %v1391_v45  ;;  %v1480_v63 = vadd.f32 %v1479_v59, %v3376_v19  ;;  %v1396_v43 = vpop.f32.mrb[13].mxu0 }
 0x1ee   : > { %v2066_v41 = vadd.f32 %v3408_v4, %v2002_v56  ;;  %1872 = vst [vmem:[%s3372_s9 + $0xb0] sm:$0xff] %v1478_v57  ;;  %v1395_v2 = vadd.f32 %v1394_v60, %v3386_v39  ;;  %v1397_v62 = vadd.f32 %v1396_v43, %v3386_v39  ;;  %v2004_v3 = vmul.f32 %v1478_v57, %v1478_v57 }
 0x1ef   : > { %v3449_v28 = vadd.f32 %v2051_v22, %v1989_v54  ;;  %1873 = vst [vmem:[%s3372_s9 + $0xb8] sm:$0xff] %v1480_v63  ;;  %v1936_v5 = vadd.f32 %v1935_v1, %v1478_v57  ;;  %v2005_v10 = vmul.f32 %v1480_v63, %v1480_v63 }
 0x1f0   : > { %v2067_v6 = vadd.f32 %v2066_v41, %v2003_v58  ;;  %1886 = vst [vmem:[%s3372_s9 + $0x120] sm:$0xff] %v1395_v2  ;;  %v1951_v27 = vadd.f32 %v3414_v12, %v1395_v2  ;;  %v2018_v40 = vmul.f32 %v1395_v2, %v1395_v2  ;;  %v1483_v7 = vpop.f32.mrb[12].mxu1  ;;  %1887 = vst [vmem:[%s3372_s9 + $0x128] sm:$0xff] %v1397_v62 }
 0x1f1   : > { %v2019_v8 = vmul.f32 %v1397_v62, %v1397_v62  ;;  %v3455_v4 = vadd.f32 %v1936_v5, %v1480_v63  ;;  %v1484_v11 = vadd.f32 %v1483_v7, %v3386_v39  ;;  %v1485_v50 = vpop.f32.mrb[13].mxu1  ;;  %v1400_v14 = vpop.f32.mrb[14].mxu0 }
 0x1f2   : > { %v2068_v15 = vadd.f32 %v2067_v6, %v2004_v3  ;;  %v2083_v16 = vadd.f32 %v3419_v18, %v2018_v40  ;;  %v1952_v13 = vadd.f32 %v1951_v27, %v1397_v62  ;;  %v1486_v12 = vadd.f32 %v1485_v50, %v3386_v39  ;;  %v1402_v9 = vpop.f32.mrb[15].mxu0 }
 0x1f3   : > { %1888 = vst [vmem:[%s3372_s9 + $0x130] sm:$0xff] %v1484_v11  ;;  %v1401_v37 = vadd.f32 %v1400_v14, %v3400_v0  ;;  %v1403_v20 = vadd.f32 %v1402_v9, %v3400_v0  ;;  %v2020_v44 = vmul.f32 %v1484_v11, %v1484_v11 }
 0x1f4   : > { %v3463_v24 = vadd.f32 %v2068_v15, %v2005_v10  ;;  %v2084_v25 = vadd.f32 %v2083_v16, %v2019_v8  ;;  %1889 = vst [vmem:[%s3372_s9 + $0x138] sm:$0xff] %v1486_v12  ;;  %v1953_v26 = vadd.f32 %v1952_v13, %v1484_v11  ;;  %v1489_v29 = vpop.f32.mrb[14].mxu1  ;;  %v2021_v36 = vmul.f32 %v1486_v12, %v1486_v12 }
 0x1f5   : > { %1902 = vst [vmem:[%s3372_s9 + $0x1a0] sm:$0xff] %v1401_v37  ;;  %v1968_v18 = vadd.f32 %v3422_v21, %v1401_v37  ;;  %v2034_v31 = vmul.f32 %v1401_v37, %v1401_v37  ;;  %v1490_v32 = vadd.f32 %v1489_v29, %v3400_v0  ;;  %1903 = vst [vmem:[%s3372_s9 + $0x1a8] sm:$0xff] %v1403_v20  ;;  %v1491_v34 = vpop.f32.mrb[15].mxu1 }
 0x1f6   : > { %v2035_v33 = vmul.f32 %v1403_v20, %v1403_v20  ;;  %v3470_v35 = vadd.f32 %v1953_v26, %v1486_v12  ;;  %v2085_v38 = vadd.f32 %v2084_v25, %v2020_v44  ;;  %v1492_v46 = vadd.f32 %v1491_v34, %v3400_v0 }
 0x1f7   : > { %v2100_v47 = vadd.f32 %v3426_v30, %v2034_v31  ;;  %1904 = vst [vmem:[%s3372_s9 + $0x1b0] sm:$0xff] %v1490_v32  ;;  %v1969_v48 = vadd.f32 %v1968_v18, %v1403_v20  ;;  %v2036_v21 = vmul.f32 %v1490_v32, %v1490_v32 }
 0x1f8   : > { %v3475_v49 = vadd.f32 %v2085_v38, %v2021_v36  ;;  %1905 = vst [vmem:[%s3372_s9 + $0x1b8] sm:$0xff] %v1492_v46  ;;  %v2037_v53 = vmul.f32 %v1492_v46, %v1492_v46 }
 0x1f9   : > { %v2101_v42 = vadd.f32 %v2100_v47, %v2035_v33  ;;  %v1970_v45 = vadd.f32 %v1969_v48, %v1490_v32 }
 0x1fa   : > { %v1560_v51 = vpop.f32.mrb[16].mxu0 }
 0x1fb   : > { %v3478_v52 = vadd.f32 %v1970_v45, %v1492_v46  ;;  %v2102_v55 = vadd.f32 %v2101_v42, %v2036_v21  ;;  %v1561_v23 = vadd.f32 %v1560_v51, %v3367_v17  ;;  %v1562_v54 = vpop.f32.mrb[17].mxu0 }
 0x1fc   : > { %v1563_v30 = vadd.f32 %v1562_v54, %v3367_v17 }
 0x1fd   : > { %v3482_v56 = vadd.f32 %v2102_v55, %v2037_v53  ;;  %1858 = vst [vmem:[%s3372_s9 + $0x40] sm:$0xff] %v1561_v23  ;;  %v1921_v57 = vadd.f32 %v3442_v61, %v1561_v23  ;;  %v1990_v58 = vmul.f32 %v1561_v23, %v1561_v23  ;;  %v1649_v59 = vpop.f32.mrb[16].mxu1 }
 0x1fe   : > { %v1650_v60 = vadd.f32 %v1649_v59, %v3367_v17  ;;  %1859 = vst [vmem:[%s3372_s9 + $0x48] sm:$0xff] %v1563_v30  ;;  %v1991_v22 = vmul.f32 %v1563_v30, %v1563_v30  ;;  %v1651_v1 = vpop.f32.mrb[17].mxu1  ;;  %v1566_v63 = vpop.f32.mrb[18].mxu0 }
 0x1ff   : > { %v2053_v43 = vadd.f32 %v3449_v28, %v1990_v58  ;;  %v1922_v41 = vadd.f32 %v1921_v57, %v1563_v30  ;;  %v1652_v2 = vadd.f32 %v1651_v1, %v3367_v17  ;;  %v1567_v62 = vadd.f32 %v1566_v63, %v3376_v19  ;;  %v1568_v3 = vpop.f32.mrb[19].mxu0 }
 0x200   : > { %1860 = vst [vmem:[%s3372_s9 + $0x50] sm:$0xff] %v1650_v60  ;;  %v1569_v61 = vadd.f32 %v1568_v3, %v3376_v19  ;;  %v1992_v5 = vmul.f32 %v1650_v60, %v1650_v60 }
 0x201   : > { %v2054_v6 = vadd.f32 %v2053_v43, %v1991_v22  ;;  %1861 = vst [vmem:[%s3372_s9 + $0x58] sm:$0xff] %v1652_v2  ;;  %v1923_v27 = vadd.f32 %v1922_v41, %v1650_v60  ;;  %1874 = vst [vmem:[%s3372_s9 + $0xc0] sm:$0xff] %v1567_v62  ;;  %v1938_v40 = vadd.f32 %v3455_v4, %v1567_v62  ;;  %v1655_v7 = vpop.f32.mrb[18].mxu1 }
 0x202   : > { %v1993_v28 = vmul.f32 %v1652_v2, %v1652_v2  ;;  %v2006_v8 = vmul.f32 %v1567_v62, %v1567_v62  ;;  %v1656_v10 = vadd.f32 %v1655_v7, %v3376_v19  ;;  %1875 = vst [vmem:[%s3372_s9 + $0xc8] sm:$0xff] %v1569_v61  ;;  %v2007_v11 = vmul.f32 %v1569_v61, %v1569_v61  ;;  %v1657_v50 = vpop.f32.mrb[19].mxu1  ;;  %v1572_v14 = vpop.f32.mrb[20].mxu0 }
 0x203   : > { %v3498_v15 = vadd.f32 %v1923_v27, %v1652_v2  ;;  %v2055_v16 = vadd.f32 %v2054_v6, %v1992_v5  ;;  %v1939_v13 = vadd.f32 %v1938_v40, %v1569_v61  ;;  %v1658_v12 = vadd.f32 %v1657_v50, %v3376_v19  ;;  %v1574_v9 = vpop.f32.mrb[21].mxu0 }
 0x204   : > { %v2070_v4 = vadd.f32 %v3463_v24, %v2006_v8  ;;  %1876 = vst [vmem:[%s3372_s9 + $0xd0] sm:$0xff] %v1656_v10  ;;  %v1573_v37 = vadd.f32 %v1572_v14, %v3386_v39  ;;  %v1575_v20 = vadd.f32 %v1574_v9, %v3386_v39  ;;  %v2008_v25 = vmul.f32 %v1656_v10, %v1656_v10 }
 0x205   : > { %v3505_v44 = vadd.f32 %v2055_v16, %v1993_v28  ;;  %1877 = vst [vmem:[%s3372_s9 + $0xd8] sm:$0xff] %v1658_v12  ;;  %v1940_v26 = vadd.f32 %v1939_v13, %v1656_v10  ;;  %v2009_v34 = vmul.f32 %v1658_v12, %v1658_v12 }
 0x206   : > { %v2071_v29 = vadd.f32 %v2070_v4, %v2007_v11  ;;  %1890 = vst [vmem:[%s3372_s9 + $0x140] sm:$0xff] %v1573_v37  ;;  %v1955_v18 = vadd.f32 %v3470_v35, %v1573_v37  ;;  %v2022_v31 = vmul.f32 %v1573_v37, %v1573_v37  ;;  %v1661_v32 = vpop.f32.mrb[20].mxu1  ;;  %1891 = vst [vmem:[%s3372_s9 + $0x148] sm:$0xff] %v1575_v20 }
 0x207   : > { %v2023_v33 = vmul.f32 %v1575_v20, %v1575_v20  ;;  %v3511_v24 = vadd.f32 %v1940_v26, %v1658_v12  ;;  %v1662_v36 = vadd.f32 %v1661_v32, %v3386_v39  ;;  %v1663_v38 = vpop.f32.mrb[21].mxu1  ;;  %v1578_v46 = vpop.f32.mrb[22].mxu0 }
 0x208   : > { %v2072_v47 = vadd.f32 %v2071_v29, %v2008_v25  ;;  %v2087_v48 = vadd.f32 %v3475_v49, %v2022_v31  ;;  %v1956_v21 = vadd.f32 %v1955_v18, %v1575_v20  ;;  %v1664_v35 = vadd.f32 %v1663_v38, %v3386_v39  ;;  %v1580_v42 = vpop.f32.mrb[23].mxu0 }
 0x209   : > { %1892 = vst [vmem:[%s3372_s9 + $0x150] sm:$0xff] %v1662_v36  ;;  %v1579_v45 = vadd.f32 %v1578_v46, %v3400_v0  ;;  %v1581_v51 = vadd.f32 %v1580_v42, %v3400_v0  ;;  %v2024_v55 = vmul.f32 %v1662_v36, %v1662_v36 }
 0x20a   : > { %v3519_v53 = vadd.f32 %v2072_v47, %v2009_v34  ;;  %v2088_v23 = vadd.f32 %v2087_v48, %v2023_v33  ;;  %1893 = vst [vmem:[%s3372_s9 + $0x158] sm:$0xff] %v1664_v35  ;;  %v1957_v54 = vadd.f32 %v1956_v21, %v1662_v36  ;;  %v1667_v30 = vpop.f32.mrb[22].mxu1  ;;  %v2025_v1 = vmul.f32 %v1664_v35, %v1664_v35 }
 0x20b   : > { %1906 = vst [vmem:[%s3372_s9 + $0x1c0] sm:$0xff] %v1579_v45  ;;  %v1972_v49 = vadd.f32 %v3478_v52, %v1579_v45  ;;  %v2038_v57 = vmul.f32 %v1579_v45, %v1579_v45  ;;  %v1668_v58 = vadd.f32 %v1667_v30, %v3400_v0  ;;  %1907 = vst [vmem:[%s3372_s9 + $0x1c8] sm:$0xff] %v1581_v51  ;;  %v1669_v60 = vpop.f32.mrb[23].mxu1 }
 0x20c   : > { %v2039_v59 = vmul.f32 %v1581_v51, %v1581_v51  ;;  %v1958_v22 = vadd.f32 %v1957_v54, %v1664_v35  ;;  %v2089_v63 = vadd.f32 %v2088_v23, %v2024_v55  ;;  %v1670_v43 = vadd.f32 %v1669_v60, %v3400_v0 }
 0x20d   : > { %v2104_v41 = vadd.f32 %v3482_v56, %v2038_v57  ;;  %1908 = vst [vmem:[%s3372_s9 + $0x1d0] sm:$0xff] %v1668_v58  ;;  %v1973_v2 = vadd.f32 %v1972_v49, %v1581_v51  ;;  %v2040_v52 = vmul.f32 %v1668_v58, %v1668_v58 }
 0x20e   : > { %v3529_v62 = vadd.f32 %v2089_v63, %v2025_v1  ;;  %1909 = vst [vmem:[%s3372_s9 + $0x1d8] sm:$0xff] %v1670_v43  ;;  %v2041_v27 = vmul.f32 %v1670_v43, %v1670_v43 }
 0x20f   : > { %v2105_v3 = vadd.f32 %v2104_v41, %v2039_v59  ;;  %v1974_v61 = vadd.f32 %v1973_v2, %v1668_v58 }
 0x210   : > { %v1738_v5 = vpop.f32.mrb[24].mxu0 }
 0x211   : > { %v3532_v6 = vadd.f32 %v1974_v61, %v1670_v43  ;;  %v2106_v40 = vadd.f32 %v2105_v3, %v2040_v52  ;;  %v1739_v7 = vadd.f32 %v1738_v5, %v3367_v17  ;;  %v1740_v28 = vpop.f32.mrb[25].mxu0 }
 0x212   : > { %v1741_v56 = vadd.f32 %v1740_v28, %v3367_v17 }
 0x213   : > { %v3536_v8 = vadd.f32 %v2106_v40, %v2041_v27  ;;  %1862 = vst [vmem:[%s3372_s9 + $0x60] sm:$0xff] %v1739_v7  ;;  %v1925_v10 = vadd.f32 %v3498_v15, %v1739_v7  ;;  %v1994_v11 = vmul.f32 %v1739_v7, %v1739_v7  ;;  %v1827_v50 = vpop.f32.mrb[24].mxu1 }
 0x214   : > { %v1828_v14 = vadd.f32 %v1827_v50, %v3367_v17  ;;  %1863 = vst [vmem:[%s3372_s9 + $0x68] sm:$0xff] %v1741_v56  ;;  %v1995_v16 = vmul.f32 %v1741_v56, %v1741_v56  ;;  %v1829_v13 = vpop.f32.mrb[25].mxu1  ;;  %v1744_v12 = vpop.f32.mrb[26].mxu0 }
 0x215   : > { %v2057_v9 = vadd.f32 %v3505_v44, %v1994_v11  ;;  %v1926_v4 = vadd.f32 %v1925_v10, %v1741_v56  ;;  %v1830_v37 = vadd.f32 %v1829_v13, %v3367_v17  ;;  %v1745_v20 = vadd.f32 %v1744_v12, %v3376_v19  ;;  %v1746_v25 = vpop.f32.mrb[27].mxu0 }
 0x216   : > { %1864 = vst [vmem:[%s3372_s9 + $0x70] sm:$0xff] %v1828_v14  ;;  %v1747_v15 = vadd.f32 %v1746_v25, %v3376_v19  ;;  %v1996_v26 = vmul.f32 %v1828_v14, %v1828_v14 }
 0x217   : > { %1865 = vst [vmem:[%s3372_s9 + $0x78] sm:$0xff] %v1830_v37  ;;  %1878 = vst [vmem:[%s3372_s9 + $0xe0] sm:$0xff] %v1745_v20  ;;  %v1942_v29 = vadd.f32 %v3511_v24, %v1745_v20  ;;  %v2010_v18 = vmul.f32 %v1745_v20, %v1745_v20  ;;  %v1833_v31 = vpop.f32.mrb[26].mxu1  ;;  %v1927_v32 = vadd.f32 %v1926_v4, %v1828_v14 }
 0x218   : > { %v1834_v44 = vadd.f32 %v1833_v31, %v3376_v19  ;;  %1879 = vst [vmem:[%s3372_s9 + $0xe8] sm:$0xff] %v1747_v15  ;;  %v2011_v17 = vmul.f32 %v1747_v15, %v1747_v15  ;;  %v1835_v33 = vpop.f32.mrb[27].mxu1  ;;  %v1750_v34 = vpop.f32.mrb[28].mxu0  ;;  %v1997_v36 = vmul.f32 %v1830_v37, %v1830_v37  ;;  %v2058_v38 = vadd.f32 %v2057_v9, %v1995_v16 }
 0x219   : > { %v2074_v46 = vadd.f32 %v3519_v53, %v2010_v18  ;;  %v1943_v47 = vadd.f32 %v1942_v29, %v1747_v15  ;;  %v1836_v48 = vadd.f32 %v1835_v33, %v3376_v19  ;;  %v1751_v24 = vadd.f32 %v1750_v34, %v3386_v39  ;;  %v1752_v21 = vpop.f32.mrb[29].mxu0  ;;  %v2150_v33 = vld [vmem:[%s3372_s9] sm:$0xff] (%p2633_p5)  ;;  %v2152_v34 = vld [vmem:[%s3372_s9 + $0x8] sm:$0xff] (%p2633_p5) }
 0x21a   : > { %1880 = vst [vmem:[%s3372_s9 + $0xf0] sm:$0xff] %v1834_v44  ;;  %v2012_v35 = vmul.f32 %v1834_v44, %v1834_v44  ;;  %v1753_v42 = vadd.f32 %v1752_v21, %v3386_v39  ;;  %v1928_v45 = vadd.f32 %v1927_v32, %v1830_v37  ;;  %v2059_v51 = vadd.f32 %v2058_v38, %v1996_v26  ;;  %v2156_v38 = vld [vmem:[%s3372_s9 + $0x18] sm:$0xff] (%p2633_p5)  ;;  %v2166_v21 = vld [vmem:[%s3372_s9 + $0x40] sm:$0xff] (%p2633_p5) }
 0x21b   : > { %1881 = vst [vmem:[%s3372_s9 + $0xf8] sm:$0xff] %v1836_v48  ;;  %1894 = vst [vmem:[%s3372_s9 + $0x160] sm:$0xff] %v1751_v24  ;;  %v1959_v55 = vadd.f32 %v1958_v22, %v1751_v24  ;;  %v2026_v23 = vmul.f32 %v1751_v24, %v1751_v24  ;;  %v1839_v54 = vpop.f32.mrb[28].mxu1  ;;  %v1944_v53 = vadd.f32 %v1943_v47, %v1834_v44  ;;  %v2160_v47 = vld [vmem:[%s3372_s9 + $0x28] sm:$0xff] (%p2633_p5)  ;;  %v2164_v24 = vld [vmem:[%s3372_s9 + $0x38] sm:$0xff] (%p2633_p5) }
 0x21c   : > { %v2013_v30 = vmul.f32 %v1836_v48, %v1836_v48  ;;  %v1840_v19 = vadd.f32 %v1839_v54, %v3386_v39  ;;  %1895 = vst [vmem:[%s3372_s9 + $0x168] sm:$0xff] %v1753_v42  ;;  %v2027_v49 = vmul.f32 %v1753_v42, %v1753_v42  ;;  %v1841_v57 = vpop.f32.mrb[29].mxu1  ;;  %1929 = vadd.xlane.f32.xlu0 %v1928_v45  ;;  %v1756_v58 = vpop.f32.mrb[30].mxu0  ;;  %2151 = vst [vmem:[%s3597_s24] sm:$0xff] (%p2633_p5), %v2150_v33  ;;  %v2172_v45 = vld [vmem:[%s3372_s9 + $0x58] sm:$0xff] (%p2633_p5) }
 0x21d   : > { %v2060_v59 = vadd.f32 %v2059_v51, %v1997_v36  ;;  %v2075_v60 = vadd.f32 %v2074_v46, %v2011_v17  ;;  %v2091_v1 = vadd.f32 %v3529_v62, %v2026_v23  ;;  %v1960_v63 = vadd.f32 %v1959_v55, %v1753_v42  ;;  %v1758_v41 = vpop.f32.mrb[31].mxu0  ;;  %v2154_v36 = vld [vmem:[%s3372_s9 + $0x10] sm:$0xff] (%p2633_p5)  ;;  %v2158_v46 = vld [vmem:[%s3372_s9 + $0x20] sm:$0xff] (%p2633_p5)  ;;  %2153 = vst [vmem:[%s3597_s24 + $0x8] sm:$0xff] (%p2633_p5), %v2152_v34  ;;  %v2176_v55 = vld [vmem:[%s3372_s9 + $0x68] sm:$0xff] (%p2633_p5) }
 0x21e   : > { %v1842_v22 = vadd.f32 %v1841_v57, %v3386_v39  ;;  %v1757_v43 = vadd.f32 %v1756_v58, %v3400_v0  ;;  %1896 = vst [vmem:[%s3372_s9 + $0x170] sm:$0xff] %v1840_v19  ;;  %v2028_v2 = vmul.f32 %v1840_v19, %v1840_v19  ;;  %v1759_v52 = vadd.f32 %v1758_v41, %v3400_v0  ;;  %v2170_v42 = vld [vmem:[%s3372_s9 + $0x50] sm:$0xff] (%p2633_p5)  ;;  %v2174_v51 = vld [vmem:[%s3372_s9 + $0x60] sm:$0xff] (%p2633_p5)  ;;  %v2180_v54 = vld [vmem:[%s3372_s9 + $0x78] sm:$0xff] (%p2633_p5) }
 0x21f   : > { %2061 = vadd.xlane.f32.xlu1 %v2060_v59  ;;  %v1945_v3 = vadd.f32 %v1944_v53, %v1836_v48  ;;  %v2076_v61 = vadd.f32 %v2075_v60, %v2012_v35  ;;  %v1845_v27 = vpop.f32.mrb[30].mxu1  ;;  %v2092_v39 = vadd.f32 %v2091_v1, %v2027_v49  ;;  %v1961_v11 = vadd.f32 %v1960_v63, %v1840_v19  ;;  %v2162_v48 = vld [vmem:[%s3372_s9 + $0x30] sm:$0xff] (%p2633_p5)  ;;  %v2168_v35 = vld [vmem:[%s3372_s9 + $0x48] sm:$0xff] (%p2633_p5)  ;;  %v2182_v53 = vld [vmem:[%s3372_s9 + $0x80] sm:$0xff] (%p2633_p5) }
 0x220   : > { %1897 = vst [vmem:[%s3372_s9 + $0x178] sm:$0xff] %v1842_v22  ;;  %1910 = vst [vmem:[%s3372_s9 + $0x1e0] sm:$0xff] %v1757_v43  ;;  %v1976_v5 = vadd.f32 %v3532_v6, %v1757_v43  ;;  %v2042_v62 = vmul.f32 %v1757_v43, %v1757_v43  ;;  %v2029_v40 = vmul.f32 %v1842_v22, %v1842_v22  ;;  %v1847_v56 = vpop.f32.mrb[31].mxu1  ;;  %v2178_v23 = vld [vmem:[%s3372_s9 + $0x70] sm:$0xff] (%p2633_p5)  ;;  %v2188_v49 = vld [vmem:[%s3372_s9 + $0x98] sm:$0xff] (%p2633_p5) }
 0x221   : > { %v1846_v7 = vadd.f32 %v1845_v27, %v3400_v0  ;;  %1911 = vst [vmem:[%s3372_s9 + $0x1e8] sm:$0xff] %v1759_v52  ;;  %v2043_v28 = vmul.f32 %v1759_v52, %v1759_v52  ;;  %v2077_v10 = vadd.f32 %v2076_v61, %v2013_v30  ;;  %v1848_v16 = vadd.f32 %v1847_v56, %v3400_v0  ;;  %v2184_v30 = vld [vmem:[%s3372_s9 + $0x88] sm:$0xff] (%p2633_p5)  ;;  %v2186_v19 = vld [vmem:[%s3372_s9 + $0x90] sm:$0xff] (%p2633_p5)  ;;  %v2190_v57 = vld [vmem:[%s3372_s9 + $0xa0] sm:$0xff] (%p2633_p5) }
 0x222   : > { %v2108_v50 = vadd.f32 %v3536_v8, %v2042_v62  ;;  %v1977_v14 = vadd.f32 %v1976_v5, %v1759_v52  ;;  %v2093_v13 = vadd.f32 %v2092_v39, %v2028_v2  ;;  %v1962_v6 = vadd.f32 %v1961_v11, %v1842_v22  ;;  %2155 = vst [vmem:[%s3597_s24 + $0x10] sm:$0xff] (%p2633_p5), %v2154_v36  ;;  %v2192_v58 = vld [vmem:[%s3372_s9 + $0xa8] sm:$0xff] (%p2633_p5)  ;;  %v2194_v59 = vld [vmem:[%s3372_s9 + $0xb0] sm:$0xff] (%p2633_p5)  ;;  %v2196_v60 = vld [vmem:[%s3372_s9 + $0xb8] sm:$0xff] (%p2633_p5) }
 0x223   : > { %1912 = vst [vmem:[%s3372_s9 + $0x1f0] sm:$0xff] %v1846_v7  ;;  %1946 = vadd.xlane.f32.xlu1 %v1945_v3  ;;  %2078 = vadd.xlane.f32.xlu0 %v2077_v10  ;;  %v2044_v12 = vmul.f32 %v1846_v7, %v1846_v7  ;;  %1913 = vst [vmem:[%s3372_s9 + $0x1f8] sm:$0xff] %v1848_v16  ;;  %v2045_v25 = vmul.f32 %v1848_v16, %v1848_v16  ;;  %v2198_v1 = vld [vmem:[%s3372_s9 + $0xc0] sm:$0xff] (%p2633_p5)  ;;  %v2200_v63 = vld [vmem:[%s3372_s9 + $0xc8] sm:$0xff] (%p2633_p5) }
 0x224   : > { %v2094_v9 = vadd.f32 %v2093_v13, %v2029_v40  ;;  %v1978_v4 = vadd.f32 %v1977_v14, %v1846_v7  ;;  %v2109_v37 = vadd.f32 %v2108_v50, %v2043_v28  ;;  %2157 = vst [vmem:[%s3597_s24 + $0x18] sm:$0xff] (%p2633_p5), %v2156_v38  ;;  %2159 = vst [vmem:[%s3597_s24 + $0x20] sm:$0xff] (%p2633_p5), %v2158_v46  ;;  %v2202_v22 = vld [vmem:[%s3372_s9 + $0xd0] sm:$0xff] (%p2633_p5)  ;;  %v2204_v43 = vld [vmem:[%s3372_s9 + $0xd8] sm:$0xff] (%p2633_p5) }
 0x225   : > { %2161 = vst [vmem:[%s3597_s24 + $0x28] sm:$0xff] (%p2633_p5), %v2160_v47  ;;  %2163 = vst [vmem:[%s3597_s24 + $0x30] sm:$0xff] (%p2633_p5), %v2162_v48  ;;  %v2206_v41 = vld [vmem:[%s3372_s9 + $0xe0] sm:$0xff] (%p2633_p5)  ;;  %v2208_v2 = vld [vmem:[%s3372_s9 + $0xe8] sm:$0xff] (%p2633_p5) }
 0x226   : > { %v1979_v20 = vadd.f32 %v1978_v4, %v1848_v16  ;;  %v2110_v15 = vadd.f32 %v2109_v37, %v2044_v12  ;;  %2165 = vst [vmem:[%s3597_s24 + $0x38] sm:$0xff] (%p2633_p5), %v2164_v24  ;;  %2167 = vst [vmem:[%s3597_s24 + $0x40] sm:$0xff] (%p2633_p5), %v2166_v21  ;;  %v2210_v52 = vld [vmem:[%s3372_s9 + $0xf0] sm:$0xff] (%p2633_p5)  ;;  %v2212_v3 = vld [vmem:[%s3372_s9 + $0xf8] sm:$0xff] (%p2633_p5) }
 0x227   : > { %2095 = vadd.xlane.f32.xlu1 %v2094_v9  ;;  %1963 = vadd.xlane.f32.xlu0 %v1962_v6  ;;  %2169 = vst [vmem:[%s3597_s24 + $0x48] sm:$0xff] (%p2633_p5), %v2168_v35  ;;  %2171 = vst [vmem:[%s3597_s24 + $0x50] sm:$0xff] (%p2633_p5), %v2170_v42  ;;  %v2214_v61 = vld [vmem:[%s3372_s9 + $0x100] sm:$0xff] (%p2633_p5)  ;;  %v2216_v5 = vld [vmem:[%s3372_s9 + $0x108] sm:$0xff] (%p2633_p5) }
 0x228   : > { %v2111_v8 = vadd.f32 %v2110_v15, %v2045_v25  ;;  %2173 = vst [vmem:[%s3597_s24 + $0x58] sm:$0xff] (%p2633_p5), %v2172_v45  ;;  %2175 = vst [vmem:[%s3597_s24 + $0x60] sm:$0xff] (%p2633_p5), %v2174_v51  ;;  %v2218_v62 = vld [vmem:[%s3372_s9 + $0x110] sm:$0xff] (%p2633_p5)  ;;  %v2220_v27 = vld [vmem:[%s3372_s9 + $0x118] sm:$0xff] (%p2633_p5) }
 0x229   : > { %2177 = vst [vmem:[%s3597_s24 + $0x68] sm:$0xff] (%p2633_p5), %v2176_v55  ;;  %2179 = vst [vmem:[%s3597_s24 + $0x70] sm:$0xff] (%p2633_p5), %v2178_v23  ;;  %v2222_v40 = vld [vmem:[%s3372_s9 + $0x120] sm:$0xff] (%p2633_p5)  ;;  %v2224_v39 = vld [vmem:[%s3372_s9 + $0x128] sm:$0xff] (%p2633_p5) }
 0x22a   : > { %2181 = vst [vmem:[%s3597_s24 + $0x78] sm:$0xff] (%p2633_p5), %v2180_v54  ;;  %2183 = vst [vmem:[%s3597_s24 + $0x100] sm:$0xff] (%p2633_p5), %v2182_v53  ;;  %v2226_v7 = vld [vmem:[%s3372_s9 + $0x130] sm:$0xff] (%p2633_p5)  ;;  %v2228_v28 = vld [vmem:[%s3372_s9 + $0x138] sm:$0xff] (%p2633_p5) }
 0x22b   : > { %1980 = vadd.xlane.f32.xlu0 %v1979_v20  ;;  %2185 = vst [vmem:[%s3597_s24 + $0x108] sm:$0xff] (%p2633_p5), %v2184_v30  ;;  %2187 = vst [vmem:[%s3597_s24 + $0x110] sm:$0xff] (%p2633_p5), %v2186_v19  ;;  %v2230_v56 = vld [vmem:[%s3372_s9 + $0x140] sm:$0xff] (%p2633_p5)  ;;  %v2232_v10 = vld [vmem:[%s3372_s9 + $0x148] sm:$0xff] (%p2633_p5) }
 0x22c   : > { %2189 = vst [vmem:[%s3597_s24 + $0x118] sm:$0xff] (%p2633_p5), %v2188_v49  ;;  %2191 = vst [vmem:[%s3597_s24 + $0x120] sm:$0xff] (%p2633_p5), %v2190_v57  ;;  %v2234_v11 = vld [vmem:[%s3372_s9 + $0x150] sm:$0xff] (%p2633_p5)  ;;  %v2236_v50 = vld [vmem:[%s3372_s9 + $0x158] sm:$0xff] (%p2633_p5) }
 0x22d   : > { %2193 = vst [vmem:[%s3597_s24 + $0x128] sm:$0xff] (%p2633_p5), %v2192_v58  ;;  %2195 = vst [vmem:[%s3597_s24 + $0x130] sm:$0xff] (%p2633_p5), %v2194_v59  ;;  %v2238_v14 = vld [vmem:[%s3372_s9 + $0x160] sm:$0xff] (%p2633_p5)  ;;  %v2240_v16 = vld [vmem:[%s3372_s9 + $0x168] sm:$0xff] (%p2633_p5) }
 0x22e   : > { %2197 = vst [vmem:[%s3597_s24 + $0x138] sm:$0xff] (%p2633_p5), %v2196_v60  ;;  %2199 = vst [vmem:[%s3597_s24 + $0x140] sm:$0xff] (%p2633_p5), %v2198_v1  ;;  %v2242_v13 = vld [vmem:[%s3372_s9 + $0x170] sm:$0xff] (%p2633_p5)  ;;  %v2244_v6 = vld [vmem:[%s3372_s9 + $0x178] sm:$0xff] (%p2633_p5) }
 0x22f   : > { %2112 = vadd.xlane.f32.xlu0 %v2111_v8  ;;  %2201 = vst [vmem:[%s3597_s24 + $0x148] sm:$0xff] (%p2633_p5), %v2200_v63  ;;  %2203 = vst [vmem:[%s3597_s24 + $0x150] sm:$0xff] (%p2633_p5), %v2202_v22  ;;  %v2246_v12 = vld [vmem:[%s3372_s9 + $0x180] sm:$0xff] (%p2633_p5)  ;;  %v2248_v9 = vld [vmem:[%s3372_s9 + $0x188] sm:$0xff] (%p2633_p5) }
 0x230   : > { %2205 = vst [vmem:[%s3597_s24 + $0x158] sm:$0xff] (%p2633_p5), %v2204_v43  ;;  %2207 = vst [vmem:[%s3597_s24 + $0x160] sm:$0xff] (%p2633_p5), %v2206_v41  ;;  %v2250_v4 = vld [vmem:[%s3372_s9 + $0x190] sm:$0xff] (%p2633_p5)  ;;  %v2252_v37 = vld [vmem:[%s3372_s9 + $0x198] sm:$0xff] (%p2633_p5) }
 0x231   : > { %2209 = vst [vmem:[%s3597_s24 + $0x168] sm:$0xff] (%p2633_p5), %v2208_v2  ;;  %2211 = vst [vmem:[%s3597_s24 + $0x170] sm:$0xff] (%p2633_p5), %v2210_v52  ;;  %v2254_v20 = vld [vmem:[%s3372_s9 + $0x1a0] sm:$0xff] (%p2633_p5)  ;;  %v2256_v25 = vld [vmem:[%s3372_s9 + $0x1a8] sm:$0xff] (%p2633_p5) }
 0x232   : > { %2213 = vst [vmem:[%s3597_s24 + $0x178] sm:$0xff] (%p2633_p5), %v2212_v3  ;;  %2215 = vst [vmem:[%s3597_s24 + $0x200] sm:$0xff] (%p2633_p5), %v2214_v61  ;;  %v2258_v15 = vld [vmem:[%s3372_s9 + $0x1b0] sm:$0xff] (%p2633_p5)  ;;  %v2260_v8 = vld [vmem:[%s3372_s9 + $0x1b8] sm:$0xff] (%p2633_p5) }
 0x233   : > { %2217 = vst [vmem:[%s3597_s24 + $0x208] sm:$0xff] (%p2633_p5), %v2216_v5  ;;  %2219 = vst [vmem:[%s3597_s24 + $0x210] sm:$0xff] (%p2633_p5), %v2218_v62 }
 0x234   : > { %2221 = vst [vmem:[%s3597_s24 + $0x218] sm:$0xff] (%p2633_p5), %v2220_v27  ;;  %2223 = vst [vmem:[%s3597_s24 + $0x220] sm:$0xff] (%p2633_p5), %v2222_v40 }
 0x235   : > { %2225 = vst [vmem:[%s3597_s24 + $0x228] sm:$0xff] (%p2633_p5), %v2224_v39  ;;  %2227 = vst [vmem:[%s3597_s24 + $0x230] sm:$0xff] (%p2633_p5), %v2226_v7 }
 0x236   : > { %2229 = vst [vmem:[%s3597_s24 + $0x238] sm:$0xff] (%p2633_p5), %v2228_v28  ;;  %2231 = vst [vmem:[%s3597_s24 + $0x240] sm:$0xff] (%p2633_p5), %v2230_v56 }
 0x237   : > { %2233 = vst [vmem:[%s3597_s24 + $0x248] sm:$0xff] (%p2633_p5), %v2232_v10  ;;  %2235 = vst [vmem:[%s3597_s24 + $0x250] sm:$0xff] (%p2633_p5), %v2234_v11 }
 0x238   : > { %2237 = vst [vmem:[%s3597_s24 + $0x258] sm:$0xff] (%p2633_p5), %v2236_v50  ;;  %2239 = vst [vmem:[%s3597_s24 + $0x260] sm:$0xff] (%p2633_p5), %v2238_v14 }
 0x239   : > { %2241 = vst [vmem:[%s3597_s24 + $0x268] sm:$0xff] (%p2633_p5), %v2240_v16  ;;  %2243 = vst [vmem:[%s3597_s24 + $0x270] sm:$0xff] (%p2633_p5), %v2242_v13 }
 0x23a   : > { %2245 = vst [vmem:[%s3597_s24 + $0x278] sm:$0xff] (%p2633_p5), %v2244_v6  ;;  %2247 = vst [vmem:[%s3597_s24 + $0x300] sm:$0xff] (%p2633_p5), %v2246_v12 }
 0x23b   : > { %2249 = vst [vmem:[%s3597_s24 + $0x308] sm:$0xff] (%p2633_p5), %v2248_v9  ;;  %2251 = vst [vmem:[%s3597_s24 + $0x310] sm:$0xff] (%p2633_p5), %v2250_v4 }
 0x23c   : > { %2253 = vst [vmem:[%s3597_s24 + $0x318] sm:$0xff] (%p2633_p5), %v2252_v37  ;;  %2255 = vst [vmem:[%s3597_s24 + $0x320] sm:$0xff] (%p2633_p5), %v2254_v20 }
 0x23d   : > { %2257 = vst [vmem:[%s3597_s24 + $0x328] sm:$0xff] (%p2633_p5), %v2256_v25  ;;  %2259 = vst [vmem:[%s3597_s24 + $0x330] sm:$0xff] (%p2633_p5), %v2258_v15 }
 0x23e   : > { %2261 = vst [vmem:[%s3597_s24 + $0x338] sm:$0xff] (%p2633_p5), %v2260_v8 }
 0x2a9   : > { %v1930_v0 = vpop.xlane.xlu0 %1929 }
 0x2aa   : > { %2115 = vst.msk [vmem:[%s600_s26] sm:$0xff] %vm2114_vm1, %v1930_v0  ;;  %v2262_v0 = vld [vmem:[%s3372_s9 + $0x1c0] sm:$0xff] (%p2633_p5) }
 0x2ab   : > { %2263 = vst [vmem:[%s3597_s24 + $0x340] sm:$0xff] (%p2633_p5), %v2262_v0 }
 0x2ac   : > { %v2062_v26 = vpop.xlane.xlu1 %2061 }
 0x2ad   : > { %2119 = vst.msk [vmem:[%s600_s26 + $0x20] sm:$0xff] %vm2114_vm1, %v2062_v26  ;;  %v2264_v26 = vld [vmem:[%s3372_s9 + $0x1c8] sm:$0xff] (%p2633_p5) }
 0x2ae   : > { %2265 = vst [vmem:[%s3597_s24 + $0x348] sm:$0xff] (%p2633_p5), %v2264_v26 }
 0x2b0   : > { %v1947_v29 = vpop.xlane.xlu1 %1946  ;;  %v2079_v18 = vpop.xlane.xlu0 %2078 }
 0x2b1   : > { %2116 = vst.msk [vmem:[%s600_s26 + $0x8] sm:$0xff] %vm2114_vm1, %v1947_v29  ;;  %2120 = vst.msk [vmem:[%s600_s26 + $0x28] sm:$0xff] %vm2114_vm1, %v2079_v18  ;;  %v2266_v29 = vld [vmem:[%s3372_s9 + $0x1d0] sm:$0xff] (%p2633_p5)  ;;  %v2268_v18 = vld [vmem:[%s3372_s9 + $0x1d8] sm:$0xff] (%p2633_p5) }
 0x2b2   : > { %2267 = vst [vmem:[%s3597_s24 + $0x350] sm:$0xff] (%p2633_p5), %v2266_v29  ;;  %2269 = vst [vmem:[%s3597_s24 + $0x358] sm:$0xff] (%p2633_p5), %v2268_v18 }
 0x2b4   : > { %v2096_v31 = vpop.xlane.xlu1 %2095  ;;  %v1964_v32 = vpop.xlane.xlu0 %1963 }
 0x2b5   : > { %2121 = vst.msk [vmem:[%s600_s26 + $0x30] sm:$0xff] %vm2114_vm1, %v2096_v31  ;;  %2117 = vst.msk [vmem:[%s600_s26 + $0x10] sm:$0xff] %vm2114_vm1, %v1964_v32  ;;  %v2270_v31 = vld [vmem:[%s3372_s9 + $0x1e0] sm:$0xff] (%p2633_p5)  ;;  %v2272_v32 = vld [vmem:[%s3372_s9 + $0x1e8] sm:$0xff] (%p2633_p5) }
 0x2b6   : > { %2271 = vst [vmem:[%s3597_s24 + $0x360] sm:$0xff] (%p2633_p5), %v2270_v31  ;;  %2273 = vst [vmem:[%s3597_s24 + $0x368] sm:$0xff] (%p2633_p5), %v2272_v32 }
 0x2b7   : > { %2134 = sbr.rel (!%p2633_p5) target bundleno = 703 (0x2bf), region = 94 }
 0x2b8   : > { %v1981_v44 = vpop.xlane.xlu0 %1980 }
 0x2b9   : > { %2118 = vst.msk [vmem:[%s600_s26 + $0x18] sm:$0xff] %vm2114_vm1, %v1981_v44  ;;  %v2274_v44 = vld [vmem:[%s3372_s9 + $0x1f0] sm:$0xff] (%p2633_p5) }
 0x2ba   : > { %2275 = vst [vmem:[%s3597_s24 + $0x370] sm:$0xff] (%p2633_p5), %v2274_v44 }
 0x2bc   : > { %v2113_v17 = vpop.xlane.xlu0 %2112 }
 0x2bd   : > { %2122 = vst.msk [vmem:[%s600_s26 + $0x38] sm:$0xff] %vm2114_vm1, %v2113_v17  ;;  %v2276_v17 = vld [vmem:[%s3372_s9 + $0x1f8] sm:$0xff] (%p2633_p5) }
 0x2be   : > { %2277 = vst [vmem:[%s3597_s24 + $0x378] sm:$0xff] %v2276_v17 }
 0x2bf PF: > { %p15_p11 = scmp.ge.s32.totalorder %s2617_s28, 4   ;;  %s3744_s24 = smov %s2550_s25 }
 0x2c0   : > { %s3745_s25 = smov %s2627_s8  ;;  %s3746_s26 = smov %s2617_s28 }
 0x2c1   :  { %17 = sbr.rel (!%p15_p11) target bundleno = 2 (0x2), region = 168 }

</bundles_post_ra>
